<compile_context>
chip_gen: v7x
topology: tpu7x:2x2x1
jax: 0.10.0
libtpu: 0.0.40
codegen_flags: <defaults>
</compile_context>

<pallas_src>
import functools
import math

import jax
import jax.numpy as jnp
from jax.experimental import pallas as pl
from jax.experimental.pallas import tpu as pltpu


# ----------------------------- Pallas kernel -------------------------------


def _layernorm(x, gamma, beta, eps=1e-5):
    mean = jnp.mean(x, axis=-1, keepdims=True)
    var = jnp.mean((x - mean) ** 2, axis=-1, keepdims=True)
    return (x - mean) * jax.lax.rsqrt(var + eps) * gamma + beta


def encoder_kernel(
    num_heads, f_tile,
    # inputs
    src_ref, pos_ref, mask_ref,
    wqk_ref, bqk_ref, wv_ref, bv_ref, wo_ref, bo_ref,
    ln1g_ref, ln1b_ref,
    w1_ref, b1_ref, w2_ref, b2_ref,
    ln2g_ref, ln2b_ref,
    # outputs
    out_ref,
    # scratch
    state_ref,
):
    layer = pl.program_id(0)

    # Initialize the carried state with `src` on the first layer.
    @pl.when(layer == 0)
    def _():
        state_ref[...] = src_ref[...].astype(jnp.float32)

    x3 = state_ref[...]                               # (B, S, D) f32
    pos3 = pos_ref[...].astype(jnp.float32)           # (B, S, D)
    mask = mask_ref[...].astype(jnp.float32)          # (S, S) additive

    B, S, D = x3.shape
    head_dim = D // num_heads
    scale = 1.0 / math.sqrt(head_dim)
    N = B * S

    # Leading-dim flatten (B,S)->(B*S) is tile-aligned (S % 8 == 0): no copy.
    x2 = x3.reshape(N, D)
    pos2 = pos3.reshape(N, D)
    qk_in = (x2 + pos2).astype(jnp.bfloat16)          # bf16 MXU operands
    x_bf = x2.astype(jnp.bfloat16)

    # Fused Q/K projection: one (N, 2D) matmul (256-wide output on the MXU).
    qk_proj = jnp.dot(qk_in, wqk_ref[0],
                      preferred_element_type=jnp.float32) + bqk_ref[0]
    v2 = jnp.dot(x_bf, wv_ref[0],
                 preferred_element_type=jnp.float32) + bv_ref[0]

    # Lane slices at the D=128 boundary are vreg-aligned.
    q3 = (qk_proj[:, :D] * scale).astype(jnp.bfloat16).reshape(B, S, D)
    k3 = qk_proj[:, D:].astype(jnp.bfloat16).reshape(B, S, D)
    v3 = v2.astype(jnp.bfloat16).reshape(B, S, D)

    # Multi-head attention.  Each head's output is immediately contracted
    # against its Wo row-slice (zero-cost ref view) and the partial products
    # accumulated -> no head-concat, no sub-128-lane masked stores, no scratch.
    attn = jnp.zeros((N, D), jnp.float32)
    for h in range(num_heads):
        lo = h * head_dim
        hi = lo + head_dim
        s = jnp.einsum("bqd,bkd->bqk", q3[:, :, lo:hi], k3[:, :, lo:hi],
                       preferred_element_type=jnp.float32)
        s = s + mask                                   # (S,S) broadcast over B
        s = s - jnp.max(s, axis=-1, keepdims=True)
        p = jnp.exp(s)
        p = p * pl.reciprocal(jnp.sum(p, axis=-1, keepdims=True), approx=True)
        oh = jnp.einsum("bqk,bkd->bqd", p.astype(jnp.bfloat16),
                        v3[:, :, lo:hi], preferred_element_type=jnp.float32)
        attn = attn + jnp.dot(oh.astype(jnp.bfloat16).reshape(N, head_dim),
                              wo_ref[0, lo:hi, :],
                              preferred_element_type=jnp.float32)
    attn = attn + bo_ref[0]

    # residual + LayerNorm1 (f32)
    y = _layernorm(x2 + attn, ln1g_ref[0], ln1b_ref[0])
    y_bf = y.astype(jnp.bfloat16)

    # FFN: Linear -> ReLU -> Linear, tiled over the hidden dim F.  Weight
    # tiles are taken as static ref slices, so only a (D, f_tile)/(f_tile, D)
    # tile is live per iteration.
    F = w1_ref.shape[-1]
    ff = jnp.zeros((N, D), jnp.float32)
    for t in range(F // f_tile):
        lo = t * f_tile
        hi = lo + f_tile
        h1 = jnp.dot(y_bf, w1_ref[0, :, lo:hi],
                     preferred_element_type=jnp.float32) + b1_ref[0, :, lo:hi]
        h1 = jnp.maximum(h1, 0.0).astype(jnp.bfloat16)
        ff = ff + jnp.dot(h1, w2_ref[0, lo:hi, :],
                          preferred_element_type=jnp.float32)
    ff = ff + b2_ref[0]

    # residual + LayerNorm2 (f32)
    z = _layernorm(y + ff, ln2g_ref[0], ln2b_ref[0])
    z3 = z.reshape(B, S, D)

    state_ref[...] = z3                                # carry to next layer
    out_ref[0] = z3.astype(out_ref.dtype)              # intermediate[l] = out


# ------------------------------- Wrapper ------------------------------------


def transformer_encoder(src, pos, mask, params, num_heads, f_tile=None,
                        out_dtype=jnp.bfloat16):
    """src, pos: (B, S, D); mask: (S, S) additive attention mask.

    Returns the stacked intermediate outputs, shape (L, B, S, D)
    (return_intermediate=True, norm=None).
    """
    B, S, D = src.shape
    L = params["wq"].shape[0]
    F = params["w1"].shape[-1]
    assert D % num_heads == 0
    if f_tile is None:
        f_tile = min(F, 512)       # >= 256 fills the MXU depth on v6e / v7x
    assert F % f_tile == 0

    # Matmul weights in bf16 (f32 accumulation on the MXU); biases / LN in f32.
    bf = lambda a: a.astype(jnp.bfloat16)
    # Fused Q/K projection weights: (L, D, 2D) / (L, 1, 2D).
    wqk = bf(jnp.concatenate([params["wq"], params["wk"]], axis=-1))
    bqk = jnp.concatenate([params["bq"], params["bk"]], axis=-1)
    wv, wo = bf(params["wv"]), bf(params["wo"])
    w1, w2 = bf(params["w1"]), bf(params["w2"])

    def const_spec(shape):          # constant across layers: fetched once
        zeros = (0,) * len(shape)
        return pl.BlockSpec(shape, lambda l: zeros)

    def layer_spec(shape):          # (L, ...) arrays indexed by layer axis
        trailing = (0,) * (len(shape) - 1)
        return pl.BlockSpec((1,) + tuple(shape[1:]),
                            lambda l: (l,) + trailing)

    in_specs = [
        const_spec((B, S, D)),       # src
        const_spec((B, S, D)),       # pos
        const_spec((S, S)),          # mask
        layer_spec((L, D, 2 * D)),   # wqk (fused)
        layer_spec((L, 1, 2 * D)),   # bqk (fused)
        layer_spec((L, D, D)),       # wv
        layer_spec((L, 1, D)),       # bv
        layer_spec((L, D, D)),       # wo
        layer_spec((L, 1, D)),       # bo
        layer_spec((L, 1, D)),       # ln1 gamma
        layer_spec((L, 1, D)),       # ln1 beta
        layer_spec((L, D, F)),       # w1
        layer_spec((L, 1, F)),       # b1
        layer_spec((L, F, D)),       # w2
        layer_spec((L, 1, D)),       # b2
        layer_spec((L, 1, D)),       # ln2 gamma
        layer_spec((L, 1, D)),       # ln2 beta
    ]

    out_spec = pl.BlockSpec((1, B, S, D), lambda l: (l, 0, 0, 0))

    grid_spec = pltpu.PrefetchScalarGridSpec(
        num_scalar_prefetch=0,
        grid=(L,),
        in_specs=in_specs,
        out_specs=out_spec,
        scratch_shapes=[
            pltpu.VMEM((B, S, D), jnp.float32),   # carried activation state
        ],
    )

    kernel = functools.partial(encoder_kernel, num_heads, f_tile)

    return pl.pallas_call(
        kernel,
        out_shape=jax.ShapeDtypeStruct((L, B, S, D), out_dtype),
        grid_spec=grid_spec,
        compiler_params=pltpu.CompilerParams(
            dimension_semantics=("arbitrary",),      # layers carry state
            vmem_limit_bytes=32 * 1024 * 1024,
        ),
    )(
        src, pos, mask,
        wqk, bqk, wv, params["bv"], wo, params["bo"],
        params["ln1g"], params["ln1b"],
        w1, params["b1"], w2, params["b2"],
        params["ln2g"], params["ln2b"],
    )


# ----------------------- Pure-JAX reference (for checking) ------------------
# Matches the kernel's numerics: bf16 MXU operands, f32 accumulation,
# softmax / LayerNorm in f32, intermediates stacked in bf16.


def reference_encoder(src, pos, mask, p, num_heads, out_dtype=jnp.bfloat16):
    x = src.astype(jnp.float32)
    posf = pos.astype(jnp.float32)
    L = p["wq"].shape[0]
    B, S, D = x.shape
    hd = D // num_heads
    scale = 1.0 / math.sqrt(hd)
    bf = jnp.bfloat16

    def bdot(a, b):
        return jnp.dot(a.astype(bf), b.astype(bf),
                       preferred_element_type=jnp.float32)

    def layernorm(v, g, b, eps=1e-5):
        m = jnp.mean(v, axis=-1, keepdims=True)
        var = jnp.mean((v - m) ** 2, axis=-1, keepdims=True)
        return (v - m) / jnp.sqrt(var + eps) * g + b

    outs = []
    for l in range(L):
        qk = x + posf
        q = bdot(qk, p["wq"][l]) + p["bq"][l]
        k = bdot(qk, p["wk"][l]) + p["bk"][l]
        v = bdot(x, p["wv"][l]) + p["bv"][l]
        q = q * scale
        heads = []
        for h in range(num_heads):
            sl = slice(h * hd, (h + 1) * hd)
            s = jnp.einsum("bqd,bkd->bqk",
                           q[..., sl].astype(bf), k[..., sl].astype(bf),
                           preferred_element_type=jnp.float32) + mask
            a = jax.nn.softmax(s, axis=-1)
            heads.append(jnp.einsum("bqk,bkd->bqd",
                                    a.astype(bf), v[..., sl].astype(bf),
                                    preferred_element_type=jnp.float32))
        attn = jnp.concatenate(heads, axis=-1)
        attn = bdot(attn, p["wo"][l]) + p["bo"][l]
        y = layernorm(x + attn, p["ln1g"][l], p["ln1b"][l])
        h1 = jnp.maximum(bdot(y, p["w1"][l]) + p["b1"][l], 0.0)
        ff = bdot(h1, p["w2"][l]) + p["b2"][l]
        x = layernorm(y + ff, p["ln2g"][l], p["ln2b"][l])
        outs.append(x.astype(out_dtype))
    return jnp.stack(outs)


# --------------------------------- Main --------------------------------------


if __name__ == "__main__":
    # Lane-dense small shapes: D, F multiples of 128; S multiple of 8.
    B, S, D, H, F, L = 2, 128, 128, 4, 256, 2

    key = jax.random.PRNGKey(0)
    keys = jax.random.split(key, 16)

    def w(k, shape, scale=0.05):
        return jax.random.normal(k, shape, dtype=jnp.float32) * scale

    params = {
        "wq": w(keys[0], (L, D, D)),
        "bq": w(keys[1], (L, 1, D)),
        "wk": w(keys[2], (L, D, D)),
        "bk": w(keys[3], (L, 1, D)),
        "wv": w(keys[4], (L, D, D)),
        "bv": w(keys[5], (L, 1, D)),
        "wo": w(keys[6], (L, D, D)),
        "bo": w(keys[7], (L, 1, D)),
        "ln1g": jnp.ones((L, 1, D), jnp.float32),
        "ln1b": jnp.zeros((L, 1, D), jnp.float32),
        "w1": w(keys[8], (L, D, F)),
        "b1": w(keys[9], (L, 1, F)),
        "w2": w(keys[10], (L, F, D)),
        "b2": w(keys[11], (L, 1, D)),
        "ln2g": jnp.ones((L, 1, D), jnp.float32),
        "ln2b": jnp.zeros((L, 1, D), jnp.float32),
    }

    src = jax.random.normal(keys[12], (B, S, D), dtype=jnp.float32)
    pos = jax.random.normal(keys[13], (B, S, D), dtype=jnp.float32)
    mask = jnp.zeros((S, S), dtype=jnp.float32)   # additive attn_mask (no masking)

    out = transformer_encoder(src, pos, mask, params, num_heads=H)
    out = jax.block_until_ready(out)

    ref = reference_encoder(src, pos, mask, params, num_heads=H)
    assert out.shape == (L, B, S, D), out.shape
    out_f = out.astype(jnp.float32)
    ref_f = ref.astype(jnp.float32)
    if not jnp.allclose(out_f, ref_f, atol=2e-2, rtol=2e-2):
        max_err = float(jnp.max(jnp.abs(out_f - ref_f)))
        raise AssertionError(f"mismatch vs reference, max abs err = {max_err}")

    print("KERNEL_OK")
</pallas_src>

<mosaic_0001>
module attributes {stable_mosaic.version = 11 : i64} {
  func.func @encoder_kernel(%arg0: i32, %arg1: memref<2x128x128xf32, #tpu.memory_space<vmem>>, %arg2: memref<2x128x128xf32, #tpu.memory_space<vmem>>, %arg3: memref<128x128xf32, #tpu.memory_space<vmem>>, %arg4: memref<1x128x256xbf16, #tpu.memory_space<vmem>>, %arg5: memref<1x1x256xf32, #tpu.memory_space<vmem>>, %arg6: memref<1x128x128xbf16, #tpu.memory_space<vmem>>, %arg7: memref<1x1x128xf32, #tpu.memory_space<vmem>>, %arg8: memref<1x128x128xbf16, #tpu.memory_space<vmem>>, %arg9: memref<1x1x128xf32, #tpu.memory_space<vmem>>, %arg10: memref<1x1x128xf32, #tpu.memory_space<vmem>>, %arg11: memref<1x1x128xf32, #tpu.memory_space<vmem>>, %arg12: memref<1x128x256xbf16, #tpu.memory_space<vmem>>, %arg13: memref<1x1x256xf32, #tpu.memory_space<vmem>>, %arg14: memref<1x256x128xbf16, #tpu.memory_space<vmem>>, %arg15: memref<1x1x128xf32, #tpu.memory_space<vmem>>, %arg16: memref<1x1x128xf32, #tpu.memory_space<vmem>>, %arg17: memref<1x1x128xf32, #tpu.memory_space<vmem>>, %arg18: memref<1x2x128x128xbf16, #tpu.memory_space<vmem>>, %arg19: memref<2x128x128xf32, #tpu.memory_space<vmem>>) attributes {dimension_semantics = [#tpu.dimension_semantics<arbitrary>], iteration_bounds = array<i64: 2>, scalar_prefetch = 0 : i64, scratch_operands = 1 : i64, tpu.core_type = #tpu.core_type<tc>, window_params = [{pipeline_mode = #tpu.pipeline_mode<synchronous>, transform_indices = @transform_0, window_bounds = array<i64: 2, 128, 128>}, {pipeline_mode = #tpu.pipeline_mode<synchronous>, transform_indices = @transform_1, window_bounds = array<i64: 2, 128, 128>}, {pipeline_mode = #tpu.pipeline_mode<synchronous>, transform_indices = @transform_2, window_bounds = array<i64: 128, 128>}, {transform_indices = @transform_3, window_bounds = array<i64: 1, 128, 256>}, {transform_indices = @transform_4, window_bounds = array<i64: 1, 1, 256>}, {transform_indices = @transform_5, window_bounds = array<i64: 1, 128, 128>}, {transform_indices = @transform_6, window_bounds = array<i64: 1, 1, 128>}, {transform_indices = @transform_7, window_bounds = array<i64: 1, 128, 128>}, {transform_indices = @transform_8, window_bounds = array<i64: 1, 1, 128>}, {transform_indices = @transform_9, window_bounds = array<i64: 1, 1, 128>}, {transform_indices = @transform_10, window_bounds = array<i64: 1, 1, 128>}, {transform_indices = @transform_11, window_bounds = array<i64: 1, 128, 256>}, {transform_indices = @transform_12, window_bounds = array<i64: 1, 1, 256>}, {transform_indices = @transform_13, window_bounds = array<i64: 1, 256, 128>}, {transform_indices = @transform_14, window_bounds = array<i64: 1, 1, 128>}, {transform_indices = @transform_15, window_bounds = array<i64: 1, 1, 128>}, {transform_indices = @transform_16, window_bounds = array<i64: 1, 1, 128>}, {transform_indices = @transform_17, window_bounds = array<i64: 1, 2, 128, 128>}]} {
    %c0_i32 = arith.constant 0 : i32
    %0 = arith.cmpi eq, %arg0, %c0_i32 : i32
    %1 = arith.extui %0 : i1 to i32
    %c0_i32_0 = arith.constant 0 : i32
    %2 = arith.cmpi ne, %1, %c0_i32_0 : i32
    scf.if %2 {
      %c0_100 = arith.constant 0 : index
      %c0_101 = arith.constant 0 : index
      %c0_102 = arith.constant 0 : index
      %220 = vector.load %arg1[%c0_100, %c0_101, %c0_102] : memref<2x128x128xf32, #tpu.memory_space<vmem>>, vector<2x128x128xf32>
      %c0_103 = arith.constant 0 : index
      %c0_104 = arith.constant 0 : index
      %c0_105 = arith.constant 0 : index
      %221 = vector.load %arg19[%c0_103, %c0_104, %c0_105] : memref<2x128x128xf32, #tpu.memory_space<vmem>>, vector<2x128x128xf32>
      tpu.vector_store %arg19[%c0_103, %c0_104, %c0_105], %220 {strides = array<i32>} : memref<2x128x128xf32, #tpu.memory_space<vmem>>, vector<2x128x128xf32>,
    } else {
    }
    %c0 = arith.constant 0 : index
    %c0_1 = arith.constant 0 : index
    %c0_2 = arith.constant 0 : index
    %3 = vector.load %arg19[%c0, %c0_1, %c0_2] : memref<2x128x128xf32, #tpu.memory_space<vmem>>, vector<2x128x128xf32>
    %c0_3 = arith.constant 0 : index
    %c0_4 = arith.constant 0 : index
    %c0_5 = arith.constant 0 : index
    %4 = vector.load %arg2[%c0_3, %c0_4, %c0_5] : memref<2x128x128xf32, #tpu.memory_space<vmem>>, vector<2x128x128xf32>
    %c0_6 = arith.constant 0 : index
    %c0_7 = arith.constant 0 : index
    %5 = vector.load %arg3[%c0_6, %c0_7] : memref<128x128xf32, #tpu.memory_space<vmem>>, vector<128x128xf32>
    %6 = vector.shape_cast %3 : vector<2x128x128xf32> to vector<256x128xf32>
    %7 = vector.shape_cast %4 : vector<2x128x128xf32> to vector<256x128xf32>
    %8 = arith.addf %6, %7 : vector<256x128xf32>
    %9 = arith.truncf %8 : vector<256x128xf32> to vector<256x128xbf16>
    %10 = arith.truncf %6 : vector<256x128xf32> to vector<256x128xbf16>
    %c0_8 = arith.constant 0 : index
    %c0_9 = arith.constant 0 : index
    %c0_10 = arith.constant 0 : index
    %11 = vector.load %arg4[%c0_8, %c0_9, %c0_10] : memref<1x128x256xbf16, #tpu.memory_space<vmem>>, vector<1x128x256xbf16>
    %12 = vector.shape_cast %11 : vector<1x128x256xbf16> to vector<128x256xbf16>
    %cst = arith.constant dense<0.000000e+00> : vector<256x256xf32>
    %13 = tpu.matmul %9, %12, %cst {dimension_numbers = #tpu.dot_dimension_numbers<[1], [0], [0], [1], [0, 0, 1, 1], [], []>} : vector<256x128xbf16>, vector<128x256xbf16>, vector<256x256xf32> -> vector<256x256xf32>
    %c0_11 = arith.constant 0 : index
    %c0_12 = arith.constant 0 : index
    %c0_13 = arith.constant 0 : index
    %14 = vector.load %arg5[%c0_11, %c0_12, %c0_13] : memref<1x1x256xf32, #tpu.memory_space<vmem>>, vector<1x1x256xf32>
    %15 = vector.shape_cast %14 : vector<1x1x256xf32> to vector<1x256xf32>
    %16 = vector.broadcast %15 : vector<1x256xf32> to vector<256x256xf32>
    %17 = arith.addf %13, %16 : vector<256x256xf32>
    %c0_14 = arith.constant 0 : index
    %c0_15 = arith.constant 0 : index
    %c0_16 = arith.constant 0 : index
    %18 = vector.load %arg6[%c0_14, %c0_15, %c0_16] : memref<1x128x128xbf16, #tpu.memory_space<vmem>>, vector<1x128x128xbf16>
    %19 = vector.shape_cast %18 : vector<1x128x128xbf16> to vector<128x128xbf16>
    %cst_17 = arith.constant dense<0.000000e+00> : vector<256x128xf32>
    %20 = tpu.matmul %10, %19, %cst_17 {dimension_numbers = #tpu.dot_dimension_numbers<[1], [0], [0], [1], [0, 0, 1, 1], [], []>} : vector<256x128xbf16>, vector<128x128xbf16>, vector<256x128xf32> -> vector<256x128xf32>
    %c0_18 = arith.constant 0 : index
    %c0_19 = arith.constant 0 : index
    %c0_20 = arith.constant 0 : index
    %21 = vector.load %arg7[%c0_18, %c0_19, %c0_20] : memref<1x1x128xf32, #tpu.memory_space<vmem>>, vector<1x1x128xf32>
    %22 = vector.shape_cast %21 : vector<1x1x128xf32> to vector<1x128xf32>
    %23 = vector.broadcast %22 : vector<1x128xf32> to vector<256x128xf32>
    %24 = arith.addf %20, %23 : vector<256x128xf32>
    %25 = vector.extract_strided_slice %17 {offsets = [0, 0], sizes = [256, 128], strides = [1, 1]} : vector<256x256xf32> to vector<256x128xf32>
    %cst_21 = arith.constant 0.176776692 : f32
    %26 = vector.broadcast %cst_21 : f32 to vector<256x128xf32>
    %27 = arith.mulf %25, %26 : vector<256x128xf32>
    %28 = arith.truncf %27 : vector<256x128xf32> to vector<256x128xbf16>
    %29 = vector.shape_cast %28 : vector<256x128xbf16> to vector<2x128x128xbf16>
    %30 = vector.extract_strided_slice %17 {offsets = [0, 128], sizes = [256, 128], strides = [1, 1]} : vector<256x256xf32> to vector<256x128xf32>
    %31 = arith.truncf %30 : vector<256x128xf32> to vector<256x128xbf16>
    %32 = vector.shape_cast %31 : vector<256x128xbf16> to vector<2x128x128xbf16>
    %33 = arith.truncf %24 : vector<256x128xf32> to vector<256x128xbf16>
    %34 = vector.shape_cast %33 : vector<256x128xbf16> to vector<2x128x128xbf16>
    %cst_22 = arith.constant 0.000000e+00 : f32
    %35 = vector.broadcast %cst_22 : f32 to vector<256x128xf32>
    %36 = vector.extract_strided_slice %29 {offsets = [0, 0, 0], sizes = [2, 128, 32], strides = [1, 1, 1]} : vector<2x128x128xbf16> to vector<2x128x32xbf16>
    %37 = vector.extract_strided_slice %32 {offsets = [0, 0, 0], sizes = [2, 128, 32], strides = [1, 1, 1]} : vector<2x128x128xbf16> to vector<2x128x32xbf16>
    "tpu.trace_start"() <{level = 10 : i32, message = "bqd,bkd->bqk"}> : () -> ()
    %cst_23 = arith.constant dense<0.000000e+00> : vector<2x128x128xf32>
    %38 = tpu.matmul %36, %37, %cst_23 {dimension_numbers = #tpu.dot_dimension_numbers<[2], [2], [1], [1], [0, 0, 0, 1, 1, 1], [0], [0]>} : vector<2x128x32xbf16>, vector<2x128x32xbf16>, vector<2x128x128xf32> -> vector<2x128x128xf32>
    "tpu.trace_stop"() : () -> ()
    %39 = vector.shape_cast %5 : vector<128x128xf32> to vector<1x128x128xf32>
    %40 = vector.broadcast %39 : vector<1x128x128xf32> to vector<2x128x128xf32>
    %41 = arith.addf %38, %40 : vector<2x128x128xf32>
    %cst_24 = arith.constant dense<0xFF800000> : vector<2x128xf32>
    %42 = vector.multi_reduction <maximumf>, %41, %cst_24 [2] : vector<2x128x128xf32> to vector<2x128xf32>
    %43 = vector.shape_cast %42 : vector<2x128xf32> to vector<2x128x1xf32>
    %44 = vector.broadcast %43 : vector<2x128x1xf32> to vector<2x128x128xf32>
    %45 = arith.subf %41, %44 : vector<2x128x128xf32>
    %46 = math.exp %45 : vector<2x128x128xf32>
    %cst_25 = arith.constant dense<0.000000e+00> : vector<2x128xf32>
    %47 = vector.multi_reduction <add>, %46, %cst_25 [2] : vector<2x128x128xf32> to vector<2x128xf32>
    %48 = vector.shape_cast %47 : vector<2x128xf32> to vector<2x128x1xf32>
    %49 = tpu.reciprocal %48 {approx = true} : vector<2x128x1xf32> -> vector<2x128x1xf32>
    %50 = vector.broadcast %49 : vector<2x128x1xf32> to vector<2x128x128xf32>
    %51 = arith.mulf %46, %50 : vector<2x128x128xf32>
    %52 = arith.truncf %51 : vector<2x128x128xf32> to vector<2x128x128xbf16>
    %53 = vector.extract_strided_slice %34 {offsets = [0, 0, 0], sizes = [2, 128, 32], strides = [1, 1, 1]} : vector<2x128x128xbf16> to vector<2x128x32xbf16>
    "tpu.trace_start"() <{level = 10 : i32, message = "bqk,bkd->bqd"}> : () -> ()
    %cst_26 = arith.constant dense<0.000000e+00> : vector<2x128x32xf32>
    %54 = tpu.matmul %52, %53, %cst_26 {dimension_numbers = #tpu.dot_dimension_numbers<[2], [1], [1], [2], [0, 0, 0, 1, 1, 2], [0], [0]>} : vector<2x128x128xbf16>, vector<2x128x32xbf16>, vector<2x128x32xf32> -> vector<2x128x32xf32>
    "tpu.trace_stop"() : () -> ()
    %55 = arith.truncf %54 : vector<2x128x32xf32> to vector<2x128x32xbf16>
    %56 = vector.shape_cast %55 : vector<2x128x32xbf16> to vector<256x32xbf16>
    %c0_27 = arith.constant 0 : index
    %c0_28 = arith.constant 0 : index
    %c0_29 = arith.constant 0 : index
    %57 = vector.load %arg8[%c0_27, %c0_28, %c0_29] : memref<1x128x128xbf16, #tpu.memory_space<vmem>>, vector<1x32x128xbf16>
    %58 = vector.shape_cast %57 : vector<1x32x128xbf16> to vector<32x128xbf16>
    %cst_30 = arith.constant dense<0.000000e+00> : vector<256x128xf32>
    %59 = tpu.matmul %56, %58, %cst_30 {dimension_numbers = #tpu.dot_dimension_numbers<[1], [0], [0], [1], [0, 0, 1, 1], [], []>} : vector<256x32xbf16>, vector<32x128xbf16>, vector<256x128xf32> -> vector<256x128xf32>
    %60 = arith.addf %35, %59 : vector<256x128xf32>
    %61 = vector.extract_strided_slice %29 {offsets = [0, 0, 32], sizes = [2, 128, 32], strides = [1, 1, 1]} : vector<2x128x128xbf16> to vector<2x128x32xbf16>
    %62 = vector.extract_strided_slice %32 {offsets = [0, 0, 32], sizes = [2, 128, 32], strides = [1, 1, 1]} : vector<2x128x128xbf16> to vector<2x128x32xbf16>
    "tpu.trace_start"() <{level = 10 : i32, message = "bqd,bkd->bqk"}> : () -> ()
    %cst_31 = arith.constant dense<0.000000e+00> : vector<2x128x128xf32>
    %63 = tpu.matmul %61, %62, %cst_31 {dimension_numbers = #tpu.dot_dimension_numbers<[2], [2], [1], [1], [0, 0, 0, 1, 1, 1], [0], [0]>} : vector<2x128x32xbf16>, vector<2x128x32xbf16>, vector<2x128x128xf32> -> vector<2x128x128xf32>
    "tpu.trace_stop"() : () -> ()
    %64 = vector.shape_cast %5 : vector<128x128xf32> to vector<1x128x128xf32>
    %65 = vector.broadcast %64 : vector<1x128x128xf32> to vector<2x128x128xf32>
    %66 = arith.addf %63, %65 : vector<2x128x128xf32>
    %cst_32 = arith.constant dense<0xFF800000> : vector<2x128xf32>
    %67 = vector.multi_reduction <maximumf>, %66, %cst_32 [2] : vector<2x128x128xf32> to vector<2x128xf32>
    %68 = vector.shape_cast %67 : vector<2x128xf32> to vector<2x128x1xf32>
    %69 = vector.broadcast %68 : vector<2x128x1xf32> to vector<2x128x128xf32>
    %70 = arith.subf %66, %69 : vector<2x128x128xf32>
    %71 = math.exp %70 : vector<2x128x128xf32>
    %cst_33 = arith.constant dense<0.000000e+00> : vector<2x128xf32>
    %72 = vector.multi_reduction <add>, %71, %cst_33 [2] : vector<2x128x128xf32> to vector<2x128xf32>
    %73 = vector.shape_cast %72 : vector<2x128xf32> to vector<2x128x1xf32>
    %74 = tpu.reciprocal %73 {approx = true} : vector<2x128x1xf32> -> vector<2x128x1xf32>
    %75 = vector.broadcast %74 : vector<2x128x1xf32> to vector<2x128x128xf32>
    %76 = arith.mulf %71, %75 : vector<2x128x128xf32>
    %77 = arith.truncf %76 : vector<2x128x128xf32> to vector<2x128x128xbf16>
    %78 = vector.extract_strided_slice %34 {offsets = [0, 0, 32], sizes = [2, 128, 32], strides = [1, 1, 1]} : vector<2x128x128xbf16> to vector<2x128x32xbf16>
    "tpu.trace_start"() <{level = 10 : i32, message = "bqk,bkd->bqd"}> : () -> ()
    %cst_34 = arith.constant dense<0.000000e+00> : vector<2x128x32xf32>
    %79 = tpu.matmul %77, %78, %cst_34 {dimension_numbers = #tpu.dot_dimension_numbers<[2], [1], [1], [2], [0, 0, 0, 1, 1, 2], [0], [0]>} : vector<2x128x128xbf16>, vector<2x128x32xbf16>, vector<2x128x32xf32> -> vector<2x128x32xf32>
    "tpu.trace_stop"() : () -> ()
    %80 = arith.truncf %79 : vector<2x128x32xf32> to vector<2x128x32xbf16>
    %81 = vector.shape_cast %80 : vector<2x128x32xbf16> to vector<256x32xbf16>
    %c0_35 = arith.constant 0 : index
    %c32 = arith.constant 32 : index
    %c0_36 = arith.constant 0 : index
    %82 = vector.load %arg8[%c0_35, %c32, %c0_36] : memref<1x128x128xbf16, #tpu.memory_space<vmem>>, vector<1x32x128xbf16>
    %83 = vector.shape_cast %82 : vector<1x32x128xbf16> to vector<32x128xbf16>
    %cst_37 = arith.constant dense<0.000000e+00> : vector<256x128xf32>
    %84 = tpu.matmul %81, %83, %cst_37 {dimension_numbers = #tpu.dot_dimension_numbers<[1], [0], [0], [1], [0, 0, 1, 1], [], []>} : vector<256x32xbf16>, vector<32x128xbf16>, vector<256x128xf32> -> vector<256x128xf32>
    %85 = arith.addf %60, %84 : vector<256x128xf32>
    %86 = vector.extract_strided_slice %29 {offsets = [0, 0, 64], sizes = [2, 128, 32], strides = [1, 1, 1]} : vector<2x128x128xbf16> to vector<2x128x32xbf16>
    %87 = vector.extract_strided_slice %32 {offsets = [0, 0, 64], sizes = [2, 128, 32], strides = [1, 1, 1]} : vector<2x128x128xbf16> to vector<2x128x32xbf16>
    "tpu.trace_start"() <{level = 10 : i32, message = "bqd,bkd->bqk"}> : () -> ()
    %cst_38 = arith.constant dense<0.000000e+00> : vector<2x128x128xf32>
    %88 = tpu.matmul %86, %87, %cst_38 {dimension_numbers = #tpu.dot_dimension_numbers<[2], [2], [1], [1], [0, 0, 0, 1, 1, 1], [0], [0]>} : vector<2x128x32xbf16>, vector<2x128x32xbf16>, vector<2x128x128xf32> -> vector<2x128x128xf32>
    "tpu.trace_stop"() : () -> ()
    %89 = vector.shape_cast %5 : vector<128x128xf32> to vector<1x128x128xf32>
    %90 = vector.broadcast %89 : vector<1x128x128xf32> to vector<2x128x128xf32>
    %91 = arith.addf %88, %90 : vector<2x128x128xf32>
    %cst_39 = arith.constant dense<0xFF800000> : vector<2x128xf32>
    %92 = vector.multi_reduction <maximumf>, %91, %cst_39 [2] : vector<2x128x128xf32> to vector<2x128xf32>
    %93 = vector.shape_cast %92 : vector<2x128xf32> to vector<2x128x1xf32>
    %94 = vector.broadcast %93 : vector<2x128x1xf32> to vector<2x128x128xf32>
    %95 = arith.subf %91, %94 : vector<2x128x128xf32>
    %96 = math.exp %95 : vector<2x128x128xf32>
    %cst_40 = arith.constant dense<0.000000e+00> : vector<2x128xf32>
    %97 = vector.multi_reduction <add>, %96, %cst_40 [2] : vector<2x128x128xf32> to vector<2x128xf32>
    %98 = vector.shape_cast %97 : vector<2x128xf32> to vector<2x128x1xf32>
    %99 = tpu.reciprocal %98 {approx = true} : vector<2x128x1xf32> -> vector<2x128x1xf32>
    %100 = vector.broadcast %99 : vector<2x128x1xf32> to vector<2x128x128xf32>
    %101 = arith.mulf %96, %100 : vector<2x128x128xf32>
    %102 = arith.truncf %101 : vector<2x128x128xf32> to vector<2x128x128xbf16>
    %103 = vector.extract_strided_slice %34 {offsets = [0, 0, 64], sizes = [2, 128, 32], strides = [1, 1, 1]} : vector<2x128x128xbf16> to vector<2x128x32xbf16>
    "tpu.trace_start"() <{level = 10 : i32, message = "bqk,bkd->bqd"}> : () -> ()
    %cst_41 = arith.constant dense<0.000000e+00> : vector<2x128x32xf32>
    %104 = tpu.matmul %102, %103, %cst_41 {dimension_numbers = #tpu.dot_dimension_numbers<[2], [1], [1], [2], [0, 0, 0, 1, 1, 2], [0], [0]>} : vector<2x128x128xbf16>, vector<2x128x32xbf16>, vector<2x128x32xf32> -> vector<2x128x32xf32>
    "tpu.trace_stop"() : () -> ()
    %105 = arith.truncf %104 : vector<2x128x32xf32> to vector<2x128x32xbf16>
    %106 = vector.shape_cast %105 : vector<2x128x32xbf16> to vector<256x32xbf16>
    %c0_42 = arith.constant 0 : index
    %c64 = arith.constant 64 : index
    %c0_43 = arith.constant 0 : index
    %107 = vector.load %arg8[%c0_42, %c64, %c0_43] : memref<1x128x128xbf16, #tpu.memory_space<vmem>>, vector<1x32x128xbf16>
    %108 = vector.shape_cast %107 : vector<1x32x128xbf16> to vector<32x128xbf16>
    %cst_44 = arith.constant dense<0.000000e+00> : vector<256x128xf32>
    %109 = tpu.matmul %106, %108, %cst_44 {dimension_numbers = #tpu.dot_dimension_numbers<[1], [0], [0], [1], [0, 0, 1, 1], [], []>} : vector<256x32xbf16>, vector<32x128xbf16>, vector<256x128xf32> -> vector<256x128xf32>
    %110 = arith.addf %85, %109 : vector<256x128xf32>
    %111 = vector.extract_strided_slice %29 {offsets = [0, 0, 96], sizes = [2, 128, 32], strides = [1, 1, 1]} : vector<2x128x128xbf16> to vector<2x128x32xbf16>
    %112 = vector.extract_strided_slice %32 {offsets = [0, 0, 96], sizes = [2, 128, 32], strides = [1, 1, 1]} : vector<2x128x128xbf16> to vector<2x128x32xbf16>
    "tpu.trace_start"() <{level = 10 : i32, message = "bqd,bkd->bqk"}> : () -> ()
    %cst_45 = arith.constant dense<0.000000e+00> : vector<2x128x128xf32>
    %113 = tpu.matmul %111, %112, %cst_45 {dimension_numbers = #tpu.dot_dimension_numbers<[2], [2], [1], [1], [0, 0, 0, 1, 1, 1], [0], [0]>} : vector<2x128x32xbf16>, vector<2x128x32xbf16>, vector<2x128x128xf32> -> vector<2x128x128xf32>
    "tpu.trace_stop"() : () -> ()
    %114 = vector.shape_cast %5 : vector<128x128xf32> to vector<1x128x128xf32>
    %115 = vector.broadcast %114 : vector<1x128x128xf32> to vector<2x128x128xf32>
    %116 = arith.addf %113, %115 : vector<2x128x128xf32>
    %cst_46 = arith.constant dense<0xFF800000> : vector<2x128xf32>
    %117 = vector.multi_reduction <maximumf>, %116, %cst_46 [2] : vector<2x128x128xf32> to vector<2x128xf32>
    %118 = vector.shape_cast %117 : vector<2x128xf32> to vector<2x128x1xf32>
    %119 = vector.broadcast %118 : vector<2x128x1xf32> to vector<2x128x128xf32>
    %120 = arith.subf %116, %119 : vector<2x128x128xf32>
    %121 = math.exp %120 : vector<2x128x128xf32>
    %cst_47 = arith.constant dense<0.000000e+00> : vector<2x128xf32>
    %122 = vector.multi_reduction <add>, %121, %cst_47 [2] : vector<2x128x128xf32> to vector<2x128xf32>
    %123 = vector.shape_cast %122 : vector<2x128xf32> to vector<2x128x1xf32>
    %124 = tpu.reciprocal %123 {approx = true} : vector<2x128x1xf32> -> vector<2x128x1xf32>
    %125 = vector.broadcast %124 : vector<2x128x1xf32> to vector<2x128x128xf32>
    %126 = arith.mulf %121, %125 : vector<2x128x128xf32>
    %127 = arith.truncf %126 : vector<2x128x128xf32> to vector<2x128x128xbf16>
    %128 = vector.extract_strided_slice %34 {offsets = [0, 0, 96], sizes = [2, 128, 32], strides = [1, 1, 1]} : vector<2x128x128xbf16> to vector<2x128x32xbf16>
    "tpu.trace_start"() <{level = 10 : i32, message = "bqk,bkd->bqd"}> : () -> ()
    %cst_48 = arith.constant dense<0.000000e+00> : vector<2x128x32xf32>
    %129 = tpu.matmul %127, %128, %cst_48 {dimension_numbers = #tpu.dot_dimension_numbers<[2], [1], [1], [2], [0, 0, 0, 1, 1, 2], [0], [0]>} : vector<2x128x128xbf16>, vector<2x128x32xbf16>, vector<2x128x32xf32> -> vector<2x128x32xf32>
    "tpu.trace_stop"() : () -> ()
    %130 = arith.truncf %129 : vector<2x128x32xf32> to vector<2x128x32xbf16>
    %131 = vector.shape_cast %130 : vector<2x128x32xbf16> to vector<256x32xbf16>
    %c0_49 = arith.constant 0 : index
    %c96 = arith.constant 96 : index
    %c0_50 = arith.constant 0 : index
    %132 = vector.load %arg8[%c0_49, %c96, %c0_50] : memref<1x128x128xbf16, #tpu.memory_space<vmem>>, vector<1x32x128xbf16>
    %133 = vector.shape_cast %132 : vector<1x32x128xbf16> to vector<32x128xbf16>
    %cst_51 = arith.constant dense<0.000000e+00> : vector<256x128xf32>
    %134 = tpu.matmul %131, %133, %cst_51 {dimension_numbers = #tpu.dot_dimension_numbers<[1], [0], [0], [1], [0, 0, 1, 1], [], []>} : vector<256x32xbf16>, vector<32x128xbf16>, vector<256x128xf32> -> vector<256x128xf32>
    %135 = arith.addf %110, %134 : vector<256x128xf32>
    %c0_52 = arith.constant 0 : index
    %c0_53 = arith.constant 0 : index
    %c0_54 = arith.constant 0 : index
    %136 = vector.load %arg9[%c0_52, %c0_53, %c0_54] : memref<1x1x128xf32, #tpu.memory_space<vmem>>, vector<1x1x128xf32>
    %137 = vector.shape_cast %136 : vector<1x1x128xf32> to vector<1x128xf32>
    %138 = vector.broadcast %137 : vector<1x128xf32> to vector<256x128xf32>
    %139 = arith.addf %135, %138 : vector<256x128xf32>
    %140 = arith.addf %6, %139 : vector<256x128xf32>
    %c0_55 = arith.constant 0 : index
    %c0_56 = arith.constant 0 : index
    %c0_57 = arith.constant 0 : index
    %141 = vector.load %arg10[%c0_55, %c0_56, %c0_57] : memref<1x1x128xf32, #tpu.memory_space<vmem>>, vector<1x1x128xf32>
    %142 = vector.shape_cast %141 : vector<1x1x128xf32> to vector<1x128xf32>
    %c0_58 = arith.constant 0 : index
    %c0_59 = arith.constant 0 : index
    %c0_60 = arith.constant 0 : index
    %143 = vector.load %arg11[%c0_58, %c0_59, %c0_60] : memref<1x1x128xf32, #tpu.memory_space<vmem>>, vector<1x1x128xf32>
    %144 = vector.shape_cast %143 : vector<1x1x128xf32> to vector<1x128xf32>
    %cst_61 = arith.constant dense<0.000000e+00> : vector<256xf32>
    %145 = vector.multi_reduction <add>, %140, %cst_61 [1] : vector<256x128xf32> to vector<256xf32>
    %146 = vector.shape_cast %145 : vector<256xf32> to vector<256x1xf32>
    %cst_62 = arith.constant 1.280000e+02 : f32
    %147 = vector.broadcast %cst_62 : f32 to vector<256x1xf32>
    %148 = arith.divf %146, %147 : vector<256x1xf32>
    %149 = vector.broadcast %148 : vector<256x1xf32> to vector<256x128xf32>
    %150 = arith.subf %140, %149 : vector<256x128xf32>
    %151 = arith.mulf %150, %150 : vector<256x128xf32>
    %cst_63 = arith.constant dense<0.000000e+00> : vector<256xf32>
    %152 = vector.multi_reduction <add>, %151, %cst_63 [1] : vector<256x128xf32> to vector<256xf32>
    %153 = vector.shape_cast %152 : vector<256xf32> to vector<256x1xf32>
    %cst_64 = arith.constant 1.280000e+02 : f32
    %154 = vector.broadcast %cst_64 : f32 to vector<256x1xf32>
    %155 = arith.divf %153, %154 : vector<256x1xf32>
    %156 = vector.broadcast %148 : vector<256x1xf32> to vector<256x128xf32>
    %157 = arith.subf %140, %156 : vector<256x128xf32>
    %cst_65 = arith.constant 9.99999974E-6 : f32
    %158 = vector.broadcast %cst_65 : f32 to vector<256x1xf32>
    %159 = arith.addf %155, %158 : vector<256x1xf32>
    %160 = math.rsqrt %159 : vector<256x1xf32>
    %161 = vector.broadcast %160 : vector<256x1xf32> to vector<256x128xf32>
    %162 = arith.mulf %157, %161 : vector<256x128xf32>
    %163 = vector.broadcast %142 : vector<1x128xf32> to vector<256x128xf32>
    %164 = arith.mulf %162, %163 : vector<256x128xf32>
    %165 = vector.broadcast %144 : vector<1x128xf32> to vector<256x128xf32>
    %166 = arith.addf %164, %165 : vector<256x128xf32>
    %167 = arith.truncf %166 : vector<256x128xf32> to vector<256x128xbf16>
    %cst_66 = arith.constant 0.000000e+00 : f32
    %168 = vector.broadcast %cst_66 : f32 to vector<256x128xf32>
    %c0_67 = arith.constant 0 : index
    %c0_68 = arith.constant 0 : index
    %c0_69 = arith.constant 0 : index
    %169 = vector.load %arg12[%c0_67, %c0_68, %c0_69] : memref<1x128x256xbf16, #tpu.memory_space<vmem>>, vector<1x128x256xbf16>
    %170 = vector.shape_cast %169 : vector<1x128x256xbf16> to vector<128x256xbf16>
    %cst_70 = arith.constant dense<0.000000e+00> : vector<256x256xf32>
    %171 = tpu.matmul %167, %170, %cst_70 {dimension_numbers = #tpu.dot_dimension_numbers<[1], [0], [0], [1], [0, 0, 1, 1], [], []>} : vector<256x128xbf16>, vector<128x256xbf16>, vector<256x256xf32> -> vector<256x256xf32>
    %c0_71 = arith.constant 0 : index
    %c0_72 = arith.constant 0 : index
    %c0_73 = arith.constant 0 : index
    %172 = vector.load %arg13[%c0_71, %c0_72, %c0_73] : memref<1x1x256xf32, #tpu.memory_space<vmem>>, vector<1x1x256xf32>
    %173 = vector.shape_cast %172 : vector<1x1x256xf32> to vector<1x256xf32>
    %174 = vector.broadcast %173 : vector<1x256xf32> to vector<256x256xf32>
    %175 = arith.addf %171, %174 : vector<256x256xf32>
    %cst_74 = arith.constant 0.000000e+00 : f32
    %176 = vector.broadcast %cst_74 : f32 to vector<256x256xf32>
    %177 = arith.maximumf %175, %176 : vector<256x256xf32>
    %178 = arith.truncf %177 : vector<256x256xf32> to vector<256x256xbf16>
    %c0_75 = arith.constant 0 : index
    %c0_76 = arith.constant 0 : index
    %c0_77 = arith.constant 0 : index
    %179 = vector.load %arg14[%c0_75, %c0_76, %c0_77] : memref<1x256x128xbf16, #tpu.memory_space<vmem>>, vector<1x256x128xbf16>
    %180 = vector.shape_cast %179 : vector<1x256x128xbf16> to vector<256x128xbf16>
    %cst_78 = arith.constant dense<0.000000e+00> : vector<256x128xf32>
    %181 = tpu.matmul %178, %180, %cst_78 {dimension_numbers = #tpu.dot_dimension_numbers<[1], [0], [0], [1], [0, 0, 1, 1], [], []>} : vector<256x256xbf16>, vector<256x128xbf16>, vector<256x128xf32> -> vector<256x128xf32>
    %182 = arith.addf %168, %181 : vector<256x128xf32>
    %c0_79 = arith.constant 0 : index
    %c0_80 = arith.constant 0 : index
    %c0_81 = arith.constant 0 : index
    %183 = vector.load %arg15[%c0_79, %c0_80, %c0_81] : memref<1x1x128xf32, #tpu.memory_space<vmem>>, vector<1x1x128xf32>
    %184 = vector.shape_cast %183 : vector<1x1x128xf32> to vector<1x128xf32>
    %185 = vector.broadcast %184 : vector<1x128xf32> to vector<256x128xf32>
    %186 = arith.addf %182, %185 : vector<256x128xf32>
    %187 = arith.addf %166, %186 : vector<256x128xf32>
    %c0_82 = arith.constant 0 : index
    %c0_83 = arith.constant 0 : index
    %c0_84 = arith.constant 0 : index
    %188 = vector.load %arg16[%c0_82, %c0_83, %c0_84] : memref<1x1x128xf32, #tpu.memory_space<vmem>>, vector<1x1x128xf32>
    %189 = vector.shape_cast %188 : vector<1x1x128xf32> to vector<1x128xf32>
    %c0_85 = arith.constant 0 : index
    %c0_86 = arith.constant 0 : index
    %c0_87 = arith.constant 0 : index
    %190 = vector.load %arg17[%c0_85, %c0_86, %c0_87] : memref<1x1x128xf32, #tpu.memory_space<vmem>>, vector<1x1x128xf32>
    %191 = vector.shape_cast %190 : vector<1x1x128xf32> to vector<1x128xf32>
    %cst_88 = arith.constant dense<0.000000e+00> : vector<256xf32>
    %192 = vector.multi_reduction <add>, %187, %cst_88 [1] : vector<256x128xf32> to vector<256xf32>
    %193 = vector.shape_cast %192 : vector<256xf32> to vector<256x1xf32>
    %cst_89 = arith.constant 1.280000e+02 : f32
    %194 = vector.broadcast %cst_89 : f32 to vector<256x1xf32>
    %195 = arith.divf %193, %194 : vector<256x1xf32>
    %196 = vector.broadcast %195 : vector<256x1xf32> to vector<256x128xf32>
    %197 = arith.subf %187, %196 : vector<256x128xf32>
    %198 = arith.mulf %197, %197 : vector<256x128xf32>
    %cst_90 = arith.constant dense<0.000000e+00> : vector<256xf32>
    %199 = vector.multi_reduction <add>, %198, %cst_90 [1] : vector<256x128xf32> to vector<256xf32>
    %200 = vector.shape_cast %199 : vector<256xf32> to vector<256x1xf32>
    %cst_91 = arith.constant 1.280000e+02 : f32
    %201 = vector.broadcast %cst_91 : f32 to vector<256x1xf32>
    %202 = arith.divf %200, %201 : vector<256x1xf32>
    %203 = vector.broadcast %195 : vector<256x1xf32> to vector<256x128xf32>
    %204 = arith.subf %187, %203 : vector<256x128xf32>
    %cst_92 = arith.constant 9.99999974E-6 : f32
    %205 = vector.broadcast %cst_92 : f32 to vector<256x1xf32>
    %206 = arith.addf %202, %205 : vector<256x1xf32>
    %207 = math.rsqrt %206 : vector<256x1xf32>
    %208 = vector.broadcast %207 : vector<256x1xf32> to vector<256x128xf32>
    %209 = arith.mulf %204, %208 : vector<256x128xf32>
    %210 = vector.broadcast %189 : vector<1x128xf32> to vector<256x128xf32>
    %211 = arith.mulf %209, %210 : vector<256x128xf32>
    %212 = vector.broadcast %191 : vector<1x128xf32> to vector<256x128xf32>
    %213 = arith.addf %211, %212 : vector<256x128xf32>
    %214 = vector.shape_cast %213 : vector<256x128xf32> to vector<2x128x128xf32>
    %c0_93 = arith.constant 0 : index
    %c0_94 = arith.constant 0 : index
    %c0_95 = arith.constant 0 : index
    %215 = vector.load %arg19[%c0_93, %c0_94, %c0_95] : memref<2x128x128xf32, #tpu.memory_space<vmem>>, vector<2x128x128xf32>
    tpu.vector_store %arg19[%c0_93, %c0_94, %c0_95], %214 {strides = array<i32>} : memref<2x128x128xf32, #tpu.memory_space<vmem>>, vector<2x128x128xf32>,
    %216 = arith.truncf %214 : vector<2x128x128xf32> to vector<2x128x128xbf16>
    %c0_96 = arith.constant 0 : index
    %c0_97 = arith.constant 0 : index
    %c0_98 = arith.constant 0 : index
    %c0_99 = arith.constant 0 : index
    %217 = vector.load %arg18[%c0_96, %c0_97, %c0_98, %c0_99] : memref<1x2x128x128xbf16, #tpu.memory_space<vmem>>, vector<1x2x128x128xbf16>
    %218 = vector.shape_cast %217 : vector<1x2x128x128xbf16> to vector<2x128x128xbf16>
    %219 = vector.shape_cast %216 : vector<2x128x128xbf16> to vector<1x2x128x128xbf16>
    tpu.vector_store %arg18[%c0_96, %c0_97, %c0_98, %c0_99], %219 {strides = array<i32>} : memref<1x2x128x128xbf16, #tpu.memory_space<vmem>>, vector<1x2x128x128xbf16>,
    return
  }
  func.func @transform_0(%arg0: i32) -> (i32, i32, i32) {
    %c0_i32 = arith.constant 0 : i32
    %c0_i32_0 = arith.constant 0 : i32
    %c0_i32_1 = arith.constant 0 : i32
    %c0_i32_2 = arith.constant 0 : i32
    return %c0_i32, %c0_i32_0, %c0_i32_1 : i32, i32, i32
  }
  func.func @transform_1(%arg0: i32) -> (i32, i32, i32) {
    %c0_i32 = arith.constant 0 : i32
    %c0_i32_0 = arith.constant 0 : i32
    %c0_i32_1 = arith.constant 0 : i32
    %c0_i32_2 = arith.constant 0 : i32
    return %c0_i32, %c0_i32_0, %c0_i32_1 : i32, i32, i32
  }
  func.func @transform_2(%arg0: i32) -> (i32, i32) {
    %c0_i32 = arith.constant 0 : i32
    %c0_i32_0 = arith.constant 0 : i32
    %c0_i32_1 = arith.constant 0 : i32
    return %c0_i32, %c0_i32_0 : i32, i32
  }
  func.func @transform_3(%arg0: i32) -> (i32, i32, i32) {
    %c0_i32 = arith.constant 0 : i32
    %c0_i32_0 = arith.constant 0 : i32
    %c0_i32_1 = arith.constant 0 : i32
    return %arg0, %c0_i32, %c0_i32_0 : i32, i32, i32
  }
  func.func @transform_4(%arg0: i32) -> (i32, i32, i32) {
    %c0_i32 = arith.constant 0 : i32
    %c0_i32_0 = arith.constant 0 : i32
    %c0_i32_1 = arith.constant 0 : i32
    return %arg0, %c0_i32, %c0_i32_0 : i32, i32, i32
  }
  func.func @transform_5(%arg0: i32) -> (i32, i32, i32) {
    %c0_i32 = arith.constant 0 : i32
    %c0_i32_0 = arith.constant 0 : i32
    %c0_i32_1 = arith.constant 0 : i32
    return %arg0, %c0_i32, %c0_i32_0 : i32, i32, i32
  }
  func.func @transform_6(%arg0: i32) -> (i32, i32, i32) {
    %c0_i32 = arith.constant 0 : i32
    %c0_i32_0 = arith.constant 0 : i32
    %c0_i32_1 = arith.constant 0 : i32
    return %arg0, %c0_i32, %c0_i32_0 : i32, i32, i32
  }
  func.func @transform_7(%arg0: i32) -> (i32, i32, i32) {
    %c0_i32 = arith.constant 0 : i32
    %c0_i32_0 = arith.constant 0 : i32
    %c0_i32_1 = arith.constant 0 : i32
    return %arg0, %c0_i32, %c0_i32_0 : i32, i32, i32
  }
  func.func @transform_8(%arg0: i32) -> (i32, i32, i32) {
    %c0_i32 = arith.constant 0 : i32
    %c0_i32_0 = arith.constant 0 : i32
    %c0_i32_1 = arith.constant 0 : i32
    return %arg0, %c0_i32, %c0_i32_0 : i32, i32, i32
  }
  func.func @transform_9(%arg0: i32) -> (i32, i32, i32) {
    %c0_i32 = arith.constant 0 : i32
    %c0_i32_0 = arith.constant 0 : i32
    %c0_i32_1 = arith.constant 0 : i32
    return %arg0, %c0_i32, %c0_i32_0 : i32, i32, i32
  }
  func.func @transform_10(%arg0: i32) -> (i32, i32, i32) {
    %c0_i32 = arith.constant 0 : i32
    %c0_i32_0 = arith.constant 0 : i32
    %c0_i32_1 = arith.constant 0 : i32
    return %arg0, %c0_i32, %c0_i32_0 : i32, i32, i32
  }
  func.func @transform_11(%arg0: i32) -> (i32, i32, i32) {
    %c0_i32 = arith.constant 0 : i32
    %c0_i32_0 = arith.constant 0 : i32
    %c0_i32_1 = arith.constant 0 : i32
    return %arg0, %c0_i32, %c0_i32_0 : i32, i32, i32
  }
  func.func @transform_12(%arg0: i32) -> (i32, i32, i32) {
    %c0_i32 = arith.constant 0 : i32
    %c0_i32_0 = arith.constant 0 : i32
    %c0_i32_1 = arith.constant 0 : i32
    return %arg0, %c0_i32, %c0_i32_0 : i32, i32, i32
  }
  func.func @transform_13(%arg0: i32) -> (i32, i32, i32) {
    %c0_i32 = arith.constant 0 : i32
    %c0_i32_0 = arith.constant 0 : i32
    %c0_i32_1 = arith.constant 0 : i32
    return %arg0, %c0_i32, %c0_i32_0 : i32, i32, i32
  }
  func.func @transform_14(%arg0: i32) -> (i32, i32, i32) {
    %c0_i32 = arith.constant 0 : i32
    %c0_i32_0 = arith.constant 0 : i32
    %c0_i32_1 = arith.constant 0 : i32
    return %arg0, %c0_i32, %c0_i32_0 : i32, i32, i32
  }
  func.func @transform_15(%arg0: i32) -> (i32, i32, i32) {
    %c0_i32 = arith.constant 0 : i32
    %c0_i32_0 = arith.constant 0 : i32
    %c0_i32_1 = arith.constant 0 : i32
    return %arg0, %c0_i32, %c0_i32_0 : i32, i32, i32
  }
  func.func @transform_16(%arg0: i32) -> (i32, i32, i32) {
    %c0_i32 = arith.constant 0 : i32
    %c0_i32_0 = arith.constant 0 : i32
    %c0_i32_1 = arith.constant 0 : i32
    return %arg0, %c0_i32, %c0_i32_0 : i32, i32, i32
  }
  func.func @transform_17(%arg0: i32) -> (i32, i32, i32, i32) {
    %c0_i32 = arith.constant 0 : i32
    %c0_i32_0 = arith.constant 0 : i32
    %c0_i32_1 = arith.constant 0 : i32
    %c0_i32_2 = arith.constant 0 : i32
    return %arg0, %c0_i32, %c0_i32_0, %c0_i32_1 : i32, i32, i32, i32
  }
}

</mosaic_0001>

<bundles_post_ra>
// kernel: tpu_custom_call.1
= control target key start
LH: loop header
LB: loop body
LE: loop exit
PB: predicated region body
PF: predicated region fallthrough
CT: control target
= control target key end

     0   :  { %s15717_s0 = inlined_call_operand.hbm [shape: f32[2,128,128], index: 0, kind: input, shape index: {}]   ;;  %s15718_s1 = inlined_call_operand.hbm [shape: f32[2,128,128], index: 1, kind: input, shape index: {}]   ;;  %s15719_s2 = inlined_call_operand.hbm [shape: f32[128,128], index: 2, kind: input, shape index: {}]   ;;  %s15720_s3 = inlined_call_operand.hbm [shape: bf16[2,128,256], index: 3, kind: input, shape index: {}]   ;;  %s15721_s4 = inlined_call_operand.vmem [shape: f32[2,1,256], index: 4, kind: input, shape index: {}]   ;;  %s15722_s5 = inlined_call_operand.hbm [shape: bf16[2,128,128], index: 5, kind: input, shape index: {}]   ;;  %s15723_s6 = inlined_call_operand.vmem [shape: f32[2,1,128], index: 6, kind: input, shape index: {}]   ;;  %s15724_s7 = inlined_call_operand.hbm [shape: bf16[2,128,128], index: 7, kind: input, shape index: {}]   ;;  %s15725_s8 = inlined_call_operand.vmem [shape: f32[2,1,128], index: 8, kind: input, shape index: {}]   ;;  %s15726_s9 = inlined_call_operand.vmem [shape: f32[2,1,128], index: 9, kind: input, shape index: {}]   ;;  %s15727_s10 = inlined_call_operand.vmem [shape: f32[2,1,128], index: 10, kind: input, shape index: {}]   ;;  %s15728_s11 = inlined_call_operand.hbm [shape: bf16[2,128,256], index: 11, kind: input, shape index: {}]   ;;  %s15729_s12 = inlined_call_operand.vmem [shape: f32[2,1,256], index: 12, kind: input, shape index: {}]   ;;  %s15730_s13 = inlined_call_operand.hbm [shape: bf16[2,256,128], index: 13, kind: input, shape index: {}]   ;;  %s15731_s14 = inlined_call_operand.vmem [shape: f32[2,1,128], index: 14, kind: input, shape index: {}]   ;;  %s15732_s15 = inlined_call_operand.vmem [shape: f32[2,1,128], index: 15, kind: input, shape index: {}]   ;;  %s15733_s16 = inlined_call_operand.vmem [shape: f32[2,1,128], index: 16, kind: input, shape index: {}]   ;;  %s15734_s17 = inlined_call_operand.hbm [shape: bf16[2,2,128,128], index: 17, kind: output, shape index: {}]  }
   0x1   :  { %15920 = sst [smem:[#allocation111_spill]] %s15717_s0 }
   0x2   :  { %15921 = sst [smem:[#allocation112_spill]] %s15718_s1 }
   0x3   :  { %15922 = sst [smem:[#allocation113_spill]] %s15719_s2 }
   0x4   :  { %15923 = sst [smem:[#allocation114_spill]] %s15720_s3 }
   0x5   :  { %15924 = sst [smem:[#allocation115_spill]] %s15721_s4 }
   0x6   :  { %15925 = sst [smem:[#allocation116_spill]] %s15722_s5 }
   0x7   :  { %15926 = sst [smem:[#allocation117_spill]] %s15723_s6 }
   0x8   :  { %15927 = sst [smem:[#allocation118_spill]] %s15724_s7 }
   0x9   :  { %15928 = sst [smem:[#allocation119_spill]] %s15725_s8 }
   0xa   :  { %15929 = sst [smem:[#allocation120_spill]] %s15726_s9 }
   0xb   :  { %15930 = sst [smem:[#allocation121_spill]] %s15727_s10 }
   0xc   :  { %15931 = sst [smem:[#allocation122_spill]] %s15728_s11 }
   0xd   :  { %15932 = sst [smem:[#allocation123_spill]] %s15729_s12 }
   0xe   :  { %15933 = sst [smem:[#allocation124_spill]] %s15730_s13 }
   0xf   :  { %15934 = sst [smem:[#allocation125_spill]] %s15731_s14 }
  0x10   :  { %15935 = sst [smem:[#allocation126_spill]] %s15732_s15 }
  0x11   :  { %15936 = sst [smem:[#allocation127_spill]] %s15733_s16 }
  0x12   :  { %15937 = sst [smem:[#allocation128_spill]] %s15734_s17 }
  0x13   :  { %22 = vsyncpa [#allocation4], 0 }
  0x14   :  { %23 = vsyncpa [#allocation7], 0 }
  0x15   :  { %24 = vsyncpa [#allocation10], 0 }
  0x16   :  { %26 = vsyncpa [#allocation10 + $0x1], 0 }
  0x17   :  { %27 = vsyncpa [#allocation13], 0 }
  0x18   :  { %29 = vsyncpa [#allocation13 + $0x1], 0 }
  0x19   :  { %30 = vsyncpa [#allocation16], 0 }
  0x1a   :  { %32 = vsyncpa [#allocation16 + $0x1], 0 }
  0x1b   :  { %33 = vsyncpa [#allocation5], 0 }
  0x1c   :  { %35 = vsyncpa [#allocation5 + $0x1], 0  ;;  %s11507_s24 = smov 0   ;;  %s11509_s25 = smov 0  }
  0x1d   :  { %s11511_s26 = smov 0   ;;  %s11513_s27 = smov 0  }
  0x1e LB: > { %15938 = sst [smem:[#allocation24_spill]] %s11385_s24  ;;  %s11528_s28 = sadd.s32 4294967295, %s11397_s27   ;;  %s11397_s27 = sphi %s11513_s27, %s16351_s27   ;;  %s11393_s26 = sphi %s11511_s26, %s16354_s26   ;;  %s11389_s25 = sphi %s11509_s25, %s16353_s25   ;;  %s11385_s24 = sphi %s11507_s24, %s16352_s24  }
  0x1f   : > { %15939 = sst [smem:[#allocation25_spill]] %s11389_s25  ;;  %s8444_s29 = sadd.s32 4294967294, %s11397_s27  }
  0x20   : > { %15940 = sst [smem:[#allocation26_spill]] %s11393_s26  ;;  %s11532_s0 = sadd.s32 1, %s11397_s27  }
  0x21   : > { %15941 = sst [smem:[#allocation27_spill]] %s11397_s27  ;;  %s111_s30 = sadd.s32 1, %s11393_s26 }
  0x22   : > { %15942 = sst [smem:[#allocation28_spill]] %s11528_s28  ;;  %s108_s18 = ssub.s32 %s11397_s27, %s11532_s0 }
  0x23   : > { %15943 = sst [smem:[#allocation29_spill]] %s11532_s0  ;;  %p118_p0 = scmp.ne.s32.totalorder %s11393_s26, %s11389_s25 }
  0x24   : > { %p109_p1 = scmp.eq.s32.totalorder %s108_s18, 0  ;;  %p119_p2 = scmp.eq.s32.totalorder %s11397_s27, 0 }
  0x25   : > { %p124_p3 = scmp.ne.s32.totalorder %s11389_s25, %s11385_s24  ;;  %p15737_p4 = scmp.eq.s32.totalorder %s11528_s28, 0 }
  0x26   : > { %s11544_s19 = scalar_select %p109_p1, %s11393_s26, %s111_s30  }
  0x27   : > { %p11546_p5 = por %p119_p2, %p118_p0  ;;  %p11552_p6 = por %p15737_p4, %p124_p3 }
  0x28   : > { %15944 = sst [smem:[#allocation30_spill]] %s11544_s19  ;;  %p486_p7 = scmp.eq.s32.totalorder %s11528_s28, 1 }
  0x29   : > { %s15945_s1 = scalar_select %p11546_p5, 1, 0 }
  0x2a   : > { %s15946_s20 = scalar_select %p11552_p6, 1, 0 }
  0x2b   : > { %p492_p8 = scmp.eq.s32.totalorder %s8444_s29, 1  ;;  %p8445_p9 = scmp.ge.s32.totalorder %s11397_s27, 1 }
  0x2c   : > { %15947 = sst [smem:[#allocation31_spill]] %s15946_s20  ;;  %p499_p10 = scmp.lt.s32.totalorder %s11397_s27, 3 }
  0x2d   : > { %p11559_p11 = por %p486_p7, %p118_p0  ;;  %p11563_p12 = por %p492_p8, %p124_p3 }
  0x2e   : > { %p11567_p13 = pnand %p8445_p9, %p499_p10  ;;  %s11399_s30 = smov [#allocation6]  }
  0x2f   : > { %s15948_s21 = scalar_select %p11559_p11, 1, 0 }
  0x30   : > { %s15950_s22 = scalar_select %p11563_p12, 1, 0 }
  0x31   : > { %15949 = sst [smem:[#allocation32_spill]] %s15948_s21  ;;  %p10199_p2 = pneg %p11567_p13 }
  0x32   : > { %15951 = sst [smem:[#allocation33_spill]] %s15950_s22  ;;  %s524_s29 = sshll.u32 %s11399_s30, 4  ;;  %s525_s29 = int_to_ptr.vmem [resolvable:$true] %s524_s29 }
  0x33   : > { %s15952_s23 = scalar_select %p11567_p13, 1, 0 }
  0x34   : > { %p15954_p6 = scmp.eq.s32.totalorder %s11528_s28, 0  ;;  %s15956_s24 = sld [smem:[#allocation112_spill]] }
  0x35   : > { %15953 = sst [smem:[#allocation34_spill]] %s15952_s23 }
  0x36   : > { %p11577_p0 = pnand %p10199_p2, %p15954_p6 }
  0x38   : > { %s15955_s18 = scalar_select %p11577_p0, 1, 0 }
  0x39   : > { %p11591_p8 = pneg %p11577_p0 }
  0x3a   : > { %s15957_s17 = smov %s15956_s24  ;;  %s11081_s21 = scalar_lea.hbm %s15956_s24, 4096 }
  0x3b   : > { %p11082_p7 = scmp.ne.s32.totalorder %s15957_s17, %s11081_s21  ;;  %p11088_p10 = scmp.lt.u32.totalorder %s11081_s21, %s15957_s17 }
  0x3c   : > { %s15958_s30 = scalar_select %p11591_p8, 1, 0 }
  0x3d   : > { %p11084_p6 = pnand %p11591_p8, %p11082_p7 }
  0x3f   : > { %p11085_p9 = pneg %p11084_p6 }
  0x41   : > { %p11090_p2 = pnand %p11088_p10, %p11085_p9 }
  0x43   : > { %11093 = shalt.err (!%p11090_p2)
}
  0x44   : > { %s11094_s24 = scalar_lea.vmem %s525_s29, 4096  ;;  %p11102_p12 = scmp.lt.s32.totalorder %s525_s29, %s525_s29 }
  0x45   : > { %p11095_p4 = scmp.ne.s32.totalorder %s525_s29, %s11094_s24  ;;  %p11103_p11 = scmp.lt.s32.totalorder %s11094_s24, %s11094_s24 }
  0x47   : > { %p11097_p1 = pnand %p11095_p4, %p11591_p8  ;;  %p11104_p13 = por %p11103_p11, %p11102_p12 }
  0x49   : > { %p11098_p3 = pneg %p11097_p1 }
  0x4b   : > { %p11105_p5 = pnand %p11104_p13, %p11098_p3 }
  0x4d   : > { %11108 = shalt.err (!%p11105_p5)
}
  0x4e   : > { %s15748_s15 = smov 128   ;;  %s15750_s12 = smov 8  }
  0x4f   : > { %10205 = dma.hbm_to_vmem [thread:$0]  (!%p11577_p0), %s15957_s17, 4096, %s525_s29, [#allocation7], %s15748_s15, %s15748_s15, %s15750_s12  }
  0x50   : > { %s11611_s0 = sand.u32 1, %s11393_s26   ;;  %s11614_s21 = sshll.u32 %s11397_s27, 11 }
  0x51   : > { %s11617_s22 = sshll.u32 %s11611_s0, 7  ;;  %s15959_s3 = sld [smem:[#allocation114_spill]] }
  0x52   : > { %p15960_p4 = scmp.ne.s32.totalorder %s15945_s1, 0  ;;  %p15961_p5 = scmp.lt.s32.totalorder %s11397_s27, 2 }
  0x53   : > { %s555_s14 = scalar_lea.vmem [#allocation9], %s11617_s22  ;;  %s15963_s19 = sand.u32 1, %s11397_s27  }
  0x54   : > { %p11629_p11 = pnand %p15961_p5, %p15960_p4  ;;  %s562_s16 = sshll.u32 %s555_s14, 4  ;;  %s11635_s16 = int_to_ptr.vmem [resolvable:$true] %s562_s16 }
  0x55   : > { %s11639_s24 = scalar_lea.sflag [#allocation10], %s15963_s19 }
  0x56   : > { %s15962_s29 = scalar_select %p11629_p11, 1, 0 }
  0x57   : > { %s11623_s10 = scalar_lea.hbm %s15959_s3, %s11614_s21  ;;  %p11645_p13 = pneg %p11629_p11 }
  0x58   : > { %s11109_s12 = scalar_lea.hbm %s11623_s10, 2048  ;;  %s11114_s14 = scalar_lea.hbm %s15959_s3, 4096 }
  0x59   : > { %p11110_p12 = scmp.ne.s32.totalorder %s11623_s10, %s11109_s12  ;;  %p11115_p7 = scmp.lt.u32.totalorder %s11623_s10, %s15959_s3 }
  0x5a   : > { %s15964_s1 = scalar_select %p11645_p13, 1, 0 }
  0x5b   : > { %p11112_p1 = pnand %p11645_p13, %p11110_p12  ;;  %p11116_p6 = scmp.lt.u32.totalorder %s11114_s14, %s11109_s12 }
  0x5c   : > { %p11118_p10 = scmp.lt.u32.totalorder %s11109_s12, %s11623_s10 }
  0x5d   : > { %p11113_p3 = pneg %p11112_p1  ;;  %p11117_p9 = por %p11116_p6, %p11115_p7 }
  0x5f   : > { %p11119_p2 = por %p11118_p10, %p11117_p9 }
  0x61   : > { %p11120_p4 = pnand %p11119_p2, %p11113_p3 }
  0x63   : > { %11123 = shalt.err (!%p11120_p4)
}
  0x64   : > { %s11124_s19 = scalar_lea.vmem %s11635_s16, 2048  ;;  %s11402_s17 = smov [#allocation9]  }
  0x65   : > { %p11125_p5 = scmp.ne.s32.totalorder %s11635_s16, %s11124_s19  ;;  %s11129_s26 = sshll.u32 %s11402_s17, 4  ;;  %s11130_s26 = int_to_ptr.vmem [resolvable:$false] %s11129_s26 }
  0x66   : > { %s11131_s9 = scalar_lea.vmem %s11130_s26, 4096  ;;  %p11132_p0 = scmp.lt.s32.totalorder %s11635_s16, %s11130_s26 }
  0x67   : > { %p11127_p12 = pnand %p11125_p5, %p11645_p13  ;;  %p11133_p8 = scmp.lt.s32.totalorder %s11131_s9, %s11124_s19 }
  0x69   : > { %p11128_p1 = pneg %p11127_p12  ;;  %p11134_p7 = por %p11133_p8, %p11132_p0 }
  0x6b   : > { %p11135_p6 = pnand %p11134_p7, %p11128_p1 }
  0x6d   : > { %11138 = shalt.err (!%p11135_p6)
}
  0x6e   : > { %s15965_s15 = smov 8   ;;  %s15966_s12 = smov 128  }
  0x6f   : > { %10212 = dma.hbm_to_vmem [thread:$0]  (!%p11629_p11), %s11623_s10, 2048, %s11635_s16, %s11639_s24, %s15966_s12, %s15966_s12, %s15965_s15  }
  0x70   : > { %s8715_s14 = sshll.u32 %s11397_s27, 10  ;;  %s15967_s5 = sld [smem:[#allocation116_spill]] }
  0x71   : > { %s15968_s9 = sshll.u32 %s11611_s0, 6  ;;  %s15969_s7 = sld [smem:[#allocation118_spill]] }
  0x72   : > { %s583_s3 = scalar_lea.vmem [#allocation11], %s15968_s9  ;;  %s15970_s25 = smov %s15968_s9 }
  0x73   : > { %s590_s8 = sshll.u32 %s583_s3, 4  ;;  %s610_s10 = scalar_lea.vmem [#allocation12], %s15970_s25  ;;  %s11680_s8 = int_to_ptr.vmem [resolvable:$true] %s590_s8 }
  0x74   : > { %s617_s16 = sshll.u32 %s610_s10, 4  ;;  %s11403_s17 = smov [#allocation3]   ;;  %s11689_s16 = int_to_ptr.vmem [resolvable:$true] %s617_s16 }
  0x75   : > { %s11691_s19 = sshll.u32 %s11403_s17, 4  ;;  %s15971_s3 = sand.u32 1, %s11397_s27   ;;  %s512_s19 = int_to_ptr.vmem [resolvable:$true] %s11691_s19 }
  0x76   : > { %s11676_s26 = scalar_lea.hbm %s15967_s5, %s8715_s14  ;;  %s11695_s9 = scalar_lea.sflag [#allocation13], %s15971_s3 }
  0x77   : > { %s11685_s20 = scalar_lea.hbm %s15969_s7, %s8715_s14  ;;  %s11144_s14 = scalar_lea.hbm %s15969_s7, 2048 }
  0x78   : > { %s11139_s28 = scalar_lea.hbm %s11685_s20, 1024  ;;  %p11145_p9 = scmp.lt.u32.totalorder %s11685_s20, %s15969_s7 }
  0x79   : > { %p11140_p0 = scmp.ne.s32.totalorder %s11685_s20, %s11139_s28  ;;  %p11146_p10 = scmp.lt.u32.totalorder %s11144_s14, %s11139_s28 }
  0x7a   : > { %p11148_p4 = scmp.lt.u32.totalorder %s11139_s28, %s11685_s20 }
  0x7b   : > { %p11142_p8 = pnand %p11140_p0, %p11645_p13  ;;  %p11147_p2 = por %p11146_p10, %p11145_p9 }
  0x7d   : > { %p11143_p3 = pneg %p11142_p8  ;;  %p11149_p5 = por %p11148_p4, %p11147_p2 }
  0x7f   : > { %p11150_p12 = pnand %p11149_p5, %p11143_p3 }
  0x81   : > { %11153 = shalt.err (!%p11150_p12)
}
  0x82   : > { %s11154_s10 = scalar_lea.vmem %s11689_s16, 1024  ;;  %s11404_s17 = smov [#allocation12]  }
  0x83   : > { %p11155_p1 = scmp.ne.s32.totalorder %s11689_s16, %s11154_s10  ;;  %s11159_s3 = sshll.u32 %s11404_s17, 4  ;;  %s11160_s3 = int_to_ptr.vmem [resolvable:$false] %s11159_s3 }
  0x84   : > { %s11161_s23 = scalar_lea.vmem %s11160_s3, 2048  ;;  %p11162_p0 = scmp.lt.s32.totalorder %s11689_s16, %s11160_s3 }
  0x85   : > { %p11157_p7 = pnand %p11155_p1, %p11645_p13  ;;  %p11163_p8 = scmp.lt.s32.totalorder %s11161_s23, %s11154_s10 }
  0x87   : > { %p11158_p6 = pneg %p11157_p7  ;;  %p11164_p9 = por %p11163_p8, %p11162_p0 }
  0x89   : > { %p11165_p10 = pnand %p11164_p9, %p11158_p6 }
  0x8b   : > { %11168 = shalt.err (!%p11165_p10)
}
  0x8c   : > { %s15768_s28 = smov 64   ;;  %s11406_s4 = smov 4  }
  0x8d   : > { %10218 = dma.hbm_to_vmem [thread:$0]  (!%p11629_p11), %s11685_s20, 1024, %s11689_s16, %s11695_s9, %s15768_s28, %s15768_s28, %s11406_s4  }
  0x8e   : > { %s15972_s25 = sld [smem:[#allocation111_spill]]  ;;  %p15974_p2 = scmp.ne.s32.totalorder %s15958_s30, 0 }
  0x94   : > { %s15973_s10 = smov %s15972_s25  ;;  %s11169_s17 = scalar_lea.hbm %s15972_s25, 4096 }
  0x95   : > { %p11170_p3 = scmp.ne.s32.totalorder %s15973_s10, %s11169_s17  ;;  %p11176_p12 = scmp.lt.u32.totalorder %s11169_s17, %s15973_s10 }
  0x97   : > { %p11172_p4 = pnand %p11170_p3, %p15974_p2 }
  0x99   : > { %p11173_p5 = pneg %p11172_p4 }
  0x9b   : > { %p11178_p1 = pnand %p11176_p12, %p11173_p5 }
  0x9d   : > { %11181 = shalt.err (!%p11178_p1)
}
  0x9e   : > { %s11182_s13 = scalar_lea.vmem %s512_s19, 4096  ;;  %p11190_p8 = scmp.lt.s32.totalorder %s512_s19, %s512_s19 }
  0x9f   : > { %p11183_p7 = scmp.ne.s32.totalorder %s512_s19, %s11182_s13  ;;  %p11191_p9 = scmp.lt.s32.totalorder %s11182_s13, %s11182_s13 }
  0xa1   : > { %p11185_p6 = pnand %p11183_p7, %p15974_p2  ;;  %p11192_p10 = por %p11191_p9, %p11190_p8 }
  0xa3   : > { %p11186_p0 = pneg %p11185_p6 }
  0xa5   : > { %p11193_p11 = pnand %p11192_p10, %p11186_p0 }
  0xa7   : > { %11196 = shalt.err (!%p11193_p11)
}
  0xa8   : > { %p15975_p3 = scmp.ne.s32.totalorder %s15955_s18, 0  ;;  %s11407_s20 = smov [#allocation8]  }
  0xa9   : > { %s537_s16 = sshll.u32 %s11407_s20, 4  ;;  %s15976_s11 = sld [smem:[#allocation122_spill]]  ;;  %s538_s16 = int_to_ptr.vmem [resolvable:$true] %s537_s16 }
  0xaa   : > { %10202 = dma.hbm_to_vmem [thread:$0]  (!%p15975_p3), %s15973_s10, 4096, %s512_s19, [#allocation4], %s15966_s12, %s15966_s12, %s15965_s15  }
  0xab   : > { %s15977_s2 = sld [smem:[#allocation113_spill]] }
  0xaf   : > { %s11748_s13 = scalar_lea.hbm %s15976_s11, %s11614_s21 }
  0xb1   : > { %s11197_s3 = scalar_lea.hbm %s15977_s2, 2048 }
  0xb2   : > { %p11198_p11 = scmp.ne.s32.totalorder %s15977_s2, %s11197_s3  ;;  %p11204_p12 = scmp.lt.u32.totalorder %s11197_s3, %s15977_s2 }
  0xb4   : > { %p11200_p4 = pnand %p11198_p11, %p15974_p2 }
  0xb6   : > { %p11201_p5 = pneg %p11200_p4 }
  0xb8   : > { %p11206_p1 = pnand %p11204_p12, %p11201_p5 }
  0xba   : > { %11209 = shalt.err (!%p11206_p1)
}
  0xbb   : > { %s11210_s27 = scalar_lea.vmem %s538_s16, 2048  ;;  %p11218_p8 = scmp.lt.s32.totalorder %s538_s16, %s538_s16 }
  0xbc   : > { %p11211_p7 = scmp.ne.s32.totalorder %s538_s16, %s11210_s27  ;;  %p11219_p9 = scmp.lt.s32.totalorder %s11210_s27, %s11210_s27 }
  0xbe   : > { %p11213_p6 = pnand %p11211_p7, %p15974_p2  ;;  %p11220_p10 = por %p11219_p9, %p11218_p8 }
  0xc0   : > { %p11214_p0 = pneg %p11213_p6 }
  0xc2   : > { %p11221_p13 = pnand %p11220_p10, %p11214_p0 }
  0xc4   : > { %11224 = shalt.err (!%p11221_p13)
}
  0xc5   : > { %10208 = dma.hbm_to_vmem [thread:$0]  (!%p15975_p3), %s15977_s2, 2048, %s538_s16, [#allocation7], %s15966_s12, %s15966_s12, %s15965_s15  }
  0xc6   : > { %s11225_s30 = scalar_lea.hbm %s11676_s26, 1024  ;;  %p15978_p11 = scmp.ne.s32.totalorder %s15964_s1, 0 }
  0xc7   : > { %p11226_p2 = scmp.ne.s32.totalorder %s11676_s26, %s11225_s30  ;;  %s11230_s18 = scalar_lea.hbm %s15967_s5, 2048 }
  0xc8   : > { %p11231_p13 = scmp.lt.u32.totalorder %s11676_s26, %s15967_s5  ;;  %p11232_p12 = scmp.lt.u32.totalorder %s11230_s18, %s11225_s30 }
  0xc9   : > { %p11228_p4 = pnand %p11226_p2, %p15978_p11  ;;  %p11234_p7 = scmp.lt.u32.totalorder %s11225_s30, %s11676_s26 }
  0xca   : > { %p11233_p1 = por %p11232_p12, %p11231_p13 }
  0xcb   : > { %p11229_p5 = pneg %p11228_p4 }
  0xcc   : > { %p11235_p6 = por %p11234_p7, %p11233_p1 }
  0xce   : > { %p11236_p0 = pnand %p11235_p6, %p11229_p5 }
  0xd0   : > { %11239 = shalt.err (!%p11236_p0)
}
  0xd1   : > { %s11240_s16 = scalar_lea.vmem %s11680_s8, 1024  ;;  %s11408_s3 = smov [#allocation11]  }
  0xd2   : > { %p11241_p3 = scmp.ne.s32.totalorder %s11680_s8, %s11240_s16  ;;  %s11245_s23 = sshll.u32 %s11408_s3, 4  ;;  %s11246_s23 = int_to_ptr.vmem [resolvable:$false] %s11245_s23 }
  0xd3   : > { %s11247_s19 = scalar_lea.vmem %s11246_s23, 2048  ;;  %p11248_p10 = scmp.lt.s32.totalorder %s11680_s8, %s11246_s23 }
  0xd4   : > { %p11243_p8 = pnand %p11241_p3, %p15978_p11  ;;  %p11249_p2 = scmp.lt.s32.totalorder %s11247_s19, %s11240_s16 }
  0xd6   : > { %p11244_p9 = pneg %p11243_p8  ;;  %p11250_p4 = por %p11249_p2, %p11248_p10 }
  0xd8   : > { %p11251_p13 = pnand %p11250_p4, %p11244_p9 }
  0xda   : > { %11254 = shalt.err (!%p11251_p13)
}
  0xdb   : > { %p15979_p5 = scmp.ne.s32.totalorder %s15962_s29, 0  ;;  %s15980_s7 = smov 64  }
  0xdc   : > { %s649_s27 = scalar_lea.vmem [#allocation14], %s11617_s22  ;;  %s11255_s20 = scalar_lea.hbm %s11748_s13, 2048 }
  0xdd   : > { %10215 = dma.hbm_to_vmem [thread:$0]  (!%p15979_p5), %s11676_s26, 1024, %s11680_s8, %s11639_s24, %s15980_s7, %s15980_s7, %s11406_s4  }
  0xde   : > { %s656_s28 = sshll.u32 %s649_s27, 4  ;;  %p11256_p12 = scmp.ne.s32.totalorder %s11748_s13, %s11255_s20  ;;  %s11797_s28 = int_to_ptr.vmem [resolvable:$true] %s656_s28 }
  0xdf   : > { %s11260_s14 = scalar_lea.hbm %s15976_s11, 4096  ;;  %p11261_p6 = scmp.lt.u32.totalorder %s11748_s13, %s15976_s11 }
  0xe0   : > { %p11258_p1 = pnand %p11256_p12, %p15978_p11  ;;  %p11262_p0 = scmp.lt.u32.totalorder %s11260_s14, %s11255_s20 }
  0xe1   : > { %p11264_p8 = scmp.lt.u32.totalorder %s11255_s20, %s11748_s13 }
  0xe2   : > { %p11259_p7 = pneg %p11258_p1  ;;  %p11263_p3 = por %p11262_p0, %p11261_p6 }
  0xe4   : > { %p11265_p9 = por %p11264_p8, %p11263_p3 }
  0xe6   : > { %p11266_p10 = pnand %p11265_p9, %p11259_p7 }
  0xe8   : > { %11269 = shalt.err (!%p11266_p10)
}
  0xe9   : > { %s11270_s8 = scalar_lea.vmem %s11797_s28, 2048  ;;  %s11409_s24 = smov [#allocation14]  }
  0xea   : > { %p11271_p2 = scmp.ne.s32.totalorder %s11797_s28, %s11270_s8  ;;  %s11275_s26 = sshll.u32 %s11409_s24, 4  ;;  %s11276_s26 = int_to_ptr.vmem [resolvable:$false] %s11275_s26 }
  0xeb   : > { %s11277_s17 = scalar_lea.vmem %s11276_s26, 4096  ;;  %p11278_p12 = scmp.lt.s32.totalorder %s11797_s28, %s11276_s26 }
  0xec   : > { %p11273_p4 = pnand %p11271_p2, %p15978_p11  ;;  %p11279_p1 = scmp.lt.s32.totalorder %s11277_s17, %s11270_s8 }
  0xee   : > { %p11274_p13 = pneg %p11273_p4  ;;  %p11280_p6 = por %p11279_p1, %p11278_p12 }
  0xf0   : > { %p11281_p0 = pnand %p11280_p6, %p11274_p13 }
  0xf2   : > { %11284 = shalt.err (!%p11281_p0)
}
  0xf3   : > { %10221 = dma.hbm_to_vmem [thread:$0]  (!%p15979_p5), %s11748_s13, 2048, %s11797_s28, %s11695_s9, %s15966_s12, %s15966_s12, %s15965_s15  }
  0xf4   : > { %s15981_s23 = sld [smem:[#allocation124_spill]]  ;;  %s677_s27 = scalar_lea.vmem [#allocation15], %s11617_s22 }
  0xf5   : > { %s684_s20 = sshll.u32 %s677_s27, 4  ;;  %s674_s30 = scalar_lea.sflag [#allocation16], %s11611_s0  ;;  %s11831_s20 = int_to_ptr.vmem [resolvable:$true] %s684_s20 }
  0xfa   : > { %s11828_s19 = scalar_lea.hbm %s15981_s23, %s11614_s21  ;;  %s11290_s9 = scalar_lea.hbm %s15981_s23, 4096 }
  0xfb   : > { %s11285_s6 = scalar_lea.hbm %s11828_s19, 2048  ;;  %p11291_p9 = scmp.lt.u32.totalorder %s11828_s19, %s15981_s23 }
  0xfc   : > { %p11286_p7 = scmp.ne.s32.totalorder %s11828_s19, %s11285_s6  ;;  %p11292_p10 = scmp.lt.u32.totalorder %s11290_s9, %s11285_s6 }
  0xfd   : > { %p11294_p4 = scmp.lt.u32.totalorder %s11285_s6, %s11828_s19 }
  0xfe   : > { %p11288_p3 = pnand %p11286_p7, %p15978_p11  ;;  %p11293_p2 = por %p11292_p10, %p11291_p9 }
 0x100   : > { %p11289_p8 = pneg %p11288_p3  ;;  %p11295_p13 = por %p11294_p4, %p11293_p2 }
 0x102   : > { %p11296_p12 = pnand %p11295_p13, %p11289_p8 }
 0x104   : > { %11299 = shalt.err (!%p11296_p12)
}
 0x105   : > { %s11300_s22 = scalar_lea.vmem %s11831_s20, 2048  ;;  %s11410_s28 = smov [#allocation15]  }
 0x106   : > { %p11301_p1 = scmp.ne.s32.totalorder %s11831_s20, %s11300_s22  ;;  %s11305_s14 = sshll.u32 %s11410_s28, 4  ;;  %s11306_s14 = int_to_ptr.vmem [resolvable:$false] %s11305_s14 }
 0x107   : > { %s11307_s18 = scalar_lea.vmem %s11306_s14, 4096  ;;  %p11308_p7 = scmp.lt.s32.totalorder %s11831_s20, %s11306_s14 }
 0x108   : > { %p11303_p6 = pnand %p11301_p1, %p15978_p11  ;;  %p11309_p3 = scmp.lt.s32.totalorder %s11307_s18, %s11300_s22 }
 0x10a   : > { %p11304_p0 = pneg %p11303_p6  ;;  %p11310_p9 = por %p11309_p3, %p11308_p7 }
 0x10c   : > { %p11311_p10 = pnand %p11310_p9, %p11304_p0 }
 0x10e   : > { %11314 = shalt.err (!%p11311_p10)
}
 0x10f   : > { %10224 = dma.hbm_to_vmem [thread:$0]  (!%p15979_p5), %s11828_s19, 2048, %s11831_s20, %s674_s30, %s15980_s7, %s15980_s7, %s11406_s4  }
 0x110   : > { %s15982_s1 = sld [smem:[#allocation34_spill]] }
 0x116   : > { %p15983_p11 = scmp.ne.s32.totalorder %s15982_s1, 0 }
 0x118   : > { %714 = sbr.rel (%p15983_p11) target bundleno = 5403 (0x151b), region = 88 }
 0x11f   : > { %s15984_s25 = sld [smem:[#allocation28_spill]] }
 0x125   : > { %p15985_p8 = scmp.eq.s32.totalorder %s15984_s25, 0 }
 0x127   : > { %11360 = dma.done.wait (%p15985_p8), [#allocation4], 4096   ;;  %p15986_p2 = pmov %p15985_p8 }
 0x129   : > { %11362 = vsyncadd (%p15986_p2), [#allocation4], 4294963200  ;;  %p15987_p4 = pmov %p15986_p2 }
 0x12a   : > { %p15988_p13 = pmov %p15986_p2 }
 0x12b   : > { %11364 = dma.done.wait (%p15987_p4), [#allocation7], 6144  }
 0x12c   : > { %11366 = vsyncadd (%p15988_p13), [#allocation7], 4294961152  ;;  %s15989_s0 = sld [smem:[#allocation25_spill]]  ;;  %s15990_s29 = sld [smem:[#allocation31_spill]] }
 0x12d   : > { %s728_s8 = sand.u32 1, %s15984_s25  }
 0x12e   : > { %s729_s24 = scalar_lea.sflag [#allocation10], %s728_s8 }
 0x132   : > { %s11872_s4 = sand.u32 1, %s15989_s0   ;;  %p15992_p5 = scmp.ne.s32.totalorder %s15990_s29, 0 }
 0x133   : > { %15991 = sst [smem:[#allocation35_spill]] %s11872_s4  ;;  %s8469_s7 = sshll.u32 %s11872_s4, 7 }
 0x134   : > { %s11875_s26 = scalar_lea.vmem [#allocation9], %s8469_s7 }
 0x135   : > { %11368 = dma.done.wait (%p15992_p5), %s729_s24, 3072  }
 0x136   : > { %11370 = vsyncadd (%p15992_p5), %s729_s24, 4294964224  ;;  %s8470_s17 = sshll.u32 %s11872_s4, 6  ;;  %s747_s3 = scalar_lea.sflag [#allocation13], %s728_s8 }
 0x137   : > { %s11882_s16 = scalar_lea.vmem [#allocation11], %s8470_s17  ;;  %s11884_s19 = scalar_lea.vmem [#allocation12], %s8470_s17 }
 0x138   : > { %11372 = dma.done.wait (%p15992_p5), %s747_s3, 3072  }
 0x139   : > { %11374 = vsyncadd (%p15992_p5), %s747_s3, 4294964224  ;;  %s11890_s27 = scalar_lea.vmem [#allocation14], %s8469_s7  ;;  %s765_s20 = scalar_lea.sflag [#allocation16], %s11872_s4 }
 0x13a   : > { %s11893_s30 = scalar_lea.vmem [#allocation15], %s8469_s7 }
 0x13b   : > { %11376 = dma.done.wait (%p15992_p5), %s765_s20, 2048  }
 0x13c   : > { %11378 = vsyncadd (%p15992_p5), %s765_s20, 4294965248  ;;  %p868_p12 = scmp.lt.s32.totalorder %s15984_s25, 1  ;;  %s15994_s14 = sld [smem:[#allocation115_spill]] }
 0x13d   : > { %s15997_s10 = sld [smem:[#allocation121_spill]]  ;;  %s15998_s9 = sld [smem:[#allocation123_spill]] }
 0x13e   : > { %s11901_s6 = scalar_select %p868_p12, %s15984_s25, 1 }
 0x13f   : > { %s16000_s0 = sld [smem:[#allocation126_spill]]  ;;  %s16001_s17 = sld [smem:[#allocation127_spill]] }
 0x140   : > { %s8475_s15 = sshll.u32 %s11901_s6, 1  ;;  %s11942_s20 = scalar_lea.vmem [#allocation17], %s8469_s7 }
 0x141   : > { %p16002_p1 = scmp.ne.s32.totalorder %s15984_s25, 0 }
 0x142   : > { %s11911_s18 = scalar_lea.vmem %s15994_s14, %s8475_s15  ;;  %s15999_s14 = sld [smem:[#allocation125_spill]]  ;;  %v902_v0 = vld [vmem:[#allocation3] sm:$0xff] (!%p16002_p1)  ;;  %v903_v1 = vld [vmem:[#allocation3 + $0x8] sm:$0xff] (!%p16002_p1)  ;;  %v904_v2 = vld [vmem:[#allocation3 + $0x10] sm:$0xff] (!%p16002_p1) }
 0x143   : > { %s883_s11 = scalar_lea.vmem %s15997_s10, %s11901_s6  ;;  %s11928_s21 = scalar_lea.vmem %s15998_s9, %s8475_s15  ;;  %934 = vst [vmem:[#allocation2] sm:$0xff] (!%p16002_p1), %v902_v0  ;;  %935 = vst [vmem:[#allocation2 + $0x8] sm:$0xff] (!%p16002_p1), %v903_v1  ;;  %v905_v3 = vld [vmem:[#allocation3 + $0x18] sm:$0xff] (!%p16002_p1)  ;;  %v906_v4 = vld [vmem:[#allocation3 + $0x20] sm:$0xff] (!%p16002_p1) }
 0x144   : > { %901 = sbr.rel (%p16002_p1) target bundleno = 339 (0x153), region = 124  ;;  %936 = vst [vmem:[#allocation2 + $0x10] sm:$0xff] (!%p16002_p1), %v904_v2  ;;  %v907_v5 = vld [vmem:[#allocation3 + $0x28] sm:$0xff] (!%p16002_p1)  ;;  %937 = vst [vmem:[#allocation2 + $0x18] sm:$0xff] (!%p16002_p1), %v905_v3  ;;  %v908_v6 = vld [vmem:[#allocation3 + $0x30] sm:$0xff] (!%p16002_p1) }
 0x145   : > { %s893_s29 = scalar_lea.vmem %s16000_s0, %s11901_s6  ;;  %s896_s3 = scalar_lea.vmem %s16001_s17, %s11901_s6  ;;  %938 = vst [vmem:[#allocation2 + $0x20] sm:$0xff] (!%p16002_p1), %v906_v4  ;;  %939 = vst [vmem:[#allocation2 + $0x28] sm:$0xff] (!%p16002_p1), %v907_v5  ;;  %v909_v7 = vld [vmem:[#allocation3 + $0x38] sm:$0xff] (!%p16002_p1)  ;;  %v910_v8 = vld [vmem:[#allocation3 + $0x40] sm:$0xff] (!%p16002_p1) }
 0x146   : > { %940 = vst [vmem:[#allocation2 + $0x30] sm:$0xff] (!%p16002_p1), %v908_v6  ;;  %941 = vst [vmem:[#allocation2 + $0x38] sm:$0xff] (!%p16002_p1), %v909_v7  ;;  %v911_v9 = vld [vmem:[#allocation3 + $0x48] sm:$0xff] (!%p16002_p1)  ;;  %v912_v10 = vld [vmem:[#allocation3 + $0x50] sm:$0xff] (!%p16002_p1) }
 0x147   : > { %942 = vst [vmem:[#allocation2 + $0x40] sm:$0xff] (!%p16002_p1), %v910_v8  ;;  %v913_v11 = vld [vmem:[#allocation3 + $0x58] sm:$0xff] (!%p16002_p1)  ;;  %943 = vst [vmem:[#allocation2 + $0x48] sm:$0xff] (!%p16002_p1), %v911_v9  ;;  %v914_v12 = vld [vmem:[#allocation3 + $0x60] sm:$0xff] (!%p16002_p1) }
 0x148   : > { %s890_s13 = scalar_lea.vmem %s15999_s14, %s11901_s6  ;;  %944 = vst [vmem:[#allocation2 + $0x50] sm:$0xff] (!%p16002_p1), %v912_v10  ;;  %945 = vst [vmem:[#allocation2 + $0x58] sm:$0xff] (!%p16002_p1), %v913_v11  ;;  %v915_v13 = vld [vmem:[#allocation3 + $0x68] sm:$0xff] (!%p16002_p1)  ;;  %v916_v14 = vld [vmem:[#allocation3 + $0x70] sm:$0xff] (!%p16002_p1) }
 0x149   : > { %946 = vst [vmem:[#allocation2 + $0x60] sm:$0xff] (!%p16002_p1), %v914_v12  ;;  %947 = vst [vmem:[#allocation2 + $0x68] sm:$0xff] (!%p16002_p1), %v915_v13  ;;  %v917_v15 = vld [vmem:[#allocation3 + $0x78] sm:$0xff] (!%p16002_p1)  ;;  %v918_v16 = vld [vmem:[#allocation3 + $0x80] sm:$0xff] (!%p16002_p1) }
 0x14a   : > { %948 = vst [vmem:[#allocation2 + $0x70] sm:$0xff] (!%p16002_p1), %v916_v14  ;;  %v919_v17 = vld [vmem:[#allocation3 + $0x88] sm:$0xff] (!%p16002_p1)  ;;  %949 = vst [vmem:[#allocation2 + $0x78] sm:$0xff] (!%p16002_p1), %v917_v15  ;;  %v920_v18 = vld [vmem:[#allocation3 + $0x90] sm:$0xff] (!%p16002_p1) }
 0x14b   : > { %950 = vst [vmem:[#allocation2 + $0x80] sm:$0xff] %v918_v16  ;;  %951 = vst [vmem:[#allocation2 + $0x88] sm:$0xff] %v919_v17  ;;  %v921_v19 = vld [vmem:[#allocation3 + $0x98] sm:$0xff]  ;;  %v922_v20 = vld [vmem:[#allocation3 + $0xa0] sm:$0xff] }
 0x14c   : > { %952 = vst [vmem:[#allocation2 + $0x90] sm:$0xff] %v920_v18  ;;  %953 = vst [vmem:[#allocation2 + $0x98] sm:$0xff] %v921_v19  ;;  %v923_v21 = vld [vmem:[#allocation3 + $0xa8] sm:$0xff]  ;;  %v924_v22 = vld [vmem:[#allocation3 + $0xb0] sm:$0xff] }
 0x14d   : > { %954 = vst [vmem:[#allocation2 + $0xa0] sm:$0xff] %v922_v20  ;;  %v925_v23 = vld [vmem:[#allocation3 + $0xb8] sm:$0xff]  ;;  %955 = vst [vmem:[#allocation2 + $0xa8] sm:$0xff] %v923_v21  ;;  %v926_v24 = vld [vmem:[#allocation3 + $0xc0] sm:$0xff] }
 0x14e   : > { %956 = vst [vmem:[#allocation2 + $0xb0] sm:$0xff] %v924_v22  ;;  %957 = vst [vmem:[#allocation2 + $0xb8] sm:$0xff] %v925_v23  ;;  %v927_v25 = vld [vmem:[#allocation3 + $0xc8] sm:$0xff]  ;;  %v928_v26 = vld [vmem:[#allocation3 + $0xd0] sm:$0xff] }
 0x14f   : > { %958 = vst [vmem:[#allocation2 + $0xc0] sm:$0xff] %v926_v24  ;;  %959 = vst [vmem:[#allocation2 + $0xc8] sm:$0xff] %v927_v25  ;;  %v929_v27 = vld [vmem:[#allocation3 + $0xd8] sm:$0xff]  ;;  %v930_v28 = vld [vmem:[#allocation3 + $0xe0] sm:$0xff] }
 0x150   : > { %960 = vst [vmem:[#allocation2 + $0xd0] sm:$0xff] %v928_v26  ;;  %v931_v29 = vld [vmem:[#allocation3 + $0xe8] sm:$0xff]  ;;  %961 = vst [vmem:[#allocation2 + $0xd8] sm:$0xff] %v929_v27  ;;  %v932_v30 = vld [vmem:[#allocation3 + $0xf0] sm:$0xff] }
 0x151   : > { %962 = vst [vmem:[#allocation2 + $0xe0] sm:$0xff] %v930_v28  ;;  %963 = vst [vmem:[#allocation2 + $0xe8] sm:$0xff] %v931_v29  ;;  %v933_v31 = vld [vmem:[#allocation3 + $0xf8] sm:$0xff] }
 0x152   : > { %964 = vst [vmem:[#allocation2 + $0xf0] sm:$0xff] %v932_v30  ;;  %965 = vst [vmem:[#allocation2 + $0xf8] sm:$0xff] %v933_v31 }
 0x153 PF: > { %v10281_v32 = vld [vmem:[%s11875_s26 + $0x4] ss:$8 sps:$4 sm:$0xff]   ;;  %v10283_v33 = vld [vmem:[%s11875_s26] ss:$8 sps:$4 sm:$0xff]   ;;  %v15778_v34 = vmov 0   ;;  %v11963_v57 = vld [vmem:[#allocation2 + $0x10] sm:$0xff] }
 0x154   : > { %1250 = vmatprep.mubr.bf16.mxu0 %v15778_v34  ;;  %1218 = vmatprep.subr.bf16.mxu0 %v10281_v32  ;;  %v10284_v35 = vld [vmem:[%s11875_s26 + $0x14] ss:$8 sps:$4 sm:$0xff]   ;;  %v10286_v36 = vld [vmem:[%s11875_s26 + $0x10] ss:$8 sps:$4 sm:$0xff]   ;;  %v10287_v37 = vld [vmem:[%s11875_s26 + $0x24] ss:$8 sps:$4 sm:$0xff]  }
 0x155   : > { %1219 = vmatpush1.bf16.msra.mxu0 %v10283_v33  ;;  %v10289_v38 = vld [vmem:[%s11875_s26 + $0x20] ss:$8 sps:$4 sm:$0xff]   ;;  %v10290_v39 = vld [vmem:[%s11875_s26 + $0x34] ss:$8 sps:$4 sm:$0xff]   ;;  %v10292_v40 = vld [vmem:[%s11875_s26 + $0x30] ss:$8 sps:$4 sm:$0xff]  }
 0x156   : > { %1220 = vmatprep.subr.bf16.mxu0 %v10284_v35  ;;  %v10293_v41 = vld [vmem:[%s11875_s26 + $0x44] ss:$8 sps:$4 sm:$0xff]   ;;  %v10295_v42 = vld [vmem:[%s11875_s26 + $0x40] ss:$8 sps:$4 sm:$0xff]   ;;  %v10296_v43 = vld [vmem:[%s11875_s26 + $0x54] ss:$8 sps:$4 sm:$0xff]  }
 0x157   : > { %v10298_v44 = vld [vmem:[%s11875_s26 + $0x50] ss:$8 sps:$4 sm:$0xff]   ;;  %v10299_v45 = vld [vmem:[%s11875_s26 + $0x64] ss:$8 sps:$4 sm:$0xff]   ;;  %v10301_v46 = vld [vmem:[%s11875_s26 + $0x60] ss:$8 sps:$4 sm:$0xff]  }
 0x158   : > { %v966_v47 = vld [vmem:[#allocation2] sm:$0xff]  ;;  %v967_v48 = vld [vmem:[#allocation2 + $0x8] sm:$0xff]  ;;  %v10302_v51 = vld [vmem:[%s11875_s26 + $0x74] ss:$8 sps:$4 sm:$0xff]   ;;  %vm1723_vm0 = vcmask 261120   ;;  %s11412_s2 = smov 96  }
 0x159   : > { %1221 = vmatpush1.bf16.msra.mxu0 %v10286_v36  ;;  %v998_v49 = vld [vmem:[#allocation6] sm:$0xff]  ;;  %v999_v50 = vld [vmem:[#allocation6 + $0x8] sm:$0xff]  ;;  %v1094_v54 = vpack.c.bf16 %v967_v48, %v966_v47  ;;  %v10304_v55 = vld [vmem:[%s11875_s26 + $0x70] ss:$8 sps:$4 sm:$0xff]   ;;  %s16026_s23 = sld [smem:[#allocation117_spill]]  ;;  %s11413_s4 = smov 64  }
 0x15a   : > { %1222 = vmatprep.subr.bf16.mxu0 %v10287_v37  ;;  %v1046_v52 = vadd.f32 %v998_v49, %v966_v47  ;;  %v1047_v53 = vadd.f32 %v999_v50, %v967_v48  ;;  %v11965_v58 = vld [vmem:[#allocation2 + $0x18] sm:$0xff]  ;;  %v1000_v59 = vld [vmem:[#allocation6 + $0x10] sm:$0xff]  ;;  %v10305_v61 = vld [vmem:[%s11882_s16] sm:$0xff]   ;;  %s11414_s7 = smov 32   ;;  %s16331_s8 = sld [smem:[#allocation120_spill]] }
 0x15b   : > { %9327 = vmatprep.mubr.bf16.mxu1 %v1094_v54  ;;  %v1001_v60 = vld [vmem:[#allocation6 + $0x18] sm:$0xff]  ;;  %v10306_v62 = vld [vmem:[%s11882_s16 + $0x8] sm:$0xff]   ;;  %v1048_v63 = vadd.f32 %v1000_v59, %v11963_v57  ;;  %9311 = vmatprep.subr.bf16.mxu1 %v10305_v61  ;;  %v10307_v1 = vld [vmem:[%s11882_s16 + $0x10] sm:$0xff]   ;;  %v1095_v30 = vpack.c.bf16 %v11965_v58, %v11963_v57  ;;  %s8167_s5 = sshll.u32 %s11942_s20, 4  ;;  %s15670_s5 = int_to_ptr.vmem [resolvable:$true] %s8167_s5 }
 0x15c   : > { %v1078_v56 = vpack.c.bf16 %v1047_v53, %v1046_v52  ;;  %v1049_v0 = vadd.f32 %v1001_v60, %v11965_v58  ;;  %9312 = vmatpush3.bf16.msra.mxu1 %v10305_v61  ;;  %v970_v2 = vld [vmem:[#allocation2 + $0x20] sm:$0xff]  ;;  %v971_v3 = vld [vmem:[#allocation2 + $0x28] sm:$0xff]  ;;  %v10308_v7 = vld [vmem:[%s11882_s16 + $0x18] sm:$0xff]  }
 0x15d   : > { %1223 = vmatpush1.bf16.msra.mxu0 %v10289_v38  ;;  %9313 = vmatprep.subr.bf16.mxu1 %v10306_v62  ;;  %v1002_v5 = vld [vmem:[#allocation6 + $0x20] sm:$0xff]  ;;  %v1003_v6 = vld [vmem:[#allocation6 + $0x28] sm:$0xff]  ;;  %v972_v11 = vld [vmem:[#allocation2 + $0x30] sm:$0xff]  ;;  %v1096_v35 = vpack.c.bf16 %v971_v3, %v970_v2 }
 0x15e   : > { %1224 = vmatprep.subr.bf16.mxu0 %v10290_v39  ;;  %v1079_v4 = vpack.c.bf16 %v1049_v0, %v1048_v63  ;;  %v1050_v8 = vadd.f32 %v1002_v5, %v970_v2  ;;  %v1051_v9 = vadd.f32 %v1003_v6, %v971_v3  ;;  %v10309_v10 = vld [vmem:[%s11882_s16 + $0x20] sm:$0xff]   ;;  %v973_v12 = vld [vmem:[#allocation2 + $0x38] sm:$0xff]  ;;  %v1004_v13 = vld [vmem:[#allocation6 + $0x30] sm:$0xff] }
 0x15f   : > { %v1005_v14 = vld [vmem:[#allocation6 + $0x38] sm:$0xff]  ;;  %v10310_v16 = vld [vmem:[%s11882_s16 + $0x28] sm:$0xff]   ;;  %v1052_v17 = vadd.f32 %v1004_v13, %v972_v11  ;;  %v10311_v19 = vld [vmem:[%s11882_s16 + $0x30] sm:$0xff]   ;;  %s16027_s25 = scalar_lea.vmem %s16026_s23, %s11901_s6 }
 0x160   : > { %9314 = vmatpush3.bf16.msra.mxu1 %v10306_v62  ;;  %v1080_v15 = vpack.c.bf16 %v1051_v9, %v1050_v8  ;;  %v1053_v18 = vadd.f32 %v1005_v14, %v973_v12  ;;  %v974_v20 = vld [vmem:[#allocation2 + $0x40] sm:$0xff]  ;;  %v975_v21 = vld [vmem:[#allocation2 + $0x48] sm:$0xff]  ;;  %v10312_v25 = vld [vmem:[%s11882_s16 + $0x38] sm:$0xff]   ;;  %s16332_s12 = scalar_lea.vmem %s16331_s8, %s11901_s6 }
 0x161   : > { %1225 = vmatpush1.bf16.msra.mxu0 %v10292_v40  ;;  %9315 = vmatprep.subr.bf16.mxu1 %v10307_v1  ;;  %v1006_v22 = vld [vmem:[#allocation6 + $0x40] sm:$0xff]  ;;  %v1007_v23 = vld [vmem:[#allocation6 + $0x48] sm:$0xff]  ;;  %v976_v29 = vld [vmem:[#allocation2 + $0x50] sm:$0xff]  ;;  %v1097_v40 = vpack.c.bf16 %v973_v12, %v972_v11 }
 0x162   : > { %1226 = vmatprep.subr.bf16.mxu0 %v10293_v41  ;;  %v1081_v24 = vpack.c.bf16 %v1053_v18, %v1052_v17  ;;  %v1054_v26 = vadd.f32 %v1006_v22, %v974_v20  ;;  %v1055_v27 = vadd.f32 %v1007_v23, %v975_v21  ;;  %v977_v31 = vld [vmem:[#allocation2 + $0x58] sm:$0xff]  ;;  %v1008_v32 = vld [vmem:[#allocation6 + $0x50] sm:$0xff]  ;;  %v978_v39 = vld [vmem:[#allocation2 + $0x60] sm:$0xff] }
 0x163   : > { %v1009_v33 = vld [vmem:[#allocation6 + $0x58] sm:$0xff]  ;;  %v1056_v36 = vadd.f32 %v1008_v32, %v976_v29  ;;  %v979_v41 = vld [vmem:[#allocation2 + $0x68] sm:$0xff]  ;;  %v980_v48 = vld [vmem:[#allocation2 + $0x70] sm:$0xff]  ;;  %v1099_v49 = vpack.c.bf16 %v977_v31, %v976_v29 }
 0x164   : > { %9316 = vmatpush3.bf16.msra.mxu1 %v10307_v1  ;;  %v1082_v28 = vpack.c.bf16 %v1055_v27, %v1054_v26  ;;  %v1057_v37 = vadd.f32 %v1009_v33, %v977_v31  ;;  %v981_v50 = vld [vmem:[#allocation2 + $0x78] sm:$0xff]  ;;  %v1100_v53 = vpack.c.bf16 %v979_v41, %v978_v39  ;;  %v982_v57 = vld [vmem:[#allocation2 + $0x80] sm:$0xff]  ;;  %v983_v58 = vld [vmem:[#allocation2 + $0x88] sm:$0xff] }
 0x165   : > { %1227 = vmatpush1.bf16.msra.mxu0 %v10295_v42  ;;  %9317 = vmatprep.subr.bf16.mxu1 %v10308_v7  ;;  %v1010_v42 = vld [vmem:[#allocation6 + $0x60] sm:$0xff]  ;;  %v1013_v52 = vld [vmem:[#allocation6 + $0x78] sm:$0xff]  ;;  %v1101_v59 = vpack.c.bf16 %v981_v50, %v980_v48  ;;  %v1015_v61 = vld [vmem:[#allocation6 + $0x88] sm:$0xff]  ;;  %v1102_v62 = vpack.c.bf16 %v983_v58, %v982_v57 }
 0x166   : > { %1228 = vmatprep.subr.bf16.mxu0 %v10296_v43  ;;  %v1083_v38 = vpack.c.bf16 %v1057_v37, %v1056_v36  ;;  %v1011_v43 = vld [vmem:[#allocation6 + $0x68] sm:$0xff]  ;;  %v1014_v60 = vld [vmem:[#allocation6 + $0x80] sm:$0xff]  ;;  %v1063_v0 = vadd.f32 %v1015_v61, %v983_v58  ;;  %v984_v1 = vld [vmem:[#allocation2 + $0x90] sm:$0xff] }
 0x167   : > { %v1062_v63 = vadd.f32 %v1014_v60, %v982_v57  ;;  %v985_v2 = vld [vmem:[#allocation2 + $0x98] sm:$0xff]  ;;  %v987_v5 = vld [vmem:[#allocation2 + $0xa8] sm:$0xff]  ;;  %v988_v12 = vld [vmem:[#allocation2 + $0xb0] sm:$0xff] }
 0x168   : > { %9318 = vmatpush3.bf16.msra.mxu1 %v10308_v7  ;;  %v1103_v6 = vpack.c.bf16 %v985_v2, %v984_v1  ;;  %v1016_v7 = vld [vmem:[#allocation6 + $0x90] sm:$0xff]  ;;  %v1017_v8 = vld [vmem:[#allocation6 + $0x98] sm:$0xff]  ;;  %v1018_v18 = vld [vmem:[#allocation6 + $0xa0] sm:$0xff] }
 0x169   : > { %1229 = vmatpush1.bf16.msra.mxu0 %v10298_v44  ;;  %9319 = vmatprep.subr.bf16.mxu1 %v10309_v10  ;;  %v1098_v44 = vpack.c.bf16 %v975_v21, %v974_v20  ;;  %v1086_v3 = vpack.c.bf16 %v1063_v0, %v1062_v63  ;;  %v1065_v11 = vadd.f32 %v1017_v8, %v985_v2  ;;  %v989_v13 = vld [vmem:[#allocation2 + $0xb8] sm:$0xff]  ;;  %v1022_v32 = vld [vmem:[#allocation6 + $0xc0] sm:$0xff]  ;;  %v1023_v33 = vld [vmem:[#allocation6 + $0xc8] sm:$0xff] }
 0x16a   : > { %1230 = vmatprep.subr.bf16.mxu0 %v10299_v45  ;;  %v1058_v45 = vadd.f32 %v1010_v42, %v978_v39  ;;  %v1105_v17 = vpack.c.bf16 %v989_v13, %v988_v12  ;;  %v993_v29 = vld [vmem:[#allocation2 + $0xd8] sm:$0xff]  ;;  %v995_v36 = vld [vmem:[#allocation2 + $0xe8] sm:$0xff]  ;;  %v996_v39 = vld [vmem:[#allocation2 + $0xf0] sm:$0xff] }
 0x16c   : > { %9320 = vmatpush3.bf16.msra.mxu1 %v10309_v10  ;;  %v1064_v10 = vadd.f32 %v1016_v7, %v984_v1 }
 0x16d   : > { %1231 = vmatpush1.bf16.msra.mxu0 %v10301_v46  ;;  %9321 = vmatprep.subr.bf16.mxu1 %v10310_v16  ;;  %v1059_v46 = vadd.f32 %v1011_v43, %v979_v41 }
 0x16e   : > { %1232 = vmatprep.subr.bf16.mxu0 %v10302_v51  ;;  %v1012_v51 = vld [vmem:[#allocation6 + $0x70] sm:$0xff]  ;;  %v1087_v14 = vpack.c.bf16 %v1065_v11, %v1064_v10 }
 0x16f   : > { %v1084_v47 = vpack.c.bf16 %v1059_v46, %v1058_v45  ;;  %v1060_v54 = vadd.f32 %v1012_v51, %v980_v48  ;;  %v1025_v45 = vld [vmem:[#allocation6 + $0xd8] sm:$0xff] }
 0x170   : > { %9322 = vmatpush3.bf16.msra.mxu1 %v10310_v16  ;;  %v991_v16 = vld [vmem:[#allocation2 + $0xc8] sm:$0xff] }
 0x171   : > { %1233 = vmatpush1.bf16.msra.mxu0 %v10304_v55  ;;  %9323 = vmatprep.subr.bf16.mxu1 %v10311_v19  ;;  %v1061_v55 = vadd.f32 %v1013_v52, %v981_v50  ;;  %v1027_v50 = vld [vmem:[#allocation6 + $0xe8] sm:$0xff] }
 0x172   : > { %v1075_v52 = vadd.f32 %v1027_v50, %v995_v36 }
 0x174   : > { %1251 = vmatmul.mubr.bf16.vlgmr.msra.gmra.mrb[0].mxu0 %v1078_v56  ;;  %9324 = vmatpush3.bf16.msra.mxu1 %v10311_v19  ;;  %v1085_v56 = vpack.c.bf16 %v1061_v55, %v1060_v54  ;;  %v1019_v19 = vld [vmem:[#allocation6 + $0xa8] sm:$0xff]  ;;  %v1028_v54 = vld [vmem:[#allocation6 + $0xf0] sm:$0xff]  ;;  %v1029_v55 = vld [vmem:[#allocation6 + $0xf8] sm:$0xff] }
 0x175   : > { %1260 = vmatprep.mubr.bf16.mxu0 %v15778_v34  ;;  %9325 = vmatprep.subr.bf16.mxu1 %v10312_v25  ;;  %v1067_v22 = vadd.f32 %v1019_v19, %v987_v5 }
 0x178   : > { %9326 = vmatpush3.bf16.msra.mxu1 %v10312_v25  ;;  %v1021_v25 = vld [vmem:[#allocation6 + $0xb8] sm:$0xff] }
 0x179   : > { %v1069_v27 = vadd.f32 %v1021_v25, %v989_v13 }
 0x17b   : > { %9328 = vmatmul.mubr.bf16.vlgmr.msra.gmra.mrb[0].mxu1 %v1095_v30 }
 0x17c   : > { %1261 = vmatmul.mubr.bf16.gmra.mrb[4].mxu0 %v1079_v4  ;;  %9331 = vmatprep.mubr.bf16.mxu1 %v1096_v35  ;;  %v986_v4 = vld [vmem:[#allocation2 + $0xa0] sm:$0xff] }
 0x17d   : > { %1270 = vmatprep.mubr.bf16.mxu0 %v15778_v34  ;;  %v1104_v9 = vpack.c.bf16 %v987_v5, %v986_v4  ;;  %v1066_v21 = vadd.f32 %v1018_v18, %v986_v4  ;;  %v994_v35 = vld [vmem:[#allocation2 + $0xe0] sm:$0xff] }
 0x17e   : > { %v1108_v41 = vpack.c.bf16 %v995_v36, %v994_v35 }
 0x17f   : > { %v1088_v23 = vpack.c.bf16 %v1067_v22, %v1066_v21 }
 0x183   : > { %9332 = vmatmul.mubr.bf16.gmra.mrb[4].mxu1 %v1097_v40  ;;  %v997_v40 = vld [vmem:[#allocation2 + $0xf8] sm:$0xff] }
 0x184   : > { %1271 = vmatmul.mubr.bf16.gmra.mrb[8].mxu0 %v1080_v15  ;;  %9335 = vmatprep.mubr.bf16.mxu1 %v1098_v44  ;;  %v990_v15 = vld [vmem:[#allocation2 + $0xc0] sm:$0xff]  ;;  %v1109_v42 = vpack.c.bf16 %v997_v40, %v996_v39  ;;  %v1024_v44 = vld [vmem:[#allocation6 + $0xd0] sm:$0xff]  ;;  %v1077_v57 = vadd.f32 %v1029_v55, %v997_v40 }
 0x185   : > { %1280 = vmatprep.mubr.bf16.mxu0 %v15778_v34  ;;  %v1106_v20 = vpack.c.bf16 %v991_v16, %v990_v15  ;;  %v1070_v37 = vadd.f32 %v1022_v32, %v990_v15 }
 0x18b   : > { %9336 = vmatmul.mubr.bf16.gmra.mrb[8].mxu1 %v1099_v49  ;;  %v1026_v49 = vld [vmem:[#allocation6 + $0xe0] sm:$0xff] }
 0x18c   : > { %1281 = vmatmul.mubr.bf16.gmra.mrb[12].mxu0 %v1081_v24  ;;  %9339 = vmatprep.mubr.bf16.mxu1 %v1100_v53  ;;  %v1020_v24 = vld [vmem:[#allocation6 + $0xb0] sm:$0xff]  ;;  %v1074_v51 = vadd.f32 %v1026_v49, %v994_v35 }
 0x18d   : > { %1290 = vmatprep.mubr.bf16.mxu0 %v15778_v34  ;;  %v1068_v26 = vadd.f32 %v1020_v24, %v988_v12 }
 0x18e   : > { %v1092_v53 = vpack.c.bf16 %v1075_v52, %v1074_v51 }
 0x18f   : > { %v1089_v31 = vpack.c.bf16 %v1069_v27, %v1068_v26 }
 0x193   : > { %9340 = vmatmul.mubr.bf16.gmra.mrb[12].mxu1 %v1101_v59  ;;  %v1128_v59 = vlaneseq }
 0x194   : > { %1291 = vmatmul.mubr.bf16.gmra.mrb[16].mxu0 %v1082_v28  ;;  %9343 = vmatprep.mubr.bf16.mxu1 %v1102_v62  ;;  %v992_v28 = vld [vmem:[#allocation2 + $0xd0] sm:$0xff]  ;;  %v1126_v62 = vld [vmem:[%s11911_s18] sm:$0x3] }
 0x195   : > { %1300 = vmatprep.mubr.bf16.mxu0 %v15778_v34  ;;  %v1107_v30 = vpack.c.bf16 %v993_v29, %v992_v28  ;;  %v1072_v46 = vadd.f32 %v1024_v44, %v992_v28  ;;  %v11994_v60 = vshrl.u32 %v1128_v59, 7 }
 0x197   : > { %16003 = vst [vmem:[#allocation36_spill] sm:$0xff] %v11994_v60  ;;  %v15777_v61 = vsub.s32 0, %v11994_v60  ;;  %v15776_v63 = vsub.s32 1, %v11994_v60 }
 0x199   : > { %v12001_v0 = vrot.slane %v1126_v62, %v15777_v61  ;;  %v12005_v2 = vrot.slane %v1126_v62, %v15776_v63 }
 0x19b   : > { %9344 = vmatmul.mubr.bf16.gmra.mrb[16].mxu1 %v1103_v6 }
 0x19c   : > { %1301 = vmatmul.mubr.bf16.gmra.mrb[20].mxu0 %v1083_v38  ;;  %9347 = vmatprep.mubr.bf16.mxu1 %v1104_v9  ;;  %v1071_v38 = vadd.f32 %v1023_v33, %v991_v16 }
 0x19d   : > { %1310 = vmatprep.mubr.bf16.mxu0 %v15778_v34 }
 0x19e   : > { %v1090_v43 = vpack.c.bf16 %v1071_v38, %v1070_v37 }
 0x1a3   : > { %9348 = vmatmul.mubr.bf16.gmra.mrb[20].mxu1 %v1105_v17 }
 0x1a4   : > { %1311 = vmatmul.mubr.bf16.gmra.mrb[24].mxu0 %v1084_v47  ;;  %9351 = vmatprep.mubr.bf16.mxu1 %v1106_v20  ;;  %v1073_v47 = vadd.f32 %v1025_v45, %v993_v29 }
 0x1a5   : > { %1320 = vmatprep.mubr.bf16.mxu0 %v15778_v34 }
 0x1a6   : > { %v1091_v48 = vpack.c.bf16 %v1073_v47, %v1072_v46 }
 0x1ab   : > { %9352 = vmatmul.mubr.bf16.gmra.mrb[24].mxu1 %v1107_v30 }
 0x1ac   : > { %1321 = vmatmul.mubr.bf16.gmra.mrb[28].mxu0 %v1085_v56  ;;  %9355 = vmatprep.mubr.bf16.mxu1 %v1108_v41  ;;  %v1076_v56 = vadd.f32 %v1028_v54, %v996_v39 }
 0x1ad   : > { %1330 = vmatprep.mubr.bf16.mxu0 %v15778_v34 }
 0x1ae   : > { %v1093_v58 = vpack.c.bf16 %v1077_v57, %v1076_v56 }
 0x1b3   : > { %9356 = vmatmul.mubr.bf16.gmra.mrb[28].mxu1 %v1109_v42 }
 0x1b4   : > { %1331 = vmatmul.mubr.bf16.gmra.mrb[32].mxu0 %v1086_v3 }
 0x1b5   : > { %1340 = vmatprep.mubr.bf16.mxu0 %v15778_v34 }
 0x1bc   : > { %1341 = vmatmul.mubr.bf16.gmra.mrb[36].mxu0 %v1087_v14 }
 0x1bd   : > { %1350 = vmatprep.mubr.bf16.mxu0 %v15778_v34 }
 0x1c4   : > { %1351 = vmatmul.mubr.bf16.gmra.mrb[40].mxu0 %v1088_v23 }
 0x1c5   : > { %1360 = vmatprep.mubr.bf16.mxu0 %v15778_v34 }
 0x1cc   : > { %1361 = vmatmul.mubr.bf16.gmra.mrb[44].mxu0 %v1089_v31 }
 0x1cd   : > { %1370 = vmatprep.mubr.bf16.mxu0 %v15778_v34 }
 0x1d4   : > { %1371 = vmatmul.mubr.bf16.gmra.mrb[48].mxu0 %v1090_v43 }
 0x1d5   : > { %1380 = vmatprep.mubr.bf16.mxu0 %v15778_v34 }
 0x1dc   : > { %1381 = vmatmul.mubr.bf16.gmra.mrb[52].mxu0 %v1091_v48 }
 0x1dd   : > { %1390 = vmatprep.mubr.bf16.mxu0 %v15778_v34 }
 0x1e4   : > { %1391 = vmatmul.mubr.bf16.gmra.mrb[56].mxu0 %v1092_v53 }
 0x1e5   : > { %1400 = vmatprep.mubr.bf16.mxu0 %v15778_v34 }
 0x1ec   : > { %1401 = vmatmul.mubr.bf16.gmra.mrb[60].mxu0 %v1093_v58 }
 0x247   : > { %v1252_v1 = vpop.f32.mrb[0].mxu0 }
 0x248   : > { %v1253_v3 = vadd.f32 %v1252_v1, %v12001_v0  ;;  %v1254_v4 = vpop.f32.mrb[1].mxu0 }
 0x249   : > { %v1256_v5 = vpop.f32.mrb[2].mxu0  ;;  %v1255_v8 = vadd.f32 %v1254_v4, %v12005_v2 }
 0x24a   : > { %v1257_v6 = vadd.f32 %v1256_v5, %v12001_v0  ;;  %v1258_v7 = vpop.f32.mrb[3].mxu0  ;;  %v1643_v10 = vmul.f32 0.17677669, %v1253_v3 }
 0x24b   : > { %v1259_v9 = vadd.f32 %v1258_v7, %v12005_v2 }
 0x24c   : > { %v1644_v11 = vmul.f32 0.17677669, %v1257_v6 }
 0x24d   : > { %v12011_v12 = vpack.c.bf16 %v1259_v9, %v1255_v8 }
 0x24e   : > { %v12013_v13 = vpack.c.bf16 %v1644_v11, %v1643_v10 }
 0x24f   : > { %16004 = vst [vmem:[#allocation37_spill] sm:$0xff] %v12011_v12  ;;  %v1262_v14 = vpop.f32.mrb[4].mxu0  ;;  %2564 = vrot.lane.b32.xlu0 %v12011_v12, %s11412_s2  ;;  %10111 = vmatprep.subr.msk.bf16.mxu1 %vm1723_vm0, %v12011_v12  ;;  %v1749_v15 = vsel %vm1723_vm0, %v12011_v12, 0 }
 0x250   : > { %16005 = vst [vmem:[#allocation38_spill] sm:$0xff] %v12013_v13  ;;  %v1263_v16 = vadd.f32 %v1262_v14, %v12001_v0  ;;  %v1264_v17 = vpop.f32.mrb[5].mxu0  ;;  %9360 = vmatpush3.bf16.xpose.msra.mxu1 %v1749_v15  ;;  %9375 = vmatprep.mubr.msk.bf16.mxu1 %vm1723_vm0, %v12013_v13 }
 0x251   : > { %v1266_v18 = vpop.f32.mrb[6].mxu0  ;;  %v1265_v21 = vadd.f32 %v1264_v17, %v12005_v2 }
 0x252   : > { %v1267_v19 = vadd.f32 %v1266_v18, %v12001_v0  ;;  %v1268_v20 = vpop.f32.mrb[7].mxu0  ;;  %v1645_v23 = vmul.f32 0.17677669, %v1263_v16 }
 0x253   : > { %v1269_v22 = vadd.f32 %v1268_v20, %v12005_v2  ;;  %2540 = vrot.lane.b32.xlu0 %v12013_v13, %s11412_s2 }
 0x254   : > { %v1646_v24 = vmul.f32 0.17677669, %v1267_v19 }
 0x255   : > { %v12029_v25 = vpack.c.bf16 %v1269_v22, %v1265_v21 }
 0x256   : > { %v12031_v26 = vpack.c.bf16 %v1646_v24, %v1645_v23 }
 0x257   : > { %16006 = vst [vmem:[#allocation39_spill] sm:$0xff] %v12029_v25  ;;  %v1272_v27 = vpop.f32.mrb[8].mxu0  ;;  %2566 = vrot.lane.b32.xlu1 %v12029_v25, %s11412_s2  ;;  %10112 = vmatprep.subr.msk.bf16.mxu1 %vm1723_vm0, %v12029_v25  ;;  %v1752_v28 = vsel %vm1723_vm0, %v12029_v25, 0 }
 0x258   : > { %16007 = vst [vmem:[#allocation40_spill] sm:$0xff] %v12031_v26  ;;  %v1273_v29 = vadd.f32 %v1272_v27, %v12001_v0  ;;  %v1274_v30 = vpop.f32.mrb[9].mxu0  ;;  %9362 = vmatpush3.bf16.xpose.msra.mxu1 %v1752_v28 }
 0x259   : > { %v1276_v31 = vpop.f32.mrb[10].mxu0  ;;  %v1275_v35 = vadd.f32 %v1274_v30, %v12005_v2 }
 0x25a   : > { %v1277_v32 = vadd.f32 %v1276_v31, %v12001_v0  ;;  %v1278_v33 = vpop.f32.mrb[11].mxu0  ;;  %v1647_v37 = vmul.f32 0.17677669, %v1273_v29 }
 0x25b   : > { %v1279_v36 = vadd.f32 %v1278_v33, %v12005_v2  ;;  %2542 = vrot.lane.b32.xlu1 %v12031_v26, %s11412_s2 }
 0x25c   : > { %v1648_v38 = vmul.f32 0.17677669, %v1277_v32 }
 0x25d   : > { %v12045_v39 = vpack.c.bf16 %v1279_v36, %v1275_v35 }
 0x25e   : > { %v12047_v40 = vpack.c.bf16 %v1648_v38, %v1647_v37 }
 0x25f   : > { %16008 = vst [vmem:[#allocation41_spill] sm:$0xff] %v12045_v39  ;;  %v1282_v41 = vpop.f32.mrb[12].mxu0  ;;  %10113 = vmatprep.subr.msk.bf16.mxu1 %vm1723_vm0, %v12045_v39  ;;  %2568 = vrot.lane.b32.xlu0 %v12045_v39, %s11412_s2  ;;  %v1755_v42 = vsel %vm1723_vm0, %v12045_v39, 0  ;;  %v12452_v39 = vld [vmem:[#allocation8 + $0x60] sm:$0xff] }
 0x260   : > { %16009 = vst [vmem:[#allocation42_spill] sm:$0xff] %v12047_v40  ;;  %v1283_v43 = vadd.f32 %v1282_v41, %v12001_v0  ;;  %v1284_v44 = vpop.f32.mrb[13].mxu0  ;;  %2544 = vrot.lane.b32.xlu1 %v12047_v40, %s11412_s2  ;;  %9364 = vmatpush3.bf16.xpose.msra.mxu1 %v1755_v42 }
 0x261   : > { %v1286_v45 = vpop.f32.mrb[14].mxu0  ;;  %v1285_v48 = vadd.f32 %v1284_v44, %v12005_v2 }
 0x262   : > { %v1287_v46 = vadd.f32 %v1286_v45, %v12001_v0  ;;  %v1288_v47 = vpop.f32.mrb[15].mxu0  ;;  %v1649_v50 = vmul.f32 0.17677669, %v1283_v43 }
 0x263   : > { %v1289_v49 = vadd.f32 %v1288_v47, %v12005_v2 }
 0x264   : > { %v1650_v51 = vmul.f32 0.17677669, %v1287_v46 }
 0x265   : > { %v12061_v52 = vpack.c.bf16 %v1289_v49, %v1285_v48 }
 0x266   : > { %v12063_v53 = vpack.c.bf16 %v1650_v51, %v1649_v50 }
 0x267   : > { %16010 = vst [vmem:[#allocation43_spill] sm:$0xff] %v12061_v52  ;;  %v1292_v54 = vpop.f32.mrb[16].mxu0  ;;  %10114 = vmatprep.subr.msk.bf16.mxu1 %vm1723_vm0, %v12061_v52  ;;  %2570 = vrot.lane.b32.xlu0 %v12061_v52, %s11412_s2  ;;  %v1758_v55 = vsel %vm1723_vm0, %v12061_v52, 0 }
 0x268   : > { %16011 = vst [vmem:[#allocation44_spill] sm:$0xff] %v12063_v53  ;;  %v1293_v56 = vadd.f32 %v1292_v54, %v12001_v0  ;;  %v1294_v57 = vpop.f32.mrb[17].mxu0  ;;  %9366 = vmatpush3.bf16.xpose.msra.mxu1 %v1758_v55 }
 0x269   : > { %v1296_v58 = vpop.f32.mrb[18].mxu0  ;;  %v1295_v1 = vadd.f32 %v1294_v57, %v12005_v2 }
 0x26a   : > { %v1297_v59 = vadd.f32 %v1296_v58, %v12001_v0  ;;  %v1298_v62 = vpop.f32.mrb[19].mxu0  ;;  %v1651_v4 = vmul.f32 0.17677669, %v1293_v56 }
 0x26b   : > { %v1299_v3 = vadd.f32 %v1298_v62, %v12005_v2  ;;  %2546 = vrot.lane.b32.xlu0 %v12063_v53, %s11412_s2 }
 0x26c   : > { %v1652_v5 = vmul.f32 0.17677669, %v1297_v59 }
 0x26d   : > { %v12077_v6 = vpack.c.bf16 %v1299_v3, %v1295_v1 }
 0x26e   : > { %v12079_v7 = vpack.c.bf16 %v1652_v5, %v1651_v4 }
 0x26f   : > { %16012 = vst [vmem:[#allocation45_spill] sm:$0xff] %v12077_v6  ;;  %v1302_v8 = vpop.f32.mrb[20].mxu0  ;;  %10115 = vmatprep.subr.msk.bf16.mxu1 %vm1723_vm0, %v12077_v6  ;;  %2572 = vrot.lane.b32.xlu0 %v12077_v6, %s11412_s2  ;;  %v1761_v9 = vsel %vm1723_vm0, %v12077_v6, 0 }
 0x270   : > { %16013 = vst [vmem:[#allocation46_spill] sm:$0xff] %v12079_v7  ;;  %v1303_v10 = vadd.f32 %v1302_v8, %v12001_v0  ;;  %v1304_v11 = vpop.f32.mrb[21].mxu0  ;;  %9368 = vmatpush3.bf16.xpose.msra.mxu1 %v1761_v9 }
 0x271   : > { %v1306_v14 = vpop.f32.mrb[22].mxu0  ;;  %v1305_v17 = vadd.f32 %v1304_v11, %v12005_v2 }
 0x272   : > { %v1307_v15 = vadd.f32 %v1306_v14, %v12001_v0  ;;  %v1308_v16 = vpop.f32.mrb[23].mxu0  ;;  %v1653_v19 = vmul.f32 0.17677669, %v1303_v10 }
 0x273   : > { %v1309_v18 = vadd.f32 %v1308_v16, %v12005_v2 }
 0x274   : > { %v1654_v20 = vmul.f32 0.17677669, %v1307_v15 }
 0x275   : > { %v12091_v21 = vpack.c.bf16 %v1309_v18, %v1305_v17 }
 0x276   : > { %v12093_v22 = vpack.c.bf16 %v1654_v20, %v1653_v19 }
 0x277   : > { %16014 = vst [vmem:[#allocation47_spill] sm:$0xff] %v12091_v21  ;;  %v1312_v23 = vpop.f32.mrb[24].mxu0  ;;  %10116 = vmatprep.subr.msk.bf16.mxu1 %vm1723_vm0, %v12091_v21  ;;  %2574 = vrot.lane.b32.xlu0 %v12091_v21, %s11412_s2  ;;  %v1764_v24 = vsel %vm1723_vm0, %v12091_v21, 0 }
 0x278   : > { %16015 = vst [vmem:[#allocation48_spill] sm:$0xff] %v12093_v22  ;;  %v1313_v27 = vadd.f32 %v1312_v23, %v12001_v0  ;;  %v1314_v28 = vpop.f32.mrb[25].mxu0  ;;  %9370 = vmatpush3.bf16.xpose.msra.mxu1 %v1764_v24 }
 0x279   : > { %v1316_v29 = vpop.f32.mrb[26].mxu0  ;;  %v1315_v32 = vadd.f32 %v1314_v28, %v12005_v2 }
 0x27a   : > { %v1317_v30 = vadd.f32 %v1316_v29, %v12001_v0  ;;  %v1318_v31 = vpop.f32.mrb[27].mxu0  ;;  %v1655_v35 = vmul.f32 0.17677669, %v1313_v27 }
 0x27b   : > { %v1319_v33 = vadd.f32 %v1318_v31, %v12005_v2 }
 0x27c   : > { %v1656_v36 = vmul.f32 0.17677669, %v1317_v30 }
 0x27d   : > { %v12105_v37 = vpack.c.bf16 %v1319_v33, %v1315_v32 }
 0x27e   : > { %v12107_v38 = vpack.c.bf16 %v1656_v36, %v1655_v35 }
 0x27f   : > { %16016 = vst [vmem:[#allocation49_spill] sm:$0xff] %v12105_v37  ;;  %v1322_v41 = vpop.f32.mrb[28].mxu0  ;;  %10117 = vmatprep.subr.msk.bf16.mxu1 %vm1723_vm0, %v12105_v37  ;;  %2576 = vrot.lane.b32.xlu0 %v12105_v37, %s11412_s2  ;;  %v1767_v42 = vsel %vm1723_vm0, %v12105_v37, 0 }
 0x280   : > { %16017 = vst [vmem:[#allocation50_spill] sm:$0xff] %v12107_v38  ;;  %v1323_v43 = vadd.f32 %v1322_v41, %v12001_v0  ;;  %v1324_v44 = vpop.f32.mrb[29].mxu0  ;;  %9372 = vmatpush3.bf16.xpose.msra.mxu1 %v1767_v42 }
 0x281   : > { %v1326_v45 = vpop.f32.mrb[30].mxu0  ;;  %v1325_v48 = vadd.f32 %v1324_v44, %v12005_v2 }
 0x282   : > { %v1327_v46 = vadd.f32 %v1326_v45, %v12001_v0  ;;  %v1328_v47 = vpop.f32.mrb[31].mxu0  ;;  %v1657_v50 = vmul.f32 0.17677669, %v1323_v43 }
 0x283   : > { %v1329_v49 = vadd.f32 %v1328_v47, %v12005_v2 }
 0x284   : > { %v1658_v51 = vmul.f32 0.17677669, %v1327_v46 }
 0x285   : > { %v12119_v54 = vpack.c.bf16 %v1329_v49, %v1325_v48 }
 0x286   : > { %v12121_v55 = vpack.c.bf16 %v1658_v51, %v1657_v50 }
 0x287   : > { %16018 = vst [vmem:[#allocation51_spill] sm:$0xff] %v12119_v54  ;;  %v1332_v56 = vpop.f32.mrb[32].mxu0  ;;  %10118 = vmatprep.subr.msk.bf16.mxu1 %vm1723_vm0, %v12119_v54  ;;  %2578 = vrot.lane.b32.xlu0 %v12119_v54, %s11412_s2  ;;  %v1770_v57 = vsel %vm1723_vm0, %v12119_v54, 0 }
 0x288   : > { %16019 = vst [vmem:[#allocation52_spill] sm:$0xff] %v12121_v55  ;;  %v1333_v58 = vadd.f32 %v1332_v56, %v12001_v0  ;;  %v1334_v59 = vpop.f32.mrb[33].mxu0  ;;  %9374 = vmatpush3.bf16.xpose.msra.mxu1 %v1770_v57 }
 0x289   : > { %v1336_v62 = vpop.f32.mrb[34].mxu0  ;;  %v1335_v4 = vadd.f32 %v1334_v59, %v12005_v2  ;;  %v12191_v59 = vld [vmem:[%s16027_s25] ss:$0 sm:$0xff]  ;;  %s16343_s25 = sld [smem:[#allocation128_spill]] }
 0x28a   : > { %v1337_v1 = vadd.f32 %v1336_v62, %v12001_v0  ;;  %v1338_v3 = vpop.f32.mrb[35].mxu0  ;;  %v1659_v8 = vmul.f32 0.17677669, %v1333_v58  ;;  %v9329_v58 = vpop.f32.mrb[0].mxu1 }
 0x28b   : > { %v1339_v5 = vadd.f32 %v1338_v3, %v12005_v2  ;;  %v1525_v3 = vadd.f32 %v9329_v58, %v12191_v59 }
 0x28c   : > { %v1660_v9 = vmul.f32 0.17677669, %v1337_v1 }
 0x28d   : > { %v12133_v10 = vpack.c.bf16 %v1339_v5, %v1335_v4  ;;  %v1516_v4 = vpop.f32.mrb[1].mxu1 }
 0x28e   : > { %v12135_v11 = vpack.c.bf16 %v1660_v9, %v1659_v8  ;;  %v1517_v9 = vadd.f32 %v12191_v59, %v1516_v4 }
 0x28f   : > { %16020 = vst [vmem:[#allocation53_spill] sm:$0xff] %v12133_v10  ;;  %v1342_v14 = vpop.f32.mrb[36].mxu0  ;;  %10119 = vmatprep.subr.msk.bf16.mxu0 %vm1723_vm0, %v12133_v10  ;;  %2757 = vrot.lane.b32.xlu1 %v12133_v10, %s11412_s2  ;;  %v1894_v15 = vsel %vm1723_vm0, %v12133_v10, 0 }
 0x290   : > { %16021 = vst [vmem:[#allocation54_spill] sm:$0xff] %v12135_v11  ;;  %v1343_v16 = vadd.f32 %v1342_v14, %v12001_v0  ;;  %9376 = vmatmul.mubr.msk.bf16.vlgmr.msra.gmra.mrb[32].mxu1 %vm1723_vm0, %v12031_v26  ;;  %v1344_v17 = vpop.f32.mrb[37].mxu0  ;;  %9392 = vmatpush3.bf16.xpose.msra.mxu0 %v1894_v15  ;;  %v9330_v14 = vpop.f32.mrb[2].mxu1  ;;  %v12418_v26 = vld [vmem:[#allocation8 + $0x50] sm:$0xff] }
 0x291   : > { %9379 = vmatprep.mubr.msk.bf16.mxu1 %vm1723_vm0, %v12047_v40  ;;  %9407 = vmatprep.mubr.msk.bf16.mxu0 %vm1723_vm0, %v12135_v11  ;;  %v1346_v18 = vpop.f32.mrb[38].mxu0  ;;  %v1345_v23 = vadd.f32 %v1344_v17, %v12005_v2  ;;  %v1528_v17 = vadd.f32 %v9330_v14, %v12191_v59  ;;  %16061 = vst [vmem:[#allocation92_spill] sm:$0xff] %v12418_v26 }
 0x292   : > { %v1347_v19 = vadd.f32 %v1346_v18, %v12001_v0  ;;  %v1348_v20 = vpop.f32.mrb[39].mxu0  ;;  %v1661_v27 = vmul.f32 0.17677669, %v1343_v16  ;;  %v1519_v18 = vpop.f32.mrb[3].mxu1 }
 0x293   : > { %v1349_v24 = vadd.f32 %v1348_v20, %v12005_v2  ;;  %v1520_v20 = vadd.f32 %v12191_v59, %v1519_v18 }
 0x294   : > { %v1662_v28 = vmul.f32 0.17677669, %v1347_v19 }
 0x295   : > { %v12153_v29 = vpack.c.bf16 %v1349_v24, %v1345_v23  ;;  %v9333_v23 = vpop.f32.mrb[4].mxu1 }
 0x296   : > { %v12155_v30 = vpack.c.bf16 %v1662_v28, %v1661_v27  ;;  %v12204_v27 = vpack.c.bf16 %v1528_v17, %v1525_v3  ;;  %v1541_v28 = vadd.f32 %v9333_v23, %v12191_v59 }
 0x297   : > { %16022 = vst [vmem:[#allocation55_spill] sm:$0xff] %v12153_v29  ;;  %v1352_v31 = vpop.f32.mrb[40].mxu0  ;;  %10120 = vmatprep.subr.msk.bf16.mxu0 %vm1723_vm0, %v12153_v29  ;;  %v1897_v32 = vsel %vm1723_vm0, %v12153_v29, 0  ;;  %2759 = vrot.lane.b32.xlu1 %v12153_v29, %s11412_s2 }
 0x298   : > { %16023 = vst [vmem:[#allocation56_spill] sm:$0xff] %v12155_v30  ;;  %v1353_v33 = vadd.f32 %v1352_v31, %v12001_v0  ;;  %9380 = vmatmul.mubr.msk.bf16.gmra.mrb[36].mxu1 %vm1723_vm0, %v12063_v53  ;;  %v1354_v35 = vpop.f32.mrb[41].mxu0  ;;  %9394 = vmatpush3.bf16.xpose.msra.mxu0 %v1897_v32  ;;  %16030 = vst [vmem:[#allocation61_spill] sm:$0xff] %v12204_v27  ;;  %v1532_v31 = vpop.f32.mrb[5].mxu1  ;;  %v12406_v53 = vld [vmem:[#allocation8 + $0x20] sm:$0xff] }
 0x299   : > { %9383 = vmatprep.mubr.msk.bf16.mxu1 %vm1723_vm0, %v12079_v7  ;;  %v1356_v36 = vpop.f32.mrb[42].mxu0  ;;  %v1355_v43 = vadd.f32 %v1354_v35, %v12005_v2  ;;  %v12213_v35 = vpack.c.bf16 %v1520_v20, %v1517_v9  ;;  %16059 = vst [vmem:[#allocation90_spill] sm:$0xff] %v12406_v53 }
 0x29a   : > { %v1357_v41 = vadd.f32 %v1356_v36, %v12001_v0  ;;  %v1358_v42 = vpop.f32.mrb[43].mxu0  ;;  %v1663_v45 = vmul.f32 0.17677669, %v1353_v33  ;;  %v1533_v36 = vadd.f32 %v12191_v59, %v1532_v31 }
 0x29b   : > { %v1359_v44 = vadd.f32 %v1358_v42, %v12005_v2  ;;  %16031 = vst [vmem:[#allocation62_spill] sm:$0xff] %v12213_v35  ;;  %9423 = vmatprep.subr.bf16.mxu1 %v12213_v35 }
 0x29c   : > { %v1664_v46 = vmul.f32 0.17677669, %v1357_v41  ;;  %v9334_v41 = vpop.f32.mrb[6].mxu1  ;;  %9424 = vmatpush3.bf16.msra.mxu1 %v12213_v35 }
 0x29d   : > { %v12171_v47 = vpack.c.bf16 %v1359_v44, %v1355_v43  ;;  %v1544_v44 = vadd.f32 %v9334_v41, %v12191_v59  ;;  %9425 = vmatprep.subr.bf16.mxu1 %v12204_v27 }
 0x29e   : > { %v12173_v48 = vpack.c.bf16 %v1664_v46, %v1663_v45  ;;  %v1535_v45 = vpop.f32.mrb[7].mxu1 }
 0x29f   : > { %16024 = vst [vmem:[#allocation57_spill] sm:$0xff] %v12171_v47  ;;  %v1362_v49 = vpop.f32.mrb[44].mxu0  ;;  %10121 = vmatprep.subr.msk.bf16.mxu0 %vm1723_vm0, %v12171_v47  ;;  %v1900_v50 = vsel %vm1723_vm0, %v12171_v47, 0  ;;  %2761 = vrot.lane.b32.xlu1 %v12171_v47, %s11412_s2 }
 0x2a0   : > { %16025 = vst [vmem:[#allocation58_spill] sm:$0xff] %v12173_v48  ;;  %v1363_v51 = vadd.f32 %v1362_v49, %v12001_v0  ;;  %9384 = vmatmul.mubr.msk.bf16.gmra.mrb[40].mxu1 %vm1723_vm0, %v12093_v22  ;;  %v1364_v56 = vpop.f32.mrb[45].mxu0  ;;  %9396 = vmatpush3.bf16.xpose.msra.mxu0 %v1900_v50  ;;  %v1536_v49 = vadd.f32 %v12191_v59, %v1535_v45  ;;  %v9337_v50 = vpop.f32.mrb[8].mxu1 }
 0x2a1   : > { %9387 = vmatprep.mubr.msk.bf16.mxu1 %vm1723_vm0, %v12107_v38  ;;  %v1366_v57 = vpop.f32.mrb[46].mxu0  ;;  %v1365_v5 = vadd.f32 %v1364_v56, %v12005_v2  ;;  %v1557_v58 = vadd.f32 %v9337_v50, %v12191_v59  ;;  %9426 = vmatpush3.bf16.msra.mxu1 %v12204_v27 }
 0x2a2   : > { %v1367_v62 = vadd.f32 %v1366_v57, %v12001_v0  ;;  %v1368_v1 = vpop.f32.mrb[47].mxu0  ;;  %v1665_v15 = vmul.f32 0.17677669, %v1363_v51  ;;  %v12223_v57 = vpack.c.bf16 %v1544_v44, %v1541_v28  ;;  %v12229_v4 = vpack.c.bf16 %v1536_v49, %v1533_v36 }
 0x2a3   : > { %v1369_v8 = vadd.f32 %v1368_v1, %v12005_v2 }
 0x2a4   : > { %v1666_v16 = vmul.f32 0.17677669, %v1367_v62  ;;  %16032 = vst [vmem:[#allocation63_spill] sm:$0xff] %v12223_v57  ;;  %v1548_v62 = vpop.f32.mrb[9].mxu1  ;;  %16033 = vst [vmem:[#allocation64_spill] sm:$0xff] %v12229_v4  ;;  %9427 = vmatprep.subr.bf16.mxu1 %v12229_v4 }
 0x2a5   : > { %v12199_v19 = vpack.c.bf16 %v1369_v8, %v1365_v5  ;;  %v1549_v5 = vadd.f32 %v12191_v59, %v1548_v62  ;;  %v9338_v8 = vpop.f32.mrb[10].mxu1  ;;  %9428 = vmatpush3.bf16.msra.mxu1 %v12229_v4 }
 0x2a6   : > { %v12202_v24 = vpack.c.bf16 %v1666_v16, %v1665_v15  ;;  %v1560_v15 = vadd.f32 %v9338_v8, %v12191_v59  ;;  %v1551_v16 = vpop.f32.mrb[11].mxu1  ;;  %9429 = vmatprep.subr.bf16.mxu1 %v12223_v57 }
 0x2a7   : > { %16028 = vst [vmem:[#allocation59_spill] sm:$0xff] %v12199_v19  ;;  %v1372_v32 = vpop.f32.mrb[48].mxu0  ;;  %10122 = vmatprep.subr.msk.bf16.mxu0 %vm1723_vm0, %v12199_v19  ;;  %v1903_v33 = vsel %vm1723_vm0, %v12199_v19, 0  ;;  %2763 = vrot.lane.b32.xlu1 %v12199_v19, %s11412_s2  ;;  %v1552_v18 = vadd.f32 %v12191_v59, %v1551_v16  ;;  %v9341_v20 = vpop.f32.mrb[12].mxu1 }
 0x2a8   : > { %16029 = vst [vmem:[#allocation60_spill] sm:$0xff] %v12202_v24  ;;  %v1373_v42 = vadd.f32 %v1372_v32, %v12001_v0  ;;  %9388 = vmatmul.mubr.msk.bf16.gmra.mrb[44].mxu1 %vm1723_vm0, %v12121_v55  ;;  %v1374_v43 = vpop.f32.mrb[49].mxu0  ;;  %9398 = vmatpush3.bf16.xpose.msra.mxu0 %v1903_v33  ;;  %v12239_v28 = vpack.c.bf16 %v1560_v15, %v1557_v58  ;;  %v1564_v32 = vpop.f32.mrb[13].mxu1 }
 0x2a9   : > { %v1376_v46 = vpop.f32.mrb[50].mxu0  ;;  %v1375_v1 = vadd.f32 %v1374_v43, %v12005_v2  ;;  %v1573_v31 = vadd.f32 %v9341_v20, %v12191_v59  ;;  %v12249_v41 = vpack.c.bf16 %v1552_v18, %v1549_v5  ;;  %v9342_v43 = vpop.f32.mrb[14].mxu1  ;;  %9430 = vmatpush3.bf16.msra.mxu1 %v12223_v57 }
 0x2aa   : > { %v1377_v51 = vadd.f32 %v1376_v46, %v12001_v0  ;;  %v1378_v56 = vpop.f32.mrb[51].mxu0  ;;  %v1667_v9 = vmul.f32 0.17677669, %v1373_v42  ;;  %16036 = vst [vmem:[#allocation67_spill] sm:$0xff] %v12239_v28  ;;  %v1565_v42 = vadd.f32 %v12191_v59, %v1564_v32  ;;  %v1576_v46 = vadd.f32 %v9342_v43, %v12191_v59  ;;  %v1567_v49 = vpop.f32.mrb[15].mxu1 }
 0x2ab   : > { %v1379_v3 = vadd.f32 %v1378_v56, %v12005_v2  ;;  %16037 = vst [vmem:[#allocation68_spill] sm:$0xff] %v12249_v41  ;;  %v9345_v56 = vpop.f32.mrb[16].mxu1  ;;  %9431 = vmatprep.subr.bf16.mxu1 %v12249_v41 }
 0x2ac   : > { %v1668_v14 = vmul.f32 0.17677669, %v1377_v51  ;;  %v1568_v51 = vadd.f32 %v12191_v59, %v1567_v49  ;;  %v1580_v5 = vpop.f32.mrb[17].mxu1 }
 0x2ad   : > { %v12234_v17 = vpack.c.bf16 %v1379_v3, %v1375_v1  ;;  %v12257_v1 = vpack.c.bf16 %v1576_v46, %v1573_v31  ;;  %v1589_v3 = vadd.f32 %v9345_v56, %v12191_v59  ;;  %v1581_v15 = vadd.f32 %v12191_v59, %v1580_v5  ;;  %v9346_v16 = vpop.f32.mrb[18].mxu1  ;;  %9432 = vmatpush3.bf16.msra.mxu1 %v12249_v41 }
 0x2ae   : > { %v12237_v23 = vpack.c.bf16 %v1668_v14, %v1667_v9  ;;  %v12263_v14 = vpack.c.bf16 %v1568_v51, %v1565_v42  ;;  %v1592_v31 = vadd.f32 %v9346_v16, %v12191_v59  ;;  %v1583_v32 = vpop.f32.mrb[19].mxu1  ;;  %9433 = vmatprep.subr.bf16.mxu1 %v12239_v28 }
 0x2af   : > { %16034 = vst [vmem:[#allocation65_spill] sm:$0xff] %v12234_v17  ;;  %v1382_v33 = vpop.f32.mrb[52].mxu0  ;;  %10123 = vmatprep.subr.msk.bf16.mxu0 %vm1723_vm0, %v12234_v17  ;;  %v1906_v36 = vsel %vm1723_vm0, %v12234_v17, 0  ;;  %2765 = vrot.lane.b32.xlu1 %v12234_v17, %s11412_s2  ;;  %16038 = vst [vmem:[#allocation69_spill] sm:$0xff] %v12257_v1  ;;  %v9349_v43 = vpop.f32.mrb[20].mxu1  ;;  %v12411_v17 = vld [vmem:[#allocation8 + $0x28] sm:$0xff] }
 0x2b0   : > { %16035 = vst [vmem:[#allocation66_spill] sm:$0xff] %v12237_v23  ;;  %v1383_v44 = vadd.f32 %v1382_v33, %v12001_v0  ;;  %v1384_v45 = vpop.f32.mrb[53].mxu0  ;;  %9400 = vmatpush3.bf16.xpose.msra.mxu0 %v1906_v36  ;;  %16039 = vst [vmem:[#allocation70_spill] sm:$0xff] %v12263_v14  ;;  %v1584_v36 = vadd.f32 %v12191_v59, %v1583_v32  ;;  %v12273_v46 = vpack.c.bf16 %v1592_v31, %v1589_v3  ;;  %v1596_v49 = vpop.f32.mrb[21].mxu1 }
 0x2b1   : > { %v1386_v50 = vpop.f32.mrb[54].mxu0  ;;  %v1385_v8 = vadd.f32 %v1384_v45, %v12005_v2  ;;  %v1605_v42 = vadd.f32 %v9349_v43, %v12191_v59  ;;  %v1597_v56 = vadd.f32 %v12191_v59, %v1596_v49  ;;  %9434 = vmatpush3.bf16.msra.mxu1 %v12239_v28  ;;  %16060 = vst [vmem:[#allocation91_spill] sm:$0xff] %v12411_v17 }
 0x2b2   : > { %v1387_v58 = vadd.f32 %v1386_v50, %v12001_v0  ;;  %v1388_v62 = vpop.f32.mrb[55].mxu0  ;;  %v1669_v18 = vmul.f32 0.17677669, %v1383_v44  ;;  %16042 = vst [vmem:[#allocation73_spill] sm:$0xff] %v12273_v46  ;;  %v12283_v51 = vpack.c.bf16 %v1584_v36, %v1581_v15  ;;  %9435 = vmatprep.subr.bf16.mxu1 %v12263_v14 }
 0x2b3   : > { %v1389_v9 = vadd.f32 %v1388_v62, %v12005_v2 }
 0x2b4   : > { %v1670_v20 = vmul.f32 0.17677669, %v1387_v58  ;;  %16043 = vst [vmem:[#allocation74_spill] sm:$0xff] %v12283_v51  ;;  %v9350_v58 = vpop.f32.mrb[22].mxu1 }
 0x2b5   : > { %v12268_v33 = vpack.c.bf16 %v1389_v9, %v1385_v8  ;;  %v1608_v5 = vadd.f32 %v9350_v58, %v12191_v59  ;;  %v1599_v8 = vpop.f32.mrb[23].mxu1  ;;  %9436 = vmatpush3.bf16.msra.mxu1 %v12263_v14  ;;  %v1043_v14 = vld [vmem:[#allocation8 + $0x68] sm:$0xff] }
 0x2b6   : > { %v12271_v45 = vpack.c.bf16 %v1670_v20, %v1669_v18  ;;  %v1600_v16 = vadd.f32 %v12191_v59, %v1599_v8  ;;  %v9353_v18 = vpop.f32.mrb[24].mxu1  ;;  %9437 = vmatprep.subr.bf16.mxu1 %v12257_v1 }
 0x2b7   : > { %16040 = vst [vmem:[#allocation71_spill] sm:$0xff] %v12268_v33  ;;  %v1392_v50 = vpop.f32.mrb[56].mxu0  ;;  %10124 = vmatprep.subr.msk.bf16.mxu0 %vm1723_vm0, %v12268_v33  ;;  %v1909_v44 = vsel %vm1723_vm0, %v12268_v33, 0  ;;  %2767 = vrot.lane.b32.xlu1 %v12268_v33, %s11412_s2  ;;  %v12291_v31 = vpack.c.bf16 %v1608_v5, %v1605_v42  ;;  %v1621_v32 = vadd.f32 %v9353_v18, %v12191_v59  ;;  %v1612_v36 = vpop.f32.mrb[25].mxu1  ;;  %v12430_v33 = vld [vmem:[#allocation8 + $0x40] sm:$0xff] }
 0x2b8   : > { %16041 = vst [vmem:[#allocation72_spill] sm:$0xff] %v12271_v45  ;;  %v1393_v62 = vadd.f32 %v1392_v50, %v12001_v0  ;;  %v1394_v3 = vpop.f32.mrb[57].mxu0  ;;  %9402 = vmatpush3.bf16.xpose.msra.mxu0 %v1909_v44  ;;  %v12297_v50 = vpack.c.bf16 %v1600_v16, %v1597_v56  ;;  %v1613_v44 = vadd.f32 %v12191_v59, %v1612_v36  ;;  %v9354_v58 = vpop.f32.mrb[26].mxu1  ;;  %16063 = vst [vmem:[#allocation94_spill] sm:$0xff] %v12430_v33 }
 0x2b9   : > { %v1396_v9 = vpop.f32.mrb[58].mxu0  ;;  %16044 = vst [vmem:[#allocation75_spill] sm:$0xff] %v12291_v31  ;;  %v1395_v43 = vadd.f32 %v1394_v3, %v12005_v2  ;;  %v1624_v42 = vadd.f32 %v9354_v58, %v12191_v59  ;;  %v1615_v5 = vpop.f32.mrb[27].mxu1  ;;  %9438 = vmatpush3.bf16.msra.mxu1 %v12257_v1 }
 0x2ba   : > { %v1397_v20 = vadd.f32 %v1396_v9, %v12001_v0  ;;  %v1398_v15 = vpop.f32.mrb[59].mxu0  ;;  %16045 = vst [vmem:[#allocation76_spill] sm:$0xff] %v12297_v50  ;;  %v1671_v8 = vmul.f32 0.17677669, %v1393_v62  ;;  %v1616_v63 = vadd.f32 %v12191_v59, %v1615_v5  ;;  %v9357_v61 = vpop.f32.mrb[28].mxu1  ;;  %9455 = vmatprep.subr.bf16.mxu1 %v12283_v51 }
 0x2bb   : > { %v1399_v49 = vadd.f32 %v1398_v15, %v12005_v2  ;;  %v12307_v15 = vpack.c.bf16 %v1624_v42, %v1621_v32  ;;  %v1637_v56 = vadd.f32 %v9357_v61, %v12191_v59  ;;  %v1628_v16 = vpop.f32.mrb[29].mxu1 }
 0x2bc   : > { %v1672_v9 = vmul.f32 0.17677669, %v1397_v20  ;;  %v12315_v20 = vpack.c.bf16 %v1616_v63, %v1613_v44 }
 0x2bd   : > { %v12302_v18 = vpack.c.bf16 %v1399_v49, %v1395_v43  ;;  %16048 = vst [vmem:[#allocation79_spill] sm:$0xff] %v12307_v15  ;;  %v1629_v43 = vadd.f32 %v12191_v59, %v1628_v16  ;;  %v9358_v49 = vpop.f32.mrb[30].mxu1 }
 0x2be   : > { %v12305_v3 = vpack.c.bf16 %v1672_v9, %v1671_v8  ;;  %16049 = vst [vmem:[#allocation80_spill] sm:$0xff] %v12315_v20  ;;  %v1640_v58 = vadd.f32 %v9358_v49, %v12191_v59  ;;  %v1631_v8 = vpop.f32.mrb[31].mxu1 }
 0x2bf   : > { %16046 = vst [vmem:[#allocation77_spill] sm:$0xff] %v12302_v18  ;;  %v1402_v36 = vpop.f32.mrb[60].mxu0  ;;  %10125 = vmatprep.subr.msk.bf16.mxu0 %vm1723_vm0, %v12302_v18  ;;  %v1912_v62 = vsel %vm1723_vm0, %v12302_v18, 0  ;;  %v1632_v42 = vadd.f32 %v12191_v59, %v1631_v8 }
 0x2c0   : > { %16047 = vst [vmem:[#allocation78_spill] sm:$0xff] %v12305_v3  ;;  %v1403_v32 = vadd.f32 %v1402_v36, %v12001_v0  ;;  %v1404_v61 = vpop.f32.mrb[61].mxu0  ;;  %9404 = vmatpush3.bf16.xpose.msra.mxu0 %v1912_v62  ;;  %v12323_v63 = vpack.c.bf16 %v1640_v58, %v1637_v56 }
 0x2c1   : > { %v1406_v9 = vpop.f32.mrb[62].mxu0  ;;  %v1405_v44 = vadd.f32 %v1404_v61, %v12005_v2  ;;  %v12328_v36 = vpack.c.bf16 %v1632_v42, %v1629_v43 }
 0x2c2   : > { %v1407_v5 = vadd.f32 %v1406_v9, %v12001_v0  ;;  %v1408_v34 = vpop.f32.mrb[63].mxu0  ;;  %16050 = vst [vmem:[#allocation81_spill] sm:$0xff] %v12323_v63  ;;  %v1673_v62 = vmul.f32 0.17677669, %v1403_v32 }
 0x2c3   : > { %v1409_v16 = vadd.f32 %v1408_v34, %v12005_v2  ;;  %16051 = vst [vmem:[#allocation82_spill] sm:$0xff] %v12328_v36  ;;  %v2565_v34 = vpop.permute.xlu0 %2564 }
 0x2c4   : > { %v1674_v49 = vmul.f32 0.17677669, %v1407_v5  ;;  %v2605_v2 = vsel %vm1723_vm0, %v2565_v34, 0 }
 0x2c5   : > { %v12331_v60 = vpack.c.bf16 %v1409_v16, %v1405_v44 }
 0x2c6   : > { %v12333_v59 = vpack.c.bf16 %v1674_v49, %v1673_v62 }
 0x2c7   : > { %16052 = vst [vmem:[#allocation83_spill] sm:$0xff] %v12331_v60  ;;  %10126 = vmatprep.subr.msk.bf16.mxu0 %vm1723_vm0, %v12331_v60  ;;  %v1915_v0 = vsel %vm1723_vm0, %v12331_v60, 0  ;;  %v2541_v43 = vpop.permute.xlu0 %2540 }
 0x2c8   : > { %16053 = vst [vmem:[#allocation84_spill] sm:$0xff] %v12333_v59  ;;  %9406 = vmatpush3.bf16.xpose.msra.mxu0 %v1915_v0 }
 0x2c9   : > { %10127 = vmatprep.subr.msk.bf16.mxu0 %vm1723_vm0, %v2565_v34  ;;  %v2567_v56 = vpop.permute.xlu1 %2566 }
 0x2ca   : > { %v2608_v32 = vsel %vm1723_vm0, %v2567_v56, 0 }
 0x2cf   : > { %9408 = vmatmul.mubr.msk.bf16.vlgmr.msra.gmra.mrb[64].mxu0 %vm1723_vm0, %v12155_v30 }
 0x2d0   : > { %9411 = vmatprep.mubr.msk.bf16.mxu0 %vm1723_vm0, %v12173_v48  ;;  %9488 = vmatpush3.bf16.xpose.msra.mxu0 %v2605_v2 }
 0x2d1   : > { %10128 = vmatprep.subr.msk.bf16.mxu0 %vm1723_vm0, %v2567_v56  ;;  %v2569_v61 = vpop.permute.xlu0 %2568  ;;  %v2543_v56 = vpop.permute.xlu1 %2542 }
 0x2d2   : > { %v2611_v8 = vsel %vm1723_vm0, %v2569_v61, 0 }
 0x2d7   : > { %9412 = vmatmul.mubr.msk.bf16.gmra.mrb[68].mxu0 %vm1723_vm0, %v12202_v24 }
 0x2d8   : > { %9415 = vmatprep.mubr.msk.bf16.mxu0 %vm1723_vm0, %v12237_v23  ;;  %9490 = vmatpush3.bf16.xpose.msra.mxu0 %v2608_v32  ;;  %v12375_v32 = vld [vmem:[#allocation8 + $0x10] sm:$0xff] }
 0x2d9   : > { %10129 = vmatprep.subr.msk.bf16.mxu0 %vm1723_vm0, %v2569_v61  ;;  %v2571_v58 = vpop.permute.xlu0 %2570  ;;  %16054 = vst [vmem:[#allocation85_spill] sm:$0xff] %v12375_v32  ;;  %v12377_v61 = vld [vmem:[#allocation8] sm:$0xff] }
 0x2da   : > { %v2614_v42 = vsel %vm1723_vm0, %v2571_v58, 0  ;;  %16055 = vst [vmem:[#allocation86_spill] sm:$0xff] %v12377_v61 }
 0x2dd   : > { %v2547_v9 = vpop.permute.xlu0 %2546 }
 0x2df   : > { %9416 = vmatmul.mubr.msk.bf16.gmra.mrb[72].mxu0 %vm1723_vm0, %v12271_v45 }
 0x2e0   : > { %9492 = vmatpush3.bf16.xpose.msra.mxu0 %v2611_v8  ;;  %9419 = vmatprep.mubr.msk.bf16.mxu0 %vm1723_vm0, %v12305_v3 }
 0x2e1   : > { %10130 = vmatprep.subr.msk.bf16.mxu0 %vm1723_vm0, %v2571_v58  ;;  %v2573_v5 = vpop.permute.xlu0 %2572 }
 0x2e2   : > { %v2617_v44 = vsel %vm1723_vm0, %v2573_v5, 0 }
 0x2e7   : > { %9420 = vmatmul.mubr.msk.bf16.gmra.mrb[76].mxu0 %vm1723_vm0, %v12333_v59 }
 0x2e8   : > { %9494 = vmatpush3.bf16.xpose.msra.mxu0 %v2614_v42  ;;  %9503 = vmatprep.mubr.msk.bf16.mxu0 %vm1723_vm0, %v2541_v43  ;;  %v2545_v43 = vpop.permute.xlu1 %2544 }
 0x2e9   : > { %10131 = vmatprep.subr.msk.bf16.mxu0 %vm1723_vm0, %v2573_v5  ;;  %v2575_v16 = vpop.permute.xlu0 %2574 }
 0x2ea   : > { %v2620_v62 = vsel %vm1723_vm0, %v2575_v16, 0 }
 0x2f0   : > { %9496 = vmatpush3.bf16.xpose.msra.mxu0 %v2617_v44  ;;  %v12385_v44 = vld [vmem:[#allocation8 + $0x18] sm:$0xff] }
 0x2f1   : > { %10132 = vmatprep.subr.msk.bf16.mxu0 %vm1723_vm0, %v2575_v16  ;;  %v2577_v49 = vpop.permute.xlu0 %2576 }
 0x2f2   : > { %v2623_v0 = vsel %vm1723_vm0, %v2577_v49, 0 }
 0x2f8   : > { %9498 = vmatpush3.bf16.xpose.msra.mxu0 %v2620_v62 }
 0x2f9   : > { %10133 = vmatprep.subr.msk.bf16.mxu0 %vm1723_vm0, %v2577_v49  ;;  %v2579_v34 = vpop.permute.xlu0 %2578  ;;  %v12388_v49 = vld [vmem:[#allocation8 + $0x8] sm:$0xff] }
 0x2fa   : > { %v2626_v2 = vsel %vm1723_vm0, %v2579_v34, 0  ;;  %16056 = vst [vmem:[#allocation87_spill] sm:$0xff] %v12388_v49 }
 0x300   : > { %9500 = vmatpush3.bf16.xpose.msra.mxu0 %v2623_v0 }
 0x301   : > { %10134 = vmatprep.subr.msk.bf16.mxu0 %vm1723_vm0, %v2579_v34  ;;  %v12397_v34 = vld [vmem:[#allocation8 + $0x30] sm:$0xff] }
 0x302   : > { %16057 = vst [vmem:[#allocation88_spill] sm:$0xff] %v12397_v34 }
 0x308   : > { %9502 = vmatpush3.bf16.xpose.msra.mxu0 %v2626_v2 }
 0x30f   : > { %9504 = vmatmul.mubr.msk.bf16.vlgmr.msra.gmra.mrb[80].mxu0 %vm1723_vm0, %v2543_v56  ;;  %v12401_v56 = vld [vmem:[#allocation8 + $0x38] sm:$0xff] }
 0x310   : > { %9507 = vmatprep.mubr.msk.bf16.mxu0 %vm1723_vm0, %v2545_v43  ;;  %16058 = vst [vmem:[#allocation89_spill] sm:$0xff] %v12401_v56 }
 0x317   : > { %9508 = vmatmul.mubr.msk.bf16.gmra.mrb[84].mxu0 %vm1723_vm0, %v2547_v9 }
 0x363   : > { %v9377_v58 = vpop.f32.mrb[32].mxu1 }
 0x364   : > { %v12380_v8 = vadd.f32 %v9377_v58, %v12375_v32  ;;  %v1806_v42 = vpop.f32.mrb[33].mxu1 }
 0x365   : > { %v12383_v5 = vadd.f32 %v1806_v42, %v12377_v61  ;;  %v9378_v16 = vpop.f32.mrb[34].mxu1 }
 0x366   : > { %2018 = vmax.xlane.f32.xlu1 %v12380_v8  ;;  %v1809_v62 = vpop.f32.mrb[35].mxu1  ;;  %v12392_v9 = vadd.f32 %v9378_v16, %v12385_v44 }
 0x367   : > { %2014 = vmax.xlane.f32.xlu0 %v12383_v5  ;;  %v12395_v0 = vadd.f32 %v1809_v62, %v12388_v49 }
 0x36a   : > { %2020 = vmax.xlane.f32.xlu1 %v12392_v9 }
 0x36b   : > { %v9381_v2 = vpop.f32.mrb[36].mxu1  ;;  %2016 = vmax.xlane.f32.xlu0 %v12395_v0 }
 0x36c   : > { %v12404_v43 = vadd.f32 %v9381_v2, %v12397_v34  ;;  %v1822_v58 = vpop.f32.mrb[37].mxu1 }
 0x36d   : > { %v9382_v42 = vpop.f32.mrb[38].mxu1  ;;  %v12416_v47 = vadd.f32 %v1822_v58, %v12406_v53 }
 0x36e   : > { %v12409_v16 = vadd.f32 %v9382_v42, %v12401_v56  ;;  %v1825_v62 = vpop.f32.mrb[39].mxu1  ;;  %v12424_v42 = vld [vmem:[#allocation8 + $0x58] sm:$0xff] }
 0x36f   : > { %2026 = vmax.xlane.f32.xlu0 %v12404_v43  ;;  %v12421_v2 = vadd.f32 %v1825_v62, %v12411_v17  ;;  %16062 = vst [vmem:[#allocation93_spill] sm:$0xff] %v12424_v42  ;;  %v12435_v62 = vld [vmem:[#allocation8 + $0x48] sm:$0xff] }
 0x370   : > { %2028 = vmax.xlane.f32.xlu1 %v12409_v16  ;;  %16064 = vst [vmem:[#allocation95_spill] sm:$0xff] %v12435_v62 }
 0x373   : > { %v9385_v13 = vpop.f32.mrb[40].mxu1  ;;  %2022 = vmax.xlane.f32.xlu0 %v12416_v47 }
 0x374   : > { %v12427_v37 = vadd.f32 %v9385_v13, %v12418_v26  ;;  %v1838_v6 = vpop.f32.mrb[41].mxu1  ;;  %2024 = vmax.xlane.f32.xlu1 %v12421_v2  ;;  %v12442_v13 = vld [vmem:[#allocation8 + $0x70] sm:$0xff] }
 0x375   : > { %v9386_v12 = vpop.f32.mrb[42].mxu1  ;;  %v12440_v19 = vadd.f32 %v1838_v6, %v12430_v33 }
 0x376   : > { %v12433_v58 = vadd.f32 %v9386_v12, %v12424_v42  ;;  %v1841_v40 = vpop.f32.mrb[43].mxu1  ;;  %v1045_v12 = vld [vmem:[#allocation8 + $0x78] sm:$0xff] }
 0x377   : > { %2034 = vmax.xlane.f32.xlu0 %v12427_v37  ;;  %v12445_v29 = vadd.f32 %v1841_v40, %v12435_v62 }
 0x378   : > { %2036 = vmax.xlane.f32.xlu1 %v12433_v58 }
 0x37b   : > { %v9389_v10 = vpop.f32.mrb[44].mxu1  ;;  %2030 = vmax.xlane.f32.xlu0 %v12440_v19 }
 0x37c   : > { %v12449_v54 = vadd.f32 %v9389_v10, %v12442_v13  ;;  %v1854_v21 = vpop.f32.mrb[45].mxu1  ;;  %2032 = vmax.xlane.f32.xlu1 %v12445_v29 }
 0x37d   : > { %v9390_v52 = vpop.f32.mrb[46].mxu1  ;;  %v12459_v40 = vadd.f32 %v1854_v21, %v12452_v39 }
 0x37e   : > { %v12454_v6 = vadd.f32 %v9390_v52, %v1045_v12  ;;  %v1857_v25 = vpop.f32.mrb[47].mxu1 }
 0x37f   : > { %2042 = vmax.xlane.f32.xlu0 %v12449_v54  ;;  %v12461_v1 = vadd.f32 %v1857_v25, %v1043_v14 }
 0x380   : > { %2044 = vmax.xlane.f32.xlu1 %v12454_v6 }
 0x383   : > { %2038 = vmax.xlane.f32.xlu0 %v12459_v40 }
 0x384   : > { %2040 = vmax.xlane.f32.xlu1 %v12461_v1 }
 0x395   : > { %2550 = vrot.lane.b32.xlu1 %v12093_v22, %s11412_s2 }
 0x3a2   : > { %v9409_v52 = vpop.f32.mrb[64].mxu0 }
 0x3a3   : > { %v12468_v10 = vadd.f32 %v9409_v52, %v12375_v32  ;;  %v1951_v57 = vpop.f32.mrb[65].mxu0 }
 0x3a4   : > { %v9410_v28 = vpop.f32.mrb[66].mxu0  ;;  %v12472_v21 = vadd.f32 %v1951_v57, %v12377_v61 }
 0x3a5   : > { %v1954_v4 = vpop.f32.mrb[67].mxu0  ;;  %2050 = vmax.xlane.f32.xlu0 %v12468_v10  ;;  %v12476_v52 = vadd.f32 %v9410_v28, %v12385_v44 }
 0x3a6   : > { %v12480_v45 = vadd.f32 %v1954_v4, %v12388_v49 }
 0x3a9   : > { %2046 = vmax.xlane.f32.xlu0 %v12472_v21 }
 0x3aa   : > { %v9413_v25 = vpop.f32.mrb[68].mxu0 }
 0x3ab   : > { %v1967_v41 = vpop.f32.mrb[69].mxu0 }
 0x3ac   : > { %v9414_v35 = vpop.f32.mrb[70].mxu0 }
 0x3ad   : > { %v1970_v27 = vpop.f32.mrb[71].mxu0  ;;  %v12484_v3 = vadd.f32 %v9414_v35, %v12401_v56 }
 0x3ae   : > { %v12490_v28 = vadd.f32 %v1970_v27, %v12411_v17  ;;  %v12507_v27 = vpop.permute.xlu1 %2757 }
 0x3b2   : > { %v9417_v63 = vpop.f32.mrb[72].mxu0 }
 0x3b3   : > { %v1983_v22 = vpop.f32.mrb[73].mxu0 }
 0x3b4   : > { %v9418_v59 = vpop.f32.mrb[74].mxu0 }
 0x3b5   : > { %v1986_v36 = vpop.f32.mrb[75].mxu0  ;;  %v12494_v4 = vadd.f32 %v9418_v59, %v12424_v42  ;;  %v12510_v59 = vadd.f32 %v9413_v25, %v12397_v34  ;;  %v12513_v42 = vpop.permute.xlu1 %2759 }
 0x3b6   : > { %v12498_v49 = vadd.f32 %v1986_v36, %v12435_v62  ;;  %16065 = vst [vmem:[#allocation96_spill] sm:$0xff] %v12513_v42  ;;  %v12516_v36 = vadd.f32 %v1967_v41, %v12406_v53  ;;  %v12536_v41 = vadd.f32 %v1983_v22, %v12430_v33 }
 0x3b9   : > { %2052 = vmax.xlane.f32.xlu1 %v12476_v52 }
 0x3ba   : > { %v9421_v32 = vpop.f32.mrb[76].mxu0 }
 0x3bb   : > { %v1999_v57 = vpop.f32.mrb[77].mxu0 }
 0x3bc   : > { %v9422_v61 = vpop.f32.mrb[78].mxu0  ;;  %v12556_v22 = vadd.f32 %v1999_v57, %v12452_v39 }
 0x3bd   : > { %2048 = vmax.xlane.f32.xlu1 %v12480_v45  ;;  %v2002_v15 = vpop.f32.mrb[79].mxu0  ;;  %v12501_v35 = vadd.f32 %v9422_v61, %v1045_v12  ;;  %v12526_v12 = vadd.f32 %v9417_v63, %v12418_v26  ;;  %v12546_v63 = vadd.f32 %v9421_v32, %v12442_v13 }
 0x3bf   : > { %2548 = vrot.lane.b32.xlu0 %v12079_v7, %s11412_s2  ;;  %v12504_v7 = vadd.f32 %v2002_v15, %v1043_v14  ;;  %v12521_v14 = vpop.permute.xlu1 %2761 }
 0x3c0   : > { %16066 = vst [vmem:[#allocation97_spill] sm:$0xff] %v12521_v14 }
 0x3c1   : > { %2060 = vmax.xlane.f32.xlu1 %v12484_v3 }
 0x3c3   : > { %v12533_v42 = vpop.permute.xlu1 %2763 }
 0x3c4   : > { %16069 = vst [vmem:[#allocation100_spill] sm:$0xff] %v12533_v42 }
 0x3c5   : > { %2056 = vmax.xlane.f32.xlu1 %v12490_v28 }
 0x3c7   : > { %v12541_v14 = vpop.permute.xlu1 %2765 }
 0x3c8   : > { %16071 = vst [vmem:[#allocation102_spill] sm:$0xff] %v12541_v14 }
 0x3c9   : > { %2068 = vmax.xlane.f32.xlu1 %v12494_v4 }
 0x3cb   : > { %v12553_v42 = vpop.permute.xlu1 %2767 }
 0x3cc   : > { %16075 = vst [vmem:[#allocation106_spill] sm:$0xff] %v12553_v42 }
 0x3cd   : > { %2064 = vmax.xlane.f32.xlu1 %v12498_v49 }
 0x3d1   : > { %2076 = vmax.xlane.f32.xlu1 %v12501_v35 }
 0x3d5   : > { %2072 = vmax.xlane.f32.xlu1 %v12504_v7 }
 0x3de   : > { %2058 = vmax.xlane.f32.xlu0 %v12510_v59 }
 0x3e2   : > { %v12518_v61 = vpop.f32.mrb[80].mxu0  ;;  %2054 = vmax.xlane.f32.xlu0 %v12516_v36 }
 0x3e3   : > { %v12523_v15 = vpop.f32.mrb[81].mxu0 }
 0x3e4   : > { %v12528_v25 = vpop.f32.mrb[82].mxu0 }
 0x3e5   : > { %16067 = vst [vmem:[#allocation98_spill] sm:$0xff] %v12528_v25  ;;  %v12530_v62 = vpop.f32.mrb[83].mxu0 }
 0x3e6   : > { %16068 = vst [vmem:[#allocation99_spill] sm:$0xff] %v12530_v62  ;;  %2066 = vmax.xlane.f32.xlu0 %v12526_v12 }
 0x3ea   : > { %v12538_v56 = vpop.f32.mrb[84].mxu0  ;;  %2062 = vmax.xlane.f32.xlu0 %v12536_v41 }
 0x3eb   : > { %16070 = vst [vmem:[#allocation101_spill] sm:$0xff] %v12538_v56  ;;  %v12543_v17 = vpop.f32.mrb[85].mxu0 }
 0x3ec   : > { %16072 = vst [vmem:[#allocation103_spill] sm:$0xff] %v12543_v17  ;;  %v12548_v26 = vpop.f32.mrb[86].mxu0 }
 0x3ed   : > { %16073 = vst [vmem:[#allocation104_spill] sm:$0xff] %v12548_v26  ;;  %v12550_v34 = vpop.f32.mrb[87].mxu0 }
 0x3ee   : > { %16074 = vst [vmem:[#allocation105_spill] sm:$0xff] %v12550_v34  ;;  %2074 = vmax.xlane.f32.xlu0 %v12546_v63 }
 0x3f2   : > { %2070 = vmax.xlane.f32.xlu0 %v12556_v22 }
 0x3f3   : > { %v2019_v33 = vpop.xlane.xlu1 %2018 }
 0x3f4   : > { %v2080_v14 = vsub.f32 %v12380_v8, %v2019_v33  ;;  %v2015_v56 = vpop.xlane.xlu0 %2014 }
 0x3f5   : > { %v2078_v32 = vsub.f32 %v12383_v5, %v2015_v56 }
 0x3f6   : > { %v2114_v13 = vmul.f32 1.442695, %v2080_v14 }
 0x3f7   : > { %v2110_v17 = vmul.f32 1.442695, %v2078_v32  ;;  %v2021_v26 = vpop.xlane.xlu1 %2020 }
 0x3f8   : > { %10361 = vpow2.f32 %v2114_v13  ;;  %v2081_v34 = vsub.f32 %v12392_v9, %v2021_v26  ;;  %v2017_v53 = vpop.xlane.xlu0 %2016 }
 0x3f9   : > { %v2079_v42 = vsub.f32 %v12395_v0, %v2017_v53  ;;  %10363 = vpow2.f32 %v2110_v17 }
 0x3fa   : > { %v2116_v62 = vmul.f32 1.442695, %v2081_v34 }
 0x3fb   : > { %v2112_v39 = vmul.f32 1.442695, %v2079_v42 }
 0x3fc   : > { %10365 = vpow2.f32 %v2116_v62  ;;  %v2027_v57 = vpop.xlane.xlu0 %2026 }
 0x3fd   : > { %v2084_v25 = vsub.f32 %v12404_v43, %v2027_v57  ;;  %v2029_v33 = vpop.xlane.xlu1 %2028  ;;  %10367 = vpow2.f32 %v2112_v39 }
 0x3fe   : > { %v2085_v8 = vsub.f32 %v12409_v16, %v2029_v33 }
 0x3ff   : > { %v2122_v5 = vmul.f32 1.442695, %v2084_v25 }
 0x400   : > { %v2124_v56 = vmul.f32 1.442695, %v2085_v8  ;;  %v2023_v14 = vpop.xlane.xlu0 %2022 }
 0x401   : > { %10369 = vpow2.f32 %v2122_v5  ;;  %v2082_v26 = vsub.f32 %v12416_v47, %v2023_v14  ;;  %v2025_v9 = vpop.xlane.xlu1 %2024 }
 0x402   : > { %v12566_v32 = vpop.eup %10361  ;;  %v2083_v53 = vsub.f32 %v12421_v2, %v2025_v9  ;;  %10371 = vpow2.f32 %v2124_v56 }
 0x403   : > { %v2118_v17 = vmul.f32 1.442695, %v2082_v26  ;;  %2178 = vadd.xlane.f32.xlu0 %v12566_v32  ;;  %v12570_v43 = vpop.eup %10363 }
 0x404   : > { %v2120_v0 = vmul.f32 1.442695, %v2083_v53  ;;  %v2035_v34 = vpop.xlane.xlu0 %2034 }
 0x405   : > { %10373 = vpow2.f32 %v2118_v17  ;;  %v2088_v16 = vsub.f32 %v12427_v37, %v2035_v34  ;;  %v2037_v42 = vpop.xlane.xlu1 %2036 }
 0x406   : > { %v12573_v62 = vpop.eup %10365  ;;  %v2089_v47 = vsub.f32 %v12433_v58, %v2037_v42  ;;  %10375 = vpow2.f32 %v2120_v0 }
 0x407   : > { %v2130_v25 = vmul.f32 1.442695, %v2088_v16  ;;  %2180 = vadd.xlane.f32.xlu1 %v12573_v62  ;;  %2174 = vadd.xlane.f32.xlu0 %v12570_v43  ;;  %v12579_v33 = vpop.eup %10367 }
 0x408   : > { %v2132_v2 = vmul.f32 1.442695, %v2089_v47  ;;  %v2031_v13 = vpop.xlane.xlu0 %2030 }
 0x409   : > { %10377 = vpow2.f32 %v2130_v25  ;;  %v2086_v39 = vsub.f32 %v12440_v19, %v2031_v13  ;;  %v2033_v57 = vpop.xlane.xlu1 %2032 }
 0x40a   : > { %v2087_v37 = vsub.f32 %v12445_v29, %v2033_v57  ;;  %10379 = vpow2.f32 %v2132_v2 }
 0x40b   : > { %v12582_v8 = vpop.eup %10369  ;;  %v2126_v5 = vmul.f32 1.442695, %v2086_v39  ;;  %2176 = vadd.xlane.f32.xlu1 %v12579_v33 }
 0x40c   : > { %v2128_v58 = vmul.f32 1.442695, %v2087_v37  ;;  %2186 = vadd.xlane.f32.xlu0 %v12582_v8  ;;  %v2043_v56 = vpop.xlane.xlu0 %2042  ;;  %v12587_v19 = vpop.eup %10371 }
 0x40d   : > { %10381 = vpow2.f32 %v2126_v5  ;;  %v2092_v14 = vsub.f32 %v12449_v54, %v2043_v56  ;;  %v2045_v26 = vpop.xlane.xlu1 %2044 }
 0x40e   : > { %v2093_v9 = vsub.f32 %v12454_v6, %v2045_v26  ;;  %10383 = vpow2.f32 %v2128_v58 }
 0x40f   : > { %v12590_v53 = vpop.eup %10373  ;;  %v2138_v29 = vmul.f32 1.442695, %v2092_v14  ;;  %2188 = vadd.xlane.f32.xlu1 %v12587_v19 }
 0x410   : > { %v2140_v17 = vmul.f32 1.442695, %v2093_v9  ;;  %2182 = vadd.xlane.f32.xlu0 %v12590_v53  ;;  %v2039_v0 = vpop.xlane.xlu0 %2038  ;;  %v12595_v54 = vpop.eup %10375 }
 0x411   : > { %10385 = vpow2.f32 %v2138_v29  ;;  %v2090_v34 = vsub.f32 %v12459_v40, %v2039_v0  ;;  %v2041_v16 = vpop.xlane.xlu1 %2040 }
 0x412   : > { %v2091_v42 = vsub.f32 %v12461_v1, %v2041_v16  ;;  %10387 = vpow2.f32 %v2140_v17 }
 0x413   : > { %v12598_v47 = vpop.eup %10377  ;;  %v2134_v6 = vmul.f32 1.442695, %v2090_v34  ;;  %2184 = vadd.xlane.f32.xlu1 %v12595_v54 }
 0x414   : > { %v2136_v25 = vmul.f32 1.442695, %v2091_v42  ;;  %2194 = vadd.xlane.f32.xlu0 %v12598_v47  ;;  %v12602_v2 = vpop.eup %10379 }
 0x415   : > { %10389 = vpow2.f32 %v2134_v6  ;;  %v2551_v17 = vpop.permute.xlu1 %2550 }
 0x416   : > { %10391 = vpow2.f32 %v2136_v25 }
 0x417   : > { %v12604_v13 = vpop.eup %10381  ;;  %2196 = vadd.xlane.f32.xlu1 %v12602_v2 }
 0x418   : > { %2190 = vadd.xlane.f32.xlu0 %v12604_v13  ;;  %v12608_v1 = vpop.eup %10383 }
 0x41b   : > { %v12610_v40 = vpop.eup %10385  ;;  %2192 = vadd.xlane.f32.xlu1 %v12608_v1 }
 0x41c   : > { %2202 = vadd.xlane.f32.xlu0 %v12610_v40  ;;  %v12614_v39 = vpop.eup %10387 }
 0x41f   : > { %v12616_v57 = vpop.eup %10389  ;;  %2204 = vadd.xlane.f32.xlu1 %v12614_v39 }
 0x420   : > { %2198 = vadd.xlane.f32.xlu0 %v12616_v57  ;;  %v12620_v37 = vpop.eup %10391 }
 0x423   : > { %2200 = vadd.xlane.f32.xlu1 %v12620_v37 }
 0x432   : > { %v2051_v5 = vpop.xlane.xlu0 %2050 }
 0x433   : > { %v2096_v58 = vsub.f32 %v12468_v10, %v2051_v5 }
 0x435   : > { %v2146_v56 = vmul.f32 1.442695, %v2096_v58 }
 0x436   : > { %2769 = vrot.lane.b32.xlu0 %v12302_v18, %s11412_s2  ;;  %v2047_v14 = vpop.xlane.xlu0 %2046 }
 0x437   : > { %10393 = vpow2.f32 %v2146_v56  ;;  %v2094_v26 = vsub.f32 %v12472_v21, %v2047_v14 }
 0x439   : > { %v2142_v9 = vmul.f32 1.442695, %v2094_v26 }
 0x43a   : > { %v2549_v29 = vpop.permute.xlu0 %2548 }
 0x43b   : > { %10395 = vpow2.f32 %v2142_v9  ;;  %9511 = vmatprep.mubr.msk.bf16.mxu0 %vm1723_vm0, %v2549_v29 }
 0x43c   : > { %9512 = vmatmul.mubr.msk.bf16.gmra.mrb[88].mxu0 %vm1723_vm0, %v2551_v17 }
 0x441   : > { %v12629_v0 = vpop.eup %10393 }
 0x442   : > { %16076 = vst [vmem:[#allocation107_spill] sm:$0xff] %v12629_v0  ;;  %2210 = vadd.xlane.f32.xlu1 %v12629_v0 }
 0x445   : > { %v12632_v10 = vpop.eup %10395 }
 0x446   : > { %v2053_v34 = vpop.xlane.xlu1 %2052  ;;  %2206 = vadd.xlane.f32.xlu1 %v12632_v10 }
 0x447   : > { %v2097_v16 = vsub.f32 %v12476_v52, %v2053_v34 }
 0x449   : > { %v2148_v21 = vmul.f32 1.442695, %v2097_v16 }
 0x44a   : > { %v2049_v42 = vpop.xlane.xlu1 %2048 }
 0x44b   : > { %10397 = vpow2.f32 %v2148_v21  ;;  %v2095_v6 = vsub.f32 %v12480_v45, %v2049_v42 }
 0x44d   : > { %v2144_v25 = vmul.f32 1.442695, %v2095_v6 }
 0x44e   : > { %v2061_v56 = vpop.xlane.xlu1 %2060 }
 0x44f   : > { %10399 = vpow2.f32 %v2144_v25  ;;  %v2101_v17 = vsub.f32 %v12484_v3, %v2061_v56 }
 0x451   : > { %v2156_v6 = vmul.f32 1.442695, %v2101_v17 }
 0x452   : > { %v2057_v14 = vpop.xlane.xlu1 %2056 }
 0x453   : > { %v2099_v3 = vsub.f32 %v12490_v28, %v2057_v14 }
 0x455   : > { %v12637_v5 = vpop.eup %10397 }
 0x456   : > { %2212 = vadd.xlane.f32.xlu1 %v12637_v5  ;;  %v2069_v26 = vpop.xlane.xlu1 %2068 }
 0x459   : > { %v12640_v58 = vpop.eup %10399 }
 0x45a   : > { %2208 = vadd.xlane.f32.xlu1 %v12640_v58  ;;  %v2065_v34 = vpop.xlane.xlu1 %2064 }
 0x45e   : > { %v2077_v18 = vpop.xlane.xlu1 %2076 }
 0x46b   : > { %2552 = vrot.lane.b32.xlu1 %v12107_v38, %s11412_s2  ;;  %v2059_v52 = vpop.xlane.xlu0 %2058  ;;  %v2103_v38 = vsub.f32 %v12498_v49, %v2065_v34 }
 0x46c   : > { %v2100_v9 = vsub.f32 %v12510_v59, %v2059_v52 }
 0x46e   : > { %v2154_v45 = vmul.f32 1.442695, %v2100_v9  ;;  %v2073_v9 = vpop.xlane.xlu1 %2072 }
 0x46f   : > { %v2055_v29 = vpop.xlane.xlu0 %2054  ;;  %v2107_v17 = vsub.f32 %v12504_v7, %v2073_v9 }
 0x470   : > { %10401 = vpow2.f32 %v2154_v45  ;;  %v2098_v16 = vsub.f32 %v12516_v36, %v2055_v29  ;;  %v2160_v36 = vmul.f32 1.442695, %v2103_v38  ;;  %v2105_v38 = vsub.f32 %v12494_v4, %v2069_v26 }
 0x471   : > { %v2168_v14 = vmul.f32 1.442695, %v2107_v17 }
 0x472   : > { %v2150_v21 = vmul.f32 1.442695, %v2098_v16  ;;  %v2164_v7 = vmul.f32 1.442695, %v2105_v38 }
 0x473   : > { %v2067_v42 = vpop.xlane.xlu0 %2066 }
 0x474   : > { %10403 = vpow2.f32 %v2150_v21  ;;  %v2104_v25 = vsub.f32 %v12526_v12, %v2067_v42  ;;  %v2152_v12 = vmul.f32 1.442695, %v2099_v3  ;;  %v2109_v42 = vsub.f32 %v12501_v35, %v2077_v18 }
 0x475   : > { %10405 = vpow2.f32 %v2156_v6 }
 0x476   : > { %v2162_v59 = vmul.f32 1.442695, %v2104_v25  ;;  %v2172_v25 = vmul.f32 1.442695, %v2109_v42 }
 0x477   : > { %v2063_v0 = vpop.xlane.xlu0 %2062 }
 0x478   : > { %10407 = vpow2.f32 %v2162_v59  ;;  %v2102_v49 = vsub.f32 %v12536_v41, %v2063_v0 }
 0x479   : > { %10409 = vpow2.f32 %v2160_v36 }
 0x47a   : > { %v12650_v52 = vpop.eup %10401  ;;  %10411 = vpow2.f32 %v2152_v12 }
 0x47b   : > { %2218 = vadd.xlane.f32.xlu0 %v12650_v52  ;;  %v2075_v56 = vpop.xlane.xlu0 %2074 }
 0x47c   : > { %v2108_v45 = vsub.f32 %v12546_v63, %v2075_v56  ;;  %v2158_v63 = vmul.f32 1.442695, %v2102_v49 }
 0x47e   : > { %v12655_v29 = vpop.eup %10403  ;;  %v2170_v34 = vmul.f32 1.442695, %v2108_v45 }
 0x47f   : > { %2214 = vadd.xlane.f32.xlu0 %v12655_v29  ;;  %v12660_v28 = vpop.eup %10405  ;;  %v2071_v16 = vpop.xlane.xlu0 %2070 }
 0x480   : > { %10413 = vpow2.f32 %v2170_v34  ;;  %v2106_v41 = vsub.f32 %v12556_v22, %v2071_v16 }
 0x481   : > { %10415 = vpow2.f32 %v2168_v14 }
 0x482   : > { %v12664_v21 = vpop.eup %10407  ;;  %10417 = vpow2.f32 %v2158_v63  ;;  %v2166_v4 = vmul.f32 1.442695, %v2106_v41 }
 0x483   : > { %2220 = vadd.xlane.f32.xlu0 %v12660_v28  ;;  %v12668_v0 = vpop.eup %10409  ;;  %10419 = vpow2.f32 %v2164_v7 }
 0x484   : > { %v12672_v26 = vpop.eup %10411  ;;  %10421 = vpow2.f32 %v2166_v4 }
 0x485   : > { %10423 = vpow2.f32 %v2172_v25 }
 0x487   : > { %2226 = vadd.xlane.f32.xlu0 %v12664_v21 }
 0x48a   : > { %v12674_v6 = vpop.eup %10413 }
 0x48b   : > { %2224 = vadd.xlane.f32.xlu0 %v12668_v0  ;;  %v12678_v22 = vpop.eup %10415 }
 0x48c   : > { %v12680_v3 = vpop.eup %10417 }
 0x48d   : > { %v12684_v56 = vpop.eup %10419 }
 0x48e   : > { %v12687_v45 = vpop.eup %10421 }
 0x48f   : > { %2216 = vadd.xlane.f32.xlu1 %v12672_v26  ;;  %2234 = vadd.xlane.f32.xlu0 %v12674_v6  ;;  %v12690_v49 = vpop.eup %10423 }
 0x490   : > { %v2179_v59 = vpop.xlane.xlu0 %2178 }
 0x493   : > { %2222 = vadd.xlane.f32.xlu1 %v12680_v3  ;;  %2232 = vadd.xlane.f32.xlu0 %v12678_v22 }
 0x494   : > { %v2181_v18 = vpop.xlane.xlu1 %2180  ;;  %v2175_v35 = vpop.xlane.xlu0 %2174 }
 0x495   : > { %10425 = vrcp.f32 %v2181_v18 }
 0x496   : > { %10427 = vrcp.f32 %v2175_v35 }
 0x497   : > { %2228 = vadd.xlane.f32.xlu1 %v12684_v56  ;;  %10429 = vrcp.f32 %v2179_v59 }
 0x498   : > { %v2177_v36 = vpop.xlane.xlu1 %2176 }
 0x499   : > { %10431 = vrcp.f32 %v2177_v36  ;;  %v2187_v9 = vpop.xlane.xlu0 %2186 }
 0x49b   : > { %2230 = vadd.xlane.f32.xlu1 %v12687_v45 }
 0x49c   : > { %v2189_v12 = vpop.xlane.xlu1 %2188 }
 0x49d   : > { %v2183_v17 = vpop.xlane.xlu0 %2182  ;;  %10433 = vrcp.f32 %v2189_v12 }
 0x49e   : > { %10435 = vrcp.f32 %v2183_v17 }
 0x49f   : > { %2236 = vadd.xlane.f32.xlu1 %v12690_v49  ;;  %v10426_v34 = vpop.eup %10425  ;;  %10437 = vrcp.f32 %v2187_v9 }
 0x4a0   : > { %v2185_v14 = vpop.xlane.xlu1 %2184  ;;  %v10428_v38 = vpop.eup %10427  ;;  %v2273_v41 = vmul.f32 %v10426_v34, %v12573_v62 }
 0x4a1   : > { %10439 = vrcp.f32 %v2185_v14  ;;  %v2195_v63 = vpop.xlane.xlu0 %2194  ;;  %v10430_v16 = vpop.eup %10429  ;;  %v2270_v4 = vmul.f32 %v10428_v38, %v12570_v43 }
 0x4a2   : > { %v2272_v59 = vmul.f32 %v10430_v16, %v12566_v32 }
 0x4a3   : > { %v10432_v7 = vpop.eup %10431 }
 0x4a4   : > { %v2197_v42 = vpop.xlane.xlu1 %2196  ;;  %v2271_v25 = vmul.f32 %v10432_v7, %v12579_v33  ;;  %v2303_v36 = vpack.c.bf16 %v2273_v41, %v2272_v59 }
 0x4a5   : > { %v2191_v18 = vpop.xlane.xlu0 %2190  ;;  %10441 = vrcp.f32 %v2197_v42 }
 0x4a6   : > { %v2302_v35 = vpack.c.bf16 %v2271_v25, %v2270_v4  ;;  %10443 = vrcp.f32 %v2191_v18 }
 0x4a7   : > { %v10434_v9 = vpop.eup %10433  ;;  %10445 = vrcp.f32 %v2195_v63 }
 0x4a8   : > { %v2193_v12 = vpop.xlane.xlu1 %2192  ;;  %9439 = vmatprep.mubr.bf16.mxu1 %v2302_v35  ;;  %v10436_v17 = vpop.eup %10435  ;;  %v2277_v33 = vmul.f32 %v10434_v9, %v12587_v19 }
 0x4a9   : > { %10447 = vrcp.f32 %v2193_v12  ;;  %9440 = vmatmul.mubr.bf16.vlgmr.msra.gmra.mrb[48].mxu1 %v2303_v36  ;;  %v2203_v62 = vpop.xlane.xlu0 %2202  ;;  %2554 = vrot.lane.b32.xlu0 %v12121_v55, %s11412_s2  ;;  %v10438_v43 = vpop.eup %10437  ;;  %v2274_v14 = vmul.f32 %v10436_v17, %v12590_v53  ;;  %v16078_v12 = vld [vmem:[#allocation79_spill] sm:$0xff] }
 0x4aa   : > { %9456 = vmatpush3.bf16.msra.mxu1 %v12283_v51  ;;  %v2276_v16 = vmul.f32 %v10438_v43, %v12582_v8 }
 0x4ab   : > { %v10440_v32 = vpop.eup %10439  ;;  %9457 = vmatprep.subr.bf16.mxu1 %v12273_v46 }
 0x4ac   : > { %v2205_v34 = vpop.xlane.xlu1 %2204  ;;  %v2275_v38 = vmul.f32 %v10440_v32, %v12595_v54  ;;  %v2305_v41 = vpack.c.bf16 %v2277_v33, %v2276_v16  ;;  %v16084_v16 = vld [vmem:[#allocation85_spill] sm:$0xff] }
 0x4ad   : > { %v2199_v63 = vpop.xlane.xlu0 %2198  ;;  %2733 = vrot.lane.b32.xlu0 %v12135_v11, %s11412_s2  ;;  %10449 = vrcp.f32 %v2205_v34  ;;  %v16136_v11 = vld [vmem:[#allocation67_spill] sm:$0xff] }
 0x4ae   : > { %9458 = vmatpush3.bf16.msra.mxu1 %v12273_v46  ;;  %v2304_v7 = vpack.c.bf16 %v2275_v38, %v2274_v14  ;;  %10451 = vrcp.f32 %v2199_v63  ;;  %v16080_v14 = vld [vmem:[#allocation82_spill] sm:$0xff]  ;;  %v16081_v63 = vld [vmem:[#allocation84_spill] sm:$0xff] }
 0x4af   : > { %9459 = vmatprep.subr.bf16.mxu1 %v12297_v50  ;;  %v10442_v19 = vpop.eup %10441  ;;  %10453 = vrcp.f32 %v2203_v62  ;;  %v16079_v62 = vld [vmem:[#allocation72_spill] sm:$0xff] }
 0x4b0   : > { %v2201_v42 = vpop.xlane.xlu1 %2200  ;;  %2771 = vrot.lane.b32.xlu1 %v12331_v60, %s11412_s2  ;;  %9443 = vmatprep.mubr.bf16.mxu1 %v2304_v7  ;;  %v10444_v53 = vpop.eup %10443  ;;  %v2281_v4 = vmul.f32 %v10442_v19, %v12602_v2  ;;  %v12753_v7 = vadd.f32 %v12518_v61, %v16084_v16  ;;  %v16090_v61 = vld [vmem:[#allocation88_spill] sm:$0xff]  ;;  %v16132_v60 = vld [vmem:[#allocation61_spill] sm:$0xff] }
 0x4b1   : > { %10455 = vrcp.f32 %v2201_v42  ;;  %9444 = vmatmul.mubr.bf16.gmra.mrb[52].mxu1 %v2305_v41  ;;  %2737 = vrot.lane.b32.xlu0 %v12173_v48, %s11412_s2  ;;  %v10446_v8 = vpop.eup %10445  ;;  %v2278_v25 = vmul.f32 %v10444_v53, %v12604_v13  ;;  %v16077_v13 = vld [vmem:[#allocation78_spill] sm:$0xff]  ;;  %v16086_v53 = vld [vmem:[#allocation87_spill] sm:$0xff] }
 0x4b2   : > { %9460 = vmatpush3.bf16.msra.mxu1 %v12297_v50  ;;  %v2280_v18 = vmul.f32 %v10446_v8, %v12598_v47  ;;  %v16085_v41 = vld [vmem:[#allocation98_spill] sm:$0xff]  ;;  %v16087_v8 = vld [vmem:[#allocation99_spill] sm:$0xff] }
 0x4b3   : > { %v10448_v54 = vpop.eup %10447  ;;  %9461 = vmatprep.subr.bf16.mxu1 %v12291_v31  ;;  %v12758_v19 = vadd.f32 %v16085_v41, %v12385_v44  ;;  %v16091_v44 = vld [vmem:[#allocation101_spill] sm:$0xff]  ;;  %v16096_v41 = vld [vmem:[#allocation107_spill] sm:$0xff] }
 0x4b4   : > { %2735 = vrot.lane.b32.xlu1 %v12155_v30, %s11412_s2  ;;  %v2279_v59 = vmul.f32 %v10448_v54, %v12608_v1  ;;  %v2307_v36 = vpack.c.bf16 %v2281_v4, %v2280_v18  ;;  %v16088_v54 = vld [vmem:[#allocation90_spill] sm:$0xff]  ;;  %v16089_v4 = vld [vmem:[#allocation103_spill] sm:$0xff]  ;;  %v12773_v18 = vadd.f32 %v16091_v44, %v16090_v61  ;;  %v16099_v44 = vld [vmem:[#allocation100_spill] sm:$0xff] }
 0x4b5   : > { %2741 = vrot.lane.b32.xlu0 %v12237_v23, %s11412_s2 }
 0x4b6   : > { %9462 = vmatpush3.bf16.msra.mxu1 %v12291_v31  ;;  %v2306_v35 = vpack.c.bf16 %v2279_v59, %v2278_v25  ;;  %v12767_v25 = vadd.f32 %v16089_v4, %v16088_v54  ;;  %v2798_v54 = vsel %vm1723_vm0, %v12507_v27, 0  ;;  %v16097_v4 = vld [vmem:[#allocation96_spill] sm:$0xff] }
 0x4b7   : > { %9463 = vmatprep.subr.bf16.mxu1 %v12315_v20  ;;  %v10450_v9 = vpop.eup %10449 }
 0x4b8   : > { %2739 = vrot.lane.b32.xlu1 %v12202_v24, %s11412_s2  ;;  %9447 = vmatprep.mubr.bf16.mxu1 %v2306_v35  ;;  %v10452_v2 = vpop.eup %10451  ;;  %v2285_v17 = vmul.f32 %v10450_v9, %v12614_v39  ;;  %v16082_v39 = vld [vmem:[#allocation81_spill] sm:$0xff]  ;;  %v16092_v35 = vld [vmem:[#allocation91_spill] sm:$0xff] }
 0x4b9   : > { %9448 = vmatmul.mubr.bf16.gmra.mrb[56].mxu1 %v2307_v36  ;;  %2745 = vrot.lane.b32.xlu0 %v16077_v13, %s11412_s2  ;;  %v10454_v1 = vpop.eup %10453  ;;  %v2282_v43 = vmul.f32 %v10452_v2, %v12616_v57  ;;  %v16093_v36 = vld [vmem:[#allocation105_spill] sm:$0xff]  ;;  %v16135_v13 = vld [vmem:[#allocation64_spill] sm:$0xff] }
 0x4ba   : > { %9464 = vmatpush3.bf16.msra.mxu1 %v12315_v20  ;;  %v2284_v33 = vmul.f32 %v10454_v1, %v12610_v40  ;;  %v16083_v40 = vld [vmem:[#allocation86_spill] sm:$0xff]  ;;  %v12777_v9 = vadd.f32 %v16093_v36, %v16092_v35  ;;  %v16094_v1 = vld [vmem:[#allocation89_spill] sm:$0xff]  ;;  %v2807_v36 = vsel %vm1723_vm0, %v16099_v44, 0 }
 0x4bb   : > { %v10456_v47 = vpop.eup %10455  ;;  %9465 = vmatprep.subr.bf16.mxu1 %v16078_v12  ;;  %v12748_v57 = vadd.f32 %v12523_v15, %v16083_v40  ;;  %v12763_v15 = vadd.f32 %v16087_v8, %v16086_v53 }
 0x4bc   : > { %2743 = vrot.lane.b32.xlu1 %v16079_v62, %s11412_s2  ;;  %v2283_v32 = vmul.f32 %v10456_v47, %v12620_v37  ;;  %v2309_v38 = vpack.c.bf16 %v2285_v17, %v2284_v33  ;;  %v16095_v47 = vld [vmem:[#allocation104_spill] sm:$0xff] }
 0x4bd   : > { %v12783_v17 = vadd.f32 %v16095_v47, %v16094_v1  ;;  %v16100_v47 = vld [vmem:[#allocation94_spill] sm:$0xff] }
 0x4be   : > { %9466 = vmatpush3.bf16.msra.mxu1 %v16078_v12  ;;  %v2308_v34 = vpack.c.bf16 %v2283_v32, %v2282_v43 }
 0x4bf   : > { %9467 = vmatprep.subr.bf16.mxu1 %v16080_v14 }
 0x4c0   : > { %2747 = vrot.lane.b32.xlu1 %v16081_v63, %s11412_s2  ;;  %9451 = vmatprep.mubr.bf16.mxu1 %v2308_v34  ;;  %v16134_v63 = vld [vmem:[#allocation68_spill] sm:$0xff] }
 0x4c1   : > { %9452 = vmatmul.mubr.bf16.gmra.mrb[60].mxu1 %v2309_v38 }
 0x4c2   : > { %9468 = vmatpush3.bf16.msra.mxu1 %v16080_v14 }
 0x4c3   : > { %9469 = vmatprep.subr.bf16.mxu1 %v16082_v39 }
 0x4c6   : > { %9470 = vmatpush3.bf16.msra.mxu1 %v16082_v39 }
 0x4c7   : > { %10135 = vmatprep.subr.msk.bf16.mxu1 %vm1723_vm0, %v12507_v27 }
 0x4cf   : > { %v2211_v37 = vpop.xlane.xlu1 %2210 }
 0x4d3   : > { %v2207_v42 = vpop.xlane.xlu1 %2206 }
 0x4d8   : > { %2918 = vmax.xlane.f32.xlu0 %v12748_v57 }
 0x4dc   : > { %2922 = vmax.xlane.f32.xlu0 %v12753_v7 }
 0x4e0   : > { %2924 = vmax.xlane.f32.xlu0 %v12758_v19 }
 0x4e3   : > { %v2213_v59 = vpop.xlane.xlu1 %2212 }
 0x4e4   : > { %2920 = vmax.xlane.f32.xlu1 %v12763_v15  ;;  %2926 = vmax.xlane.f32.xlu0 %v12767_v25  ;;  %10457 = vrcp.f32 %v2213_v59 }
 0x4e5   : > { %10459 = vrcp.f32 %v2207_v42 }
 0x4e6   : > { %10461 = vrcp.f32 %v2211_v37 }
 0x4e7   : > { %v2209_v2 = vpop.xlane.xlu1 %2208 }
 0x4e8   : > { %10463 = vrcp.f32 %v2209_v2  ;;  %2928 = vmax.xlane.f32.xlu1 %v12777_v9  ;;  %2930 = vmax.xlane.f32.xlu0 %v12773_v18 }
 0x4eb   : > { %v2553_v43 = vpop.permute.xlu1 %2552 }
 0x4ec   : > { %9515 = vmatprep.mubr.msk.bf16.mxu0 %vm1723_vm0, %v2553_v43  ;;  %2932 = vmax.xlane.f32.xlu1 %v12783_v17 }
 0x4ee   : > { %v10458_v32 = vpop.eup %10457 }
 0x4ef   : > { %v10460_v33 = vpop.eup %10459  ;;  %v2289_v40 = vmul.f32 %v10458_v32, %v12637_v5  ;;  %v2801_v5 = vsel %vm1723_vm0, %v16097_v4, 0 }
 0x4f0   : > { %v10462_v34 = vpop.eup %10461  ;;  %v2286_v37 = vmul.f32 %v10460_v33, %v12632_v10  ;;  %v16098_v10 = vld [vmem:[#allocation97_spill] sm:$0xff]  ;;  %v16101_v33 = vld [vmem:[#allocation102_spill] sm:$0xff] }
 0x4f1   : > { %v2288_v42 = vmul.f32 %v10462_v34, %v16096_v41  ;;  %v2804_v59 = vsel %vm1723_vm0, %v16098_v10, 0 }
 0x4f2   : > { %v10464_v38 = vpop.eup %10463 }
 0x4f3   : > { %v2287_v16 = vmul.f32 %v10464_v38, %v12640_v58  ;;  %v2311_v8 = vpack.c.bf16 %v2289_v40, %v2288_v42  ;;  %v2770_v58 = vpop.permute.xlu0 %2769  ;;  %v16102_v38 = vld [vmem:[#allocation95_spill] sm:$0xff]  ;;  %v16104_v42 = vld [vmem:[#allocation93_spill] sm:$0xff] }
 0x4f5   : > { %v2310_v53 = vpack.c.bf16 %v2287_v16, %v2286_v37  ;;  %v16103_v16 = vld [vmem:[#allocation92_spill] sm:$0xff] }
 0x4f7   : > { %9471 = vmatprep.mubr.bf16.mxu1 %v2310_v53 }
 0x4f8   : > { %9472 = vmatmul.mubr.bf16.vlgmr.msra.gmra.mrb[64].mxu1 %v2311_v8  ;;  %v2810_v8 = vsel %vm1723_vm0, %v16101_v33, 0 }
 0x4f9   : > { %9520 = vmatpush3.bf16.xpose.msra.mxu1 %v2798_v54 }
 0x4fa   : > { %10136 = vmatprep.subr.msk.bf16.mxu1 %vm1723_vm0, %v16097_v4  ;;  %v16105_v4 = vld [vmem:[#allocation106_spill] sm:$0xff] }
 0x501   : > { %9522 = vmatpush3.bf16.xpose.msra.mxu1 %v2801_v5 }
 0x502   : > { %10137 = vmatprep.subr.msk.bf16.mxu1 %vm1723_vm0, %v16098_v10 }
 0x508   : > { %v2219_v61 = vpop.xlane.xlu0 %2218 }
 0x509   : > { %9524 = vmatpush3.bf16.xpose.msra.mxu1 %v2804_v59 }
 0x50a   : > { %10138 = vmatprep.subr.msk.bf16.mxu1 %vm1723_vm0, %v16099_v44  ;;  %v2813_v44 = vsel %vm1723_vm0, %v16105_v4, 0 }
 0x50c   : > { %v2215_v27 = vpop.xlane.xlu0 %2214 }
 0x50f   : > { %v9513_v35 = vpop.f32.mrb[88].mxu0 }
 0x510   : > { %v2694_v2 = vpop.f32.mrb[89].mxu0  ;;  %v2221_v1 = vpop.xlane.xlu0 %2220  ;;  %v12815_v41 = vadd.f32 %v9513_v35, %v16103_v16 }
 0x511   : > { %9526 = vmatpush3.bf16.xpose.msra.mxu1 %v2807_v36  ;;  %v12806_v43 = vadd.f32 %v2694_v2, %v16100_v47  ;;  %v9514_v32 = vpop.f32.mrb[90].mxu0  ;;  %10465 = vrcp.f32 %v2221_v1 }
 0x512   : > { %10139 = vmatprep.subr.msk.bf16.mxu1 %vm1723_vm0, %v16101_v33  ;;  %v2697_v34 = vpop.f32.mrb[91].mxu0  ;;  %v12819_v53 = vadd.f32 %v9514_v32, %v16104_v42  ;;  %10467 = vrcp.f32 %v2215_v27 }
 0x513   : > { %v12811_v40 = vadd.f32 %v2697_v34, %v16102_v38  ;;  %2934 = vmax.xlane.f32.xlu0 %v12806_v43  ;;  %10469 = vrcp.f32 %v2219_v61  ;;  %v2816_v34 = vsel %vm1723_vm0, %v2770_v58, 0 }
 0x514   : > { %v2227_v37 = vpop.xlane.xlu0 %2226 }
 0x515   : > { %2936 = vmax.xlane.f32.xlu1 %v12811_v40 }
 0x517   : > { %2938 = vmax.xlane.f32.xlu0 %v12815_v41 }
 0x518   : > { %v2225_v54 = vpop.xlane.xlu0 %2224 }
 0x519   : > { %9528 = vmatpush3.bf16.xpose.msra.mxu1 %v2810_v8  ;;  %2940 = vmax.xlane.f32.xlu1 %v12819_v53 }
 0x51a   : > { %10140 = vmatprep.subr.msk.bf16.mxu1 %vm1723_vm0, %v16105_v4 }
 0x51b   : > { %v10466_v36 = vpop.eup %10465 }
 0x51c   : > { %v2217_v5 = vpop.xlane.xlu1 %2216  ;;  %v2235_v10 = vpop.xlane.xlu0 %2234  ;;  %v2293_v32 = vmul.f32 %v10466_v36, %v12660_v28 }
 0x51d   : > { %10471 = vrcp.f32 %v2217_v5  ;;  %v10468_v47 = vpop.eup %10467 }
 0x51e   : > { %10473 = vrcp.f32 %v2225_v54  ;;  %v10470_v61 = vpop.eup %10469  ;;  %v2290_v38 = vmul.f32 %v10468_v47, %v12655_v29 }
 0x51f   : > { %v2292_v42 = vmul.f32 %v10470_v61, %v12650_v52 }
 0x520   : > { %v2223_v59 = vpop.xlane.xlu1 %2222  ;;  %v2233_v35 = vpop.xlane.xlu0 %2232 }
 0x521   : > { %10475 = vrcp.f32 %v2223_v59  ;;  %9530 = vmatpush3.bf16.xpose.msra.mxu1 %v2813_v44  ;;  %v2313_v4 = vpack.c.bf16 %v2293_v32, %v2292_v42 }
 0x522   : > { %10141 = vmatprep.subr.msk.bf16.mxu1 %vm1723_vm0, %v2770_v58  ;;  %10477 = vrcp.f32 %v2227_v37 }
 0x524   : > { %v2229_v2 = vpop.xlane.xlu1 %2228  ;;  %v2555_v1 = vpop.permute.xlu0 %2554 }
 0x525   : > { %10479 = vrcp.f32 %v2229_v2  ;;  %9516 = vmatmul.mubr.msk.bf16.gmra.mrb[92].mxu0 %vm1723_vm0, %v2555_v1 }
 0x526   : > { %10481 = vrcp.f32 %v2233_v35 }
 0x527   : > { %v10472_v27 = vpop.eup %10471 }
 0x528   : > { %v2231_v33 = vpop.xlane.xlu1 %2230  ;;  %v2291_v16 = vmul.f32 %v10472_v27, %v12672_v26  ;;  %v10474_v37 = vpop.eup %10473 }
 0x529   : > { %10483 = vrcp.f32 %v2231_v33  ;;  %9532 = vmatpush3.bf16.xpose.msra.mxu1 %v2816_v34  ;;  %v2295_v59 = vmul.f32 %v10474_v37, %v12668_v0  ;;  %v2734_v33 = vpop.permute.xlu0 %2733 }
 0x52a   : > { %v2312_v8 = vpack.c.bf16 %v2291_v16, %v2290_v38  ;;  %10485 = vrcp.f32 %v2235_v10 }
 0x52b   : > { %v10476_v54 = vpop.eup %10475 }
 0x52c   : > { %v2237_v5 = vpop.xlane.xlu1 %2236  ;;  %9475 = vmatprep.mubr.bf16.mxu1 %v2312_v8  ;;  %v2294_v28 = vmul.f32 %v10476_v54, %v12680_v3  ;;  %v10478_v58 = vpop.eup %10477 }
 0x52d   : > { %10487 = vrcp.f32 %v2237_v5  ;;  %9476 = vmatmul.mubr.bf16.gmra.mrb[68].mxu1 %v2313_v4  ;;  %v2296_v35 = vmul.f32 %v10478_v58, %v12664_v21  ;;  %v2738_v38 = vpop.permute.xlu0 %2737 }
 0x52e   : > { %v2314_v29 = vpack.c.bf16 %v2295_v59, %v2294_v28 }
 0x52f   : > { %v10480_v26 = vpop.eup %10479 }
 0x530   : > { %v2772_v44 = vpop.permute.xlu1 %2771  ;;  %9479 = vmatprep.mubr.bf16.mxu1 %v2314_v29  ;;  %v2297_v52 = vmul.f32 %v10480_v26, %v12684_v56  ;;  %v10482_v36 = vpop.eup %10481  ;;  %v12931_v29 = vld [vmem:[#allocation8 + $0x78] sm:$0xff] }
 0x531   : > { %10142 = vmatprep.subr.msk.bf16.mxu1 %vm1723_vm0, %v2772_v44  ;;  %v2819_v10 = vsel %vm1723_vm0, %v2772_v44, 0  ;;  %v2299_v1 = vmul.f32 %v10482_v36, %v12678_v22 }
 0x532   : > { %9534 = vmatpush3.bf16.xpose.msra.mxu1 %v2819_v10  ;;  %v2315_v3 = vpack.c.bf16 %v2297_v52, %v2296_v35  ;;  %v12919_v10 = vld [vmem:[#allocation8 + $0x68] sm:$0xff] }
 0x533   : > { %v10484_v2 = vpop.eup %10483 }
 0x534   : > { %v2298_v0 = vmul.f32 %v10484_v2, %v12687_v45  ;;  %v10486_v47 = vpop.eup %10485  ;;  %v2736_v34 = vpop.permute.xlu1 %2735 }
 0x535   : > { %9480 = vmatmul.mubr.bf16.gmra.mrb[72].mxu1 %v2315_v3  ;;  %v2300_v21 = vmul.f32 %v10486_v47, %v12674_v6  ;;  %v2742_v45 = vpop.permute.xlu0 %2741 }
 0x536   : > { %v2316_v61 = vpack.c.bf16 %v2299_v1, %v2298_v0 }
 0x537   : > { %v10488_v27 = vpop.eup %10487 }
 0x538   : > { %9483 = vmatprep.mubr.bf16.mxu1 %v2316_v61  ;;  %v2301_v56 = vmul.f32 %v10488_v27, %v12690_v49  ;;  %v2740_v22 = vpop.permute.xlu1 %2739 }
 0x539   : > { %v2746_v16 = vpop.permute.xlu0 %2745 }
 0x53a   : > { %v2317_v32 = vpack.c.bf16 %v2301_v56, %v2300_v21 }
 0x53c   : > { %v2744_v6 = vpop.permute.xlu1 %2743 }
 0x53d   : > { %9484 = vmatmul.mubr.bf16.gmra.mrb[76].mxu1 %v2317_v32 }
 0x53e   : > { %9535 = vmatprep.mubr.msk.bf16.mxu1 %vm1723_vm0, %v2734_v33 }
 0x540   : > { %v2748_v49 = vpop.permute.xlu1 %2747 }
 0x545   : > { %9536 = vmatmul.mubr.msk.bf16.vlgmr.msra.gmra.mrb[80].mxu1 %vm1723_vm0, %v2736_v34  ;;  %v12925_v34 = vld [vmem:[#allocation8 + $0x70] sm:$0xff] }
 0x546   : > { %9539 = vmatprep.mubr.msk.bf16.mxu1 %vm1723_vm0, %v2738_v38 }
 0x54d   : > { %9540 = vmatmul.mubr.msk.bf16.gmra.mrb[84].mxu1 %vm1723_vm0, %v2740_v22 }
 0x54e   : > { %9543 = vmatprep.mubr.msk.bf16.mxu1 %vm1723_vm0, %v2742_v45 }
 0x555   : > { %9544 = vmatmul.mubr.msk.bf16.gmra.mrb[88].mxu1 %vm1723_vm0, %v2744_v6 }
 0x556   : > { %9547 = vmatprep.mubr.msk.bf16.mxu1 %vm1723_vm0, %v2746_v16  ;;  %v12914_v16 = vld [vmem:[#allocation8 + $0x60] sm:$0xff] }
 0x55d   : > { %9548 = vmatmul.mubr.msk.bf16.gmra.mrb[92].mxu1 %vm1723_vm0, %v2748_v49 }
 0x571   : > { %v2921_v14 = vpop.xlane.xlu1 %2920 }
 0x57c   : > { %v12854_v37 = vpop.f32.mrb[48].mxu1 }
 0x57d   : > { %v12856_v42 = vpop.f32.mrb[49].mxu1 }
 0x57e   : > { %v12858_v8 = vpop.f32.mrb[50].mxu1 }
 0x57f   : > { %v12862_v4 = vpop.f32.mrb[51].mxu1 }
 0x584   : > { %v12866_v28 = vpop.f32.mrb[52].mxu1 }
 0x585   : > { %16106 = vst [vmem:[#allocation86_spill] sm:$0xff] %v12866_v28  ;;  %v12868_v59 = vpop.f32.mrb[53].mxu1 }
 0x586   : > { %v12870_v58 = vpop.f32.mrb[54].mxu1 }
 0x587   : > { %16107 = vst [vmem:[#allocation85_spill] sm:$0xff] %v12870_v58  ;;  %v12874_v26 = vpop.f32.mrb[55].mxu1 }
 0x58c   : > { %v12878_v35 = vpop.f32.mrb[56].mxu1 }
 0x58d   : > { %16108 = vst [vmem:[#allocation98_spill] sm:$0xff] %v12878_v35  ;;  %v12880_v52 = vpop.f32.mrb[57].mxu1 }
 0x58e   : > { %16109 = vst [vmem:[#allocation87_spill] sm:$0xff] %v12880_v52  ;;  %v12882_v36 = vpop.f32.mrb[58].mxu1 }
 0x58f   : > { %16110 = vst [vmem:[#allocation99_spill] sm:$0xff] %v12882_v36  ;;  %v12886_v3 = vpop.f32.mrb[59].mxu1 }
 0x590   : > { %16111 = vst [vmem:[#allocation90_spill] sm:$0xff] %v12886_v3 }
 0x594   : > { %v12890_v0 = vpop.f32.mrb[60].mxu1 }
 0x595   : > { %16112 = vst [vmem:[#allocation103_spill] sm:$0xff] %v12890_v0  ;;  %v12892_v1 = vpop.f32.mrb[61].mxu1 }
 0x596   : > { %16113 = vst [vmem:[#allocation88_spill] sm:$0xff] %v12892_v1  ;;  %v12894_v47 = vpop.f32.mrb[62].mxu1 }
 0x597   : > { %16114 = vst [vmem:[#allocation101_spill] sm:$0xff] %v12894_v47  ;;  %v12898_v27 = vpop.f32.mrb[63].mxu1 }
 0x598   : > { %16115 = vst [vmem:[#allocation91_spill] sm:$0xff] %v12898_v27 }
 0x5cb   : > { %v12902_v56 = vpop.f32.mrb[64].mxu1 }
 0x5cc   : > { %16116 = vst [vmem:[#allocation105_spill] sm:$0xff] %v12902_v56  ;;  %v12904_v32 = vpop.f32.mrb[65].mxu1 }
 0x5cd   : > { %16117 = vst [vmem:[#allocation89_spill] sm:$0xff] %v12904_v32  ;;  %v12906_v33 = vpop.f32.mrb[66].mxu1 }
 0x5ce   : > { %16118 = vst [vmem:[#allocation104_spill] sm:$0xff] %v12906_v33  ;;  %v12910_v38 = vpop.f32.mrb[67].mxu1 }
 0x5cf   : > { %16119 = vst [vmem:[#allocation107_spill] sm:$0xff] %v12910_v38 }
 0x5f8   : > { %v9517_v45 = vpop.f32.mrb[92].mxu0 }
 0x5f9   : > { %v2710_v6 = vpop.f32.mrb[93].mxu0  ;;  %v12928_v22 = vadd.f32 %v12925_v34, %v9517_v45 }
 0x5fa   : > { %v12917_v49 = vadd.f32 %v12914_v16, %v2710_v6  ;;  %v9518_v61 = vpop.f32.mrb[94].mxu0 }
 0x5fb   : > { %v2713_v21 = vpop.f32.mrb[95].mxu0  ;;  %v12934_v6 = vadd.f32 %v12931_v29, %v9518_v61 }
 0x5fc   : > { %v12922_v2 = vadd.f32 %v12919_v10, %v2713_v21  ;;  %2942 = vmax.xlane.f32.xlu0 %v12917_v49 }
 0x5fe   : > { %2944 = vmax.xlane.f32.xlu1 %v12922_v2 }
 0x600   : > { %v12936_v44 = vpop.f32.mrb[68].mxu1  ;;  %2946 = vmax.xlane.f32.xlu0 %v12928_v22 }
 0x601   : > { %16120 = vst [vmem:[#allocation96_spill] sm:$0xff] %v12936_v44  ;;  %v12939_v21 = vpop.f32.mrb[69].mxu1 }
 0x602   : > { %16121 = vst [vmem:[#allocation97_spill] sm:$0xff] %v12939_v21  ;;  %v12941_v54 = vpop.f32.mrb[70].mxu1  ;;  %2948 = vmax.xlane.f32.xlu1 %v12934_v6 }
 0x603   : > { %16122 = vst [vmem:[#allocation100_spill] sm:$0xff] %v12941_v54  ;;  %v12946_v5 = vpop.f32.mrb[71].mxu1 }
 0x604   : > { %16123 = vst [vmem:[#allocation94_spill] sm:$0xff] %v12946_v5  ;;  %v2929_v5 = vpop.xlane.xlu1 %2928 }
 0x608   : > { %v12950_v61 = vpop.f32.mrb[72].mxu1  ;;  %v2933_v0 = vpop.xlane.xlu1 %2932 }
 0x609   : > { %16124 = vst [vmem:[#allocation102_spill] sm:$0xff] %v12950_v61  ;;  %v12952_v23 = vpop.f32.mrb[73].mxu1  ;;  %v16133_v61 = vld [vmem:[#allocation62_spill] sm:$0xff]  ;;  %v2989_v3 = vsub.f32 %v12783_v17, %v2933_v0 }
 0x60a   : > { %16125 = vst [vmem:[#allocation95_spill] sm:$0xff] %v12952_v23  ;;  %v12954_v48 = vpop.f32.mrb[74].mxu1 }
 0x60b   : > { %16126 = vst [vmem:[#allocation92_spill] sm:$0xff] %v12954_v48  ;;  %v12958_v55 = vpop.f32.mrb[75].mxu1 }
 0x60c   : > { %16127 = vst [vmem:[#allocation93_spill] sm:$0xff] %v12958_v55  ;;  %v2937_v36 = vpop.xlane.xlu1 %2936 }
 0x610   : > { %v12962_v45 = vpop.f32.mrb[76].mxu1 }
 0x611   : > { %16128 = vst [vmem:[#allocation106_spill] sm:$0xff] %v12962_v45  ;;  %v12964_v62 = vpop.f32.mrb[77].mxu1  ;;  %v2919_v45 = vpop.xlane.xlu0 %2918 }
 0x612   : > { %16129 = vst [vmem:[#allocation108_spill] sm:$0xff] %v12964_v62  ;;  %v12966_v24 = vpop.f32.mrb[78].mxu1  ;;  %v2982_v27 = vsub.f32 %v12748_v57, %v2919_v45  ;;  %v2983_v57 = vsub.f32 %v12763_v15, %v2921_v14 }
 0x613   : > { %16130 = vst [vmem:[#allocation109_spill] sm:$0xff] %v12966_v24  ;;  %v12970_v30 = vpop.f32.mrb[79].mxu1  ;;  %3232 = vrot.lane.b32.xlu1 %v16132_v60, %s11412_s2 }
 0x614   : > { %16131 = vst [vmem:[#allocation110_spill] sm:$0xff] %v12970_v30  ;;  %v3014_v58 = vmul.f32 1.442695, %v2982_v27  ;;  %v3016_v17 = vmul.f32 1.442695, %v2983_v57 }
 0x615   : > { %v2923_v62 = vpop.xlane.xlu0 %2922 }
 0x616   : > { %3230 = vrot.lane.b32.xlu0 %v16133_v61, %s11412_s2  ;;  %v16137_v61 = vld [vmem:[#allocation63_spill] sm:$0xff]  ;;  %v2984_v38 = vsub.f32 %v12753_v7, %v2923_v62  ;;  %v3028_v62 = vmul.f32 1.442695, %v2989_v3 }
 0x617   : > { %3238 = vrot.lane.b32.xlu1 %v16134_v63, %s11412_s2  ;;  %v16138_v63 = vld [vmem:[#allocation69_spill] sm:$0xff] }
 0x618   : > { %v12980_v48 = vpop.f32.mrb[80].mxu1  ;;  %v3018_v35 = vmul.f32 1.442695, %v2984_v38 }
 0x619   : > { %v12982_v23 = vpop.f32.mrb[81].mxu1 }
 0x61a   : > { %v12984_v55 = vpop.f32.mrb[82].mxu1  ;;  %3234 = vrot.lane.b32.xlu0 %v16135_v13, %s11412_s2  ;;  %v16139_v13 = vld [vmem:[#allocation70_spill] sm:$0xff] }
 0x61b   : > { %v12988_v60 = vpop.f32.mrb[83].mxu1  ;;  %3240 = vrot.lane.b32.xlu1 %v16136_v11, %s11412_s2 }
 0x61e   : > { %3236 = vrot.lane.b32.xlu0 %v16137_v61, %s11412_s2  ;;  %v2925_v61 = vpop.xlane.xlu0 %2924 }
 0x61f   : > { %3244 = vrot.lane.b32.xlu1 %v16138_v63, %s11412_s2 }
 0x620   : > { %v12996_v24 = vpop.f32.mrb[84].mxu1 }
 0x621   : > { %v12998_v30 = vpop.f32.mrb[85].mxu1 }
 0x622   : > { %v13000_v39 = vpop.f32.mrb[86].mxu1  ;;  %3242 = vrot.lane.b32.xlu0 %v16139_v13, %s11412_s2 }
 0x623   : > { %v13004_v44 = vpop.f32.mrb[87].mxu1  ;;  %3361 = vrot.lane.b32.xlu1 %v12273_v46, %s11412_s2  ;;  %v2927_v46 = vpop.xlane.xlu0 %2926 }
 0x624   : > { %v2986_v47 = vsub.f32 %v12767_v25, %v2927_v46 }
 0x626   : > { %3359 = vrot.lane.b32.xlu0 %v12283_v51, %s11412_s2  ;;  %v3022_v52 = vmul.f32 1.442695, %v2986_v47 }
 0x627   : > { %3365 = vrot.lane.b32.xlu1 %v12291_v31, %s11412_s2  ;;  %v2931_v31 = vpop.xlane.xlu0 %2930 }
 0x628   : > { %v13012_v63 = vpop.f32.mrb[88].mxu1  ;;  %v2988_v32 = vsub.f32 %v12773_v18, %v2931_v31  ;;  %v2985_v31 = vsub.f32 %v12758_v19, %v2925_v61  ;;  %v2941_v18 = vpop.xlane.xlu1 %2940 }
 0x629   : > { %v13014_v11 = vpop.f32.mrb[89].mxu1 }
 0x62a   : > { %v13016_v54 = vpop.f32.mrb[90].mxu1  ;;  %3363 = vrot.lane.b32.xlu0 %v12297_v50, %s11412_s2  ;;  %v3026_v1 = vmul.f32 1.442695, %v2988_v32  ;;  %v3020_v46 = vmul.f32 1.442695, %v2985_v31 }
 0x62b   : > { %v13020_v13 = vpop.f32.mrb[91].mxu1  ;;  %v2935_v50 = vpop.xlane.xlu0 %2934 }
 0x62c   : > { %10489 = vpow2.f32 %v3026_v1  ;;  %v2993_v1 = vsub.f32 %v12819_v53, %v2941_v18  ;;  %v2990_v53 = vsub.f32 %v12806_v43, %v2935_v50 }
 0x62d   : > { %10491 = vpow2.f32 %v3018_v35  ;;  %v2987_v35 = vsub.f32 %v12777_v9, %v2929_v5 }
 0x62e   : > { %10493 = vpow2.f32 %v3022_v52 }
 0x62f   : > { %v2939_v28 = vpop.xlane.xlu0 %2938  ;;  %10495 = vpow2.f32 %v3014_v58  ;;  %v3024_v15 = vmul.f32 1.442695, %v2987_v35 }
 0x630   : > { %v13022_v21 = vpop.f32.mrb[92].mxu1  ;;  %v2992_v7 = vsub.f32 %v12815_v41, %v2939_v28  ;;  %10497 = vpow2.f32 %v3028_v62  ;;  %v2991_v41 = vsub.f32 %v12811_v40, %v2937_v36  ;;  %v3036_v28 = vmul.f32 1.442695, %v2993_v1 }
 0x631   : > { %v13024_v51 = vpop.f32.mrb[93].mxu1  ;;  %10499 = vpow2.f32 %v3020_v46  ;;  %v3030_v40 = vmul.f32 1.442695, %v2990_v53 }
 0x632   : > { %v13026_v56 = vpop.f32.mrb[94].mxu1  ;;  %v3034_v25 = vmul.f32 1.442695, %v2992_v7  ;;  %v3032_v9 = vmul.f32 1.442695, %v2991_v41 }
 0x633   : > { %v13028_v33 = vpop.f32.mrb[95].mxu1 }
 0x634   : > { %10501 = vpow2.f32 %v3034_v25 }
 0x635   : > { %10503 = vpow2.f32 %v3016_v17 }
 0x636   : > { %v13039_v47 = vpop.eup %10489  ;;  %10505 = vpow2.f32 %v3036_v28 }
 0x637   : > { %v13043_v19 = vpop.eup %10491  ;;  %10507 = vpow2.f32 %v3024_v15 }
 0x638   : > { %v13047_v14 = vpop.eup %10493  ;;  %10509 = vpow2.f32 %v3032_v9 }
 0x639   : > { %v13051_v58 = vpop.eup %10495  ;;  %10511 = vpow2.f32 %v3030_v40 }
 0x63a   : > { %v13054_v5 = vpop.eup %10497 }
 0x63b   : > { %v13057_v52 = vpop.eup %10499 }
 0x63e   : > { %v13060_v50 = vpop.eup %10501 }
 0x63f   : > { %v13063_v43 = vpop.eup %10503 }
 0x640   : > { %v13066_v36 = vpop.eup %10505 }
 0x641   : > { %v13069_v3 = vpop.eup %10507 }
 0x642   : > { %v13072_v0 = vpop.eup %10509 }
 0x643   : > { %v13075_v27 = vpop.eup %10511 }
 0x649   : > { %3090 = vadd.xlane.f32.xlu0 %v13039_v47 }
 0x64b   : > { %3082 = vadd.xlane.f32.xlu1 %v13043_v19 }
 0x64d   : > { %3086 = vadd.xlane.f32.xlu0 %v13047_v14 }
 0x64f   : > { %3078 = vadd.xlane.f32.xlu1 %v13051_v58 }
 0x651   : > { %3092 = vadd.xlane.f32.xlu0 %v13054_v5 }
 0x653   : > { %3084 = vadd.xlane.f32.xlu1 %v13057_v52 }
 0x655   : > { %3098 = vadd.xlane.f32.xlu0 %v13060_v50 }
 0x657   : > { %3080 = vadd.xlane.f32.xlu1 %v13063_v43 }
 0x659   : > { %3100 = vadd.xlane.f32.xlu0 %v13066_v36 }
 0x65b   : > { %3088 = vadd.xlane.f32.xlu1 %v13069_v3 }
 0x65d   : > { %3096 = vadd.xlane.f32.xlu0 %v13072_v0 }
 0x65f   : > { %3094 = vadd.xlane.f32.xlu1 %v13075_v27 }
 0x689   : > { %v2943_v32 = vpop.xlane.xlu0 %2942 }
 0x68a   : > { %v2994_v61 = vsub.f32 %v12917_v49, %v2943_v32 }
 0x68b   : > { %v2945_v38 = vpop.xlane.xlu1 %2944 }
 0x68c   : > { %v2995_v7 = vsub.f32 %v12922_v2, %v2945_v38  ;;  %v3038_v25 = vmul.f32 1.442695, %v2994_v61  ;;  %v11005_v38 = vld [vmem:[#allocation8 + $0x18] sm:$0xff] }
 0x68d   : > { %v2947_v45 = vpop.xlane.xlu0 %2946 }
 0x68e   : > { %v2996_v31 = vsub.f32 %v12928_v22, %v2947_v45  ;;  %v3040_v35 = vmul.f32 1.442695, %v2995_v7  ;;  %v13094_v45 = vadd.f32 %v11005_v38, %v12984_v55  ;;  %v11007_v7 = vld [vmem:[#allocation8 + $0x8] sm:$0xff] }
 0x68f   : > { %v2949_v62 = vpop.xlane.xlu1 %2948 }
 0x690   : > { %v3042_v18 = vmul.f32 1.442695, %v2996_v31  ;;  %v2997_v46 = vsub.f32 %v12934_v6, %v2949_v62  ;;  %v11006_v31 = vld [vmem:[#allocation8 + $0x10] sm:$0xff] }
 0x691   : > { %v3231_v57 = vpop.permute.xlu0 %3230  ;;  %v13098_v62 = vadd.f32 %v11006_v31, %v12980_v48  ;;  %v11009_v48 = vld [vmem:[#allocation8 + $0x38] sm:$0xff] }
 0x692   : > { %10513 = vpow2.f32 %v3042_v18  ;;  %v3044_v1 = vmul.f32 1.442695, %v2997_v46  ;;  %9551 = vmatprep.subr.bf16.mxu0 %v3231_v57  ;;  %v13102_v18 = vadd.f32 %v11007_v7, %v12988_v60  ;;  %v11008_v46 = vld [vmem:[#allocation8] sm:$0xff] }
 0x693   : > { %v3233_v17 = vpop.permute.xlu1 %3232  ;;  %9552 = vmatpush3.bf16.msra.mxu0 %v3231_v57  ;;  %v13106_v57 = vadd.f32 %v11008_v46, %v12982_v23  ;;  %v11011_v23 = vld [vmem:[#allocation8 + $0x28] sm:$0xff] }
 0x694   : > { %10515 = vpow2.f32 %v3044_v1  ;;  %9553 = vmatprep.subr.bf16.mxu0 %v3233_v17  ;;  %v11010_v1 = vld [vmem:[#allocation8 + $0x30] sm:$0xff] }
 0x695   : > { %v3235_v41 = vpop.permute.xlu0 %3234  ;;  %10517 = vpow2.f32 %v3038_v25  ;;  %v13110_v25 = vadd.f32 %v11009_v48, %v13000_v39  ;;  %v11012_v39 = vld [vmem:[#allocation8 + $0x20] sm:$0xff] }
 0x696   : > { %10519 = vpow2.f32 %v3040_v35  ;;  %v13118_v35 = vadd.f32 %v11011_v23, %v13004_v44 }
 0x697   : > { %v3239_v49 = vpop.permute.xlu1 %3238  ;;  %9554 = vmatpush3.bf16.msra.mxu0 %v3233_v17  ;;  %v13114_v17 = vadd.f32 %v11010_v1, %v12996_v24 }
 0x698   : > { %9555 = vmatprep.subr.bf16.mxu0 %v3235_v41 }
 0x699   : > { %v3237_v2 = vpop.permute.xlu0 %3236 }
 0x69b   : > { %v3241_v22 = vpop.permute.xlu1 %3240  ;;  %9556 = vmatpush3.bf16.msra.mxu0 %v3235_v41  ;;  %v13122_v41 = vadd.f32 %v11012_v39, %v12998_v30  ;;  %v11016_v30 = vld [vmem:[#allocation8 + $0x40] sm:$0xff] }
 0x69c   : > { %v13082_v6 = vpop.eup %10513  ;;  %9557 = vmatprep.subr.bf16.mxu0 %v3237_v2 }
 0x69d   : > { %3106 = vadd.xlane.f32.xlu1 %v13082_v6  ;;  %v3243_v28 = vpop.permute.xlu0 %3242 }
 0x69e   : > { %v13085_v15 = vpop.eup %10515 }
 0x69f   : > { %v3245_v53 = vpop.permute.xlu1 %3244  ;;  %3108 = vadd.xlane.f32.xlu0 %v13085_v15  ;;  %9558 = vmatpush3.bf16.msra.mxu0 %v3237_v2  ;;  %v13088_v9 = vpop.eup %10517  ;;  %v11014_v2 = vld [vmem:[#allocation8 + $0x50] sm:$0xff] }
 0x6a0   : > { %9559 = vmatprep.subr.bf16.mxu0 %v3239_v49  ;;  %v13091_v32 = vpop.eup %10519  ;;  %v13130_v44 = vadd.f32 %v11014_v2, %v13012_v63  ;;  %v13148_v63 = vadd.f32 %v12925_v34, %v13022_v21 }
 0x6a1   : > { %3102 = vadd.xlane.f32.xlu1 %v13088_v9  ;;  %v3360_v40 = vpop.permute.xlu0 %3359 }
 0x6a2   : > { %9583 = vmatprep.subr.bf16.mxu1 %v3360_v40 }
 0x6a3   : > { %v3362_v61 = vpop.permute.xlu1 %3361  ;;  %3104 = vadd.xlane.f32.xlu0 %v13091_v32  ;;  %9560 = vmatpush3.bf16.msra.mxu0 %v3239_v49  ;;  %v11013_v49 = vld [vmem:[#allocation8 + $0x58] sm:$0xff] }
 0x6a4   : > { %9584 = vmatpush3.bf16.msra.mxu1 %v3360_v40  ;;  %9561 = vmatprep.subr.bf16.mxu0 %v3241_v22  ;;  %v13126_v24 = vadd.f32 %v11013_v49, %v13016_v54  ;;  %v13143_v54 = vadd.f32 %v12931_v29, %v13026_v56  ;;  %v10313_v29 = vld [vmem:[%s11884_s19] sm:$0xff]  }
 0x6a5   : > { %9585 = vmatprep.subr.bf16.mxu1 %v3362_v61  ;;  %2956 = vmax.xlane.f32.xlu1 %v13094_v45  ;;  %v3364_v55 = vpop.permute.xlu0 %3363 }
 0x6a7   : > { %2954 = vmax.xlane.f32.xlu0 %v13098_v62  ;;  %9562 = vmatpush3.bf16.msra.mxu0 %v3241_v22  ;;  %v3366_v60 = vpop.permute.xlu1 %3365  ;;  %v11015_v22 = vld [vmem:[#allocation8 + $0x48] sm:$0xff] }
 0x6a8   : > { %9586 = vmatpush3.bf16.msra.mxu1 %v3362_v61  ;;  %9563 = vmatprep.subr.bf16.mxu0 %v3243_v28 }
 0x6a9   : > { %9587 = vmatprep.subr.bf16.mxu1 %v3364_v55  ;;  %2952 = vmax.xlane.f32.xlu1 %v13102_v18 }
 0x6ab   : > { %2950 = vmax.xlane.f32.xlu0 %v13106_v57  ;;  %9564 = vmatpush3.bf16.msra.mxu0 %v3243_v28  ;;  %v13134_v28 = vadd.f32 %v11015_v22, %v13020_v13  ;;  %v13153_v13 = vadd.f32 %v12919_v10, %v13028_v33 }
 0x6ac   : > { %9588 = vmatpush3.bf16.msra.mxu1 %v3364_v55  ;;  %9565 = vmatprep.subr.bf16.mxu0 %v3245_v53 }
 0x6ad   : > { %9589 = vmatprep.subr.bf16.mxu1 %v3366_v60  ;;  %2964 = vmax.xlane.f32.xlu1 %v13110_v25 }
 0x6af   : > { %2962 = vmax.xlane.f32.xlu0 %v13114_v17  ;;  %9566 = vmatpush3.bf16.msra.mxu0 %v3245_v53  ;;  %v13138_v53 = vadd.f32 %v11016_v30, %v13014_v11  ;;  %v13158_v11 = vadd.f32 %v12914_v16, %v13024_v51 }
 0x6b0   : > { %9590 = vmatpush3.bf16.msra.mxu1 %v3366_v60  ;;  %9651 = vmatprep.subr.bf16.mxu0 %v10313_v29 }
 0x6b1   : > { %2960 = vmax.xlane.f32.xlu1 %v13118_v35 }
 0x6b3   : > { %2958 = vmax.xlane.f32.xlu0 %v13122_v41 }
 0x6b5   : > { %2972 = vmax.xlane.f32.xlu1 %v13126_v24 }
 0x6b7   : > { %2970 = vmax.xlane.f32.xlu0 %v13130_v44 }
 0x6b9   : > { %2968 = vmax.xlane.f32.xlu1 %v13134_v28 }
 0x6bb   : > { %2966 = vmax.xlane.f32.xlu0 %v13138_v53 }
 0x6bd   : > { %2980 = vmax.xlane.f32.xlu1 %v13143_v54 }
 0x6bf   : > { %2978 = vmax.xlane.f32.xlu0 %v13148_v63 }
 0x6c1   : > { %2976 = vmax.xlane.f32.xlu1 %v13153_v13 }
 0x6c3   : > { %2974 = vmax.xlane.f32.xlu0 %v13158_v11 }
 0x6d2   : > { %3369 = vrot.lane.b32.xlu1 %v16078_v12, %s11412_s2 }
 0x6d6   : > { %v3091_v56 = vpop.xlane.xlu0 %3090 }
 0x6d8   : > { %v3083_v34 = vpop.xlane.xlu1 %3082 }
 0x6d9   : > { %3367 = vrot.lane.b32.xlu0 %v12315_v20, %s11412_s2 }
 0x6da   : > { %v3087_v10 = vpop.xlane.xlu0 %3086 }
 0x6dc   : > { %v3079_v33 = vpop.xlane.xlu1 %3078 }
 0x6de   : > { %v3093_v21 = vpop.xlane.xlu0 %3092 }
 0x6e0   : > { %v3085_v40 = vpop.xlane.xlu1 %3084 }
 0x6e1   : > { %10521 = vrcp.f32 %v3085_v40 }
 0x6e2   : > { %v3099_v51 = vpop.xlane.xlu0 %3098  ;;  %10523 = vrcp.f32 %v3079_v33 }
 0x6e3   : > { %10525 = vrcp.f32 %v3083_v34  ;;  %v10314_v34 = vld [vmem:[%s11884_s19 + $0x8] sm:$0xff]  }
 0x6e4   : > { %v3081_v16 = vpop.xlane.xlu1 %3080 }
 0x6e5   : > { %10527 = vrcp.f32 %v3081_v16 }
 0x6e6   : > { %v3101_v38 = vpop.xlane.xlu0 %3100  ;;  %10529 = vrcp.f32 %v3087_v10 }
 0x6e8   : > { %v3089_v61 = vpop.xlane.xlu1 %3088 }
 0x6e9   : > { %10531 = vrcp.f32 %v3089_v61 }
 0x6ea   : > { %10533 = vrcp.f32 %v3093_v21  ;;  %v3097_v31 = vpop.xlane.xlu0 %3096 }
 0x6eb   : > { %10535 = vrcp.f32 %v3091_v56  ;;  %v10522_v7 = vpop.eup %10521 }
 0x6ec   : > { %10537 = vrcp.f32 %v3097_v31  ;;  %v3095_v55 = vpop.xlane.xlu1 %3094  ;;  %v10524_v46 = vpop.eup %10523  ;;  %v3177_v1 = vmul.f32 %v10522_v7, %v13057_v52 }
 0x6ed   : > { %10539 = vrcp.f32 %v3095_v55  ;;  %v10526_v48 = vpop.eup %10525  ;;  %v3174_v23 = vmul.f32 %v10524_v46, %v13051_v58 }
 0x6ee   : > { %v3176_v2 = vmul.f32 %v10526_v48, %v13043_v19  ;;  %10541 = vrcp.f32 %v3101_v38 }
 0x6ef   : > { %v10528_v60 = vpop.eup %10527  ;;  %10543 = vrcp.f32 %v3099_v51 }
 0x6f0   : > { %v3175_v39 = vmul.f32 %v10528_v60, %v13063_v43  ;;  %v10530_v49 = vpop.eup %10529  ;;  %v3207_v56 = vpack.c.bf16 %v3177_v1, %v3176_v2 }
 0x6f1   : > { %v3178_v33 = vmul.f32 %v10530_v49, %v13047_v14 }
 0x6f2   : > { %v3206_v22 = vpack.c.bf16 %v3175_v39, %v3174_v23 }
 0x6f3   : > { %v10532_v30 = vpop.eup %10531 }
 0x6f4   : > { %v10534_v10 = vpop.eup %10533  ;;  %9567 = vmatprep.mubr.bf16.mxu0 %v3206_v22  ;;  %v3179_v21 = vmul.f32 %v10532_v30, %v13069_v3 }
 0x6f5   : > { %v10536_v52 = vpop.eup %10535  ;;  %9568 = vmatmul.mubr.bf16.vlgmr.msra.gmra.mrb[96].mxu0 %v3207_v56  ;;  %v3181_v19 = vmul.f32 %v10534_v10, %v13054_v5 }
 0x6f6   : > { %v10538_v58 = vpop.eup %10537  ;;  %v3208_v40 = vpack.c.bf16 %v3179_v21, %v3178_v33  ;;  %9652 = vmatpush3.bf16.msra.mxu0 %v10313_v29  ;;  %v3180_v38 = vmul.f32 %v10536_v52, %v13039_v47 }
 0x6f7   : > { %v10540_v43 = vpop.eup %10539  ;;  %9653 = vmatprep.subr.bf16.mxu0 %v10314_v34  ;;  %v3183_v51 = vmul.f32 %v10538_v58, %v13072_v0 }
 0x6f8   : > { %9571 = vmatprep.mubr.bf16.mxu0 %v3208_v40  ;;  %v3182_v16 = vmul.f32 %v10540_v43, %v13075_v27  ;;  %v3209_v14 = vpack.c.bf16 %v3181_v19, %v3180_v38  ;;  %v10542_v61 = vpop.eup %10541 }
 0x6f9   : > { %v10544_v31 = vpop.eup %10543  ;;  %v3185_v29 = vmul.f32 %v10542_v61, %v13066_v36 }
 0x6fa   : > { %9654 = vmatpush3.bf16.msra.mxu0 %v10314_v34  ;;  %v3210_v3 = vpack.c.bf16 %v3183_v51, %v3182_v16  ;;  %v3184_v7 = vmul.f32 %v10544_v31, %v13060_v50 }
 0x6fc   : > { %v3211_v5 = vpack.c.bf16 %v3185_v29, %v3184_v7 }
 0x6fd   : > { %9572 = vmatmul.mubr.bf16.gmra.mrb[100].mxu0 %v3209_v14 }
 0x6fe   : > { %9575 = vmatprep.mubr.bf16.mxu0 %v3210_v3 }
 0x705   : > { %9576 = vmatmul.mubr.bf16.gmra.mrb[104].mxu0 %v3211_v5 }
 0x72a   : > { %v3107_v55 = vpop.xlane.xlu1 %3106 }
 0x72c   : > { %v3109_v46 = vpop.xlane.xlu0 %3108 }
 0x72d   : > { %10545 = vrcp.f32 %v3109_v46 }
 0x72e   : > { %v3103_v27 = vpop.xlane.xlu1 %3102 }
 0x72f   : > { %10547 = vrcp.f32 %v3103_v27 }
 0x730   : > { %10549 = vrcp.f32 %v3107_v55  ;;  %v3105_v47 = vpop.xlane.xlu0 %3104 }
 0x731   : > { %10551 = vrcp.f32 %v3105_v47 }
 0x732   : > { %v2957_v0 = vpop.xlane.xlu1 %2956 }
 0x733   : > { %v3001_v48 = vsub.f32 %v13094_v45, %v2957_v0 }
 0x734   : > { %v2955_v60 = vpop.xlane.xlu0 %2954 }
 0x735   : > { %v3052_v1 = vmul.f32 1.442695, %v3001_v48  ;;  %v3000_v23 = vsub.f32 %v13098_v62, %v2955_v60 }
 0x736   : > { %v2953_v36 = vpop.xlane.xlu1 %2952 }
 0x737   : > { %10553 = vpow2.f32 %v3052_v1  ;;  %v3050_v50 = vmul.f32 1.442695, %v3000_v23  ;;  %v2999_v39 = vsub.f32 %v13102_v18, %v2953_v36  ;;  %v10546_v49 = vpop.eup %10545 }
 0x738   : > { %v2951_v2 = vpop.xlane.xlu0 %2950  ;;  %v3189_v62 = vmul.f32 %v10546_v49, %v13085_v15  ;;  %v16144_v49 = vld [vmem:[#allocation86_spill] sm:$0xff] }
 0x739   : > { %v10548_v22 = vpop.eup %10547  ;;  %10555 = vpow2.f32 %v3050_v50  ;;  %v3048_v30 = vmul.f32 1.442695, %v2999_v39  ;;  %v2998_v56 = vsub.f32 %v13106_v57, %v2951_v2  ;;  %v16143_v39 = vld [vmem:[#allocation85_spill] sm:$0xff] }
 0x73a   : > { %v10550_v34 = vpop.eup %10549  ;;  %v2965_v10 = vpop.xlane.xlu1 %2964  ;;  %v3186_v58 = vmul.f32 %v10548_v22, %v13088_v9  ;;  %v16145_v2 = vpack.c.bf16 %v16143_v39, %v16144_v49  ;;  %v16147_v22 = vld [vmem:[#allocation87_spill] sm:$0xff] }
 0x73b   : > { %v10552_v33 = vpop.eup %10551  ;;  %10557 = vpow2.f32 %v3048_v30  ;;  %v3046_v45 = vmul.f32 1.442695, %v2998_v56  ;;  %v3005_v21 = vsub.f32 %v13110_v25, %v2965_v10  ;;  %v3188_v57 = vmul.f32 %v10550_v34, %v13082_v6 }
 0x73c   : > { %v2963_v52 = vpop.xlane.xlu0 %2962  ;;  %v3187_v18 = vmul.f32 %v10552_v33, %v13091_v32  ;;  %v16140_v6 = vpack.c.bf16 %v12862_v4, %v12856_v42 }
 0x73d   : > { %10559 = vpow2.f32 %v3046_v45  ;;  %v3060_v40 = vmul.f32 1.442695, %v3005_v21  ;;  %v3004_v43 = vsub.f32 %v13114_v17, %v2963_v52  ;;  %v3213_v25 = vpack.c.bf16 %v3189_v62, %v3188_v57  ;;  %v16149_v21 = vld [vmem:[#allocation99_spill] sm:$0xff]  ;;  %v16150_v62 = vld [vmem:[#allocation98_spill] sm:$0xff] }
 0x73e   : > { %v2961_v19 = vpop.xlane.xlu1 %2960  ;;  %v3212_v16 = vpack.c.bf16 %v3187_v18, %v3186_v58  ;;  %v16151_v52 = vpack.c.bf16 %v16149_v21, %v16150_v62  ;;  %v16152_v58 = vld [vmem:[#allocation91_spill] sm:$0xff]  ;;  %v16153_v18 = vld [vmem:[#allocation88_spill] sm:$0xff]  ;;  %v16192_v62 = vld [vmem:[#allocation42_spill] sm:$0xff] }
 0x73f   : > { %10561 = vpow2.f32 %v3060_v40  ;;  %v3058_v38 = vmul.f32 1.442695, %v3004_v43  ;;  %v3003_v51 = vsub.f32 %v13118_v35, %v2961_v19  ;;  %v16154_v40 = vpack.c.bf16 %v16152_v58, %v16153_v18  ;;  %v16155_v19 = vld [vmem:[#allocation101_spill] sm:$0xff]  ;;  %v16191_v21 = vld [vmem:[#allocation59_spill] sm:$0xff]  ;;  %v16194_v58 = vld [vmem:[#allocation48_spill] sm:$0xff] }
 0x740   : > { %9579 = vmatprep.mubr.bf16.mxu0 %v3212_v16  ;;  %v2959_v15 = vpop.xlane.xlu0 %2958  ;;  %v16156_v16 = vld [vmem:[#allocation103_spill] sm:$0xff]  ;;  %v16195_v18 = vld [vmem:[#allocation50_spill] sm:$0xff] }
 0x741   : > { %v13191_v14 = vpop.eup %10553  ;;  %10563 = vpow2.f32 %v3058_v38  ;;  %v3056_v9 = vmul.f32 1.442695, %v3003_v51  ;;  %v3002_v32 = vsub.f32 %v13122_v41, %v2959_v15  ;;  %9580 = vmatmul.mubr.bf16.gmra.mrb[108].mxu0 %v3213_v25  ;;  %v16157_v38 = vpack.c.bf16 %v16155_v19, %v16156_v16  ;;  %v16158_v51 = vld [vmem:[#allocation107_spill] sm:$0xff]  ;;  %v16159_v25 = vld [vmem:[#allocation89_spill] sm:$0xff] }
 0x742   : > { %3116 = vadd.xlane.f32.xlu0 %v13191_v14  ;;  %v2973_v17 = vpop.xlane.xlu1 %2972  ;;  %9655 = vmatprep.mubr.msk.bf16.mxu0 %vm1723_vm0, %v16140_v6  ;;  %v16160_v15 = vpack.c.bf16 %v16158_v51, %v16159_v25  ;;  %v16164_v6 = vld [vmem:[#allocation94_spill] sm:$0xff]  ;;  %v16197_v19 = vld [vmem:[#allocation83_spill] sm:$0xff]  ;;  %v16198_v16 = vld [vmem:[#allocation45_spill] sm:$0xff] }
 0x743   : > { %v13199_v61 = vpop.eup %10555  ;;  %10565 = vpow2.f32 %v3056_v9  ;;  %v3054_v35 = vmul.f32 1.442695, %v3002_v32  ;;  %v3009_v3 = vsub.f32 %v13126_v24, %v2973_v17  ;;  %v16161_v9 = vld [vmem:[#allocation104_spill] sm:$0xff]  ;;  %v16162_v32 = vld [vmem:[#allocation105_spill] sm:$0xff] }
 0x744   : > { %3114 = vadd.xlane.f32.xlu1 %v13199_v61  ;;  %v2971_v31 = vpop.xlane.xlu0 %2970  ;;  %v16163_v17 = vpack.c.bf16 %v16161_v9, %v16162_v32  ;;  %v16200_v51 = vld [vmem:[#allocation49_spill] sm:$0xff]  ;;  %v16201_v25 = vld [vmem:[#allocation60_spill] sm:$0xff] }
 0x745   : > { %v13203_v29 = vpop.eup %10557  ;;  %10567 = vpow2.f32 %v3054_v35  ;;  %v3068_v41 = vmul.f32 1.442695, %v3009_v3  ;;  %v3008_v7 = vsub.f32 %v13130_v44, %v2971_v31  ;;  %v16141_v44 = vpack.c.bf16 %v12858_v8, %v12854_v37  ;;  %v16165_v35 = vld [vmem:[#allocation97_spill] sm:$0xff]  ;;  %v16167_v31 = vld [vmem:[#allocation82_spill] sm:$0xff]  ;;  %v16203_v9 = vld [vmem:[#allocation72_spill] sm:$0xff] }
 0x746   : > { %3112 = vadd.xlane.f32.xlu0 %v13203_v29  ;;  %v2969_v42 = vpop.xlane.xlu1 %2968  ;;  %v16166_v3 = vpack.c.bf16 %v16164_v6, %v16165_v35  ;;  %v16204_v32 = vld [vmem:[#allocation40_spill] sm:$0xff]  ;;  %v16206_v6 = vld [vmem:[#allocation57_spill] sm:$0xff] }
 0x747   : > { %v13207_v4 = vpop.eup %10559  ;;  %10569 = vpow2.f32 %v3068_v41  ;;  %v3066_v5 = vmul.f32 1.442695, %v3008_v7  ;;  %v3007_v55 = vsub.f32 %v13134_v28, %v2969_v42  ;;  %v16142_v28 = vpack.c.bf16 %v12874_v26, %v12868_v59  ;;  %v16168_v41 = vld [vmem:[#allocation100_spill] sm:$0xff]  ;;  %v16207_v35 = vld [vmem:[#allocation61_spill] sm:$0xff] }
 0x748   : > { %3110 = vadd.xlane.f32.xlu1 %v13207_v4  ;;  %v2967_v24 = vpop.xlane.xlu0 %2966  ;;  %v16169_v7 = vld [vmem:[#allocation96_spill] sm:$0xff] }
 0x749   : > { %v13211_v46 = vpop.eup %10561  ;;  %10571 = vpow2.f32 %v3066_v5  ;;  %v3064_v27 = vmul.f32 1.442695, %v3007_v55  ;;  %v3006_v47 = vsub.f32 %v13138_v53, %v2967_v24  ;;  %9656 = vmatmul.mubr.msk.bf16.vlgmr.msra.gmra.mrb[112].mxu0 %vm1723_vm0, %v16141_v44  ;;  %v16170_v42 = vpack.c.bf16 %v16168_v41, %v16169_v7  ;;  %v16171_v5 = vld [vmem:[#allocation81_spill] sm:$0xff]  ;;  %v16173_v24 = vld [vmem:[#allocation95_spill] sm:$0xff]  ;;  %v16209_v41 = vld [vmem:[#allocation68_spill] sm:$0xff] }
 0x74a   : > { %3124 = vadd.xlane.f32.xlu0 %v13211_v46  ;;  %v2981_v0 = vpop.xlane.xlu1 %2980  ;;  %9659 = vmatprep.mubr.msk.bf16.mxu0 %vm1723_vm0, %v16142_v28  ;;  %v16172_v55 = vld [vmem:[#allocation93_spill] sm:$0xff]  ;;  %v16176_v28 = vld [vmem:[#allocation92_spill] sm:$0xff] }
 0x74b   : > { %v13223_v48 = vpop.eup %10563  ;;  %10573 = vpow2.f32 %v3064_v27  ;;  %v3062_v60 = vmul.f32 1.442695, %v3006_v47  ;;  %v16174_v27 = vpack.c.bf16 %v16172_v55, %v16173_v24  ;;  %v16175_v47 = vld [vmem:[#allocation39_spill] sm:$0xff]  ;;  %v3013_v39 = vsub.f32 %v13143_v54, %v2981_v0  ;;  %v16189_v54 = vld [vmem:[#allocation53_spill] sm:$0xff]  ;;  %v16210_v7 = vld [vmem:[#allocation44_spill] sm:$0xff] }
 0x74c   : > { %3122 = vadd.xlane.f32.xlu1 %v13223_v48  ;;  %v2979_v53 = vpop.xlane.xlu0 %2978  ;;  %v16212_v55 = vld [vmem:[#allocation46_spill] sm:$0xff]  ;;  %v16213_v24 = vld [vmem:[#allocation69_spill] sm:$0xff] }
 0x74d   : > { %v13226_v1 = vpop.eup %10565  ;;  %10575 = vpow2.f32 %v3062_v60  ;;  %v3012_v37 = vsub.f32 %v13148_v63, %v2979_v53  ;;  %v16146_v63 = vld [vmem:[#allocation90_spill] sm:$0xff] }
 0x74e   : > { %3120 = vadd.xlane.f32.xlu0 %v13226_v1  ;;  %v2977_v59 = vpop.xlane.xlu1 %2976  ;;  %v16148_v30 = vpack.c.bf16 %v16146_v63, %v16147_v22  ;;  %v16177_v60 = vld [vmem:[#allocation102_spill] sm:$0xff] }
 0x74f   : > { %v13230_v8 = vpop.eup %10567  ;;  %v3074_v23 = vmul.f32 1.442695, %v3012_v37  ;;  %v3011_v44 = vsub.f32 %v13153_v13, %v2977_v59  ;;  %v16178_v53 = vpack.c.bf16 %v16176_v28, %v16177_v60  ;;  %v16179_v37 = vld [vmem:[#allocation41_spill] sm:$0xff]  ;;  %v3076_v13 = vmul.f32 1.442695, %v3013_v39  ;;  %v16185_v63 = vld [vmem:[#allocation106_spill] sm:$0xff] }
 0x750   : > { %3118 = vadd.xlane.f32.xlu1 %v13230_v8  ;;  %v2975_v26 = vpop.xlane.xlu0 %2974  ;;  %v16184_v59 = vld [vmem:[#allocation109_spill] sm:$0xff]  ;;  %v16216_v39 = vld [vmem:[#allocation52_spill] sm:$0xff] }
 0x751   : > { %v13233_v36 = vpop.eup %10569  ;;  %10577 = vpow2.f32 %v3074_v23  ;;  %v3010_v50 = vsub.f32 %v13158_v11, %v2975_v26  ;;  %9660 = vmatmul.mubr.msk.bf16.gmra.mrb[116].mxu0 %vm1723_vm0, %v16145_v2  ;;  %v16180_v23 = vld [vmem:[#allocation110_spill] sm:$0xff]  ;;  %v16181_v26 = vld [vmem:[#allocation108_spill] sm:$0xff]  ;;  %v3072_v49 = vmul.f32 1.442695, %v3011_v44  ;;  %v16183_v2 = vld [vmem:[#allocation43_spill] sm:$0xff]  ;;  %v16186_v22 = vpack.c.bf16 %v16184_v59, %v16185_v63 }
 0x752   : > { %3132 = vadd.xlane.f32.xlu0 %v13233_v36  ;;  %9663 = vmatprep.mubr.msk.bf16.mxu0 %vm1723_vm0, %v16148_v30  ;;  %v3370_v11 = vpop.permute.xlu1 %3369  ;;  %v16187_v30 = vld [vmem:[#allocation47_spill] sm:$0xff]  ;;  %v16214_v44 = vld [vmem:[#allocation77_spill] sm:$0xff]  ;;  %v16218_v63 = vld [vmem:[#allocation54_spill] sm:$0xff] }
 0x753   : > { %v13245_v56 = vpop.eup %10571  ;;  %v3070_v34 = vmul.f32 1.442695, %v3010_v50  ;;  %v16182_v50 = vpack.c.bf16 %v16180_v23, %v16181_v26  ;;  %v16215_v60 = vld [vmem:[#allocation73_spill] sm:$0xff] }
 0x754   : > { %3130 = vadd.xlane.f32.xlu1 %v13245_v56  ;;  %v3368_v10 = vpop.permute.xlu0 %3367 }
 0x755   : > { %v13248_v33 = vpop.eup %10573  ;;  %10579 = vpow2.f32 %v3070_v34  ;;  %9591 = vmatprep.subr.bf16.mxu1 %v3368_v10  ;;  %v16188_v34 = vld [vmem:[#allocation51_spill] sm:$0xff] }
 0x756   : > { %3128 = vadd.xlane.f32.xlu0 %v13248_v33  ;;  %9592 = vmatpush3.bf16.msra.mxu1 %v3368_v10  ;;  %10581 = vpow2.f32 %v3072_v49  ;;  %v16190_v10 = vld [vmem:[#allocation55_spill] sm:$0xff] }
 0x757   : > { %v13251_v45 = vpop.eup %10575  ;;  %9593 = vmatprep.subr.bf16.mxu1 %v3370_v11  ;;  %10583 = vpow2.f32 %v3076_v13  ;;  %v16217_v49 = vld [vmem:[#allocation75_spill] sm:$0xff] }
 0x758   : > { %3126 = vadd.xlane.f32.xlu1 %v13251_v45 }
 0x759   : > { %9664 = vmatmul.mubr.msk.bf16.gmra.mrb[120].mxu0 %vm1723_vm0, %v16151_v52  ;;  %v16193_v52 = vld [vmem:[#allocation71_spill] sm:$0xff] }
 0x75a   : > { %9594 = vmatpush3.bf16.msra.mxu1 %v3370_v11  ;;  %9667 = vmatprep.mubr.msk.bf16.mxu0 %vm1723_vm0, %v16154_v40  ;;  %v16196_v40 = vld [vmem:[#allocation37_spill] sm:$0xff] }
 0x75b   : > { %v13262_v43 = vpop.eup %10577 }
 0x75c   : > { %3138 = vadd.xlane.f32.xlu1 %v13262_v43 }
 0x75f   : > { %v13265_v57 = vpop.eup %10579 }
 0x760   : > { %3134 = vadd.xlane.f32.xlu1 %v13265_v57  ;;  %v13322_v0 = vpop.eup %10581 }
 0x761   : > { %9668 = vmatmul.mubr.msk.bf16.gmra.mrb[124].mxu0 %vm1723_vm0, %v16157_v38  ;;  %v13327_v11 = vpop.eup %10583  ;;  %v16199_v38 = vld [vmem:[#allocation56_spill] sm:$0xff] }
 0x762   : > { %9671 = vmatprep.mubr.msk.bf16.mxu0 %vm1723_vm0, %v16160_v15  ;;  %v16202_v15 = vld [vmem:[#allocation38_spill] sm:$0xff] }
 0x769   : > { %9672 = vmatmul.mubr.msk.bf16.gmra.mrb[128].mxu0 %vm1723_vm0, %v16163_v17  ;;  %v16205_v17 = vld [vmem:[#allocation84_spill] sm:$0xff] }
 0x76a   : > { %9675 = vmatprep.mubr.msk.bf16.mxu0 %vm1723_vm0, %v16166_v3  ;;  %v16208_v3 = vld [vmem:[#allocation65_spill] sm:$0xff] }
 0x76c   : > { %3371 = vrot.lane.b32.xlu0 %v16167_v31, %s11412_s2 }
 0x771   : > { %9676 = vmatmul.mubr.msk.bf16.gmra.mrb[132].mxu0 %vm1723_vm0, %v16170_v42  ;;  %3373 = vrot.lane.b32.xlu1 %v16171_v5, %s11412_s2  ;;  %v16211_v42 = vld [vmem:[#allocation67_spill] sm:$0xff] }
 0x772   : > { %9679 = vmatprep.mubr.msk.bf16.mxu0 %vm1723_vm0, %v16174_v27 }
 0x775   : > { %3960 = vrot.lane.b32.xlu1 %v16175_v47, %s11413_s4 }
 0x779   : > { %9680 = vmatmul.mubr.msk.bf16.gmra.mrb[136].mxu0 %vm1723_vm0, %v16178_v53  ;;  %3962 = vrot.lane.b32.xlu1 %v16179_v37, %s11413_s4 }
 0x77a   : > { %9683 = vmatprep.mubr.msk.bf16.mxu0 %vm1723_vm0, %v16182_v50 }
 0x77d   : > { %3964 = vrot.lane.b32.xlu1 %v16183_v2, %s11413_s4 }
 0x781   : > { %9684 = vmatmul.mubr.msk.bf16.gmra.mrb[140].mxu0 %vm1723_vm0, %v16186_v22  ;;  %3968 = vrot.lane.b32.xlu1 %v16187_v30, %s11413_s4 }
 0x785   : > { %3972 = vrot.lane.b32.xlu1 %v16188_v34, %s11413_s4 }
 0x789   : > { %4135 = vrot.lane.b32.xlu1 %v16189_v54, %s11413_s4 }
 0x78b   : > { %3136 = vadd.xlane.f32.xlu0 %v13322_v0 }
 0x78d   : > { %4137 = vrot.lane.b32.xlu1 %v16190_v10, %s11413_s4 }
 0x78f   : > { %3140 = vadd.xlane.f32.xlu0 %v13327_v11 }
 0x791   : > { %4141 = vrot.lane.b32.xlu1 %v16191_v21, %s11413_s4 }
 0x795   : > { %3946 = vrot.lane.b32.xlu1 %v16192_v62, %s11413_s4 }
 0x799   : > { %4145 = vrot.lane.b32.xlu1 %v16193_v52, %s11413_s4 }
 0x79d   : > { %3952 = vrot.lane.b32.xlu1 %v16194_v58, %s11413_s4 }
 0x7a1   : > { %3954 = vrot.lane.b32.xlu1 %v16195_v18, %s11413_s4 }
 0x7a5   : > { %3958 = vrot.lane.b32.xlu0 %v16196_v40, %s11413_s4  ;;  %4149 = vrot.lane.b32.xlu1 %v16197_v19, %s11413_s4 }
 0x7a9   : > { %3966 = vrot.lane.b32.xlu0 %v16198_v16, %s11413_s4  ;;  %4121 = vrot.lane.b32.xlu1 %v16199_v38, %s11413_s4 }
 0x7ad   : > { %3970 = vrot.lane.b32.xlu0 %v16200_v51, %s11413_s4  ;;  %4125 = vrot.lane.b32.xlu1 %v16201_v25, %s11413_s4 }
 0x7b1   : > { %3942 = vrot.lane.b32.xlu0 %v16202_v15, %s11413_s4  ;;  %4129 = vrot.lane.b32.xlu1 %v16203_v9, %s11413_s4 }
 0x7b5   : > { %3944 = vrot.lane.b32.xlu0 %v16204_v32, %s11413_s4  ;;  %4133 = vrot.lane.b32.xlu1 %v16205_v17, %s11413_s4  ;;  %v16222_v17 = vld [vmem:[#allocation62_spill] sm:$0xff] }
 0x7b9   : > { %4139 = vrot.lane.b32.xlu0 %v16206_v6, %s11413_s4  ;;  %4602 = vrot.lane.b32.xlu1 %v16207_v35, %s11413_s4 }
 0x7bd   : > { %4143 = vrot.lane.b32.xlu0 %v16208_v3, %s11413_s4  ;;  %4608 = vrot.lane.b32.xlu1 %v16209_v41, %s11413_s4 }
 0x7c1   : > { %3948 = vrot.lane.b32.xlu0 %v16210_v7, %s11413_s4  ;;  %4610 = vrot.lane.b32.xlu1 %v16211_v42, %s11413_s4 }
 0x7c5   : > { %3950 = vrot.lane.b32.xlu0 %v16212_v55, %s11413_s4  ;;  %4614 = vrot.lane.b32.xlu1 %v16213_v24, %s11413_s4 }
 0x7c8   : > { %v13376_v27 = vpop.f32.mrb[96].mxu0 }
 0x7c9   : > { %4147 = vrot.lane.b32.xlu0 %v16214_v44, %s11413_s4  ;;  %v13380_v28 = vpop.f32.mrb[97].mxu0  ;;  %4723 = vrot.lane.b32.xlu1 %v16215_v60, %s11413_s4 }
 0x7ca   : > { %v13384_v53 = vpop.f32.mrb[98].mxu0 }
 0x7cb   : > { %v13388_v26 = vpop.f32.mrb[99].mxu0 }
 0x7cd   : > { %3956 = vrot.lane.b32.xlu0 %v16216_v39, %s11413_s4  ;;  %4727 = vrot.lane.b32.xlu1 %v16217_v49, %s11413_s4 }
 0x7cf   : > { %v3117_v13 = vpop.xlane.xlu0 %3116 }
 0x7d0   : > { %v13396_v59 = vpop.f32.mrb[100].mxu0 }
 0x7d1   : > { %4119 = vrot.lane.b32.xlu0 %v16218_v63, %s11413_s4  ;;  %v13400_v22 = vpop.f32.mrb[101].mxu0  ;;  %v3115_v23 = vpop.xlane.xlu1 %3114  ;;  %4731 = vrot.lane.b32.xlu1 %v16078_v12, %s11413_s4  ;;  %v16219_v63 = vld [vmem:[#allocation58_spill] sm:$0xff] }
 0x7d2   : > { %v13404_v44 = vpop.f32.mrb[102].mxu0  ;;  %v16220_v12 = vld [vmem:[#allocation66_spill] sm:$0xff] }
 0x7d3   : > { %v13408_v18 = vpop.f32.mrb[103].mxu0  ;;  %v3113_v49 = vpop.xlane.xlu0 %3112 }
 0x7d4   : > { %10585 = vrcp.f32 %v3113_v49 }
 0x7d5   : > { %4123 = vrot.lane.b32.xlu0 %v16219_v63, %s11413_s4  ;;  %v3111_v3 = vpop.xlane.xlu1 %3110  ;;  %v16221_v63 = vld [vmem:[#allocation78_spill] sm:$0xff] }
 0x7d6   : > { %10587 = vrcp.f32 %v3111_v3  ;;  %v16223_v3 = vld [vmem:[#allocation64_spill] sm:$0xff] }
 0x7d7   : > { %v3125_v24 = vpop.xlane.xlu0 %3124  ;;  %10589 = vrcp.f32 %v3115_v23  ;;  %v16226_v23 = vld [vmem:[#allocation74_spill] sm:$0xff] }
 0x7d8   : > { %v13414_v55 = vpop.f32.mrb[104].mxu0 }
 0x7d9   : > { %4127 = vrot.lane.b32.xlu0 %v16220_v12, %s11413_s4  ;;  %v13418_v42 = vpop.f32.mrb[105].mxu0  ;;  %v3123_v50 = vpop.xlane.xlu1 %3122 }
 0x7da   : > { %v13420_v6 = vpop.f32.mrb[106].mxu0 }
 0x7db   : > { %v13424_v49 = vpop.f32.mrb[107].mxu0  ;;  %v3121_v41 = vpop.xlane.xlu0 %3120 }
 0x7dd   : > { %4131 = vrot.lane.b32.xlu0 %v16221_v63, %s11413_s4  ;;  %v3119_v62 = vpop.xlane.xlu1 %3118 }
 0x7de   : > { %v10586_v35 = vpop.eup %10585  ;;  %10591 = vrcp.f32 %v3119_v62 }
 0x7df   : > { %v3133_v12 = vpop.xlane.xlu0 %3132  ;;  %v3191_v60 = vmul.f32 %v10586_v35, %v13203_v29  ;;  %10593 = vrcp.f32 %v3117_v13 }
 0x7e0   : > { %v10588_v54 = vpop.eup %10587  ;;  %10595 = vrcp.f32 %v3121_v41 }
 0x7e1   : > { %4600 = vrot.lane.b32.xlu0 %v16222_v17, %s11413_s4  ;;  %v3131_v15 = vpop.xlane.xlu1 %3130  ;;  %v3190_v9 = vmul.f32 %v10588_v54, %v13207_v4  ;;  %v16224_v17 = vld [vmem:[#allocation63_spill] sm:$0xff]  ;;  %10597 = vrcp.f32 %v3123_v50  ;;  %v10590_v29 = vpop.eup %10589  ;;  %v16225_v54 = vld [vmem:[#allocation70_spill] sm:$0xff] }
 0x7e2   : > { %v3192_v41 = vmul.f32 %v10590_v29, %v13199_v61  ;;  %v16227_v61 = vld [vmem:[#allocation76_spill] sm:$0xff] }
 0x7e3   : > { %v3129_v51 = vpop.xlane.xlu0 %3128  ;;  %v3214_v25 = vpack.c.bf16 %v3191_v60, %v3190_v9  ;;  %v10315_v60 = vld [vmem:[%s11884_s19 + $0x10] sm:$0xff]  }
 0x7e5   : > { %4604 = vrot.lane.b32.xlu0 %v16223_v3, %s11413_s4  ;;  %v3127_v63 = vpop.xlane.xlu1 %3126  ;;  %9599 = vmatprep.mubr.bf16.mxu1 %v3214_v25 }
 0x7e6   : > { %10599 = vrcp.f32 %v3127_v63 }
 0x7e7   : > { %v3372_v16 = vpop.permute.xlu0 %3371  ;;  %10601 = vrcp.f32 %v3125_v24 }
 0x7e8   : > { %9595 = vmatprep.subr.bf16.mxu1 %v3372_v16  ;;  %v10592_v9 = vpop.eup %10591  ;;  %10603 = vrcp.f32 %v3129_v51  ;;  %v10316_v51 = vld [vmem:[%s11884_s19 + $0x18] sm:$0xff]  }
 0x7e9   : > { %4606 = vrot.lane.b32.xlu0 %v16224_v17, %s11413_s4  ;;  %v13438_v4 = vpop.xlane.xlu1 %3138  ;;  %9596 = vmatpush3.bf16.msra.mxu1 %v3372_v16  ;;  %v10594_v25 = vpop.eup %10593  ;;  %v3194_v50 = vmul.f32 %v10592_v9, %v13230_v8  ;;  %10605 = vrcp.f32 %v3131_v15 }
 0x7ea   : > { %v10596_v35 = vpop.eup %10595  ;;  %v3193_v24 = vmul.f32 %v10594_v25, %v13191_v14  ;;  %10607 = vrcp.f32 %v3133_v12 }
 0x7eb   : > { %v3195_v13 = vmul.f32 %v10596_v35, %v13226_v1 }
 0x7ec   : > { %v3215_v63 = vpack.c.bf16 %v3193_v24, %v3192_v41 }
 0x7ed   : > { %4612 = vrot.lane.b32.xlu0 %v16225_v54, %s11413_s4  ;;  %v3135_v62 = vpop.xlane.xlu1 %3134  ;;  %v10598_v54 = vpop.eup %10597  ;;  %v3216_v29 = vpack.c.bf16 %v3195_v13, %v3194_v50 }
 0x7ee   : > { %v3196_v15 = vmul.f32 %v10598_v54, %v13223_v48  ;;  %10609 = vrcp.f32 %v3135_v62 }
 0x7f1   : > { %4721 = vrot.lane.b32.xlu0 %v16226_v23, %s11413_s4  ;;  %v3374_v16 = vpop.permute.xlu1 %3373  ;;  %v10600_v23 = vpop.eup %10599 }
 0x7f2   : > { %9597 = vmatprep.subr.bf16.mxu1 %v3374_v16  ;;  %v10602_v17 = vpop.eup %10601  ;;  %v3198_v12 = vmul.f32 %v10600_v23, %v13251_v45 }
 0x7f3   : > { %9598 = vmatpush3.bf16.msra.mxu1 %v3374_v16  ;;  %v10604_v14 = vpop.eup %10603  ;;  %v3197_v1 = vmul.f32 %v10602_v17, %v13211_v46 }
 0x7f4   : > { %9615 = vmatprep.subr.bf16.mxu1 %v10315_v60  ;;  %v3199_v9 = vmul.f32 %v10604_v14, %v13248_v33  ;;  %v10606_v35 = vpop.eup %10605 }
 0x7f5   : > { %4725 = vrot.lane.b32.xlu0 %v16227_v61, %s11413_s4  ;;  %v13452_v8 = vpop.permute.xlu1 %3960  ;;  %v3217_v25 = vpack.c.bf16 %v3197_v1, %v3196_v15  ;;  %v10608_v16 = vpop.eup %10607  ;;  %v3200_v48 = vmul.f32 %v10606_v35, %v13245_v56 }
 0x7f6   : > { %9600 = vmatmul.mubr.bf16.vlgmr.msra.gmra.mrb[96].mxu1 %v3215_v63  ;;  %v3218_v41 = vpack.c.bf16 %v3199_v9, %v3198_v12  ;;  %v3201_v54 = vmul.f32 %v10608_v16, %v13233_v36 }
 0x7f7   : > { %9603 = vmatprep.mubr.bf16.mxu1 %v3216_v29  ;;  %9616 = vmatpush3.bf16.msra.mxu1 %v10315_v60 }
 0x7f8   : > { %9617 = vmatprep.subr.bf16.mxu1 %v10316_v51  ;;  %v3219_v45 = vpack.c.bf16 %v3201_v54, %v3200_v48  ;;  %v10610_v12 = vpop.eup %10609 }
 0x7f9   : > { %4729 = vrot.lane.b32.xlu0 %v12315_v20, %s11413_s4  ;;  %v13460_v60 = vpop.permute.xlu1 %3962 }
 0x7fb   : > { %9618 = vmatpush3.bf16.msra.mxu1 %v10316_v51 }
 0x7fd   : > { %v13464_v50 = vpop.permute.xlu1 %3964 }
 0x7fe   : > { %9604 = vmatmul.mubr.bf16.gmra.mrb[100].mxu1 %v3217_v25  ;;  %v3202_v25 = vmul.f32 %v10610_v12, %v13265_v57  ;;  %v16228_v57 = vpack.c.bf16 %v13388_v26, %v13380_v28  ;;  %v16230_v28 = vpack.c.bf16 %v13408_v18, %v13400_v22  ;;  %v16232_v18 = vpack.c.bf16 %v13424_v49, %v13418_v42 }
 0x7ff   : > { %9607 = vmatprep.mubr.bf16.mxu1 %v3218_v41 }
 0x801   : > { %v13466_v46 = vpop.permute.xlu1 %3968 }
 0x805   : > { %v13468_v33 = vpop.permute.xlu1 %3972 }
 0x806   : > { %9608 = vmatmul.mubr.bf16.gmra.mrb[104].mxu1 %v3219_v45 }
 0x809   : > { %v13472_v24 = vpop.permute.xlu1 %4135 }
 0x80d   : > { %v13476_v29 = vpop.permute.xlu1 %4137 }
 0x811   : > { %v13479_v1 = vpop.permute.xlu1 %4141 }
 0x814   : > { %v13470_v17 = vpop.f32.mrb[108].mxu0 }
 0x815   : > { %v3336_v23 = vpop.f32.mrb[109].mxu0 }
 0x816   : > { %v9582_v13 = vpop.f32.mrb[110].mxu0 }
 0x817   : > { %v3487_v63 = vpack.c.bf16 %v9582_v13, %v13470_v17  ;;  %v3339_v56 = vpop.f32.mrb[111].mxu0 }
 0x818   : > { %v3486_v51 = vpack.c.bf16 %v3339_v56, %v3336_v23  ;;  %v3137_v36 = vpop.xlane.xlu0 %3136 }
 0x819   : > { %10611 = vrcp.f32 %v3137_v36 }
 0x81a   : > { %10613 = vrcp.f32 %v13438_v4  ;;  %v13483_v4 = vpop.permute.xlu1 %3946 }
 0x81c   : > { %v3141_v14 = vpop.xlane.xlu0 %3140 }
 0x81d   : > { %10615 = vrcp.f32 %v3141_v14 }
 0x820   : > { %v3959_v15 = vpop.permute.xlu0 %3958 }
 0x821   : > { %10143 = vmatprep.subr.msk.bf16.mxu1 %vm1723_vm0, %v3959_v15 }
 0x823   : > { %v10612_v9 = vpop.eup %10611 }
 0x824   : > { %v3967_v62 = vpop.permute.xlu0 %3966  ;;  %v3203_v35 = vmul.f32 %v10612_v9, %v13322_v0  ;;  %v10614_v41 = vpop.eup %10613 }
 0x825   : > { %v3204_v45 = vmul.f32 %v10614_v41, %v13262_v43  ;;  %v13493_v0 = vpop.permute.xlu1 %4145  ;;  %v16229_v43 = vpack.c.bf16 %v13384_v53, %v13376_v27  ;;  %v16231_v27 = vpack.c.bf16 %v13404_v44, %v13396_v59  ;;  %v4002_v53 = vsel %vm1723_vm0, %v13452_v8, 0 }
 0x826   : > { %v3220_v16 = vpack.c.bf16 %v3203_v35, %v3202_v25  ;;  %v16233_v44 = vpack.c.bf16 %v13420_v6, %v13414_v55  ;;  %v4005_v59 = vsel %vm1723_vm0, %v13460_v60, 0  ;;  %v4008_v6 = vsel %vm1723_vm0, %v13464_v50, 0 }
 0x827   : > { %v10616_v48 = vpop.eup %10615  ;;  %v4011_v35 = vsel %vm1723_vm0, %v3967_v62, 0 }
 0x828   : > { %9611 = vmatprep.mubr.bf16.mxu1 %v3220_v16  ;;  %v3971_v54 = vpop.permute.xlu0 %3970  ;;  %v3205_v17 = vmul.f32 %v10616_v48, %v13327_v11  ;;  %v3999_v11 = vsel %vm1723_vm0, %v3959_v15, 0  ;;  %v4014_v16 = vsel %vm1723_vm0, %v13466_v46, 0 }
 0x829   : > { %v13497_v36 = vpop.permute.xlu1 %3952 }
 0x82a   : > { %v3221_v23 = vpack.c.bf16 %v3205_v17, %v3204_v45  ;;  %v4017_v17 = vsel %vm1723_vm0, %v3971_v54, 0 }
 0x82c   : > { %9612 = vmatmul.mubr.bf16.gmra.mrb[108].mxu1 %v3221_v23  ;;  %v13487_v13 = vpop.permute.xlu0 %3942 }
 0x82d   : > { %9619 = vmatprep.mubr.msk.bf16.mxu1 %vm1723_vm0, %v16228_v57  ;;  %v13514_v12 = vpop.permute.xlu1 %3954  ;;  %v4020_v57 = vsel %vm1723_vm0, %v13468_v33, 0 }
 0x830   : > { %v13495_v56 = vpop.permute.xlu0 %3944 }
 0x831   : > { %v13530_v22 = vpop.permute.xlu1 %4149 }
 0x834   : > { %9620 = vmatmul.mubr.msk.bf16.vlgmr.msra.gmra.mrb[112].mxu1 %vm1723_vm0, %v16229_v43  ;;  %v13504_v14 = vpop.permute.xlu0 %4139 }
 0x835   : > { %9688 = vmatpush3.bf16.xpose.msra.mxu1 %v3999_v11  ;;  %9623 = vmatprep.mubr.msk.bf16.mxu1 %vm1723_vm0, %v16230_v28  ;;  %v13543_v42 = vpop.permute.xlu1 %4121 }
 0x836   : > { %10144 = vmatprep.subr.msk.bf16.mxu1 %vm1723_vm0, %v13452_v8 }
 0x838   : > { %v13512_v26 = vpop.permute.xlu0 %4143 }
 0x839   : > { %v13549_v25 = vpop.permute.xlu1 %4125 }
 0x83c   : > { %9624 = vmatmul.mubr.msk.bf16.gmra.mrb[116].mxu1 %vm1723_vm0, %v16231_v27  ;;  %v13522_v15 = vpop.permute.xlu0 %3948 }
 0x83d   : > { %9690 = vmatpush3.bf16.xpose.msra.mxu1 %v4002_v53  ;;  %9627 = vmatprep.mubr.msk.bf16.mxu1 %vm1723_vm0, %v16232_v18 }
 0x83e   : > { %10145 = vmatprep.subr.msk.bf16.mxu1 %vm1723_vm0, %v13460_v60 }
 0x840   : > { %v13532_v9 = vpop.permute.xlu0 %3950 }
 0x844   : > { %9628 = vmatmul.mubr.msk.bf16.gmra.mrb[120].mxu1 %vm1723_vm0, %v16233_v44  ;;  %v13540_v8 = vpop.permute.xlu0 %4147 }
 0x845   : > { %9692 = vmatpush3.bf16.xpose.msra.mxu1 %v4005_v59  ;;  %9631 = vmatprep.mubr.msk.bf16.mxu1 %vm1723_vm0, %v3486_v51  ;;  %v13559_v51 = vpop.permute.xlu1 %4129 }
 0x846   : > { %10146 = vmatprep.subr.msk.bf16.mxu1 %vm1723_vm0, %v13464_v50 }
 0x848   : > { %v13547_v49 = vpop.permute.xlu0 %3956 }
 0x84c   : > { %9632 = vmatmul.mubr.msk.bf16.gmra.mrb[124].mxu1 %vm1723_vm0, %v3487_v63  ;;  %v13554_v55 = vpop.permute.xlu0 %4119  ;;  %v13566_v63 = vpop.permute.xlu1 %4133 }
 0x84d   : > { %9694 = vmatpush3.bf16.xpose.msra.mxu1 %v4008_v6 }
 0x84e   : > { %10147 = vmatprep.subr.msk.bf16.mxu1 %vm1723_vm0, %v3967_v62 }
 0x850   : > { %v13557_v60 = vpop.permute.xlu0 %4123  ;;  %v4603_v45 = vpop.permute.xlu1 %4602 }
 0x854   : > { %v13562_v41 = vpop.permute.xlu0 %4127 }
 0x855   : > { %9696 = vmatpush3.bf16.xpose.msra.mxu1 %v4011_v35 }
 0x856   : > { %10148 = vmatprep.subr.msk.bf16.mxu1 %vm1723_vm0, %v13466_v46  ;;  %v4609_v46 = vpop.permute.xlu1 %4608 }
 0x858   : > { %v13568_v50 = vpop.permute.xlu0 %4131 }
 0x85a   : > { %v4611_v43 = vpop.permute.xlu1 %4610 }
 0x85c   : > { %v4601_v48 = vpop.permute.xlu0 %4600 }
 0x85d   : > { %9698 = vmatpush3.bf16.xpose.msra.mxu1 %v4014_v16  ;;  %9751 = vmatprep.subr.bf16.mxu0 %v4601_v48 }
 0x85e   : > { %10149 = vmatprep.subr.msk.bf16.mxu1 %vm1723_vm0, %v3971_v54  ;;  %9752 = vmatpush3.bf16.msra.mxu0 %v4601_v48  ;;  %v4615_v11 = vpop.permute.xlu1 %4614 }
 0x85f   : > { %9753 = vmatprep.subr.bf16.mxu0 %v4603_v45 }
 0x860   : > { %v4605_v62 = vpop.permute.xlu0 %4604 }
 0x862   : > { %9754 = vmatpush3.bf16.msra.mxu0 %v4603_v45 }
 0x863   : > { %9755 = vmatprep.subr.bf16.mxu0 %v4605_v62 }
 0x864   : > { %v4607_v23 = vpop.permute.xlu0 %4606 }
 0x865   : > { %9700 = vmatpush3.bf16.xpose.msra.mxu1 %v4017_v17 }
 0x866   : > { %10150 = vmatprep.subr.msk.bf16.mxu1 %vm1723_vm0, %v13468_v33  ;;  %9756 = vmatpush3.bf16.msra.mxu0 %v4605_v62 }
 0x867   : > { %9757 = vmatprep.subr.bf16.mxu0 %v4607_v23 }
 0x868   : > { %v4613_v54 = vpop.permute.xlu0 %4612 }
 0x86a   : > { %9758 = vmatpush3.bf16.msra.mxu0 %v4607_v23 }
 0x86b   : > { %9759 = vmatprep.subr.bf16.mxu0 %v4609_v46 }
 0x86d   : > { %9702 = vmatpush3.bf16.xpose.msra.mxu1 %v4020_v57 }
 0x86e   : > { %10151 = vmatprep.subr.msk.bf16.mxu1 %vm1723_vm0, %v13472_v24  ;;  %9760 = vmatpush3.bf16.msra.mxu0 %v4609_v46 }
 0x86f   : > { %9761 = vmatprep.subr.bf16.mxu0 %v4611_v43 }
 0x872   : > { %9762 = vmatpush3.bf16.msra.mxu0 %v4611_v43 }
 0x873   : > { %9763 = vmatprep.subr.bf16.mxu0 %v4613_v54 }
 0x876   : > { %9764 = vmatpush3.bf16.msra.mxu0 %v4613_v54 }
 0x877   : > { %9765 = vmatprep.subr.bf16.mxu0 %v4615_v11 }
 0x87a   : > { %9766 = vmatpush3.bf16.msra.mxu0 %v4615_v11 }
 0x8c9   : > { %v9601_v28 = vpop.f32.mrb[96].mxu1 }
 0x8ca   : > { %v3417_v27 = vpop.f32.mrb[97].mxu1 }
 0x8cb   : > { %v9602_v53 = vpop.f32.mrb[98].mxu1 }
 0x8cc   : > { %v3489_v18 = vpack.c.bf16 %v9602_v53, %v9601_v28  ;;  %v3420_v44 = vpop.f32.mrb[99].mxu1 }
 0x8cd   : > { %v3488_v33 = vpack.c.bf16 %v3420_v44, %v3417_v27 }
 0x8cf   : > { %9635 = vmatprep.mubr.msk.bf16.mxu1 %vm1723_vm0, %v3488_v33 }
 0x8d0   : > { %9636 = vmatmul.mubr.msk.bf16.gmra.mrb[128].mxu1 %vm1723_vm0, %v3489_v18 }
 0x8d1   : > { %v9605_v59 = vpop.f32.mrb[100].mxu1 }
 0x8d2   : > { %v3433_v6 = vpop.f32.mrb[101].mxu1 }
 0x8d3   : > { %v9606_v35 = vpop.f32.mrb[102].mxu1 }
 0x8d4   : > { %v3491_v16 = vpack.c.bf16 %v9606_v35, %v9605_v59  ;;  %v3436_v48 = vpop.f32.mrb[103].mxu1  ;;  %v4176_v35 = vsel %vm1723_vm0, %v13472_v24, 0  ;;  %v4179_v24 = vsel %vm1723_vm0, %v13476_v29, 0 }
 0x8d5   : > { %v3490_v45 = vpack.c.bf16 %v3436_v48, %v3433_v6 }
 0x8d7   : > { %9639 = vmatprep.mubr.msk.bf16.mxu1 %vm1723_vm0, %v3490_v45 }
 0x8d8   : > { %9640 = vmatmul.mubr.msk.bf16.gmra.mrb[132].mxu1 %vm1723_vm0, %v3491_v16 }
 0x8d9   : > { %v9609_v62 = vpop.f32.mrb[104].mxu1 }
 0x8da   : > { %v3449_v17 = vpop.f32.mrb[105].mxu1 }
 0x8db   : > { %v9610_v23 = vpop.f32.mrb[106].mxu1 }
 0x8dc   : > { %v3493_v46 = vpack.c.bf16 %v9610_v23, %v9609_v62  ;;  %v3452_v57 = vpop.f32.mrb[107].mxu1 }
 0x8dd   : > { %v3492_v43 = vpack.c.bf16 %v3452_v57, %v3449_v17 }
 0x8df   : > { %9643 = vmatprep.mubr.msk.bf16.mxu1 %vm1723_vm0, %v3492_v43 }
 0x8e0   : > { %9644 = vmatmul.mubr.msk.bf16.gmra.mrb[136].mxu1 %vm1723_vm0, %v3493_v46 }
 0x8ff   : > { %v9613_v54 = vpop.f32.mrb[108].mxu1 }
 0x900   : > { %v3465_v11 = vpop.f32.mrb[109].mxu1 }
 0x901   : > { %v9614_v28 = vpop.f32.mrb[110].mxu1 }
 0x902   : > { %v3495_v27 = vpack.c.bf16 %v9614_v28, %v9613_v54  ;;  %v3468_v53 = vpop.f32.mrb[111].mxu1 }
 0x903   : > { %v3494_v18 = vpack.c.bf16 %v3468_v53, %v3465_v11 }
 0x905   : > { %9647 = vmatprep.mubr.msk.bf16.mxu1 %vm1723_vm0, %v3494_v18 }
 0x906   : > { %9648 = vmatmul.mubr.msk.bf16.gmra.mrb[140].mxu1 %vm1723_vm0, %v3495_v27 }
 0x907   : > { %v13588_v44 = vpop.f32.mrb[112].mxu1  ;;  %9703 = vmatprep.mubr.msk.bf16.mxu1 %vm1723_vm0, %v13487_v13 }
 0x908   : > { %16234 = vst [vmem:[#allocation85_spill] sm:$0xff] %v13588_v44  ;;  %v13592_v33 = vpop.f32.mrb[113].mxu1 }
 0x909   : > { %16235 = vst [vmem:[#allocation86_spill] sm:$0xff] %v13592_v33  ;;  %v13594_v59 = vpop.f32.mrb[114].mxu1 }
 0x90a   : > { %16236 = vst [vmem:[#allocation90_spill] sm:$0xff] %v13594_v59  ;;  %v13596_v6 = vpop.f32.mrb[115].mxu1 }
 0x90b   : > { %16237 = vst [vmem:[#allocation87_spill] sm:$0xff] %v13596_v6 }
 0x90e   : > { %9704 = vmatmul.mubr.msk.bf16.vlgmr.msra.gmra.mrb[144].mxu1 %vm1723_vm0, %v13495_v56 }
 0x90f   : > { %9720 = vmatpush3.bf16.xpose.msra.mxu1 %v4176_v35  ;;  %v13602_v16 = vpop.f32.mrb[116].mxu1  ;;  %9707 = vmatprep.mubr.msk.bf16.mxu1 %vm1723_vm0, %v13483_v4 }
 0x910   : > { %16238 = vst [vmem:[#allocation99_spill] sm:$0xff] %v13602_v16  ;;  %10152 = vmatprep.subr.msk.bf16.mxu1 %vm1723_vm0, %v13476_v29  ;;  %v13608_v13 = vpop.f32.mrb[117].mxu1  ;;  %v4182_v29 = vsel %vm1723_vm0, %v13504_v14, 0 }
 0x911   : > { %16239 = vst [vmem:[#allocation98_spill] sm:$0xff] %v13608_v13  ;;  %v13610_v48 = vpop.f32.mrb[118].mxu1 }
 0x912   : > { %16240 = vst [vmem:[#allocation91_spill] sm:$0xff] %v13610_v48  ;;  %v13612_v45 = vpop.f32.mrb[119].mxu1 }
 0x913   : > { %16241 = vst [vmem:[#allocation88_spill] sm:$0xff] %v13612_v45 }
 0x916   : > { %9708 = vmatmul.mubr.msk.bf16.gmra.mrb[148].mxu1 %vm1723_vm0, %v13522_v15 }
 0x917   : > { %9722 = vmatpush3.bf16.xpose.msra.mxu1 %v4179_v24  ;;  %v13618_v56 = vpop.f32.mrb[120].mxu1  ;;  %9711 = vmatprep.mubr.msk.bf16.mxu1 %vm1723_vm0, %v13532_v9 }
 0x918   : > { %16242 = vst [vmem:[#allocation101_spill] sm:$0xff] %v13618_v56  ;;  %10153 = vmatprep.subr.msk.bf16.mxu1 %vm1723_vm0, %v13504_v14  ;;  %v13624_v4 = vpop.f32.mrb[121].mxu1  ;;  %v4188_v14 = vsel %vm1723_vm0, %v13512_v26, 0 }
 0x919   : > { %16243 = vst [vmem:[#allocation103_spill] sm:$0xff] %v13624_v4  ;;  %v13626_v62 = vpop.f32.mrb[122].mxu1 }
 0x91a   : > { %16244 = vst [vmem:[#allocation107_spill] sm:$0xff] %v13626_v62  ;;  %v13628_v17 = vpop.f32.mrb[123].mxu1 }
 0x91b   : > { %16245 = vst [vmem:[#allocation89_spill] sm:$0xff] %v13628_v17  ;;  %v11030_v17 = vld [vmem:[#allocation8 + $0x70] sm:$0xff] }
 0x91e   : > { %9712 = vmatmul.mubr.msk.bf16.gmra.mrb[152].mxu1 %vm1723_vm0, %v13497_v36  ;;  %v4185_v36 = vsel %vm1723_vm0, %v13479_v1, 0 }
 0x91f   : > { %9724 = vmatpush3.bf16.xpose.msra.mxu1 %v4182_v29  ;;  %v13634_v15 = vpop.f32.mrb[124].mxu1  ;;  %9715 = vmatprep.mubr.msk.bf16.mxu1 %vm1723_vm0, %v13514_v12  ;;  %v4191_v12 = vsel %vm1723_vm0, %v13493_v0, 0 }
 0x920   : > { %16246 = vst [vmem:[#allocation104_spill] sm:$0xff] %v13634_v15  ;;  %10154 = vmatprep.subr.msk.bf16.mxu1 %vm1723_vm0, %v13479_v1  ;;  %v13640_v9 = vpop.f32.mrb[125].mxu1  ;;  %v4194_v1 = vsel %vm1723_vm0, %v13540_v8, 0 }
 0x921   : > { %16247 = vst [vmem:[#allocation105_spill] sm:$0xff] %v13640_v9  ;;  %v13642_v23 = vpop.f32.mrb[126].mxu1  ;;  %v11029_v9 = vld [vmem:[#allocation8 + $0x78] sm:$0xff] }
 0x922   : > { %16248 = vst [vmem:[#allocation94_spill] sm:$0xff] %v13642_v23  ;;  %v13644_v46 = vpop.f32.mrb[127].mxu1 }
 0x923   : > { %16249 = vst [vmem:[#allocation97_spill] sm:$0xff] %v13644_v46 }
 0x926   : > { %9716 = vmatmul.mubr.msk.bf16.gmra.mrb[156].mxu1 %vm1723_vm0, %v13547_v49  ;;  %v4722_v49 = vpop.permute.xlu0 %4721 }
 0x927   : > { %9726 = vmatpush3.bf16.xpose.msra.mxu1 %v4185_v36  ;;  %9735 = vmatprep.mubr.msk.bf16.mxu1 %vm1723_vm0, %v13554_v55  ;;  %v13714_v36 = vld [vmem:[#allocation8 + $0x10] sm:$0xff] }
 0x928   : > { %10155 = vmatprep.subr.msk.bf16.mxu1 %vm1723_vm0, %v13512_v26  ;;  %v4197_v26 = vsel %vm1723_vm0, %v13530_v22, 0 }
 0x92f   : > { %9728 = vmatpush3.bf16.xpose.msra.mxu1 %v4188_v14 }
 0x930   : > { %10156 = vmatprep.subr.msk.bf16.mxu1 %vm1723_vm0, %v13493_v0  ;;  %v4724_v0 = vpop.permute.xlu1 %4723 }
 0x934   : > { %v4728_v55 = vpop.permute.xlu1 %4727 }
 0x937   : > { %9730 = vmatpush3.bf16.xpose.msra.mxu1 %v4191_v12 }
 0x938   : > { %10157 = vmatprep.subr.msk.bf16.mxu1 %vm1723_vm0, %v13540_v8  ;;  %v4726_v8 = vpop.permute.xlu0 %4725 }
 0x93f   : > { %9732 = vmatpush3.bf16.xpose.msra.mxu1 %v4194_v1 }
 0x940   : > { %10158 = vmatprep.subr.msk.bf16.mxu1 %vm1723_vm0, %v13530_v22  ;;  %v4730_v22 = vpop.permute.xlu0 %4729 }
 0x947   : > { %9734 = vmatpush3.bf16.xpose.msra.mxu1 %v4197_v26 }
 0x948   : > { %9783 = vmatprep.subr.bf16.mxu1 %v4722_v49 }
 0x94e   : > { %9736 = vmatmul.mubr.msk.bf16.vlgmr.msra.gmra.mrb[160].mxu1 %vm1723_vm0, %v13543_v42  ;;  %v4732_v42 = vpop.permute.xlu1 %4731 }
 0x94f   : > { %9739 = vmatprep.mubr.msk.bf16.mxu1 %vm1723_vm0, %v13557_v60  ;;  %9784 = vmatpush3.bf16.msra.mxu1 %v4722_v49  ;;  %v13720_v49 = vld [vmem:[#allocation8 + $0x8] sm:$0xff] }
 0x950   : > { %9785 = vmatprep.subr.bf16.mxu1 %v4724_v0 }
 0x953   : > { %9786 = vmatpush3.bf16.msra.mxu1 %v4724_v0 }
 0x954   : > { %9787 = vmatprep.subr.bf16.mxu1 %v4726_v8 }
 0x956   : > { %9740 = vmatmul.mubr.msk.bf16.gmra.mrb[164].mxu1 %vm1723_vm0, %v13549_v25 }
 0x957   : > { %9743 = vmatprep.mubr.msk.bf16.mxu1 %vm1723_vm0, %v13562_v41  ;;  %9788 = vmatpush3.bf16.msra.mxu1 %v4726_v8  ;;  %v11019_v8 = vld [vmem:[#allocation8] sm:$0xff] }
 0x958   : > { %9789 = vmatprep.subr.bf16.mxu1 %v4728_v55 }
 0x95b   : > { %9790 = vmatpush3.bf16.msra.mxu1 %v4728_v55 }
 0x95c   : > { %9791 = vmatprep.subr.bf16.mxu1 %v4730_v22 }
 0x95e   : > { %9744 = vmatmul.mubr.msk.bf16.gmra.mrb[168].mxu1 %vm1723_vm0, %v13559_v51 }
 0x95f   : > { %9747 = vmatprep.mubr.msk.bf16.mxu1 %vm1723_vm0, %v13568_v50  ;;  %9792 = vmatpush3.bf16.msra.mxu1 %v4730_v22 }
 0x960   : > { %9793 = vmatprep.subr.bf16.mxu1 %v4732_v42 }
 0x963   : > { %9794 = vmatpush3.bf16.msra.mxu1 %v4732_v42  ;;  %v11020_v42 = vld [vmem:[#allocation8 + $0x18] sm:$0xff] }
 0x966   : > { %9748 = vmatmul.mubr.msk.bf16.gmra.mrb[172].mxu1 %vm1723_vm0, %v13566_v63 }
 0x9a3   : > { %v13682_v25 = vpop.f32.mrb[128].mxu1 }
 0x9a4   : > { %16250 = vst [vmem:[#allocation82_spill] sm:$0xff] %v13682_v25  ;;  %v13684_v60 = vpop.f32.mrb[129].mxu1  ;;  %v11028_v25 = vld [vmem:[#allocation8 + $0x40] sm:$0xff] }
 0x9a5   : > { %16251 = vst [vmem:[#allocation100_spill] sm:$0xff] %v13684_v60  ;;  %v13686_v41 = vpop.f32.mrb[130].mxu1 }
 0x9a6   : > { %16252 = vst [vmem:[#allocation96_spill] sm:$0xff] %v13686_v41  ;;  %v13688_v57 = vpop.f32.mrb[131].mxu1 }
 0x9a7   : > { %16253 = vst [vmem:[#allocation81_spill] sm:$0xff] %v13688_v57  ;;  %v11026_v57 = vld [vmem:[#allocation8 + $0x50] sm:$0xff] }
 0x9ab   : > { %v13690_v43 = vpop.f32.mrb[132].mxu1 }
 0x9ac   : > { %16254 = vst [vmem:[#allocation93_spill] sm:$0xff] %v13690_v43  ;;  %v13692_v51 = vpop.f32.mrb[133].mxu1 }
 0x9ad   : > { %16255 = vst [vmem:[#allocation95_spill] sm:$0xff] %v13692_v51  ;;  %v13694_v54 = vpop.f32.mrb[134].mxu1  ;;  %v11025_v51 = vld [vmem:[#allocation8 + $0x58] sm:$0xff] }
 0x9ae   : > { %16256 = vst [vmem:[#allocation39_spill] sm:$0xff] %v13694_v54  ;;  %v13696_v50 = vpop.f32.mrb[135].mxu1 }
 0x9af   : > { %16257 = vst [vmem:[#allocation92_spill] sm:$0xff] %v13696_v50 }
 0x9b3   : > { %v13698_v11 = vpop.f32.mrb[136].mxu1 }
 0x9b4   : > { %16258 = vst [vmem:[#allocation102_spill] sm:$0xff] %v13698_v11  ;;  %v13700_v28 = vpop.f32.mrb[137].mxu1  ;;  %v11024_v11 = vld [vmem:[#allocation8 + $0x20] sm:$0xff] }
 0x9b5   : > { %16259 = vst [vmem:[#allocation41_spill] sm:$0xff] %v13700_v28  ;;  %v13702_v63 = vpop.f32.mrb[138].mxu1 }
 0x9b6   : > { %16260 = vst [vmem:[#allocation110_spill] sm:$0xff] %v13702_v63  ;;  %v13704_v27 = vpop.f32.mrb[139].mxu1 }
 0x9b7   : > { %16261 = vst [vmem:[#allocation108_spill] sm:$0xff] %v13704_v27  ;;  %v11022_v27 = vld [vmem:[#allocation8 + $0x30] sm:$0xff] }
 0x9d9   : > { %v13706_v53 = vpop.f32.mrb[140].mxu1 }
 0x9da   : > { %16262 = vst [vmem:[#allocation43_spill] sm:$0xff] %v13706_v53  ;;  %v13708_v18 = vpop.f32.mrb[141].mxu1 }
 0x9db   : > { %16263 = vst [vmem:[#allocation109_spill] sm:$0xff] %v13708_v18  ;;  %v13710_v35 = vpop.f32.mrb[142].mxu1  ;;  %v11021_v18 = vld [vmem:[#allocation8 + $0x38] sm:$0xff] }
 0x9dc   : > { %16264 = vst [vmem:[#allocation106_spill] sm:$0xff] %v13710_v35  ;;  %v13712_v24 = vpop.f32.mrb[143].mxu1 }
 0x9dd   : > { %16265 = vst [vmem:[#allocation47_spill] sm:$0xff] %v13712_v24 }
 0x9e1   : > { %v9705_v29 = vpop.f32.mrb[144].mxu1 }
 0x9e2   : > { %v13717_v14 = vadd.f32 %v13714_v36, %v9705_v29  ;;  %v4056_v12 = vpop.f32.mrb[145].mxu1 }
 0x9e3   : > { %v9706_v1 = vpop.f32.mrb[146].mxu1  ;;  %v13725_v55 = vadd.f32 %v11019_v8, %v4056_v12  ;;  %v11023_v12 = vld [vmem:[#allocation8 + $0x28] sm:$0xff] }
 0x9e4   : > { %4300 = vmax.xlane.f32.xlu0 %v13717_v14  ;;  %v4059_v26 = vpop.f32.mrb[147].mxu1  ;;  %v13729_v29 = vadd.f32 %v11020_v42, %v9706_v1 }
 0x9e5   : > { %v13723_v0 = vadd.f32 %v13720_v49, %v4059_v26 }
 0x9e7   : > { %4298 = vmax.xlane.f32.xlu1 %v13723_v0 }
 0x9e8   : > { %4296 = vmax.xlane.f32.xlu0 %v13725_v55 }
 0x9e9   : > { %v9709_v22 = vpop.f32.mrb[148].mxu1 }
 0x9ea   : > { %v4072_v24 = vpop.f32.mrb[149].mxu1  ;;  %v13734_v63 = vadd.f32 %v11022_v27, %v9709_v22 }
 0x9eb   : > { %v9710_v35 = vpop.f32.mrb[150].mxu1  ;;  %v13740_v50 = vadd.f32 %v11024_v11, %v4072_v24 }
 0x9ec   : > { %v13731_v53 = vadd.f32 %v11021_v18, %v9710_v35  ;;  %4302 = vmax.xlane.f32.xlu0 %v13729_v29  ;;  %v4075_v26 = vpop.f32.mrb[151].mxu1 }
 0x9ed   : > { %v13737_v28 = vadd.f32 %v11023_v12, %v4075_v26  ;;  %v11027_v26 = vld [vmem:[#allocation8 + $0x48] sm:$0xff] }
 0x9ee   : > { %4310 = vmax.xlane.f32.xlu1 %v13731_v53 }
 0x9f0   : > { %4308 = vmax.xlane.f32.xlu0 %v13734_v63 }
 0x9f1   : > { %v9713_v1 = vpop.f32.mrb[152].mxu1 }
 0x9f2   : > { %4306 = vmax.xlane.f32.xlu1 %v13737_v28  ;;  %v4088_v35 = vpop.f32.mrb[153].mxu1  ;;  %v13746_v41 = vadd.f32 %v11026_v57, %v9713_v1 }
 0x9f3   : > { %v9714_v54 = vpop.f32.mrb[154].mxu1  ;;  %v13752_v46 = vadd.f32 %v11028_v25, %v4088_v35  ;;  %v11032_v35 = vld [vmem:[#allocation8 + $0x60] sm:$0xff] }
 0x9f4   : > { %v13743_v43 = vadd.f32 %v11025_v51, %v9714_v54  ;;  %4304 = vmax.xlane.f32.xlu0 %v13740_v50  ;;  %v4091_v22 = vpop.f32.mrb[155].mxu1 }
 0x9f5   : > { %v13749_v60 = vadd.f32 %v11027_v26, %v4091_v22  ;;  %v11031_v22 = vld [vmem:[#allocation8 + $0x68] sm:$0xff] }
 0x9f6   : > { %4318 = vmax.xlane.f32.xlu1 %v13743_v43 }
 0x9f8   : > { %4316 = vmax.xlane.f32.xlu0 %v13746_v41 }
 0x9f9   : > { %v9717_v24 = vpop.f32.mrb[156].mxu1 }
 0x9fa   : > { %4314 = vmax.xlane.f32.xlu1 %v13749_v60  ;;  %v4104_v54 = vpop.f32.mrb[157].mxu1  ;;  %v13758_v62 = vadd.f32 %v11030_v17, %v9717_v24 }
 0x9fb   : > { %v9718_v23 = vpop.f32.mrb[158].mxu1  ;;  %v13764_v56 = vadd.f32 %v11032_v35, %v4104_v54 }
 0x9fc   : > { %v13755_v15 = vadd.f32 %v11029_v9, %v9718_v23  ;;  %4312 = vmax.xlane.f32.xlu0 %v13752_v46  ;;  %v4107_v1 = vpop.f32.mrb[159].mxu1 }
 0x9fd   : > { %v13761_v4 = vadd.f32 %v11031_v22, %v4107_v1 }
 0x9fe   : > { %4326 = vmax.xlane.f32.xlu1 %v13755_v15 }
 0xa00   : > { %4324 = vmax.xlane.f32.xlu0 %v13758_v62 }
 0xa02   : > { %4322 = vmax.xlane.f32.xlu1 %v13761_v4 }
 0xa04   : > { %4320 = vmax.xlane.f32.xlu0 %v13764_v56 }
 0xa21   : > { %v9737_v23 = vpop.f32.mrb[160].mxu1 }
 0xa22   : > { %v13769_v45 = vadd.f32 %v13714_v36, %v9737_v23  ;;  %v4233_v24 = vpop.f32.mrb[161].mxu1 }
 0xa23   : > { %v9738_v48 = vpop.f32.mrb[162].mxu1  ;;  %v13774_v16 = vadd.f32 %v11019_v8, %v4233_v24 }
 0xa24   : > { %v13771_v13 = vadd.f32 %v11020_v42, %v9738_v48  ;;  %4332 = vmax.xlane.f32.xlu0 %v13769_v45  ;;  %v4236_v1 = vpop.f32.mrb[163].mxu1 }
 0xa25   : > { %v13778_v54 = vadd.f32 %v13720_v49, %v4236_v1 }
 0xa26   : > { %4334 = vmax.xlane.f32.xlu1 %v13771_v13 }
 0xa28   : > { %4328 = vmax.xlane.f32.xlu0 %v13774_v16 }
 0xa29   : > { %v9741_v6 = vpop.f32.mrb[164].mxu1 }
 0xa2a   : > { %v13781_v59 = vadd.f32 %v11022_v27, %v9741_v6  ;;  %4330 = vmax.xlane.f32.xlu1 %v13778_v54  ;;  %v4249_v36 = vpop.f32.mrb[165].mxu1 }
 0xa2b   : > { %v9742_v48 = vpop.f32.mrb[166].mxu1  ;;  %v13787_v23 = vadd.f32 %v11024_v11, %v4249_v36 }
 0xa2c   : > { %v13784_v42 = vadd.f32 %v11021_v18, %v9742_v48  ;;  %4340 = vmax.xlane.f32.xlu0 %v13781_v59  ;;  %v4252_v8 = vpop.f32.mrb[167].mxu1 }
 0xa2d   : > { %v13790_v49 = vadd.f32 %v11023_v12, %v4252_v8 }
 0xa2e   : > { %4342 = vmax.xlane.f32.xlu1 %v13784_v42 }
 0xa30   : > { %4336 = vmax.xlane.f32.xlu0 %v13787_v23 }
 0xa31   : > { %v9745_v24 = vpop.f32.mrb[168].mxu1 }
 0xa32   : > { %v13793_v6 = vadd.f32 %v11026_v57, %v9745_v24  ;;  %4338 = vmax.xlane.f32.xlu1 %v13790_v49  ;;  %v4265_v27 = vpop.f32.mrb[169].mxu1 }
 0xa33   : > { %v9746_v1 = vpop.f32.mrb[170].mxu1  ;;  %v13799_v11 = vadd.f32 %v11028_v25, %v4265_v27 }
 0xa34   : > { %v13796_v18 = vadd.f32 %v11025_v51, %v9746_v1  ;;  %4348 = vmax.xlane.f32.xlu0 %v13793_v6  ;;  %v4268_v48 = vpop.f32.mrb[171].mxu1 }
 0xa35   : > { %v13802_v12 = vadd.f32 %v11027_v26, %v4268_v48 }
 0xa36   : > { %4350 = vmax.xlane.f32.xlu1 %v13796_v18 }
 0xa38   : > { %4344 = vmax.xlane.f32.xlu0 %v13799_v11 }
 0xa39   : > { %v9749_v36 = vpop.f32.mrb[172].mxu1 }
 0xa3a   : > { %v13805_v57 = vadd.f32 %v11030_v17, %v9749_v36  ;;  %4346 = vmax.xlane.f32.xlu1 %v13802_v12  ;;  %v4281_v8 = vpop.f32.mrb[173].mxu1 }
 0xa3b   : > { %v9750_v24 = vpop.f32.mrb[174].mxu1  ;;  %v13811_v25 = vadd.f32 %v11032_v35, %v4281_v8 }
 0xa3c   : > { %v13808_v51 = vadd.f32 %v11029_v9, %v9750_v24  ;;  %4356 = vmax.xlane.f32.xlu0 %v13805_v57  ;;  %v4284_v1 = vpop.f32.mrb[175].mxu1 }
 0xa3d   : > { %v13814_v26 = vadd.f32 %v11031_v22, %v4284_v1 }
 0xa3e   : > { %4358 = vmax.xlane.f32.xlu1 %v13808_v51 }
 0xa40   : > { %4352 = vmax.xlane.f32.xlu0 %v13811_v25 }
 0xa42   : > { %4354 = vmax.xlane.f32.xlu1 %v13814_v26 }
 0xa71   : > { %v4301_v17 = vpop.xlane.xlu0 %4300 }
 0xa72   : > { %v4362_v27 = vsub.f32 %v13717_v14, %v4301_v17 }
 0xa74   : > { %v4396_v48 = vmul.f32 1.442695, %v4362_v27  ;;  %v4299_v9 = vpop.xlane.xlu1 %4298 }
 0xa75   : > { %v4297_v36 = vpop.xlane.xlu0 %4296  ;;  %v4361_v35 = vsub.f32 %v13723_v0, %v4299_v9 }
 0xa76   : > { %10617 = vpow2.f32 %v4396_v48  ;;  %v4360_v24 = vsub.f32 %v13725_v55, %v4297_v36 }
 0xa77   : > { %v4394_v20 = vmul.f32 1.442695, %v4361_v35 }
 0xa78   : > { %v4392_v33 = vmul.f32 1.442695, %v4360_v24 }
 0xa79   : > { %v4303_v8 = vpop.xlane.xlu0 %4302 }
 0xa7a   : > { %10619 = vpow2.f32 %v4392_v33  ;;  %v4363_v22 = vsub.f32 %v13729_v29, %v4303_v8 }
 0xa7b   : > { %v4311_v1 = vpop.xlane.xlu1 %4310 }
 0xa7c   : > { %v4398_v44 = vmul.f32 1.442695, %v4363_v22  ;;  %v4367_v33 = vsub.f32 %v13731_v53, %v4311_v1 }
 0xa7d   : > { %v4309_v3 = vpop.xlane.xlu0 %4308 }
 0xa7e   : > { %10621 = vpow2.f32 %v4398_v44  ;;  %v4366_v14 = vsub.f32 %v13734_v63, %v4309_v3  ;;  %v4406_v24 = vmul.f32 1.442695, %v4367_v33 }
 0xa7f   : > { %v4307_v17 = vpop.xlane.xlu1 %4306  ;;  %10623 = vpow2.f32 %v4394_v20 }
 0xa80   : > { %v13823_v27 = vpop.eup %10617  ;;  %v4404_v48 = vmul.f32 1.442695, %v4366_v14  ;;  %v4365_v55 = vsub.f32 %v13737_v28, %v4307_v17 }
 0xa81   : > { %4460 = vadd.xlane.f32.xlu1 %v13823_v27  ;;  %v4305_v0 = vpop.xlane.xlu0 %4304 }
 0xa82   : > { %10625 = vpow2.f32 %v4404_v48  ;;  %v4402_v29 = vmul.f32 1.442695, %v4365_v55  ;;  %v4364_v36 = vsub.f32 %v13740_v50, %v4305_v0 }
 0xa83   : > { %v4319_v9 = vpop.xlane.xlu1 %4318 }
 0xa84   : > { %v13829_v44 = vpop.eup %10619  ;;  %v4400_v3 = vmul.f32 1.442695, %v4364_v36  ;;  %10627 = vpow2.f32 %v4402_v29  ;;  %v4371_v53 = vsub.f32 %v13743_v43, %v4319_v9 }
 0xa85   : > { %4456 = vadd.xlane.f32.xlu1 %v13829_v44  ;;  %v4317_v63 = vpop.xlane.xlu0 %4316 }
 0xa86   : > { %10629 = vpow2.f32 %v4400_v3  ;;  %v4370_v20 = vsub.f32 %v13746_v41, %v4317_v63  ;;  %v4414_v48 = vmul.f32 1.442695, %v4371_v53 }
 0xa87   : > { %v4315_v28 = vpop.xlane.xlu1 %4314  ;;  %10631 = vpow2.f32 %v4406_v24 }
 0xa88   : > { %v13833_v35 = vpop.eup %10621  ;;  %v4412_v8 = vmul.f32 1.442695, %v4370_v20  ;;  %v4369_v41 = vsub.f32 %v13749_v60, %v4315_v28 }
 0xa89   : > { %4462 = vadd.xlane.f32.xlu1 %v13833_v35  ;;  %v4313_v50 = vpop.xlane.xlu0 %4312  ;;  %v13838_v1 = vpop.eup %10623 }
 0xa8a   : > { %v4368_v22 = vsub.f32 %v13752_v46, %v4313_v50  ;;  %10633 = vpow2.f32 %v4412_v8  ;;  %v4410_v36 = vmul.f32 1.442695, %v4369_v41 }
 0xa8b   : > { %v4327_v55 = vpop.xlane.xlu1 %4326 }
 0xa8c   : > { %v13840_v14 = vpop.eup %10625  ;;  %v4408_v17 = vmul.f32 1.442695, %v4368_v22  ;;  %v4375_v9 = vsub.f32 %v13755_v15, %v4327_v55 }
 0xa8d   : > { %4458 = vadd.xlane.f32.xlu1 %v13838_v1  ;;  %4468 = vadd.xlane.f32.xlu0 %v13840_v14  ;;  %v4325_v43 = vpop.xlane.xlu0 %4324 }
 0xa8e   : > { %10635 = vpow2.f32 %v4408_v17  ;;  %v4374_v0 = vsub.f32 %v13758_v62, %v4325_v43  ;;  %v13846_v33 = vpop.eup %10627  ;;  %v4422_v20 = vmul.f32 1.442695, %v4375_v9 }
 0xa8f   : > { %10637 = vpow2.f32 %v4414_v48  ;;  %v4323_v63 = vpop.xlane.xlu1 %4322 }
 0xa90   : > { %v13848_v46 = vpop.eup %10629  ;;  %v4420_v29 = vmul.f32 1.442695, %v4374_v0  ;;  %v4373_v28 = vsub.f32 %v13761_v4, %v4323_v63 }
 0xa91   : > { %4466 = vadd.xlane.f32.xlu1 %v13846_v33  ;;  %4464 = vadd.xlane.f32.xlu0 %v13848_v46  ;;  %v4321_v60 = vpop.xlane.xlu0 %4320  ;;  %v13854_v24 = vpop.eup %10631 }
 0xa92   : > { %10639 = vpow2.f32 %v4420_v29  ;;  %v4372_v3 = vsub.f32 %v13764_v56, %v4321_v60  ;;  %v4418_v56 = vmul.f32 1.442695, %v4373_v28 }
 0xa93   : > { %10641 = vpow2.f32 %v4410_v36 }
 0xa94   : > { %v4416_v62 = vmul.f32 1.442695, %v4372_v3  ;;  %v13858_v53 = vpop.eup %10633 }
 0xa95   : > { %4470 = vadd.xlane.f32.xlu0 %v13854_v24 }
 0xa96   : > { %10643 = vpow2.f32 %v4416_v62 }
 0xa97   : > { %10645 = vpow2.f32 %v4422_v20 }
 0xa98   : > { %v13860_v8 = vpop.eup %10635  ;;  %10647 = vpow2.f32 %v4418_v56 }
 0xa99   : > { %4476 = vadd.xlane.f32.xlu0 %v13858_v53  ;;  %4472 = vadd.xlane.f32.xlu1 %v13860_v8  ;;  %v13864_v15 = vpop.eup %10637 }
 0xa9c   : > { %v13866_v50 = vpop.eup %10639 }
 0xa9d   : > { %4478 = vadd.xlane.f32.xlu0 %v13864_v15  ;;  %4484 = vadd.xlane.f32.xlu1 %v13866_v50  ;;  %v13870_v4 = vpop.eup %10641 }
 0xaa0   : > { %v13872_v22 = vpop.eup %10643 }
 0xaa1   : > { %4474 = vadd.xlane.f32.xlu0 %v13870_v4  ;;  %4480 = vadd.xlane.f32.xlu1 %v13872_v22  ;;  %v13876_v17 = vpop.eup %10645 }
 0xaa2   : > { %v13879_v48 = vpop.eup %10647 }
 0xaa5   : > { %4486 = vadd.xlane.f32.xlu0 %v13876_v17 }
 0xaa9   : > { %4482 = vadd.xlane.f32.xlu0 %v13879_v48 }
 0xab1   : > { %v4333_v41 = vpop.xlane.xlu0 %4332 }
 0xab2   : > { %v4378_v55 = vsub.f32 %v13769_v45, %v4333_v41 }
 0xab3   : > { %v4335_v43 = vpop.xlane.xlu1 %4334 }
 0xab4   : > { %v4428_v0 = vmul.f32 1.442695, %v4378_v55  ;;  %v4379_v29 = vsub.f32 %v13771_v13, %v4335_v43 }
 0xab5   : > { %v4329_v36 = vpop.xlane.xlu0 %4328 }
 0xab6   : > { %10649 = vpow2.f32 %v4428_v0  ;;  %v4430_v60 = vmul.f32 1.442695, %v4379_v29  ;;  %v4376_v9 = vsub.f32 %v13774_v16, %v4329_v36 }
 0xab7   : > { %v4331_v3 = vpop.xlane.xlu1 %4330 }
 0xab8   : > { %10651 = vpow2.f32 %v4430_v60  ;;  %v4424_v63 = vmul.f32 1.442695, %v4376_v9  ;;  %v4377_v62 = vsub.f32 %v13778_v54, %v4331_v3 }
 0xab9   : > { %v4341_v20 = vpop.xlane.xlu0 %4340 }
 0xaba   : > { %10653 = vpow2.f32 %v4424_v63  ;;  %v4426_v28 = vmul.f32 1.442695, %v4377_v62  ;;  %v4382_v56 = vsub.f32 %v13781_v59, %v4341_v20 }
 0xabb   : > { %v4343_v45 = vpop.xlane.xlu1 %4342 }
 0xabc   : > { %10655 = vpow2.f32 %v4426_v28  ;;  %v4436_v41 = vmul.f32 1.442695, %v4382_v56  ;;  %v4383_v13 = vsub.f32 %v13784_v42, %v4343_v45 }
 0xabd   : > { %v4337_v55 = vpop.xlane.xlu0 %4336 }
 0xabe   : > { %10657 = vpow2.f32 %v4436_v41  ;;  %v4438_v43 = vmul.f32 1.442695, %v4383_v13  ;;  %v4380_v16 = vsub.f32 %v13787_v23, %v4337_v55 }
 0xabf   : > { %v4339_v0 = vpop.xlane.xlu1 %4338 }
 0xac0   : > { %v13889_v29 = vpop.eup %10649  ;;  %10659 = vpow2.f32 %v4438_v43  ;;  %v4432_v54 = vmul.f32 1.442695, %v4380_v16  ;;  %v4381_v36 = vsub.f32 %v13790_v49, %v4339_v0 }
 0xac1   : > { %4492 = vadd.xlane.f32.xlu1 %v13889_v29  ;;  %v4349_v59 = vpop.xlane.xlu0 %4348 }
 0xac2   : > { %v13893_v60 = vpop.eup %10651  ;;  %10661 = vpow2.f32 %v4432_v54  ;;  %v4434_v9 = vmul.f32 1.442695, %v4381_v36  ;;  %v4386_v42 = vsub.f32 %v13793_v6, %v4349_v59 }
 0xac3   : > { %v4351_v3 = vpop.xlane.xlu1 %4350  ;;  %4494 = vadd.xlane.f32.xlu0 %v13893_v60 }
 0xac4   : > { %v13897_v23 = vpop.eup %10653  ;;  %10663 = vpow2.f32 %v4434_v9  ;;  %v4444_v63 = vmul.f32 1.442695, %v4386_v42  ;;  %v4387_v62 = vsub.f32 %v13796_v18, %v4351_v3 }
 0xac5   : > { %4488 = vadd.xlane.f32.xlu1 %v13897_v23  ;;  %v4345_v49 = vpop.xlane.xlu0 %4344 }
 0xac6   : > { %v13901_v20 = vpop.eup %10655  ;;  %10665 = vpow2.f32 %v4444_v63  ;;  %v4446_v28 = vmul.f32 1.442695, %v4387_v62  ;;  %v4384_v56 = vsub.f32 %v13799_v11, %v4345_v49 }
 0xac7   : > { %v4347_v45 = vpop.xlane.xlu1 %4346  ;;  %4490 = vadd.xlane.f32.xlu0 %v13901_v20 }
 0xac8   : > { %v13905_v6 = vpop.eup %10657  ;;  %10667 = vpow2.f32 %v4446_v28  ;;  %v4440_v41 = vmul.f32 1.442695, %v4384_v56  ;;  %v4385_v13 = vsub.f32 %v13802_v12, %v4347_v45 }
 0xac9   : > { %4500 = vadd.xlane.f32.xlu1 %v13905_v6  ;;  %v4357_v18 = vpop.xlane.xlu0 %4356 }
 0xaca   : > { %v13909_v55 = vpop.eup %10659  ;;  %10669 = vpow2.f32 %v4440_v41  ;;  %v4442_v43 = vmul.f32 1.442695, %v4385_v13  ;;  %v4390_v16 = vsub.f32 %v13805_v57, %v4357_v18 }
 0xacb   : > { %4502 = vadd.xlane.f32.xlu0 %v13909_v55  ;;  %v4359_v62 = vpop.xlane.xlu1 %4358 }
 0xacc   : > { %v13913_v11 = vpop.eup %10661  ;;  %10671 = vpow2.f32 %v4442_v43  ;;  %v4452_v0 = vmul.f32 1.442695, %v4390_v16  ;;  %v4391_v56 = vsub.f32 %v13808_v51, %v4359_v62 }
 0xacd   : > { %4496 = vadd.xlane.f32.xlu1 %v13913_v11  ;;  %v4353_v54 = vpop.xlane.xlu0 %4352 }
 0xace   : > { %v13916_v36 = vpop.eup %10663  ;;  %10673 = vpow2.f32 %v4452_v0  ;;  %v4388_v12 = vsub.f32 %v13811_v25, %v4353_v54  ;;  %v4454_v41 = vmul.f32 1.442695, %v4391_v56 }
 0xacf   : > { %4498 = vadd.xlane.f32.xlu0 %v13916_v36  ;;  %v4355_v49 = vpop.xlane.xlu1 %4354 }
 0xad0   : > { %v13920_v59 = vpop.eup %10665  ;;  %v4448_v9 = vmul.f32 1.442695, %v4388_v12  ;;  %v4389_v28 = vsub.f32 %v13814_v26, %v4355_v49 }
 0xad1   : > { %4508 = vadd.xlane.f32.xlu1 %v13920_v59 }
 0xad2   : > { %v13923_v57 = vpop.eup %10667  ;;  %10675 = vpow2.f32 %v4448_v9  ;;  %v4450_v45 = vmul.f32 1.442695, %v4389_v28 }
 0xad3   : > { %4510 = vadd.xlane.f32.xlu0 %v13923_v57 }
 0xad4   : > { %v13926_v42 = vpop.eup %10669  ;;  %10677 = vpow2.f32 %v4450_v45 }
 0xad5   : > { %4504 = vadd.xlane.f32.xlu1 %v13926_v42  ;;  %10679 = vpow2.f32 %v4454_v41  ;;  %v16268_v41 = vld [vmem:[#allocation49_spill] sm:$0xff] }
 0xad6   : > { %v13929_v3 = vpop.eup %10671 }
 0xad7   : > { %4506 = vadd.xlane.f32.xlu0 %v13929_v3 }
 0xad8   : > { %v13932_v25 = vpop.eup %10673 }
 0xad9   : > { %4516 = vadd.xlane.f32.xlu1 %v13932_v25 }
 0xadc   : > { %v13935_v63 = vpop.eup %10675 }
 0xadd   : > { %4512 = vadd.xlane.f32.xlu1 %v13935_v63 }
 0xaed   : > { %4733 = vrot.lane.b32.xlu0 %v16167_v31, %s11413_s4 }
 0xaee   : > { %4735 = vrot.lane.b32.xlu1 %v16171_v5, %s11413_s4 }
 0xaf2   : > { %5133 = vrot.lane.b32.xlu1 %v16175_v47, %s11414_s7  ;;  %v13958_v47 = vpop.eup %10677 }
 0xaf6   : > { %5135 = vrot.lane.b32.xlu1 %v16179_v37, %s11414_s7 }
 0xafa   : > { %5137 = vrot.lane.b32.xlu1 %v16183_v2, %s11414_s7  ;;  %v13963_v2 = vpop.eup %10679 }
 0xafe   : > { %5141 = vrot.lane.b32.xlu1 %v16187_v30, %s11414_s7 }
 0xb02   : > { %5145 = vrot.lane.b32.xlu1 %v16188_v34, %s11414_s7 }
 0xb06   : > { %5117 = vrot.lane.b32.xlu1 %v16204_v32, %s11414_s7 }
 0xb0a   : > { %5310 = vrot.lane.b32.xlu1 %v16190_v10, %s11414_s7 }
 0xb0c   : > { %4514 = vadd.xlane.f32.xlu0 %v13958_v47 }
 0xb0e   : > { %5121 = vrot.lane.b32.xlu1 %v16210_v7, %s11414_s7  ;;  %v4461_v37 = vpop.xlane.xlu1 %4460 }
 0xb10   : > { %4518 = vadd.xlane.f32.xlu0 %v13963_v2 }
 0xb12   : > { %5314 = vrot.lane.b32.xlu1 %v16191_v21, %s11414_s7  ;;  %v4457_v30 = vpop.xlane.xlu1 %4456 }
 0xb13   : > { %10681 = vrcp.f32 %v4457_v30 }
 0xb16   : > { %5125 = vrot.lane.b32.xlu1 %v16194_v58, %s11414_s7  ;;  %v4463_v34 = vpop.xlane.xlu1 %4462 }
 0xb17   : > { %10683 = vrcp.f32 %v4463_v34 }
 0xb18   : > { %10685 = vrcp.f32 %v4461_v37  ;;  %v16269_v37 = vld [vmem:[#allocation72_spill] sm:$0xff] }
 0xb1a   : > { %5318 = vrot.lane.b32.xlu1 %v16193_v52, %s11414_s7  ;;  %v4459_v10 = vpop.xlane.xlu1 %4458  ;;  %v4469_v32 = vpop.xlane.xlu0 %4468 }
 0xb1b   : > { %10687 = vrcp.f32 %v4459_v10  ;;  %v10318_v10 = vld [vmem:[%s11884_s19 + $0x28] sm:$0xff]  }
 0xb1d   : > { %v10682_v21 = vpop.eup %10681 }
 0xb1e   : > { %5129 = vrot.lane.b32.xlu1 %v16216_v39, %s11414_s7  ;;  %v4467_v7 = vpop.xlane.xlu1 %4466  ;;  %v4465_v51 = vpop.xlane.xlu0 %4464  ;;  %v4552_v16 = vmul.f32 %v10682_v21, %v13829_v44 }
 0xb1f   : > { %10689 = vrcp.f32 %v4467_v7  ;;  %v16270_v7 = vld [vmem:[#allocation38_spill] sm:$0xff] }
 0xb20   : > { %10691 = vrcp.f32 %v4465_v51  ;;  %v16271_v51 = vld [vmem:[#allocation84_spill] sm:$0xff] }
 0xb21   : > { %10693 = vrcp.f32 %v4469_v32  ;;  %v10684_v26 = vpop.eup %10683 }
 0xb22   : > { %5322 = vrot.lane.b32.xlu1 %v16197_v19, %s11414_s7  ;;  %v4471_v58 = vpop.xlane.xlu0 %4470  ;;  %v10686_v13 = vpop.eup %10685  ;;  %v4555_v18 = vmul.f32 %v10684_v26, %v13833_v35  ;;  %v16266_v35 = vld [vmem:[#allocation45_spill] sm:$0xff] }
 0xb23   : > { %10695 = vrcp.f32 %v4471_v58  ;;  %v4554_v0 = vmul.f32 %v10686_v13, %v13823_v27  ;;  %v10317_v27 = vld [vmem:[%s11884_s19 + $0x20] sm:$0xff]  }
 0xb24   : > { %9815 = vmatprep.subr.bf16.mxu0 %v10317_v27 }
 0xb25   : > { %v10688_v52 = vpop.eup %10687 }
 0xb26   : > { %5131 = vrot.lane.b32.xlu0 %v16196_v40, %s11414_s7  ;;  %5294 = vrot.lane.b32.xlu1 %v16199_v38, %s11414_s7  ;;  %v4473_v39 = vpop.xlane.xlu1 %4472  ;;  %v4477_v43 = vpop.xlane.xlu0 %4476  ;;  %v4553_v19 = vmul.f32 %v10688_v52, %v13838_v1  ;;  %v16267_v40 = vld [vmem:[#allocation60_spill] sm:$0xff]  ;;  %v4585_v38 = vpack.c.bf16 %v4555_v18, %v4554_v0 }
 0xb28   : > { %v4584_v54 = vpack.c.bf16 %v4553_v19, %v4552_v16 }
 0xb29   : > { %v10690_v12 = vpop.eup %10689 }
 0xb2a   : > { %v10692_v9 = vpop.eup %10691  ;;  %5139 = vrot.lane.b32.xlu0 %v16266_v35, %s11414_s7  ;;  %5298 = vrot.lane.b32.xlu1 %v16267_v40, %s11414_s7  ;;  %v4479_v62 = vpop.xlane.xlu0 %4478  ;;  %v4557_v49 = vmul.f32 %v10690_v12, %v13846_v33  ;;  %v16276_v35 = vld [vmem:[#allocation57_spill] sm:$0xff]  ;;  %v16277_v40 = vld [vmem:[#allocation67_spill] sm:$0xff] }
 0xb2b   : > { %v10694_v28 = vpop.eup %10693  ;;  %9767 = vmatprep.mubr.bf16.mxu0 %v4584_v54  ;;  %v4485_v44 = vpop.xlane.xlu1 %4484  ;;  %v4556_v1 = vmul.f32 %v10692_v9, %v13848_v46  ;;  %10697 = vrcp.f32 %v4479_v62 }
 0xb2c   : > { %9768 = vmatmul.mubr.bf16.vlgmr.msra.gmra.mrb[144].mxu0 %v4585_v38  ;;  %10699 = vrcp.f32 %v4473_v39  ;;  %v4558_v30 = vmul.f32 %v10694_v28, %v13840_v14  ;;  %v16272_v14 = vld [vmem:[#allocation53_spill] sm:$0xff]  ;;  %v16274_v39 = vld [vmem:[#allocation42_spill] sm:$0xff] }
 0xb2d   : > { %v10696_v56 = vpop.eup %10695  ;;  %v4586_v45 = vpack.c.bf16 %v4557_v49, %v4556_v1  ;;  %10701 = vrcp.f32 %v4477_v43  ;;  %9816 = vmatpush3.bf16.msra.mxu0 %v10317_v27  ;;  %v16275_v43 = vld [vmem:[#allocation68_spill] sm:$0xff] }
 0xb2e   : > { %5143 = vrot.lane.b32.xlu0 %v16268_v41, %s11414_s7  ;;  %5302 = vrot.lane.b32.xlu1 %v16269_v37, %s11414_s7  ;;  %v4475_v33 = vpop.xlane.xlu0 %4474  ;;  %v4559_v34 = vmul.f32 %v10696_v56, %v13854_v24  ;;  %v16273_v24 = vld [vmem:[#allocation61_spill] sm:$0xff]  ;;  %v16282_v37 = vld [vmem:[#allocation50_spill] sm:$0xff] }
 0xb2f   : > { %9771 = vmatprep.mubr.bf16.mxu0 %v4586_v45  ;;  %10703 = vrcp.f32 %v4475_v33  ;;  %9817 = vmatprep.subr.bf16.mxu0 %v10318_v10  ;;  %v4481_v32 = vpop.xlane.xlu1 %4480  ;;  %v16280_v56 = vld [vmem:[#allocation65_spill] sm:$0xff] }
 0xb30   : > { %v4587_v46 = vpack.c.bf16 %v4559_v34, %v4558_v30  ;;  %10705 = vrcp.f32 %v4481_v32  ;;  %v16281_v45 = vld [vmem:[#allocation73_spill] sm:$0xff]  ;;  %v16285_v34 = vld [vmem:[#allocation58_spill] sm:$0xff] }
 0xb31   : > { %9818 = vmatpush3.bf16.msra.mxu0 %v10318_v10  ;;  %v16286_v32 = vld [vmem:[#allocation66_spill] sm:$0xff] }
 0xb32   : > { %5115 = vrot.lane.b32.xlu0 %v16270_v7, %s11414_s7  ;;  %5306 = vrot.lane.b32.xlu1 %v16271_v51, %s11414_s7  ;;  %v4487_v21 = vpop.xlane.xlu0 %4486 }
 0xb33   : > { %10707 = vrcp.f32 %v4487_v21  ;;  %v16287_v21 = vld [vmem:[#allocation78_spill] sm:$0xff] }
 0xb34   : > { %9772 = vmatmul.mubr.bf16.gmra.mrb[148].mxu0 %v4587_v46  ;;  %10709 = vrcp.f32 %v4485_v44 }
 0xb35   : > { %v10698_v26 = vpop.eup %10697 }
 0xb36   : > { %5308 = vrot.lane.b32.xlu0 %v16272_v14, %s11414_s7  ;;  %5775 = vrot.lane.b32.xlu1 %v16273_v24, %s11414_s7  ;;  %v4483_v58 = vpop.xlane.xlu0 %4482  ;;  %v10700_v13 = vpop.eup %10699  ;;  %v4563_v16 = vmul.f32 %v10698_v26, %v13864_v15 }
 0xb37   : > { %10711 = vrcp.f32 %v4483_v58  ;;  %v10702_v52 = vpop.eup %10701  ;;  %v4560_v19 = vmul.f32 %v10700_v13, %v13860_v8  ;;  %v16278_v8 = vld [vmem:[#allocation46_spill] sm:$0xff] }
 0xb38   : > { %v4562_v54 = vmul.f32 %v10702_v52, %v13858_v53  ;;  %v16288_v52 = vld [vmem:[#allocation62_spill] sm:$0xff] }
 0xb39   : > { %v10704_v18 = vpop.eup %10703 }
 0xb3a   : > { %5119 = vrot.lane.b32.xlu0 %v16274_v39, %s11414_s7  ;;  %5781 = vrot.lane.b32.xlu1 %v16275_v43, %s11414_s7  ;;  %v4561_v0 = vmul.f32 %v10704_v18, %v13870_v4  ;;  %v10706_v9 = vpop.eup %10705  ;;  %v4589_v62 = vpack.c.bf16 %v4563_v16, %v4562_v54  ;;  %v16279_v4 = vld [vmem:[#allocation69_spill] sm:$0xff]  ;;  %v16289_v16 = vld [vmem:[#allocation64_spill] sm:$0xff] }
 0xb3b   : > { %v4564_v53 = vmul.f32 %v10706_v9, %v13872_v22  ;;  %v16283_v22 = vld [vmem:[#allocation77_spill] sm:$0xff] }
 0xb3c   : > { %v4588_v12 = vpack.c.bf16 %v4561_v0, %v4560_v19 }
 0xb3d   : > { %v10708_v38 = vpop.eup %10707 }
 0xb3e   : > { %5312 = vrot.lane.b32.xlu0 %v16276_v35, %s11414_s7  ;;  %5783 = vrot.lane.b32.xlu1 %v16277_v40, %s11414_s7  ;;  %v10710_v49 = vpop.eup %10709  ;;  %v4567_v44 = vmul.f32 %v10708_v38, %v13876_v17 }
 0xb3f   : > { %9775 = vmatprep.mubr.bf16.mxu0 %v4588_v12  ;;  %v4566_v27 = vmul.f32 %v10710_v49, %v13866_v50 }
 0xb40   : > { %9776 = vmatmul.mubr.bf16.gmra.mrb[152].mxu0 %v4589_v62  ;;  %v16291_v62 = vld [vmem:[#allocation70_spill] sm:$0xff] }
 0xb41   : > { %v10712_v15 = vpop.eup %10711  ;;  %v4591_v41 = vpack.c.bf16 %v4567_v44, %v4566_v27 }
 0xb42   : > { %5123 = vrot.lane.b32.xlu0 %v16278_v8, %s11414_s7  ;;  %5787 = vrot.lane.b32.xlu1 %v16279_v4, %s11414_s7  ;;  %v4565_v28 = vmul.f32 %v10712_v15, %v13879_v48  ;;  %v16284_v48 = vld [vmem:[#allocation54_spill] sm:$0xff] }
 0xb44   : > { %v4590_v1 = vpack.c.bf16 %v4565_v28, %v4564_v53  ;;  %v16292_v28 = vld [vmem:[#allocation74_spill] sm:$0xff] }
 0xb46   : > { %5316 = vrot.lane.b32.xlu0 %v16280_v56, %s11414_s7  ;;  %5896 = vrot.lane.b32.xlu1 %v16281_v45, %s11414_s7 }
 0xb47   : > { %9779 = vmatprep.mubr.bf16.mxu0 %v4590_v1 }
 0xb48   : > { %9780 = vmatmul.mubr.bf16.gmra.mrb[156].mxu0 %v4591_v41 }
 0xb4a   : > { %5127 = vrot.lane.b32.xlu0 %v16282_v37, %s11414_s7  ;;  %5898 = vrot.lane.b32.xlu1 %v16227_v61, %s11414_s7 }
 0xb4e   : > { %5320 = vrot.lane.b32.xlu0 %v16283_v22, %s11414_s7  ;;  %v4493_v17 = vpop.xlane.xlu1 %4492 }
 0xb50   : > { %v4495_v50 = vpop.xlane.xlu0 %4494 }
 0xb52   : > { %5292 = vrot.lane.b32.xlu0 %v16284_v48, %s11414_s7  ;;  %v4489_v33 = vpop.xlane.xlu1 %4488 }
 0xb53   : > { %10713 = vrcp.f32 %v4489_v33 }
 0xb54   : > { %v4491_v30 = vpop.xlane.xlu0 %4490 }
 0xb55   : > { %10715 = vrcp.f32 %v4491_v30 }
 0xb56   : > { %5296 = vrot.lane.b32.xlu0 %v16285_v34, %s11414_s7  ;;  %v4501_v10 = vpop.xlane.xlu1 %4500  ;;  %10717 = vrcp.f32 %v4495_v50 }
 0xb58   : > { %v4503_v46 = vpop.xlane.xlu0 %4502 }
 0xb5a   : > { %5300 = vrot.lane.b32.xlu0 %v16286_v32, %s11414_s7  ;;  %v4497_v61 = vpop.xlane.xlu1 %4496 }
 0xb5c   : > { %v4499_v7 = vpop.xlane.xlu0 %4498 }
 0xb5d   : > { %v10714_v51 = vpop.eup %10713  ;;  %10719 = vrcp.f32 %v4499_v7 }
 0xb5e   : > { %5304 = vrot.lane.b32.xlu0 %v16287_v21, %s11414_s7  ;;  %v4509_v14 = vpop.xlane.xlu1 %4508  ;;  %v4568_v26 = vmul.f32 %v10714_v51, %v13897_v23  ;;  %10721 = vrcp.f32 %v4493_v17 }
 0xb5f   : > { %v10716_v24 = vpop.eup %10715  ;;  %10723 = vrcp.f32 %v4497_v61 }
 0xb60   : > { %v4511_v58 = vpop.xlane.xlu0 %4510  ;;  %v4569_v13 = vmul.f32 %v10716_v24, %v13901_v20  ;;  %10725 = vrcp.f32 %v4503_v46  ;;  %v10718_v23 = vpop.eup %10717  ;;  %v16290_v20 = vld [vmem:[#allocation63_spill] sm:$0xff] }
 0xb61   : > { %v4571_v40 = vmul.f32 %v10718_v23, %v13893_v60 }
 0xb62   : > { %5773 = vrot.lane.b32.xlu0 %v16288_v52, %s11414_s7  ;;  %v4505_v18 = vpop.xlane.xlu1 %4504  ;;  %v4592_v39 = vpack.c.bf16 %v4569_v13, %v4568_v26 }
 0xb64   : > { %9799 = vmatprep.mubr.bf16.mxu1 %v4592_v39  ;;  %v4507_v43 = vpop.xlane.xlu0 %4506 }
 0xb65   : > { %10727 = vrcp.f32 %v4507_v43 }
 0xb66   : > { %5777 = vrot.lane.b32.xlu0 %v16289_v16, %s11414_s7  ;;  %v4517_v19 = vpop.xlane.xlu1 %4516  ;;  %10729 = vrcp.f32 %v4501_v10 }
 0xb67   : > { %v10720_v12 = vpop.eup %10719  ;;  %10731 = vrcp.f32 %v4505_v18 }
 0xb68   : > { %v4734_v0 = vpop.permute.xlu0 %4733  ;;  %v10722_v9 = vpop.eup %10721  ;;  %v4573_v49 = vmul.f32 %v10720_v12, %v13916_v36  ;;  %10733 = vrcp.f32 %v4511_v58 }
 0xb69   : > { %9795 = vmatprep.subr.bf16.mxu1 %v4734_v0  ;;  %v10724_v35 = vpop.eup %10723  ;;  %v4570_v15 = vmul.f32 %v10722_v9, %v13889_v29  ;;  %10735 = vrcp.f32 %v4509_v14 }
 0xb6a   : > { %5779 = vrot.lane.b32.xlu0 %v16290_v20, %s11414_s7  ;;  %v4513_v54 = vpop.xlane.xlu1 %4512  ;;  %9796 = vmatpush3.bf16.msra.mxu1 %v4734_v0  ;;  %v4572_v8 = vmul.f32 %v10724_v35, %v13913_v11  ;;  %v10726_v53 = vpop.eup %10725 }
 0xb6b   : > { %v4593_v4 = vpack.c.bf16 %v4571_v40, %v4570_v15  ;;  %v4575_v36 = vmul.f32 %v10726_v53, %v13909_v55  ;;  %10737 = vrcp.f32 %v4513_v54 }
 0xb6c   : > { %v4594_v60 = vpack.c.bf16 %v4573_v49, %v4572_v8 }
 0xb6e   : > { %5785 = vrot.lane.b32.xlu0 %v16291_v62, %s11414_s7  ;;  %v4736_v38 = vpop.permute.xlu1 %4735 }
 0xb6f   : > { %9797 = vmatprep.subr.bf16.mxu1 %v4736_v38  ;;  %v10728_v44 = vpop.eup %10727 }
 0xb70   : > { %9798 = vmatpush3.bf16.msra.mxu1 %v4736_v38  ;;  %v10730_v1 = vpop.eup %10729  ;;  %v4577_v29 = vmul.f32 %v10728_v44, %v13929_v3 }
 0xb71   : > { %v10732_v27 = vpop.eup %10731  ;;  %v4574_v56 = vmul.f32 %v10730_v1, %v13905_v6 }
 0xb72   : > { %5894 = vrot.lane.b32.xlu0 %v16292_v28, %s11414_s7  ;;  %v4576_v11 = vmul.f32 %v10732_v27, %v13926_v42  ;;  %v10734_v41 = vpop.eup %10733  ;;  %v5134_v17 = vpop.permute.xlu1 %5133 }
 0xb73   : > { %9800 = vmatmul.mubr.bf16.vlgmr.msra.gmra.mrb[176].mxu1 %v4593_v4  ;;  %v4595_v45 = vpack.c.bf16 %v4575_v36, %v4574_v56  ;;  %v10736_v22 = vpop.eup %10735  ;;  %v4579_v50 = vmul.f32 %v10734_v41, %v13923_v57  ;;  %v5175_v39 = vsel %vm1723_vm0, %v5134_v17, 0 }
 0xb74   : > { %9803 = vmatprep.mubr.bf16.mxu1 %v4594_v60  ;;  %v4596_v37 = vpack.c.bf16 %v4577_v29, %v4576_v11  ;;  %v4578_v48 = vmul.f32 %v10736_v22, %v13920_v59 }
 0xb75   : > { %v10738_v32 = vpop.eup %10737 }
 0xb76   : > { %v4597_v33 = vpack.c.bf16 %v4579_v50, %v4578_v48  ;;  %v5136_v30 = vpop.permute.xlu1 %5135  ;;  %v4580_v51 = vmul.f32 %v10738_v32, %v13935_v63 }
 0xb7a   : > { %v5138_v55 = vpop.permute.xlu1 %5137 }
 0xb7b   : > { %9804 = vmatmul.mubr.bf16.gmra.mrb[180].mxu1 %v4595_v45  ;;  %v5181_v20 = vsel %vm1723_vm0, %v5138_v55, 0 }
 0xb7c   : > { %9807 = vmatprep.mubr.bf16.mxu1 %v4596_v37 }
 0xb7e   : > { %v5142_v3 = vpop.permute.xlu1 %5141 }
 0xb7f   : > { %v5187_v49 = vsel %vm1723_vm0, %v5142_v3, 0 }
 0xb82   : > { %v14066_v34 = vpop.permute.xlu1 %5145 }
 0xb83   : > { %9808 = vmatmul.mubr.bf16.gmra.mrb[184].mxu1 %v4597_v33  ;;  %v5193_v27 = vsel %vm1723_vm0, %v14066_v34, 0 }
 0xb86   : > { %v14068_v42 = vpop.permute.xlu1 %5117 }
 0xb8a   : > { %v14070_v46 = vpop.permute.xlu1 %5310 }
 0xb8e   : > { %v5122_v24 = vpop.permute.xlu1 %5121 }
 0xb92   : > { %v14081_v16 = vpop.permute.xlu1 %5314 }
 0xb99   : > { %v4515_v6 = vpop.xlane.xlu0 %4514 }
 0xb9a   : > { %10739 = vrcp.f32 %v4515_v6 }
 0xb9b   : > { %10741 = vrcp.f32 %v4517_v19 }
 0xb9d   : > { %v4519_v10 = vpop.xlane.xlu0 %4518 }
 0xb9e   : > { %10743 = vrcp.f32 %v4519_v10 }
 0xba1   : > { %v5132_v57 = vpop.permute.xlu0 %5131 }
 0xba2   : > { %10159 = vmatprep.subr.msk.bf16.mxu1 %vm1723_vm0, %v5132_v57  ;;  %v5172_v59 = vsel %vm1723_vm0, %v5132_v57, 0 }
 0xba3   : > { %9852 = vmatpush3.bf16.xpose.msra.mxu1 %v5172_v59 }
 0xba4   : > { %v10740_v61 = vpop.eup %10739  ;;  %10160 = vmatprep.subr.msk.bf16.mxu1 %vm1723_vm0, %v5134_v17 }
 0xba5   : > { %v5140_v7 = vpop.permute.xlu0 %5139  ;;  %v4581_v21 = vmul.f32 %v10740_v61, %v13958_v47  ;;  %v10742_v14 = vpop.eup %10741  ;;  %v5352_v61 = vsel %vm1723_vm0, %v14070_v46, 0 }
 0xba6   : > { %v4582_v52 = vmul.f32 %v10742_v14, %v13932_v25  ;;  %v5178_v25 = vsel %vm1723_vm0, %v5136_v30, 0  ;;  %v5184_v35 = vsel %vm1723_vm0, %v5140_v7, 0 }
 0xba7   : > { %v4598_v58 = vpack.c.bf16 %v4581_v21, %v4580_v51 }
 0xba8   : > { %v10744_v26 = vpop.eup %10743 }
 0xba9   : > { %9811 = vmatprep.mubr.bf16.mxu1 %v4598_v58  ;;  %v5144_v13 = vpop.permute.xlu0 %5143  ;;  %v4583_v18 = vmul.f32 %v10744_v26, %v13963_v2  ;;  %v5126_v2 = vpop.permute.xlu1 %5125 }
 0xbaa   : > { %v5190_v28 = vsel %vm1723_vm0, %v5144_v13, 0 }
 0xbab   : > { %9854 = vmatpush3.bf16.xpose.msra.mxu1 %v5175_v39  ;;  %v4599_v43 = vpack.c.bf16 %v4583_v18, %v4582_v52 }
 0xbac   : > { %10161 = vmatprep.subr.msk.bf16.mxu1 %vm1723_vm0, %v5136_v30 }
 0xbad   : > { %9812 = vmatmul.mubr.bf16.gmra.mrb[188].mxu1 %v4599_v43  ;;  %v5116_v63 = vpop.permute.xlu0 %5115  ;;  %v14090_v0 = vpop.permute.xlu1 %5318  ;;  %v5358_v43 = vsel %vm1723_vm0, %v14081_v16, 0 }
 0xbae   : > { %9867 = vmatprep.mubr.msk.bf16.mxu1 %vm1723_vm0, %v5116_v63 }
 0xbb1   : > { %v14084_v47 = vpop.permute.xlu0 %5308  ;;  %v5130_v12 = vpop.permute.xlu1 %5129 }
 0xbb2   : > { %10167 = vmatprep.subr.msk.bf16.mxu0 %vm1723_vm0, %v14084_v47 }
 0xbb3   : > { %9856 = vmatpush3.bf16.xpose.msra.mxu1 %v5178_v25  ;;  %v5364_v25 = vsel %vm1723_vm0, %v14090_v0, 0 }
 0xbb4   : > { %10162 = vmatprep.subr.msk.bf16.mxu1 %vm1723_vm0, %v5138_v55 }
 0xbb5   : > { %v5120_v19 = vpop.permute.xlu0 %5119  ;;  %v14100_v40 = vpop.permute.xlu1 %5322 }
 0xbb9   : > { %v14092_v23 = vpop.permute.xlu0 %5312  ;;  %v14105_v15 = vpop.permute.xlu1 %5294 }
 0xbba   : > { %v5355_v58 = vsel %vm1723_vm0, %v14092_v23, 0 }
 0xbbb   : > { %9858 = vmatpush3.bf16.xpose.msra.mxu1 %v5181_v20 }
 0xbbc   : > { %10163 = vmatprep.subr.msk.bf16.mxu1 %vm1723_vm0, %v5140_v7 }
 0xbbd   : > { %v5124_v54 = vpop.permute.xlu0 %5123  ;;  %v14110_v4 = vpop.permute.xlu1 %5298 }
 0xbc1   : > { %v14096_v9 = vpop.permute.xlu0 %5316  ;;  %v14119_v44 = vpop.permute.xlu1 %5302 }
 0xbc3   : > { %9860 = vmatpush3.bf16.xpose.msra.mxu1 %v5184_v35 }
 0xbc4   : > { %10164 = vmatprep.subr.msk.bf16.mxu1 %vm1723_vm0, %v5142_v3 }
 0xbc5   : > { %v5128_v62 = vpop.permute.xlu0 %5127  ;;  %v14125_v36 = vpop.permute.xlu1 %5306 }
 0xbc9   : > { %v14102_v38 = vpop.permute.xlu0 %5320  ;;  %v5776_v56 = vpop.permute.xlu1 %5775 }
 0xbcb   : > { %9862 = vmatpush3.bf16.xpose.msra.mxu1 %v5187_v49 }
 0xbcc   : > { %10165 = vmatprep.subr.msk.bf16.mxu1 %vm1723_vm0, %v5144_v13 }
 0xbcd   : > { %v14108_v8 = vpop.permute.xlu0 %5292  ;;  %v5782_v41 = vpop.permute.xlu1 %5781 }
 0xbd1   : > { %v14112_v53 = vpop.permute.xlu0 %5296  ;;  %v5784_v37 = vpop.permute.xlu1 %5783 }
 0xbd3   : > { %9864 = vmatpush3.bf16.xpose.msra.mxu1 %v5190_v28 }
 0xbd4   : > { %10166 = vmatprep.subr.msk.bf16.mxu1 %vm1723_vm0, %v14066_v34  ;;  %v5349_v34 = vsel %vm1723_vm0, %v14084_v47, 0  ;;  %v5361_v47 = vsel %vm1723_vm0, %v14096_v9, 0 }
 0xbd5   : > { %v14117_v60 = vpop.permute.xlu0 %5300  ;;  %v5788_v17 = vpop.permute.xlu1 %5787 }
 0xbd9   : > { %v14121_v1 = vpop.permute.xlu0 %5304 }
 0xbdb   : > { %9866 = vmatpush3.bf16.xpose.msra.mxu1 %v5193_v27 }
 0xbdd   : > { %v5774_v29 = vpop.permute.xlu0 %5773 }
 0xbde   : > { %9915 = vmatprep.subr.bf16.mxu1 %v5774_v29 }
 0xbe1   : > { %v5778_v11 = vpop.permute.xlu0 %5777 }
 0xbe2   : > { %9868 = vmatmul.mubr.msk.bf16.vlgmr.msra.gmra.mrb[192].mxu1 %vm1723_vm0, %v14068_v42 }
 0xbe3   : > { %9871 = vmatprep.mubr.msk.bf16.mxu1 %vm1723_vm0, %v5120_v19  ;;  %9916 = vmatpush3.bf16.msra.mxu1 %v5774_v29 }
 0xbe4   : > { %9917 = vmatprep.subr.bf16.mxu1 %v5776_v56 }
 0xbe5   : > { %v5780_v45 = vpop.permute.xlu0 %5779 }
 0xbe7   : > { %9918 = vmatpush3.bf16.msra.mxu1 %v5776_v56 }
 0xbe8   : > { %9919 = vmatprep.subr.bf16.mxu1 %v5778_v11 }
 0xbe9   : > { %v5786_v22 = vpop.permute.xlu0 %5785 }
 0xbea   : > { %9872 = vmatmul.mubr.msk.bf16.gmra.mrb[196].mxu1 %vm1723_vm0, %v5122_v24 }
 0xbeb   : > { %9875 = vmatprep.mubr.msk.bf16.mxu1 %vm1723_vm0, %v5124_v54  ;;  %9920 = vmatpush3.bf16.msra.mxu1 %v5778_v11 }
 0xbec   : > { %9921 = vmatprep.subr.bf16.mxu1 %v5780_v45 }
 0xbed   : > { %v5895_v19 = vpop.permute.xlu0 %5894 }
 0xbef   : > { %9922 = vmatpush3.bf16.msra.mxu1 %v5780_v45 }
 0xbf0   : > { %9923 = vmatprep.subr.bf16.mxu1 %v5782_v41 }
 0xbf2   : > { %9876 = vmatmul.mubr.msk.bf16.gmra.mrb[200].mxu1 %vm1723_vm0, %v5126_v2  ;;  %v5370_v2 = vsel %vm1723_vm0, %v14100_v40, 0 }
 0xbf3   : > { %9879 = vmatprep.mubr.msk.bf16.mxu1 %vm1723_vm0, %v5128_v62  ;;  %9924 = vmatpush3.bf16.msra.mxu1 %v5782_v41 }
 0xbf4   : > { %9925 = vmatprep.subr.bf16.mxu1 %v5784_v37 }
 0xbf7   : > { %9926 = vmatpush3.bf16.msra.mxu1 %v5784_v37 }
 0xbf8   : > { %9927 = vmatprep.subr.bf16.mxu1 %v5786_v22 }
 0xbfa   : > { %9880 = vmatmul.mubr.msk.bf16.gmra.mrb[204].mxu1 %vm1723_vm0, %v5130_v12 }
 0xbfb   : > { %9928 = vmatpush3.bf16.msra.mxu1 %v5786_v22 }
 0xbfc   : > { %9929 = vmatprep.subr.bf16.mxu1 %v5788_v17 }
 0xbff   : > { %v9769_v50 = vpop.f32.mrb[144].mxu0  ;;  %9930 = vmatpush3.bf16.msra.mxu1 %v5788_v17 }
 0xc00   : > { %v4658_v48 = vpop.f32.mrb[145].mxu0 }
 0xc01   : > { %v9770_v33 = vpop.f32.mrb[146].mxu0 }
 0xc02   : > { %v4843_v30 = vpack.c.bf16 %v9770_v33, %v9769_v50  ;;  %v4661_v55 = vpop.f32.mrb[147].mxu0 }
 0xc03   : > { %v4842_v3 = vpack.c.bf16 %v4661_v55, %v4658_v48 }
 0xc05   : > { %9819 = vmatprep.mubr.msk.bf16.mxu0 %vm1723_vm0, %v4842_v3 }
 0xc06   : > { %9820 = vmatmul.mubr.msk.bf16.vlgmr.msra.gmra.mrb[112].mxu0 %vm1723_vm0, %v4843_v30  ;;  %v5897_v30 = vpop.permute.xlu1 %5896 }
 0xc07   : > { %9884 = vmatpush3.bf16.xpose.msra.mxu0 %v5349_v34  ;;  %v9773_v6 = vpop.f32.mrb[148].mxu0  ;;  %v14203_v34 = vld [vmem:[#allocation8 + $0x8] sm:$0xff] }
 0xc08   : > { %10168 = vmatprep.subr.msk.bf16.mxu0 %vm1723_vm0, %v14070_v46  ;;  %v4674_v42 = vpop.f32.mrb[149].mxu0 }
 0xc09   : > { %v9774_v10 = vpop.f32.mrb[150].mxu0 }
 0xc0a   : > { %v4845_v57 = vpack.c.bf16 %v9774_v10, %v9773_v6  ;;  %v4677_v32 = vpop.f32.mrb[151].mxu0  ;;  %v5899_v55 = vpop.permute.xlu1 %5898 }
 0xc0b   : > { %v4844_v59 = vpack.c.bf16 %v4677_v32, %v4674_v42  ;;  %v14212_v42 = vld [vmem:[#allocation8 + $0x18] sm:$0xff] }
 0xc0d   : > { %9823 = vmatprep.mubr.msk.bf16.mxu0 %vm1723_vm0, %v4844_v59  ;;  %v14215_v59 = vld [vmem:[#allocation8 + $0x38] sm:$0xff] }
 0xc0e   : > { %9824 = vmatmul.mubr.msk.bf16.gmra.mrb[116].mxu0 %vm1723_vm0, %v4845_v57 }
 0xc0f   : > { %9886 = vmatpush3.bf16.xpose.msra.mxu0 %v5352_v61 }
 0xc10   : > { %10169 = vmatprep.subr.msk.bf16.mxu0 %vm1723_vm0, %v14092_v23 }
 0xc13   : > { %v9777_v7 = vpop.f32.mrb[152].mxu0 }
 0xc14   : > { %v4690_v51 = vpop.f32.mrb[153].mxu0 }
 0xc15   : > { %v9778_v21 = vpop.f32.mrb[154].mxu0 }
 0xc16   : > { %v4847_v14 = vpack.c.bf16 %v9778_v21, %v9777_v7  ;;  %v4693_v24 = vpop.f32.mrb[155].mxu0 }
 0xc17   : > { %v4846_v26 = vpack.c.bf16 %v4693_v24, %v4690_v51  ;;  %9888 = vmatpush3.bf16.xpose.msra.mxu0 %v5355_v58  ;;  %v14220_v51 = vld [vmem:[#allocation8 + $0x30] sm:$0xff] }
 0xc18   : > { %10170 = vmatprep.subr.msk.bf16.mxu0 %vm1723_vm0, %v14081_v16  ;;  %v5367_v16 = vsel %vm1723_vm0, %v14102_v38, 0 }
 0xc19   : > { %9827 = vmatprep.mubr.msk.bf16.mxu0 %vm1723_vm0, %v4846_v26  ;;  %v14229_v26 = vld [vmem:[#allocation8 + $0x20] sm:$0xff] }
 0xc1a   : > { %9828 = vmatmul.mubr.msk.bf16.gmra.mrb[120].mxu0 %vm1723_vm0, %v4847_v14  ;;  %v14224_v14 = vld [vmem:[#allocation8 + $0x28] sm:$0xff] }
 0xc1b   : > { %v9781_v46 = vpop.f32.mrb[156].mxu0 }
 0xc1c   : > { %v4706_v13 = vpop.f32.mrb[157].mxu0 }
 0xc1d   : > { %v9782_v52 = vpop.f32.mrb[158].mxu0 }
 0xc1e   : > { %v4849_v18 = vpack.c.bf16 %v9782_v52, %v9781_v46  ;;  %v4709_v39 = vpop.f32.mrb[159].mxu0 }
 0xc1f   : > { %v4848_v63 = vpack.c.bf16 %v4709_v39, %v4706_v13  ;;  %9890 = vmatpush3.bf16.xpose.msra.mxu0 %v5358_v43 }
 0xc20   : > { %10171 = vmatprep.subr.msk.bf16.mxu0 %vm1723_vm0, %v14096_v9 }
 0xc21   : > { %9831 = vmatprep.mubr.msk.bf16.mxu0 %vm1723_vm0, %v4848_v63  ;;  %v14241_v63 = vld [vmem:[#allocation8 + $0x50] sm:$0xff] }
 0xc22   : > { %9832 = vmatmul.mubr.msk.bf16.gmra.mrb[124].mxu0 %vm1723_vm0, %v4849_v18  ;;  %v14235_v18 = vld [vmem:[#allocation8 + $0x58] sm:$0xff] }
 0xc27   : > { %9892 = vmatpush3.bf16.xpose.msra.mxu0 %v5361_v47 }
 0xc28   : > { %10172 = vmatprep.subr.msk.bf16.mxu0 %vm1723_vm0, %v14090_v0 }
 0xc2f   : > { %9894 = vmatpush3.bf16.xpose.msra.mxu0 %v5364_v25  ;;  %v14247_v25 = vld [vmem:[#allocation8 + $0x48] sm:$0xff] }
 0xc30   : > { %10173 = vmatprep.subr.msk.bf16.mxu0 %vm1723_vm0, %v14102_v38 }
 0xc37   : > { %9896 = vmatpush3.bf16.xpose.msra.mxu0 %v5367_v16 }
 0xc38   : > { %10174 = vmatprep.subr.msk.bf16.mxu0 %vm1723_vm0, %v14100_v40 }
 0xc3f   : > { %9898 = vmatpush3.bf16.xpose.msra.mxu0 %v5370_v2 }
 0xc40   : > { %9947 = vmatprep.subr.bf16.mxu0 %v5895_v19 }
 0xc46   : > { %v9801_v23 = vpop.f32.mrb[176].mxu1 }
 0xc47   : > { %v4779_v20 = vpop.f32.mrb[177].mxu1 }
 0xc48   : > { %v9802_v0 = vpop.f32.mrb[178].mxu1 }
 0xc49   : > { %v4851_v54 = vpack.c.bf16 %v9802_v0, %v9801_v23  ;;  %v4782_v12 = vpop.f32.mrb[179].mxu1 }
 0xc4a   : > { %v4850_v9 = vpack.c.bf16 %v4782_v12, %v4779_v20 }
 0xc4c   : > { %9835 = vmatprep.mubr.msk.bf16.mxu0 %vm1723_vm0, %v4850_v9 }
 0xc4d   : > { %9836 = vmatmul.mubr.msk.bf16.gmra.mrb[128].mxu0 %vm1723_vm0, %v4851_v54  ;;  %v14259_v54 = vld [vmem:[#allocation8 + $0x78] sm:$0xff] }
 0xc4e   : > { %v9805_v35 = vpop.f32.mrb[180].mxu1 }
 0xc4f   : > { %v4795_v62 = vpop.f32.mrb[181].mxu1 }
 0xc50   : > { %v9806_v38 = vpop.f32.mrb[182].mxu1 }
 0xc51   : > { %v4853_v49 = vpack.c.bf16 %v9806_v38, %v9805_v35  ;;  %v4798_v28 = vpop.f32.mrb[183].mxu1  ;;  %v14265_v35 = vld [vmem:[#allocation8 + $0x70] sm:$0xff]  ;;  %v14271_v38 = vld [vmem:[#allocation8 + $0x68] sm:$0xff] }
 0xc52   : > { %v4852_v27 = vpack.c.bf16 %v4798_v28, %v4795_v62  ;;  %v14277_v28 = vld [vmem:[#allocation8 + $0x60] sm:$0xff] }
 0xc54   : > { %9839 = vmatprep.mubr.msk.bf16.mxu0 %vm1723_vm0, %v4852_v27 }
 0xc55   : > { %9840 = vmatmul.mubr.msk.bf16.gmra.mrb[132].mxu0 %vm1723_vm0, %v4853_v49 }
 0xc56   : > { %v9809_v40 = vpop.f32.mrb[184].mxu1 }
 0xc57   : > { %v4811_v29 = vpop.f32.mrb[185].mxu1 }
 0xc58   : > { %v9810_v56 = vpop.f32.mrb[186].mxu1 }
 0xc59   : > { %v4855_v11 = vpack.c.bf16 %v9810_v56, %v9809_v40  ;;  %v4814_v45 = vpop.f32.mrb[187].mxu1 }
 0xc5a   : > { %v4854_v41 = vpack.c.bf16 %v4814_v45, %v4811_v29 }
 0xc5c   : > { %9843 = vmatprep.mubr.msk.bf16.mxu0 %vm1723_vm0, %v4854_v41 }
 0xc5d   : > { %9844 = vmatmul.mubr.msk.bf16.gmra.mrb[136].mxu0 %vm1723_vm0, %v4855_v11 }
 0xc80   : > { %v9813_v37 = vpop.f32.mrb[188].mxu1 }
 0xc81   : > { %v4827_v22 = vpop.f32.mrb[189].mxu1 }
 0xc82   : > { %v9814_v17 = vpop.f32.mrb[190].mxu1 }
 0xc83   : > { %v4857_v50 = vpack.c.bf16 %v9814_v17, %v9813_v37  ;;  %v4830_v48 = vpop.f32.mrb[191].mxu1 }
 0xc84   : > { %v4856_v33 = vpack.c.bf16 %v4830_v48, %v4827_v22 }
 0xc86   : > { %9847 = vmatprep.mubr.msk.bf16.mxu0 %vm1723_vm0, %v4856_v33 }
 0xc87   : > { %9848 = vmatmul.mubr.msk.bf16.gmra.mrb[140].mxu0 %vm1723_vm0, %v4857_v50 }
 0xc88   : > { %9899 = vmatprep.mubr.msk.bf16.mxu0 %vm1723_vm0, %v14108_v8  ;;  %v14197_v8 = vld [vmem:[#allocation8 + $0x10] sm:$0xff] }
 0xc8f   : > { %9900 = vmatmul.mubr.msk.bf16.vlgmr.msra.gmra.mrb[160].mxu0 %vm1723_vm0, %v14105_v15 }
 0xc90   : > { %9948 = vmatpush3.bf16.msra.mxu0 %v5895_v19  ;;  %9903 = vmatprep.mubr.msk.bf16.mxu0 %vm1723_vm0, %v14112_v53  ;;  %v14253_v19 = vld [vmem:[#allocation8 + $0x40] sm:$0xff] }
 0xc91   : > { %9949 = vmatprep.subr.bf16.mxu0 %v5897_v30 }
 0xc94   : > { %9950 = vmatpush3.bf16.msra.mxu0 %v5897_v30 }
 0xc95   : > { %9951 = vmatprep.subr.bf16.mxu0 %v5899_v55 }
 0xc97   : > { %9904 = vmatmul.mubr.msk.bf16.gmra.mrb[164].mxu0 %vm1723_vm0, %v14110_v4 }
 0xc98   : > { %9952 = vmatpush3.bf16.msra.mxu0 %v5899_v55  ;;  %9907 = vmatprep.mubr.msk.bf16.mxu0 %vm1723_vm0, %v14117_v60 }
 0xc9f   : > { %9908 = vmatmul.mubr.msk.bf16.gmra.mrb[168].mxu0 %vm1723_vm0, %v14119_v44 }
 0xca0   : > { %9911 = vmatprep.mubr.msk.bf16.mxu0 %vm1723_vm0, %v14121_v1  ;;  %v14208_v1 = vld [vmem:[#allocation8] sm:$0xff] }
 0xca7   : > { %9912 = vmatmul.mubr.msk.bf16.gmra.mrb[172].mxu0 %vm1723_vm0, %v14125_v36 }
 0xcb5   : > { %v9869_v15 = vpop.f32.mrb[192].mxu1 }
 0xcb6   : > { %v14200_v53 = vadd.f32 %v14197_v8, %v9869_v15  ;;  %v5229_v4 = vpop.f32.mrb[193].mxu1 }
 0xcb7   : > { %v9870_v3 = vpop.f32.mrb[194].mxu1  ;;  %v5230_v36 = vadd.f32 %v14208_v1, %v5229_v4 }
 0xcb8   : > { %5473 = vmax.xlane.f32.xlu0 %v14200_v53  ;;  %v5232_v60 = vpop.f32.mrb[195].mxu1  ;;  %v5241_v10 = vadd.f32 %v14212_v42, %v9870_v3 }
 0xcb9   : > { %v14206_v44 = vadd.f32 %v14203_v34, %v5232_v60 }
 0xcbb   : > { %5471 = vmax.xlane.f32.xlu1 %v14206_v44 }
 0xcbc   : > { %5469 = vmax.xlane.f32.xlu0 %v5230_v36 }
 0xcbd   : > { %v9873_v6 = vpop.f32.mrb[196].mxu1 }
 0xcbe   : > { %v5245_v57 = vpop.f32.mrb[197].mxu1  ;;  %v5254_v21 = vadd.f32 %v14220_v51, %v9873_v6 }
 0xcbf   : > { %v9874_v32 = vpop.f32.mrb[198].mxu1  ;;  %v14232_v46 = vadd.f32 %v14229_v26, %v5245_v57 }
 0xcc0   : > { %v14218_v61 = vadd.f32 %v14215_v59, %v9874_v32  ;;  %5475 = vmax.xlane.f32.xlu0 %v5241_v10  ;;  %v5248_v7 = vpop.f32.mrb[199].mxu1 }
 0xcc1   : > { %v14227_v24 = vadd.f32 %v14224_v14, %v5248_v7 }
 0xcc2   : > { %5483 = vmax.xlane.f32.xlu1 %v14218_v61 }
 0xcc4   : > { %5481 = vmax.xlane.f32.xlu0 %v5254_v21 }
 0xcc5   : > { %v9877_v58 = vpop.f32.mrb[200].mxu1 }
 0xcc6   : > { %5479 = vmax.xlane.f32.xlu1 %v14227_v24  ;;  %v5261_v13 = vpop.f32.mrb[201].mxu1  ;;  %v14244_v47 = vadd.f32 %v14241_v63, %v9877_v58 }
 0xcc7   : > { %v9878_v52 = vpop.f32.mrb[202].mxu1  ;;  %v14256_v23 = vadd.f32 %v14253_v19, %v5261_v13 }
 0xcc8   : > { %v14238_v39 = vadd.f32 %v14235_v18, %v9878_v52  ;;  %5477 = vmax.xlane.f32.xlu0 %v14232_v46  ;;  %v5264_v43 = vpop.f32.mrb[203].mxu1 }
 0xcc9   : > { %v14250_v16 = vadd.f32 %v14247_v25, %v5264_v43 }
 0xcca   : > { %5491 = vmax.xlane.f32.xlu1 %v14238_v39 }
 0xccc   : > { %5489 = vmax.xlane.f32.xlu0 %v14244_v47 }
 0xccd   : > { %v9881_v2 = vpop.f32.mrb[204].mxu1 }
 0xcce   : > { %5487 = vmax.xlane.f32.xlu1 %v14250_v16  ;;  %v5277_v20 = vpop.f32.mrb[205].mxu1  ;;  %v14268_v62 = vadd.f32 %v14265_v35, %v9881_v2 }
 0xccf   : > { %v9882_v0 = vpop.f32.mrb[206].mxu1  ;;  %v14280_v27 = vadd.f32 %v14277_v28, %v5277_v20 }
 0xcd0   : > { %v14262_v12 = vadd.f32 %v14259_v54, %v9882_v0  ;;  %5485 = vmax.xlane.f32.xlu0 %v14256_v23  ;;  %v5280_v9 = vpop.f32.mrb[207].mxu1 }
 0xcd1   : > { %v14274_v49 = vadd.f32 %v14271_v38, %v5280_v9 }
 0xcd2   : > { %5499 = vmax.xlane.f32.xlu1 %v14262_v12 }
 0xcd4   : > { %5497 = vmax.xlane.f32.xlu0 %v14268_v62 }
 0xcd6   : > { %5495 = vmax.xlane.f32.xlu1 %v14274_v49 }
 0xcd8   : > { %5493 = vmax.xlane.f32.xlu0 %v14280_v27 }
 0xd45   : > { %v5474_v40 = vpop.xlane.xlu0 %5473 }
 0xd46   : > { %v5535_v29 = vsub.f32 %v14200_v53, %v5474_v40 }
 0xd48   : > { %v5569_v56 = vmul.f32 1.442695, %v5535_v29  ;;  %v5472_v45 = vpop.xlane.xlu1 %5471 }
 0xd49   : > { %v5470_v11 = vpop.xlane.xlu0 %5469  ;;  %v5534_v22 = vsub.f32 %v14206_v44, %v5472_v45 }
 0xd4a   : > { %10745 = vpow2.f32 %v5569_v56  ;;  %v5533_v41 = vsub.f32 %v5230_v36, %v5470_v11 }
 0xd4b   : > { %v5567_v30 = vmul.f32 1.442695, %v5534_v22 }
 0xd4c   : > { %v5565_v37 = vmul.f32 1.442695, %v5533_v41 }
 0xd4d   : > { %v5476_v17 = vpop.xlane.xlu0 %5475 }
 0xd4e   : > { %10747 = vpow2.f32 %v5565_v37  ;;  %v5536_v50 = vsub.f32 %v5241_v10, %v5476_v17 }
 0xd4f   : > { %v5484_v48 = vpop.xlane.xlu1 %5483 }
 0xd50   : > { %v5571_v33 = vmul.f32 1.442695, %v5536_v50  ;;  %v5540_v55 = vsub.f32 %v14218_v61, %v5484_v48 }
 0xd51   : > { %v5482_v15 = vpop.xlane.xlu0 %5481 }
 0xd52   : > { %10749 = vpow2.f32 %v5571_v33  ;;  %v5539_v4 = vsub.f32 %v5254_v21, %v5482_v15  ;;  %v5579_v36 = vmul.f32 1.442695, %v5540_v55 }
 0xd53   : > { %v5480_v53 = vpop.xlane.xlu1 %5479  ;;  %10751 = vpow2.f32 %v5567_v30 }
 0xd54   : > { %v14287_v3 = vpop.eup %10745  ;;  %v5577_v60 = vmul.f32 1.442695, %v5539_v4  ;;  %v5538_v6 = vsub.f32 %v14227_v24, %v5480_v53 }
 0xd55   : > { %5633 = vadd.xlane.f32.xlu1 %v14287_v3  ;;  %v5478_v44 = vpop.xlane.xlu0 %5477 }
 0xd56   : > { %10753 = vpow2.f32 %v5577_v60  ;;  %v5537_v10 = vsub.f32 %v14232_v46, %v5478_v44  ;;  %v5575_v7 = vmul.f32 1.442695, %v5538_v6 }
 0xd57   : > { %10755 = vpow2.f32 %v5579_v36  ;;  %v5492_v13 = vpop.xlane.xlu1 %5491 }
 0xd58   : > { %v14292_v57 = vpop.eup %10747  ;;  %v5573_v32 = vmul.f32 1.442695, %v5537_v10  ;;  %v5544_v20 = vsub.f32 %v14238_v39, %v5492_v13 }
 0xd59   : > { %5629 = vadd.xlane.f32.xlu1 %v14292_v57  ;;  %v5490_v61 = vpop.xlane.xlu0 %5489 }
 0xd5a   : > { %10757 = vpow2.f32 %v5573_v32  ;;  %v5543_v21 = vsub.f32 %v14244_v47, %v5490_v61  ;;  %v5587_v45 = vmul.f32 1.442695, %v5544_v20 }
 0xd5b   : > { %10759 = vpow2.f32 %v5575_v7  ;;  %v5488_v29 = vpop.xlane.xlu1 %5487 }
 0xd5c   : > { %v14296_v58 = vpop.eup %10749  ;;  %v5585_v24 = vmul.f32 1.442695, %v5543_v21  ;;  %v5542_v37 = vsub.f32 %v14250_v16, %v5488_v29 }
 0xd5d   : > { %5635 = vadd.xlane.f32.xlu1 %v14296_v58  ;;  %v5486_v52 = vpop.xlane.xlu0 %5485  ;;  %v14300_v43 = vpop.eup %10751 }
 0xd5e   : > { %v5541_v46 = vsub.f32 %v14256_v23, %v5486_v52  ;;  %10761 = vpow2.f32 %v5585_v24  ;;  %v5583_v33 = vmul.f32 1.442695, %v5542_v37 }
 0xd5f   : > { %v5500_v48 = vpop.xlane.xlu1 %5499 }
 0xd60   : > { %v14302_v2 = vpop.eup %10753  ;;  %v5581_v0 = vmul.f32 1.442695, %v5541_v46 }
 0xd61   : > { %5631 = vadd.xlane.f32.xlu1 %v14300_v43  ;;  %5641 = vadd.xlane.f32.xlu0 %v14302_v2  ;;  %v5498_v47 = vpop.xlane.xlu0 %5497  ;;  %v14309_v40 = vpop.eup %10755 }
 0xd62   : > { %v14307_v9 = vpop.f32.mrb[160].mxu0  ;;  %10763 = vpow2.f32 %v5581_v0  ;;  %v5547_v30 = vsub.f32 %v14268_v62, %v5498_v47 }
 0xd63   : > { %v14311_v56 = vpop.f32.mrb[161].mxu0  ;;  %10765 = vpow2.f32 %v5587_v45  ;;  %v5496_v36 = vpop.xlane.xlu1 %5495 }
 0xd64   : > { %v14313_v23 = vpop.eup %10757  ;;  %v9902_v11 = vpop.f32.mrb[162].mxu0  ;;  %v5593_v60 = vmul.f32 1.442695, %v5547_v30  ;;  %v5546_v62 = vsub.f32 %v14274_v49, %v5496_v36 }
 0xd65   : > { %v5409_v41 = vpop.f32.mrb[163].mxu0  ;;  %5643 = vadd.xlane.f32.xlu0 %v14309_v40  ;;  %5637 = vadd.xlane.f32.xlu1 %v14313_v23  ;;  %v5494_v39 = vpop.xlane.xlu0 %5493  ;;  %v14338_v52 = vadd.f32 %v14212_v42, %v9902_v11 }
 0xd66   : > { %v5545_v22 = vsub.f32 %v14280_v27, %v5494_v39  ;;  %v14319_v17 = vpop.eup %10759  ;;  %v5548_v27 = vsub.f32 %v14262_v12, %v5500_v48  ;;  %v5591_v12 = vmul.f32 1.442695, %v5546_v62  ;;  %v14345_v46 = vadd.f32 %v14203_v34, %v5409_v41 }
 0xd67   : > { %v14367_v41 = vadd.f32 %v14197_v8, %v14307_v9 }
 0xd68   : > { %v5589_v50 = vmul.f32 1.442695, %v5545_v22  ;;  %v14323_v4 = vpop.eup %10761  ;;  %v5595_v6 = vmul.f32 1.442695, %v5548_v27 }
 0xd69   : > { %5639 = vadd.xlane.f32.xlu0 %v14319_v17 }
 0xd6a   : > { %10767 = vpow2.f32 %v5589_v50  ;;  %v9905_v55 = vpop.f32.mrb[164].mxu0 }
 0xd6b   : > { %v5422_v15 = vpop.f32.mrb[165].mxu0  ;;  %10769 = vpow2.f32 %v5583_v33  ;;  %v14384_v8 = vadd.f32 %v14220_v51, %v9905_v55 }
 0xd6c   : > { %v9906_v53 = vpop.f32.mrb[166].mxu0  ;;  %v14327_v44 = vpop.eup %10763  ;;  %10771 = vpow2.f32 %v5593_v60 }
 0xd6d   : > { %v5425_v16 = vpop.f32.mrb[167].mxu0  ;;  %5649 = vadd.xlane.f32.xlu0 %v14323_v4  ;;  %v14331_v32 = vpop.eup %10765  ;;  %10773 = vpow2.f32 %v5595_v6  ;;  %v14352_v42 = vadd.f32 %v14215_v59, %v9906_v53 }
 0xd6e   : > { %10775 = vpow2.f32 %v5591_v12  ;;  %v14359_v34 = vadd.f32 %v14224_v14, %v5425_v16  ;;  %v14376_v14 = vadd.f32 %v14208_v1, %v14311_v56  ;;  %v14392_v1 = vadd.f32 %v14229_v26, %v5422_v15  ;;  %v16293_v26 = vld [vmem:[#allocation80_spill] sm:$0xff] }
 0xd71   : > { %5645 = vadd.xlane.f32.xlu0 %v14327_v44 }
 0xd72   : > { %v9909_v10 = vpop.f32.mrb[168].mxu0 }
 0xd73   : > { %v5438_v61 = vpop.f32.mrb[169].mxu0 }
 0xd74   : > { %v14333_v7 = vpop.eup %10767  ;;  %v9910_v21 = vpop.f32.mrb[170].mxu0  ;;  %v14400_v51 = vadd.f32 %v14253_v19, %v5438_v61 }
 0xd75   : > { %v5441_v13 = vpop.f32.mrb[171].mxu0  ;;  %5651 = vadd.xlane.f32.xlu0 %v14331_v32  ;;  %5653 = vadd.xlane.f32.xlu1 %v14333_v7  ;;  %v14340_v24 = vpop.eup %10769 }
 0xd76   : > { %v14347_v47 = vpop.eup %10771  ;;  %v14370_v59 = vadd.f32 %v14247_v25, %v5441_v13 }
 0xd77   : > { %v14354_v11 = vpop.eup %10773 }
 0xd78   : > { %v14361_v45 = vpop.eup %10775 }
 0xd79   : > { %5647 = vadd.xlane.f32.xlu0 %v14340_v24  ;;  %5507 = vmax.xlane.f32.xlu1 %v14338_v52 }
 0xd7a   : > { %v9913_v49 = vpop.f32.mrb[172].mxu0 }
 0xd7b   : > { %v5454_v20 = vpop.f32.mrb[173].mxu0  ;;  %v14379_v39 = vadd.f32 %v14265_v35, %v9913_v49  ;;  %v14396_v35 = vadd.f32 %v14241_v63, %v9909_v10  ;;  %v16294_v63 = vld [vmem:[#allocation79_spill] sm:$0xff] }
 0xd7c   : > { %v9914_v0 = vpop.f32.mrb[174].mxu0  ;;  %v14387_v25 = vadd.f32 %v14277_v28, %v5454_v20  ;;  %v14404_v28 = vadd.f32 %v14235_v18, %v9910_v21  ;;  %v16295_v18 = vld [vmem:[#allocation75_spill] sm:$0xff] }
 0xd7d   : > { %v5457_v29 = vpop.f32.mrb[175].mxu0  ;;  %5657 = vadd.xlane.f32.xlu0 %v14347_v47  ;;  %5503 = vmax.xlane.f32.xlu1 %v14345_v46  ;;  %v14410_v9 = vadd.f32 %v14259_v54, %v9914_v0 }
 0xd7e   : > { %v14416_v19 = vadd.f32 %v14271_v38, %v5457_v29 }
 0xd81   : > { %5659 = vadd.xlane.f32.xlu0 %v14354_v11  ;;  %5515 = vmax.xlane.f32.xlu1 %v14352_v42 }
 0xd85   : > { %5655 = vadd.xlane.f32.xlu0 %v14361_v45  ;;  %5511 = vmax.xlane.f32.xlu1 %v14359_v34 }
 0xd89   : > { %5505 = vmax.xlane.f32.xlu0 %v14367_v41  ;;  %5519 = vmax.xlane.f32.xlu1 %v14370_v59 }
 0xd8d   : > { %5501 = vmax.xlane.f32.xlu0 %v14376_v14  ;;  %5529 = vmax.xlane.f32.xlu1 %v14379_v39 }
 0xd91   : > { %5513 = vmax.xlane.f32.xlu0 %v14384_v8  ;;  %5525 = vmax.xlane.f32.xlu1 %v14387_v25 }
 0xd95   : > { %5509 = vmax.xlane.f32.xlu0 %v14392_v1 }
 0xd99   : > { %5521 = vmax.xlane.f32.xlu0 %v14396_v35 }
 0xd9d   : > { %5517 = vmax.xlane.f32.xlu0 %v14400_v51 }
 0xda1   : > { %5523 = vmax.xlane.f32.xlu0 %v14404_v28 }
 0xda2   : > { %5902 = vrot.lane.b32.xlu1 %v16293_v26, %s11414_s7 }
 0xda5   : > { %5531 = vmax.xlane.f32.xlu0 %v14410_v9 }
 0xda6   : > { %5904 = vrot.lane.b32.xlu1 %v16294_v63, %s11414_s7 }
 0xda9   : > { %5527 = vmax.xlane.f32.xlu0 %v14416_v19 }
 0xdbf   : > { %5900 = vrot.lane.b32.xlu0 %v16295_v18, %s11414_s7 }
 0xde2   : > { %v5634_v56 = vpop.xlane.xlu1 %5633 }
 0xde6   : > { %v5630_v37 = vpop.xlane.xlu1 %5629 }
 0xdea   : > { %v5636_v22 = vpop.xlane.xlu1 %5635 }
 0xdeb   : > { %10777 = vrcp.f32 %v5636_v22 }
 0xdec   : > { %10779 = vrcp.f32 %v5630_v37 }
 0xded   : > { %10781 = vrcp.f32 %v5634_v56 }
 0xdee   : > { %v5632_v54 = vpop.xlane.xlu1 %5631  ;;  %v5642_v50 = vpop.xlane.xlu0 %5641 }
 0xdef   : > { %10783 = vrcp.f32 %v5632_v54 }
 0xdf2   : > { %v5638_v48 = vpop.xlane.xlu1 %5637  ;;  %v5644_v33 = vpop.xlane.xlu0 %5643 }
 0xdf3   : > { %10785 = vrcp.f32 %v5644_v33 }
 0xdf4   : > { %10787 = vrcp.f32 %v5638_v48 }
 0xdf5   : > { %v10778_v38 = vpop.eup %10777  ;;  %10789 = vrcp.f32 %v5642_v50 }
 0xdf6   : > { %v5640_v30 = vpop.xlane.xlu0 %5639  ;;  %v10780_v55 = vpop.eup %10779  ;;  %v5728_v16 = vmul.f32 %v10778_v38, %v14296_v58 }
 0xdf7   : > { %10791 = vrcp.f32 %v5640_v30  ;;  %v10782_v15 = vpop.eup %10781  ;;  %v5725_v60 = vmul.f32 %v10780_v55, %v14292_v57 }
 0xdf8   : > { %v5727_v6 = vmul.f32 %v10782_v15, %v14287_v3 }
 0xdf9   : > { %v10784_v53 = vpop.eup %10783 }
 0xdfa   : > { %v5650_v27 = vpop.xlane.xlu0 %5649  ;;  %v5726_v36 = vmul.f32 %v10784_v53, %v14300_v43  ;;  %v5758_v10 = vpack.c.bf16 %v5728_v16, %v5727_v6 }
 0xdfc   : > { %v5757_v62 = vpack.c.bf16 %v5726_v36, %v5725_v60 }
 0xdfd   : > { %v10786_v61 = vpop.eup %10785 }
 0xdfe   : > { %9931 = vmatprep.mubr.bf16.mxu1 %v5757_v62  ;;  %v5646_v21 = vpop.xlane.xlu0 %5645  ;;  %v10788_v13 = vpop.eup %10787  ;;  %v5732_v20 = vmul.f32 %v10786_v61, %v14309_v40 }
 0xdff   : > { %9932 = vmatmul.mubr.bf16.vlgmr.msra.gmra.mrb[208].mxu1 %v5758_v10  ;;  %v10790_v12 = vpop.eup %10789  ;;  %v5729_v29 = vmul.f32 %v10788_v13, %v14313_v23 }
 0xe00   : > { %v5731_v43 = vmul.f32 %v10790_v12, %v14302_v2 }
 0xe01   : > { %v10792_v49 = vpop.eup %10791 }
 0xe02   : > { %v5654_v0 = vpop.xlane.xlu1 %5653  ;;  %v5652_v58 = vpop.xlane.xlu0 %5651  ;;  %v5730_v57 = vmul.f32 %v10792_v49, %v14319_v17  ;;  %v5760_v26 = vpack.c.bf16 %v5732_v20, %v5731_v43 }
 0xe03   : > { %10793 = vrcp.f32 %v5652_v58 }
 0xe04   : > { %v5759_v3 = vpack.c.bf16 %v5730_v57, %v5729_v29  ;;  %10795 = vrcp.f32 %v5646_v21 }
 0xe05   : > { %10797 = vrcp.f32 %v5650_v27 }
 0xe06   : > { %v5508_v63 = vpop.xlane.xlu1 %5507  ;;  %9935 = vmatprep.mubr.bf16.mxu1 %v5759_v3  ;;  %v5648_v18 = vpop.xlane.xlu0 %5647 }
 0xe07   : > { %10799 = vrcp.f32 %v5648_v18  ;;  %9936 = vmatmul.mubr.bf16.gmra.mrb[212].mxu1 %v5760_v26  ;;  %v5552_v10 = vsub.f32 %v14338_v52, %v5508_v63 }
 0xe0a   : > { %v5504_v56 = vpop.xlane.xlu1 %5503  ;;  %v5658_v40 = vpop.xlane.xlu0 %5657 }
 0xe0b   : > { %v5550_v37 = vsub.f32 %v14345_v46, %v5504_v56 }
 0xe0d   : > { %v5599_v22 = vmul.f32 1.442695, %v5550_v37  ;;  %v10794_v23 = vpop.eup %10793 }
 0xe0e   : > { %v14430_v54 = vpop.xlane.xlu1 %5515  ;;  %v5660_v17 = vpop.xlane.xlu0 %5659  ;;  %v5736_v33 = vmul.f32 %v10794_v23, %v14331_v32 }
 0xe0f   : > { %v10796_v2 = vpop.eup %10795  ;;  %10801 = vpow2.f32 %v5599_v22 }
 0xe10   : > { %v10798_v50 = vpop.eup %10797  ;;  %10803 = vrcp.f32 %v5660_v17  ;;  %v5733_v55 = vmul.f32 %v10796_v2, %v14327_v44 }
 0xe11   : > { %v10800_v48 = vpop.eup %10799  ;;  %10805 = vrcp.f32 %v5654_v0  ;;  %v5735_v53 = vmul.f32 %v10798_v50, %v14323_v4  ;;  %v5603_v0 = vmul.f32 1.442695, %v5552_v10 }
 0xe12   : > { %v5512_v38 = vpop.xlane.xlu1 %5511  ;;  %v5656_v30 = vpop.xlane.xlu0 %5655  ;;  %v5734_v15 = vmul.f32 %v10800_v48, %v14340_v24  ;;  %10807 = vrcp.f32 %v5658_v40 }
 0xe13   : > { %v5554_v46 = vsub.f32 %v14359_v34, %v5512_v38  ;;  %10809 = vrcp.f32 %v5656_v30  ;;  %v5762_v60 = vpack.c.bf16 %v5736_v33, %v5735_v53 }
 0xe14   : > { %v5761_v16 = vpack.c.bf16 %v5734_v15, %v5733_v55 }
 0xe15   : > { %v5607_v27 = vmul.f32 1.442695, %v5554_v46 }
 0xe16   : > { %9939 = vmatprep.mubr.bf16.mxu1 %v5761_v16  ;;  %v5506_v36 = vpop.xlane.xlu0 %5505  ;;  %v5520_v26 = vpop.xlane.xlu1 %5519 }
 0xe17   : > { %10811 = vpow2.f32 %v5607_v27  ;;  %v5551_v32 = vsub.f32 %v14367_v41, %v5506_v36  ;;  %9940 = vmatmul.mubr.bf16.gmra.mrb[216].mxu1 %v5762_v60  ;;  %v5558_v30 = vsub.f32 %v14370_v59, %v5520_v26 }
 0xe19   : > { %v14438_v6 = vpop.eup %10801  ;;  %v5601_v44 = vmul.f32 1.442695, %v5551_v32  ;;  %v5615_v55 = vmul.f32 1.442695, %v5558_v30 }
 0xe1a   : > { %5663 = vadd.xlane.f32.xlu0 %v14438_v6  ;;  %v5502_v24 = vpop.xlane.xlu0 %5501  ;;  %v10804_v62 = vpop.eup %10803 }
 0xe1b   : > { %v5549_v34 = vsub.f32 %v14376_v14, %v5502_v24  ;;  %v10806_v4 = vpop.eup %10805  ;;  %10813 = vpow2.f32 %v5601_v44  ;;  %v5740_v41 = vmul.f32 %v10804_v62, %v14354_v11  ;;  %v5530_v37 = vpop.xlane.xlu1 %5529 }
 0xe1c   : > { %v10808_v61 = vpop.eup %10807  ;;  %v5737_v49 = vmul.f32 %v10806_v4, %v14333_v7  ;;  %v5563_v53 = vsub.f32 %v14379_v39, %v5530_v37 }
 0xe1d   : > { %v5597_v21 = vmul.f32 1.442695, %v5549_v34  ;;  %v10810_v13 = vpop.eup %10809  ;;  %v5739_v14 = vmul.f32 %v10808_v61, %v14347_v47  ;;  %v5556_v47 = vsub.f32 %v14352_v42, %v14430_v54 }
 0xe1e   : > { %v5514_v12 = vpop.xlane.xlu0 %5513  ;;  %v5738_v20 = vmul.f32 %v10810_v13, %v14361_v45  ;;  %v16296_v45 = vmov 0   ;;  %v5625_v27 = vmul.f32 1.442695, %v5563_v53 }
 0xe1f   : > { %10815 = vpow2.f32 %v5597_v21  ;;  %v5555_v58 = vsub.f32 %v14384_v8, %v5514_v12  ;;  %v5764_v43 = vpack.c.bf16 %v5740_v41, %v5739_v14  ;;  %v5526_v54 = vpop.xlane.xlu1 %5525 }
 0xe20   : > { %v5763_v52 = vpack.c.bf16 %v5738_v20, %v5737_v49  ;;  %10817 = vpow2.f32 %v5603_v0 }
 0xe21   : > { %v14448_v29 = vpop.eup %10811  ;;  %v5609_v11 = vmul.f32 1.442695, %v5555_v58 }
 0xe22   : > { %5671 = vadd.xlane.f32.xlu0 %v14448_v29  ;;  %v5510_v57 = vpop.xlane.xlu0 %5509  ;;  %9943 = vmatprep.mubr.bf16.mxu1 %v5763_v52 }
 0xe23   : > { %v5553_v7 = vsub.f32 %v14392_v1, %v5510_v57  ;;  %9944 = vmatmul.mubr.bf16.gmra.mrb[220].mxu1 %v5764_v43  ;;  %10819 = vpow2.f32 %v5609_v11  ;;  %v5611_v1 = vmul.f32 1.442695, %v5556_v47  ;;  %v5903_v48 = vpop.permute.xlu1 %5902 }
 0xe24   : > { %6946 = vmatprep.mubr.bf16.mxu1 %v16296_v45 }
 0xe25   : > { %v14453_v3 = vpop.eup %10813  ;;  %v5605_v63 = vmul.f32 1.442695, %v5553_v7 }
 0xe26   : > { %v5522_v8 = vpop.xlane.xlu0 %5521  ;;  %5665 = vadd.xlane.f32.xlu1 %v14453_v3 }
 0xe27   : > { %10821 = vpow2.f32 %v5605_v63  ;;  %v5905_v38 = vpop.permute.xlu1 %5904  ;;  %v5559_v15 = vsub.f32 %v14396_v35, %v5522_v8  ;;  %v10319_v8 = vld [vmem:[%s11884_s19 + $0x30] sm:$0xff]  }
 0xe28   : > { %10823 = vpow2.f32 %v5611_v1 }
 0xe29   : > { %v14458_v18 = vpop.eup %10815  ;;  %10825 = vpow2.f32 %v5615_v55  ;;  %v5617_v46 = vmul.f32 1.442695, %v5559_v15 }
 0xe2a   : > { %v5518_v56 = vpop.xlane.xlu0 %5517  ;;  %5661 = vadd.xlane.f32.xlu1 %v14458_v18  ;;  %v14461_v40 = vpop.eup %10817 }
 0xe2b   : > { %10827 = vpow2.f32 %v5617_v46 }
 0xe2d   : > { %v14464_v23 = vpop.eup %10819 }
 0xe2e   : > { %v5524_v22 = vpop.xlane.xlu0 %5523  ;;  %5667 = vadd.xlane.f32.xlu1 %v14461_v40 }
 0xe2f   : > { %v5560_v39 = vsub.f32 %v14404_v28, %v5524_v22 }
 0xe31   : > { %v14467_v17 = vpop.eup %10821  ;;  %v5619_v32 = vmul.f32 1.442695, %v5560_v39 }
 0xe32   : > { %v5532_v42 = vpop.xlane.xlu0 %5531  ;;  %5673 = vadd.xlane.f32.xlu1 %v14464_v23  ;;  %v14472_v50 = vpop.eup %10823 }
 0xe33   : > { %v14481_v60 = vpop.eup %10825  ;;  %v5564_v24 = vsub.f32 %v14410_v9, %v5532_v42 }
 0xe35   : > { %v14484_v59 = vpop.eup %10827 }
 0xe36   : > { %v5528_v2 = vpop.xlane.xlu0 %5527  ;;  %5669 = vadd.xlane.f32.xlu1 %v14467_v17 }
 0xe37   : > { %v5562_v44 = vsub.f32 %v14416_v19, %v5528_v2 }
 0xe38   : > { %5906 = vrot.lane.b32.xlu0 %v16167_v31, %s11414_s7  ;;  %v5561_v31 = vsub.f32 %v14387_v25, %v5526_v54  ;;  %v5557_v25 = vsub.f32 %v14400_v51, %v5518_v56  ;;  %v5627_v51 = vmul.f32 1.442695, %v5564_v24  ;;  %v10320_v56 = vld [vmem:[%s11884_s19 + $0x38] sm:$0xff]   ;;  %s16298_s19 = sld [smem:[#allocation119_spill]] }
 0xe39   : > { %v5623_v62 = vmul.f32 1.442695, %v5562_v44 }
 0xe3a   : > { %v5901_v33 = vpop.permute.xlu0 %5900  ;;  %5675 = vadd.xlane.f32.xlu1 %v14472_v50  ;;  %v5621_v16 = vmul.f32 1.442695, %v5561_v31 }
 0xe3b   : > { %9953 = vmatprep.subr.bf16.mxu0 %v5901_v33 }
 0xe3c   : > { %9954 = vmatpush3.bf16.msra.mxu0 %v5901_v33  ;;  %10829 = vpow2.f32 %v5621_v16 }
 0xe3d   : > { %9955 = vmatprep.subr.bf16.mxu0 %v5903_v48  ;;  %10831 = vpow2.f32 %v5625_v27 }
 0xe3e   : > { %s16299_s15 = scalar_lea.vmem %s16298_s19, %s11901_s6  ;;  %s16340_s6 = sld [smem:[#allocation28_spill]] }
 0xe3f   : > { %s11315_s19 = scalar_lea.vmem %s15670_s5, 2048 }
 0xe40   : > { %9956 = vmatpush3.bf16.msra.mxu0 %v5903_v48  ;;  %p11316_p6 = scmp.ne.s32.totalorder %s15670_s5, %s11315_s19 }
 0xe41   : > { %9957 = vmatprep.subr.bf16.mxu0 %v5905_v38 }
 0xe44   : > { %9958 = vmatpush3.bf16.msra.mxu0 %v5905_v38  ;;  %s8751_s2 = sshll.u32 %s16340_s6, 11 }
 0xe45   : > { %s15668_s26 = scalar_lea.hbm %s16343_s25, %s8751_s2 }
 0xe46   : > { %v14488_v35 = vpop.eup %10829 }
 0xe47   : > { %v14492_v36 = vpop.eup %10831 }
 0xe4b   : > { %5908 = vrot.lane.b32.xlu1 %v16171_v5, %s11414_s7  ;;  %v5613_v5 = vmul.f32 1.442695, %v5557_v25  ;;  %s16344_s7 = smov %s16343_s25 }
 0xe4d   : > { %10833 = vpow2.f32 %v5613_v5 }
 0xe4e   : > { %10835 = vpow2.f32 %v5619_v32 }
 0xe4f   : > { %10837 = vpow2.f32 %v5623_v62 }
 0xe50   : > { %10839 = vpow2.f32 %v5627_v51 }
 0xe57   : > { %5679 = vadd.xlane.f32.xlu0 %v14481_v60  ;;  %v14497_v34 = vpop.eup %10833 }
 0xe58   : > { %v14500_v28 = vpop.eup %10835 }
 0xe59   : > { %v14503_v4 = vpop.eup %10837 }
 0xe5a   : > { %v14506_v19 = vpop.eup %10839 }
 0xe5b   : > { %5681 = vadd.xlane.f32.xlu0 %v14484_v59 }
 0xe5f   : > { %5685 = vadd.xlane.f32.xlu0 %v14488_v35 }
 0xe63   : > { %5689 = vadd.xlane.f32.xlu0 %v14492_v36 }
 0xe6f   : > { %5677 = vadd.xlane.f32.xlu1 %v14497_v34 }
 0xe73   : > { %5683 = vadd.xlane.f32.xlu1 %v14500_v28 }
 0xe77   : > { %5687 = vadd.xlane.f32.xlu1 %v14503_v4 }
 0xe7b   : > { %5691 = vadd.xlane.f32.xlu1 %v14506_v19 }
 0xea7   : > { %v5664_v9 = vpop.xlane.xlu0 %5663 }
 0xea8   : > { %10841 = vrcp.f32 %v5664_v9 }
 0xeaf   : > { %v5672_v10 = vpop.xlane.xlu0 %5671 }
 0xeb2   : > { %v10842_v49 = vpop.eup %10841 }
 0xeb3   : > { %v5907_v61 = vpop.permute.xlu0 %5906  ;;  %v5666_v21 = vpop.xlane.xlu1 %5665  ;;  %v5742_v14 = vmul.f32 %v10842_v49, %v14438_v6 }
 0xeb4   : > { %9959 = vmatprep.subr.bf16.mxu0 %v5907_v61 }
 0xeb5   : > { %9960 = vmatpush3.bf16.msra.mxu0 %v5907_v61 }
 0xeb7   : > { %v5662_v13 = vpop.xlane.xlu1 %5661 }
 0xeb8   : > { %10843 = vrcp.f32 %v5662_v13 }
 0xebb   : > { %v5668_v12 = vpop.xlane.xlu1 %5667 }
 0xebc   : > { %10845 = vrcp.f32 %v5668_v12 }
 0xebd   : > { %10847 = vrcp.f32 %v5666_v21 }
 0xebe   : > { %10849 = vrcp.f32 %v5672_v10 }
 0xebf   : > { %v5674_v41 = vpop.xlane.xlu1 %5673 }
 0xec2   : > { %v10844_v20 = vpop.eup %10843 }
 0xec3   : > { %v5670_v0 = vpop.xlane.xlu1 %5669  ;;  %v5741_v58 = vmul.f32 %v10844_v20, %v14458_v18 }
 0xec4   : > { %10851 = vrcp.f32 %v5670_v0 }
 0xec5   : > { %v5765_v52 = vpack.c.bf16 %v5742_v14, %v5741_v58  ;;  %10853 = vrcp.f32 %v5674_v41 }
 0xec6   : > { %v10846_v57 = vpop.eup %10845 }
 0xec7   : > { %v5676_v43 = vpop.xlane.xlu1 %5675  ;;  %9963 = vmatprep.mubr.bf16.mxu0 %v5765_v52  ;;  %v10848_v11 = vpop.eup %10847  ;;  %v5744_v7 = vmul.f32 %v10846_v57, %v14461_v40 }
 0xec8   : > { %10855 = vrcp.f32 %v5676_v43  ;;  %v10850_v26 = vpop.eup %10849  ;;  %v5743_v63 = vmul.f32 %v10848_v11, %v14453_v3 }
 0xec9   : > { %v5746_v37 = vmul.f32 %v10850_v26, %v14448_v29 }
 0xeca   : > { %v5766_v6 = vpack.c.bf16 %v5744_v7, %v5743_v63 }
 0xecb   : > { %v5909_v47 = vpop.permute.xlu1 %5908 }
 0xecc   : > { %9961 = vmatprep.subr.bf16.mxu0 %v5909_v47 }
 0xecd   : > { %9962 = vmatpush3.bf16.msra.mxu0 %v5909_v47 }
 0xece   : > { %v10852_v18 = vpop.eup %10851  ;;  %9979 = vmatprep.subr.bf16.mxu0 %v10319_v8 }
 0xecf   : > { %v5745_v1 = vmul.f32 %v10852_v18, %v14467_v17  ;;  %v10854_v22 = vpop.eup %10853 }
 0xed0   : > { %9964 = vmatmul.mubr.bf16.vlgmr.msra.gmra.mrb[176].mxu0 %v5766_v6  ;;  %v5747_v48 = vmul.f32 %v10854_v22, %v14464_v23 }
 0xed1   : > { %v5767_v40 = vpack.c.bf16 %v5746_v37, %v5745_v1  ;;  %9980 = vmatpush3.bf16.msra.mxu0 %v10319_v8 }
 0xed2   : > { %v14517_v42 = vpop.f32.mrb[208].mxu1  ;;  %v10856_v54 = vpop.eup %10855  ;;  %9981 = vmatprep.subr.bf16.mxu0 %v10320_v56 }
 0xed3   : > { %v14519_v2 = vpop.f32.mrb[209].mxu1  ;;  %9967 = vmatprep.mubr.bf16.mxu0 %v5767_v40  ;;  %v5748_v33 = vmul.f32 %v10856_v54, %v14472_v50 }
 0xed4   : > { %v14521_v3 = vpop.f32.mrb[210].mxu1 }
 0xed5   : > { %v6016_v29 = vpack.c.bf16 %v14521_v3, %v14517_v42  ;;  %v14527_v17 = vpop.f32.mrb[211].mxu1  ;;  %v5768_v30 = vpack.c.bf16 %v5748_v33, %v5747_v48  ;;  %9982 = vmatpush3.bf16.msra.mxu0 %v10320_v56 }
 0xed6   : > { %v6015_v38 = vpack.c.bf16 %v14527_v17, %v14519_v2 }
 0xed8   : > { %9968 = vmatmul.mubr.bf16.gmra.mrb[180].mxu0 %v5768_v30 }
 0xeda   : > { %v9937_v55 = vpop.f32.mrb[212].mxu1 }
 0xedb   : > { %v5847_v15 = vpop.f32.mrb[213].mxu1 }
 0xedc   : > { %v9938_v31 = vpop.f32.mrb[214].mxu1 }
 0xedd   : > { %v6018_v46 = vpack.c.bf16 %v9938_v31, %v9937_v55  ;;  %v5850_v53 = vpop.f32.mrb[215].mxu1 }
 0xede   : > { %v6017_v16 = vpack.c.bf16 %v5850_v53, %v5847_v15 }
 0xee4   : > { %v5680_v32 = vpop.xlane.xlu0 %5679 }
 0xee5   : > { %10857 = vrcp.f32 %v5680_v32  ;;  %v16300_v32 = vld [vmem:[#allocation86_spill] sm:$0xff] }
 0xee8   : > { %v5682_v62 = vpop.xlane.xlu0 %5681 }
 0xeea   : > { %v9941_v23 = vpop.f32.mrb[216].mxu1 }
 0xeeb   : > { %v5863_v27 = vpop.f32.mrb[217].mxu1 }
 0xeec   : > { %v9942_v50 = vpop.f32.mrb[218].mxu1  ;;  %v5686_v13 = vpop.xlane.xlu0 %5685 }
 0xeed   : > { %v6020_v25 = vpack.c.bf16 %v9942_v50, %v9941_v23  ;;  %v5866_v5 = vpop.f32.mrb[219].mxu1  ;;  %v16297_v50 = vld [vmem:[#allocation85_spill] sm:$0xff] }
 0xeee   : > { %v6019_v39 = vpack.c.bf16 %v5866_v5, %v5863_v27  ;;  %v14564_v5 = vld [vmem:[%s16299_s15] ss:$0 sm:$0xff]  ;;  %s11415_s15 = smov [#allocation17]  }
 0xeef   : > { %v10858_v20 = vpop.eup %10857 }
 0xef0   : > { %v5690_v41 = vpop.xlane.xlu0 %5689  ;;  %v5750_v52 = vmul.f32 %v10858_v20, %v14481_v60 }
 0xef6   : > { %v9945_v44 = vpop.f32.mrb[220].mxu1 }
 0xef7   : > { %v5879_v24 = vpop.f32.mrb[221].mxu1 }
 0xef8   : > { %v9946_v51 = vpop.f32.mrb[222].mxu1 }
 0xef9   : > { %v6022_v9 = vpack.c.bf16 %v9946_v51, %v9945_v44  ;;  %v5882_v10 = vpop.f32.mrb[223].mxu1 }
 0xefa   : > { %v6021_v61 = vpack.c.bf16 %v5882_v10, %v5879_v24 }
 0xefc   : > { %v5678_v21 = vpop.xlane.xlu1 %5677 }
 0xefd   : > { %10859 = vrcp.f32 %v5678_v21 }
 0xefe   : > { %10861 = vrcp.f32 %v5682_v62  ;;  %v16301_v62 = vld [vmem:[#allocation90_spill] sm:$0xff] }
 0xf00   : > { %v5684_v12 = vpop.xlane.xlu1 %5683 }
 0xf01   : > { %10863 = vrcp.f32 %v5684_v12 }
 0xf02   : > { %10865 = vrcp.f32 %v5686_v13 }
 0xf04   : > { %v5688_v49 = vpop.xlane.xlu1 %5687 }
 0xf05   : > { %10867 = vrcp.f32 %v5688_v49 }
 0xf06   : > { %10869 = vrcp.f32 %v5690_v41  ;;  %v11049_v41 = vld [vmem:[#allocation2] sm:$0xff] }
 0xf07   : > { %v10860_v0 = vpop.eup %10859 }
 0xf08   : > { %v5692_v58 = vpop.xlane.xlu1 %5691  ;;  %v5749_v14 = vmul.f32 %v10860_v0, %v14497_v34  ;;  %v10862_v57 = vpop.eup %10861 }
 0xf09   : > { %10871 = vrcp.f32 %v5692_v58  ;;  %v5751_v7 = vmul.f32 %v10862_v57, %v14484_v59  ;;  %v11050_v58 = vld [vmem:[#allocation2 + $0x8] sm:$0xff] }
 0xf0a   : > { %v5769_v43 = vpack.c.bf16 %v5750_v52, %v5749_v14  ;;  %v16303_v52 = vld [vmem:[#allocation99_spill] sm:$0xff] }
 0xf0b   : > { %v10864_v11 = vpop.eup %10863 }
 0xf0c   : > { %9971 = vmatprep.mubr.bf16.mxu0 %v5769_v43  ;;  %v5752_v8 = vmul.f32 %v10864_v11, %v14500_v28  ;;  %v10866_v47 = vpop.eup %10865  ;;  %v16304_v11 = vld [vmem:[#allocation98_spill] sm:$0xff] }
 0xf0d   : > { %v5753_v18 = vmul.f32 %v10866_v47, %v14488_v35  ;;  %v11051_v47 = vld [vmem:[#allocation2 + $0x10] sm:$0xff] }
 0xf0e   : > { %v5770_v26 = vpack.c.bf16 %v5752_v8, %v5751_v7 }
 0xf0f   : > { %v10868_v63 = vpop.eup %10867 }
 0xf10   : > { %9972 = vmatmul.mubr.bf16.gmra.mrb[184].mxu0 %v5770_v26  ;;  %v5754_v6 = vmul.f32 %v10868_v63, %v14503_v4  ;;  %v10870_v34 = vpop.eup %10869  ;;  %v16305_v63 = vld [vmem:[#allocation91_spill] sm:$0xff] }
 0xf11   : > { %v5755_v1 = vmul.f32 %v10870_v34, %v14492_v36 }
 0xf12   : > { %v5771_v56 = vpack.c.bf16 %v5754_v6, %v5753_v18 }
 0xf13   : > { %v10872_v60 = vpop.eup %10871 }
 0xf14   : > { %9975 = vmatprep.mubr.bf16.mxu0 %v5771_v56  ;;  %v5756_v37 = vmul.f32 %v10872_v60, %v14506_v19  ;;  %v16306_v56 = vld [vmem:[#allocation88_spill] sm:$0xff] }
 0xf16   : > { %v5772_v22 = vpack.c.bf16 %v5756_v37, %v5755_v1  ;;  %v11052_v1 = vld [vmem:[#allocation2 + $0x18] sm:$0xff] }
 0xf18   : > { %9976 = vmatmul.mubr.bf16.gmra.mrb[188].mxu0 %v5772_v22 }
 0xf19   : > { %9983 = vmatprep.mubr.msk.bf16.mxu0 %vm1723_vm0, %v6015_v38 }
 0xf20   : > { %9984 = vmatmul.mubr.msk.bf16.vlgmr.msra.gmra.mrb[112].mxu0 %vm1723_vm0, %v6016_v29 }
 0xf21   : > { %9987 = vmatprep.mubr.msk.bf16.mxu0 %vm1723_vm0, %v6017_v16 }
 0xf28   : > { %9988 = vmatmul.mubr.msk.bf16.gmra.mrb[116].mxu0 %vm1723_vm0, %v6018_v46 }
 0xf29   : > { %9991 = vmatprep.mubr.msk.bf16.mxu0 %vm1723_vm0, %v6019_v39 }
 0xf30   : > { %9992 = vmatmul.mubr.msk.bf16.gmra.mrb[120].mxu0 %vm1723_vm0, %v6020_v25 }
 0xf31   : > { %9995 = vmatprep.mubr.msk.bf16.mxu0 %vm1723_vm0, %v6021_v61  ;;  %v16302_v61 = vld [vmem:[#allocation87_spill] sm:$0xff] }
 0xf38   : > { %9996 = vmatmul.mubr.msk.bf16.gmra.mrb[124].mxu0 %vm1723_vm0, %v6022_v9 }
 0xfa3   : > { %v9965_v59 = vpop.f32.mrb[176].mxu0 }
 0xfa4   : > { %v5952_v35 = vpop.f32.mrb[177].mxu0 }
 0xfa5   : > { %v9966_v36 = vpop.f32.mrb[178].mxu0 }
 0xfa6   : > { %v6024_v28 = vpack.c.bf16 %v9966_v36, %v9965_v59  ;;  %v5955_v4 = vpop.f32.mrb[179].mxu0 }
 0xfa7   : > { %v6023_v19 = vpack.c.bf16 %v5955_v4, %v5952_v35  ;;  %v11053_v35 = vld [vmem:[#allocation2 + $0x20] sm:$0xff] }
 0xfa9   : > { %9999 = vmatprep.mubr.msk.bf16.mxu0 %vm1723_vm0, %v6023_v19  ;;  %v11054_v19 = vld [vmem:[#allocation2 + $0x28] sm:$0xff] }
 0xfaa   : > { %10000 = vmatmul.mubr.msk.bf16.gmra.mrb[128].mxu0 %vm1723_vm0, %v6024_v28 }
 0xfab   : > { %v9969_v42 = vpop.f32.mrb[180].mxu0 }
 0xfac   : > { %v5968_v40 = vpop.f32.mrb[181].mxu0 }
 0xfad   : > { %v9970_v54 = vpop.f32.mrb[182].mxu0 }
 0xfae   : > { %v6026_v2 = vpack.c.bf16 %v9970_v54, %v9969_v42  ;;  %v5971_v3 = vpop.f32.mrb[183].mxu0 }
 0xfaf   : > { %v6025_v48 = vpack.c.bf16 %v5971_v3, %v5968_v40  ;;  %v16307_v40 = vld [vmem:[#allocation101_spill] sm:$0xff]  ;;  %v16308_v3 = vld [vmem:[#allocation103_spill] sm:$0xff] }
 0xfb1   : > { %10003 = vmatprep.mubr.msk.bf16.mxu0 %vm1723_vm0, %v6025_v48 }
 0xfb2   : > { %10004 = vmatmul.mubr.msk.bf16.gmra.mrb[132].mxu0 %vm1723_vm0, %v6026_v2 }
 0xfe3   : > { %v9973_v33 = vpop.f32.mrb[184].mxu0 }
 0xfe4   : > { %v5984_v29 = vpop.f32.mrb[185].mxu0 }
 0xfe5   : > { %v9974_v17 = vpop.f32.mrb[186].mxu0 }
 0xfe6   : > { %v6028_v38 = vpack.c.bf16 %v9974_v17, %v9973_v33  ;;  %v5987_v30 = vpop.f32.mrb[187].mxu0 }
 0xfe7   : > { %v6027_v55 = vpack.c.bf16 %v5987_v30, %v5984_v29  ;;  %v11055_v29 = vld [vmem:[#allocation2 + $0x30] sm:$0xff] }
 0xfe9   : > { %10007 = vmatprep.mubr.msk.bf16.mxu0 %vm1723_vm0, %v6027_v55 }
 0xfea   : > { %10008 = vmatmul.mubr.msk.bf16.gmra.mrb[136].mxu0 %vm1723_vm0, %v6028_v38  ;;  %v16309_v38 = vld [vmem:[#allocation107_spill] sm:$0xff] }
 0xfeb   : > { %v9977_v15 = vpop.f32.mrb[188].mxu0 }
 0xfec   : > { %v6000_v31 = vpop.f32.mrb[189].mxu0 }
 0xfed   : > { %v9978_v46 = vpop.f32.mrb[190].mxu0 }
 0xfee   : > { %v6030_v53 = vpack.c.bf16 %v9978_v46, %v9977_v15  ;;  %v6003_v16 = vpop.f32.mrb[191].mxu0 }
 0xfef   : > { %v6029_v23 = vpack.c.bf16 %v6003_v16, %v6000_v31  ;;  %v16310_v31 = vld [vmem:[#allocation89_spill] sm:$0xff] }
 0xff1   : > { %10011 = vmatprep.mubr.msk.bf16.mxu0 %vm1723_vm0, %v6029_v23 }
 0xff2   : > { %10012 = vmatmul.mubr.msk.bf16.gmra.mrb[140].mxu0 %vm1723_vm0, %v6030_v53  ;;  %v11056_v53 = vld [vmem:[#allocation2 + $0x38] sm:$0xff] }
 0xff3   : > { %v9985_v27 = vpop.f32.mrb[112].mxu0 }
 0xff4   : > { %v10015_v25 = vadd.f32 %v9985_v27, %v16297_v50  ;;  %v6129_v39 = vpop.f32.mrb[113].mxu0  ;;  %v11057_v50 = vld [vmem:[#allocation2 + $0x40] sm:$0xff] }
 0xff5   : > { %v10016_v44 = vadd.f32 %v6129_v39, %v16300_v32  ;;  %v9986_v24 = vpop.f32.mrb[114].mxu0 }
 0xff6   : > { %v10017_v51 = vadd.f32 %v9986_v24, %v16301_v62  ;;  %v6132_v9 = vpop.f32.mrb[115].mxu0  ;;  %v6297_v13 = vadd.f32 %v10015_v25, %v14564_v5  ;;  %v16311_v62 = vld [vmem:[#allocation104_spill] sm:$0xff] }
 0xff7   : > { %v6295_v10 = vadd.f32 %v10016_v44, %v14564_v5  ;;  %v10018_v21 = vadd.f32 %v6132_v9, %v16302_v61  ;;  %v11058_v44 = vld [vmem:[#allocation2 + $0x48] sm:$0xff] }
 0xff8   : > { %v6298_v20 = vadd.f32 %v10017_v51, %v14564_v5  ;;  %v14581_v26 = vadd.f32 %v11051_v47, %v6297_v13  ;;  %v11059_v13 = vld [vmem:[#allocation2 + $0x50] sm:$0xff]  ;;  %v11061_v47 = vld [vmem:[#allocation2 + $0x60] sm:$0xff] }
 0xff9   : > { %v6296_v12 = vadd.f32 %v10018_v21, %v14564_v5  ;;  %v14572_v49 = vadd.f32 %v11049_v41, %v6295_v10  ;;  %v16312_v10 = vld [vmem:[#allocation105_spill] sm:$0xff]  ;;  %v16313_v41 = vld [vmem:[#allocation94_spill] sm:$0xff] }
 0xffa   : > { %v14587_v37 = vadd.f32 %v11052_v1, %v6298_v20  ;;  %v11064_v1 = vld [vmem:[#allocation2 + $0x78] sm:$0xff] }
 0xffb   : > { %6361 = vadd.xlane.f32.xlu0 %v14572_v49  ;;  %v9989_v0 = vpop.f32.mrb[116].mxu0  ;;  %v14576_v14 = vadd.f32 %v11050_v58, %v6296_v12 }
 0xffc   : > { %v10019_v57 = vadd.f32 %v9989_v0, %v16303_v52  ;;  %v6145_v43 = vpop.f32.mrb[117].mxu0  ;;  %v16314_v52 = vld [vmem:[#allocation97_spill] sm:$0xff] }
 0xffd   : > { %v10020_v7 = vadd.f32 %v6145_v43, %v16304_v11  ;;  %6363 = vadd.xlane.f32.xlu1 %v14576_v14  ;;  %v9990_v8 = vpop.f32.mrb[118].mxu0  ;;  %v11060_v43 = vld [vmem:[#allocation2 + $0x58] sm:$0xff] }
 0xffe   : > { %v10021_v18 = vadd.f32 %v9990_v8, %v16305_v63  ;;  %v6148_v6 = vpop.f32.mrb[119].mxu0  ;;  %v6301_v22 = vadd.f32 %v10019_v57, %v14564_v5 }
 0xfff   : > { %v6299_v34 = vadd.f32 %v10020_v7, %v14564_v5  ;;  %v10022_v60 = vadd.f32 %v6148_v6, %v16306_v56  ;;  %6365 = vadd.xlane.f32.xlu0 %v14581_v26  ;;  %v11062_v6 = vld [vmem:[#allocation2 + $0x68] sm:$0xff]  ;;  %v11063_v56 = vld [vmem:[#allocation2 + $0x70] sm:$0xff] }
0x1000   : > { %v6302_v28 = vadd.f32 %v10021_v18, %v14564_v5  ;;  %v14601_v17 = vadd.f32 %v11055_v29, %v6301_v22  ;;  %v16318_v29 = vld [vmem:[#allocation81_spill] sm:$0xff] }
0x1001   : > { %v6300_v59 = vadd.f32 %v10022_v60, %v14564_v5  ;;  %6367 = vadd.xlane.f32.xlu1 %v14587_v37  ;;  %v14592_v36 = vadd.f32 %v11053_v35, %v6299_v34  ;;  %v16315_v35 = vld [vmem:[#allocation82_spill] sm:$0xff] }
0x1002   : > { %v14607_v16 = vadd.f32 %v11056_v53, %v6302_v28 }
0x1003   : > { %6369 = vadd.xlane.f32.xlu0 %v14592_v36  ;;  %v9993_v4 = vpop.f32.mrb[120].mxu0  ;;  %v14596_v42 = vadd.f32 %v11054_v19, %v6300_v59  ;;  %v16316_v19 = vld [vmem:[#allocation100_spill] sm:$0xff] }
0x1004   : > { %v10023_v54 = vadd.f32 %v9993_v4, %v16307_v40  ;;  %v6161_v2 = vpop.f32.mrb[121].mxu0 }
0x1005   : > { %v10024_v48 = vadd.f32 %v6161_v2, %v16308_v3  ;;  %6371 = vadd.xlane.f32.xlu1 %v14596_v42  ;;  %v9994_v33 = vpop.f32.mrb[122].mxu0  ;;  %v16317_v2 = vld [vmem:[#allocation96_spill] sm:$0xff] }
0x1006   : > { %v10025_v30 = vadd.f32 %v9994_v33, %v16309_v38  ;;  %v6164_v55 = vpop.f32.mrb[123].mxu0  ;;  %v6305_v23 = vadd.f32 %v10023_v54, %v14564_v5 }
0x1007   : > { %v6303_v15 = vadd.f32 %v10024_v48, %v14564_v5  ;;  %v10026_v46 = vadd.f32 %v6164_v55, %v16310_v31  ;;  %6373 = vadd.xlane.f32.xlu0 %v14601_v17 }
0x1008   : > { %v6306_v39 = vadd.f32 %v10025_v30, %v14564_v5  ;;  %v14621_v12 = vadd.f32 %v11059_v13, %v6305_v23  ;;  %v11066_v23 = vld [vmem:[#allocation2 + $0x88] sm:$0xff] }
0x1009   : > { %v6304_v27 = vadd.f32 %v10026_v46, %v14564_v5  ;;  %6375 = vadd.xlane.f32.xlu1 %v14607_v16  ;;  %v14612_v25 = vadd.f32 %v11057_v50, %v6303_v15  ;;  %v11065_v15 = vld [vmem:[#allocation2 + $0x80] sm:$0xff]  ;;  %v16319_v50 = vld [vmem:[#allocation93_spill] sm:$0xff] }
0x100a   : > { %v14627_v11 = vadd.f32 %v11060_v43, %v6306_v39 }
0x100b   : > { %6377 = vadd.xlane.f32.xlu0 %v14612_v25  ;;  %v9997_v32 = vpop.f32.mrb[124].mxu0  ;;  %v14616_v24 = vadd.f32 %v11058_v44, %v6304_v27  ;;  %v16320_v44 = vld [vmem:[#allocation95_spill] sm:$0xff] }
0x100c   : > { %v10027_v51 = vadd.f32 %v9997_v32, %v16311_v62  ;;  %v6177_v9 = vpop.f32.mrb[125].mxu0 }
0x100d   : > { %v10028_v61 = vadd.f32 %v6177_v9, %v16312_v10  ;;  %6379 = vadd.xlane.f32.xlu1 %v14616_v24  ;;  %v9998_v21 = vpop.f32.mrb[126].mxu0  ;;  %v11067_v9 = vld [vmem:[#allocation2 + $0x90] sm:$0xff] }
0x100e   : > { %v10029_v20 = vadd.f32 %v9998_v21, %v16313_v41  ;;  %v6180_v0 = vpop.f32.mrb[127].mxu0  ;;  %v6309_v7 = vadd.f32 %v10027_v51, %v14564_v5 }
0x100f   : > { %v6307_v58 = vadd.f32 %v10028_v61, %v14564_v5  ;;  %v10030_v57 = vadd.f32 %v6180_v0, %v16314_v52  ;;  %6381 = vadd.xlane.f32.xlu0 %v14621_v12  ;;  %v16321_v61 = vld [vmem:[#allocation39_spill] sm:$0xff]  ;;  %v16322_v0 = vld [vmem:[#allocation92_spill] sm:$0xff] }
0x1010   : > { %v6310_v18 = vadd.f32 %v10029_v20, %v14564_v5  ;;  %v14639_v60 = vadd.f32 %v11063_v56, %v6309_v7  ;;  %v11068_v52 = vld [vmem:[#allocation2 + $0x98] sm:$0xff] }
0x1011   : > { %v6308_v8 = vadd.f32 %v10030_v57, %v14564_v5  ;;  %6383 = vadd.xlane.f32.xlu1 %v14627_v11  ;;  %v14632_v63 = vadd.f32 %v11061_v47, %v6307_v58 }
0x1012   : > { %v14642_v22 = vadd.f32 %v11064_v1, %v6310_v18 }
0x1013   : > { %6385 = vadd.xlane.f32.xlu0 %v14632_v63  ;;  %v14636_v34 = vadd.f32 %v11062_v6, %v6308_v8 }
0x1015   : > { %6387 = vadd.xlane.f32.xlu1 %v14636_v34 }
0x1017   : > { %6389 = vadd.xlane.f32.xlu0 %v14639_v60 }
0x1019   : > { %6391 = vadd.xlane.f32.xlu1 %v14642_v22 }
0x107d   : > { %v10001_v59 = vpop.f32.mrb[128].mxu0 }
0x107e   : > { %v10031_v28 = vadd.f32 %v10001_v59, %v16315_v35  ;;  %v6193_v4 = vpop.f32.mrb[129].mxu0 }
0x107f   : > { %v10032_v40 = vadd.f32 %v6193_v4, %v16316_v19  ;;  %v10002_v54 = vpop.f32.mrb[130].mxu0 }
0x1080   : > { %v10033_v3 = vadd.f32 %v10002_v54, %v16317_v2  ;;  %v6196_v48 = vpop.f32.mrb[131].mxu0  ;;  %v6313_v30 = vadd.f32 %v10031_v28, %v14564_v5  ;;  %v11070_v2 = vld [vmem:[#allocation2 + $0xa8] sm:$0xff] }
0x1081   : > { %v6311_v33 = vadd.f32 %v10032_v40, %v14564_v5  ;;  %v10034_v38 = vadd.f32 %v6196_v48, %v16318_v29 }
0x1082   : > { %v6314_v46 = vadd.f32 %v10033_v3, %v14564_v5  ;;  %v14661_v10 = vadd.f32 %v11067_v9, %v6313_v30  ;;  %v10321_v30 = vld [vmem:[%s11890_s27] ss:$8 sps:$4 sm:$0xff]  }
0x1083   : > { %v6312_v55 = vadd.f32 %v10034_v38, %v14564_v5  ;;  %v14652_v31 = vadd.f32 %v11065_v15, %v6311_v33  ;;  %v10323_v33 = vld [vmem:[%s11890_s27 + $0x4] ss:$8 sps:$4 sm:$0xff]   ;;  %v10327_v9 = vld [vmem:[%s11890_s27 + $0x20] ss:$8 sps:$4 sm:$0xff]  }
0x1084   : > { %v14666_v57 = vadd.f32 %v11068_v52, %v6314_v46  ;;  %6914 = vmatprep.subr.bf16.mxu1 %v10323_v33  ;;  %v10326_v46 = vld [vmem:[%s11890_s27 + $0x14] ss:$8 sps:$4 sm:$0xff]   ;;  %v10339_v52 = vld [vmem:[%s11890_s27 + $0x60] ss:$8 sps:$4 sm:$0xff]  }
0x1085   : > { %6393 = vadd.xlane.f32.xlu0 %v14652_v31  ;;  %v10005_v53 = vpop.f32.mrb[132].mxu0  ;;  %v14656_v27 = vadd.f32 %v11066_v23, %v6312_v55  ;;  %6915 = vmatpush1.bf16.msra.mxu1 %v10321_v30  ;;  %v11071_v23 = vld [vmem:[#allocation2 + $0xb0] sm:$0xff] }
0x1086   : > { %v10035_v39 = vadd.f32 %v10005_v53, %v16319_v50  ;;  %v6209_v32 = vpop.f32.mrb[133].mxu0  ;;  %6916 = vmatprep.subr.bf16.mxu1 %v10326_v46 }
0x1087   : > { %v10036_v62 = vadd.f32 %v6209_v32, %v16320_v44  ;;  %6395 = vadd.xlane.f32.xlu1 %v14656_v27  ;;  %v10006_v51 = vpop.f32.mrb[134].mxu0  ;;  %v11072_v44 = vld [vmem:[#allocation2 + $0xb8] sm:$0xff] }
0x1088   : > { %v10037_v21 = vadd.f32 %v10006_v51, %v16321_v61  ;;  %v6362_v13 = vpop.xlane.xlu0 %6361  ;;  %v6212_v41 = vpop.f32.mrb[135].mxu0  ;;  %v6317_v29 = vadd.f32 %v10035_v39, %v14564_v5  ;;  %v10324_v39 = vld [vmem:[%s11890_s27 + $0x10] ss:$8 sps:$4 sm:$0xff]   ;;  %v10332_v61 = vld [vmem:[%s11890_s27 + $0x34] ss:$8 sps:$4 sm:$0xff]  }
0x1089   : > { %v6426_v20 = vmul.f32 0.0078125, %v6362_v13  ;;  %v10038_v58 = vadd.f32 %v6212_v41, %v16322_v0  ;;  %6397 = vadd.xlane.f32.xlu0 %v14661_v10  ;;  %v6315_v18 = vadd.f32 %v10036_v62, %v14564_v5  ;;  %6917 = vmatpush1.bf16.msra.mxu1 %v10324_v39  ;;  %v10335_v13 = vld [vmem:[%s11890_s27 + $0x44] ss:$8 sps:$4 sm:$0xff]   ;;  %v10333_v41 = vld [vmem:[%s11890_s27 + $0x40] ss:$8 sps:$4 sm:$0xff]  }
0x108a   : > { %v6364_v43 = vpop.xlane.xlu1 %6363  ;;  %v14705_v50 = vadd.f32 %v11071_v23, %v6317_v29  ;;  %v10336_v0 = vld [vmem:[%s11890_s27 + $0x50] ss:$8 sps:$4 sm:$0xff]  }
0x108b   : > { %v14669_v7 = vsub.f32 %v14572_v49, %v6426_v20  ;;  %v6427_v8 = vmul.f32 0.0078125, %v6364_v43  ;;  %6399 = vadd.xlane.f32.xlu1 %v14666_v57  ;;  %v6316_v35 = vadd.f32 %v10038_v58, %v14564_v5  ;;  %v10338_v20 = vld [vmem:[%s11890_s27 + $0x54] ss:$8 sps:$4 sm:$0xff]   ;;  %v10341_v58 = vld [vmem:[%s11890_s27 + $0x64] ss:$8 sps:$4 sm:$0xff]  }
0x108c   : > { %v6366_v47 = vpop.xlane.xlu0 %6365  ;;  %v10344_v43 = vld [vmem:[%s11890_s27 + $0x74] ss:$8 sps:$4 sm:$0xff]  }
0x108d   : > { %v14674_v6 = vsub.f32 %v14576_v14, %v6427_v8  ;;  %v6428_v56 = vmul.f32 0.0078125, %v6366_v47  ;;  %v6490_v1 = vmul.f32 %v14669_v7, %v14669_v7  ;;  %v11069_v14 = vld [vmem:[#allocation2 + $0xa0] sm:$0xff]  ;;  %v14690_v3 = vadd.f32 %v11070_v2, %v6316_v35  ;;  %v10342_v8 = vld [vmem:[%s11890_s27 + $0x70] ss:$8 sps:$4 sm:$0xff]  }
0x108e   : > { %v6368_v59 = vpop.xlane.xlu1 %6367  ;;  %v14684_v19 = vadd.f32 %v11069_v14, %v6315_v18  ;;  %v16325_v2 = vld [vmem:[#allocation110_spill] sm:$0xff] }
0x108f   : > { %v6429_v28 = vmul.f32 0.0078125, %v6368_v59  ;;  %6522 = vadd.xlane.f32.xlu0 %v6490_v1  ;;  %v6491_v49 = vmul.f32 %v14674_v6, %v14674_v6  ;;  %v14682_v4 = vsub.f32 %v14581_v26, %v6428_v56  ;;  %v16323_v1 = vld [vmem:[#allocation102_spill] sm:$0xff] }
0x1090   : > { %v6370_v40 = vpop.xlane.xlu0 %6369 }
0x1091   : > { %6524 = vadd.xlane.f32.xlu1 %v6491_v49  ;;  %v14687_v54 = vsub.f32 %v14587_v37, %v6429_v28  ;;  %v6430_v26 = vmul.f32 0.0078125, %v6370_v40  ;;  %v6492_v38 = vmul.f32 %v14682_v4, %v14682_v4  ;;  %v6318_v37 = vadd.f32 %v10037_v21, %v14564_v5  ;;  %v10330_v21 = vld [vmem:[%s11890_s27 + $0x30] ss:$8 sps:$4 sm:$0xff]   ;;  %v16324_v49 = vld [vmem:[#allocation41_spill] sm:$0xff] }
0x1092   : > { %v6372_v48 = vpop.xlane.xlu1 %6371 }
0x1093   : > { %6401 = vadd.xlane.f32.xlu0 %v14684_v19  ;;  %v6431_v55 = vmul.f32 0.0078125, %v6372_v48  ;;  %v6493_v15 = vmul.f32 %v14687_v54, %v14687_v54  ;;  %v14703_v53 = vsub.f32 %v14592_v36, %v6430_v26  ;;  %v14712_v62 = vadd.f32 %v11072_v44, %v6318_v37  ;;  %v10329_v36 = vld [vmem:[%s11890_s27 + $0x24] ss:$8 sps:$4 sm:$0xff]   ;;  %s11319_s27 = sshll.u32 %s11415_s15, 4  ;;  %s11320_s27 = int_to_ptr.vmem [resolvable:$false] %s11319_s27 }
0x1094   : > { %6918 = vmatprep.subr.bf16.mxu1 %v10329_v36  ;;  %v6374_v47 = vpop.xlane.xlu0 %6373  ;;  %v11074_v36 = vld [vmem:[#allocation2 + $0xc8] sm:$0xff]  ;;  %s11321_s18 = scalar_lea.vmem %s11320_s27, 4096  ;;  %p11322_p9 = scmp.lt.s32.totalorder %s15670_s5, %s11320_s27 }
0x1095   : > { %6403 = vadd.xlane.f32.xlu1 %v14690_v3  ;;  %v14709_v32 = vsub.f32 %v14596_v42, %v6431_v55  ;;  %v6494_v51 = vmul.f32 %v14703_v53, %v14703_v53  ;;  %6919 = vmatpush1.bf16.msra.mxu1 %v10327_v9  ;;  %v6432_v28 = vmul.f32 0.0078125, %v6374_v47  ;;  %p11323_p10 = scmp.lt.s32.totalorder %s11321_s18, %s11315_s19 }
0x1096   : > { %6920 = vmatprep.subr.bf16.mxu1 %v10332_v61  ;;  %v6376_v56 = vpop.xlane.xlu1 %6375 }
0x1097   : > { %6526 = vadd.xlane.f32.xlu0 %v6492_v38  ;;  %v6495_v42 = vmul.f32 %v14709_v32, %v14709_v32  ;;  %v6433_v29 = vmul.f32 0.0078125, %v6376_v56  ;;  %v16326_v38 = vld [vmem:[#allocation108_spill] sm:$0xff]  ;;  %v14737_v37 = vsub.f32 %v14601_v17, %v6432_v28  ;;  %p11324_p11 = por %p11323_p10, %p11322_p9 }
0x1098   : > { %v6378_v23 = vpop.xlane.xlu0 %6377 }
0x1099   : > { %6528 = vadd.xlane.f32.xlu1 %v6493_v15  ;;  %6921 = vmatpush1.bf16.msra.mxu1 %v10330_v21  ;;  %v11073_v15 = vld [vmem:[#allocation2 + $0xc0] sm:$0xff]  ;;  %v14743_v39 = vsub.f32 %v14607_v16, %v6433_v29  ;;  %v6434_v21 = vmul.f32 0.0078125, %v6378_v23  ;;  %v6496_v16 = vmul.f32 %v14737_v37, %v14737_v37 }
0x109a   : > { %6922 = vmatprep.subr.bf16.mxu1 %v10335_v13  ;;  %v6380_v9 = vpop.xlane.xlu1 %6379 }
0x109b   : > { %6405 = vadd.xlane.f32.xlu0 %v14705_v50 }
0x109d   : > { %6407 = vadd.xlane.f32.xlu1 %v14712_v62  ;;  %6923 = vmatpush1.bf16.msra.mxu1 %v10333_v41  ;;  %v16328_v41 = vld [vmem:[#allocation109_spill] sm:$0xff] }
0x109e   : > { %6924 = vmatprep.subr.bf16.mxu1 %v10338_v20 }
0x109f   : > { %6530 = vadd.xlane.f32.xlu0 %v6494_v51 }
0x10a1   : > { %6532 = vadd.xlane.f32.xlu1 %v6495_v42  ;;  %6925 = vmatpush1.bf16.msra.mxu1 %v10336_v0  ;;  %v16327_v42 = vld [vmem:[#allocation43_spill] sm:$0xff] }
0x10a2   : > { %6926 = vmatprep.subr.bf16.mxu1 %v10341_v58  ;;  %v16329_v58 = vld [vmem:[#allocation106_spill] sm:$0xff] }
0x10a5   : > { %6927 = vmatpush1.bf16.msra.mxu1 %v10339_v52 }
0x10a6   : > { %6928 = vmatprep.subr.bf16.mxu1 %v10344_v43 }
0x10a9   : > { %6929 = vmatpush1.bf16.msra.mxu1 %v10342_v8  ;;  %v6435_v8 = vmul.f32 0.0078125, %v6380_v9  ;;  %v11078_v9 = vld [vmem:[#allocation2 + $0xe8] sm:$0xff] }
0x10bd   : > { %v10009_v18 = vpop.f32.mrb[136].mxu0 }
0x10be   : > { %v10039_v59 = vadd.f32 %v10009_v18, %v16323_v1  ;;  %v6225_v35 = vpop.f32.mrb[137].mxu0  ;;  %v16330_v18 = vld [vmem:[#allocation47_spill] sm:$0xff]  ;;  %v6497_v1 = vmul.f32 %v14743_v39, %v14743_v39 }
0x10bf   : > { %v10040_v14 = vadd.f32 %v6225_v35, %v16324_v49  ;;  %v10010_v40 = vpop.f32.mrb[138].mxu0  ;;  %v11075_v35 = vld [vmem:[#allocation2 + $0xd0] sm:$0xff]  ;;  %v6382_v49 = vpop.xlane.xlu0 %6381 }
0x10c0   : > { %v10041_v48 = vadd.f32 %v10010_v40, %v16325_v2  ;;  %v6228_v33 = vpop.f32.mrb[139].mxu0  ;;  %v6321_v13 = vadd.f32 %v10039_v59, %v14564_v5  ;;  %v14760_v59 = vsub.f32 %v14612_v25, %v6434_v21  ;;  %v11076_v40 = vld [vmem:[#allocation2 + $0xd8] sm:$0xff] }
0x10c1   : > { %v6319_v26 = vadd.f32 %v10040_v14, %v14564_v5  ;;  %v10042_v30 = vadd.f32 %v6228_v33, %v16326_v38  ;;  %v14765_v14 = vsub.f32 %v14616_v24, %v6435_v8  ;;  %v6436_v33 = vmul.f32 0.0078125, %v6382_v49 }
0x10c2   : > { %v6322_v47 = vadd.f32 %v10041_v48, %v14564_v5  ;;  %v14762_v28 = vadd.f32 %v11075_v35, %v6321_v13  ;;  %v6384_v48 = vpop.xlane.xlu1 %6383  ;;  %v6498_v25 = vmul.f32 %v14760_v59, %v14760_v59 }
0x10c3   : > { %v6320_v55 = vadd.f32 %v10042_v30, %v14564_v5  ;;  %v14740_v46 = vadd.f32 %v11073_v15, %v6319_v26  ;;  %v6437_v26 = vmul.f32 0.0078125, %v6384_v48  ;;  %v6499_v24 = vmul.f32 %v14765_v14, %v14765_v14  ;;  %v6386_v30 = vpop.xlane.xlu0 %6385  ;;  %v11077_v15 = vld [vmem:[#allocation2 + $0xe0] sm:$0xff] }
0x10c4   : > { %v14768_v2 = vadd.f32 %v11076_v40, %v6322_v47 }
0x10c5   : > { %6409 = vadd.xlane.f32.xlu0 %v14740_v46  ;;  %v10013_v44 = vpop.f32.mrb[140].mxu0  ;;  %v14746_v51 = vadd.f32 %v11074_v36, %v6320_v55  ;;  %v14778_v55 = vsub.f32 %v14621_v12, %v6436_v33  ;;  %v14783_v36 = vsub.f32 %v14627_v11, %v6437_v26 }
0x10c6   : > { %v10043_v61 = vadd.f32 %v10013_v44, %v16327_v42  ;;  %v6241_v17 = vpop.f32.mrb[141].mxu0  ;;  %v6388_v44 = vpop.xlane.xlu1 %6387 }
0x10c7   : > { %v10044_v20 = vadd.f32 %v6241_v17, %v16328_v41  ;;  %6411 = vadd.xlane.f32.xlu1 %v14746_v51  ;;  %v10014_v0 = vpop.f32.mrb[142].mxu0  ;;  %v6438_v17 = vmul.f32 0.0078125, %v6386_v30  ;;  %v6500_v12 = vmul.f32 %v14778_v55, %v14778_v55  ;;  %v6390_v13 = vpop.xlane.xlu0 %6389  ;;  %v6439_v41 = vmul.f32 0.0078125, %v6388_v44 }
0x10c8   : > { %v10045_v52 = vadd.f32 %v10014_v0, %v16329_v58  ;;  %v6244_v43 = vpop.f32.mrb[143].mxu0  ;;  %v6325_v21 = vadd.f32 %v10043_v61, %v14564_v5  ;;  %v6501_v11 = vmul.f32 %v14783_v36, %v14783_v36  ;;  %v6440_v58 = vmul.f32 0.0078125, %v6390_v13  ;;  %v11079_v61 = vld [vmem:[#allocation2 + $0xf0] sm:$0xff] }
0x10c9   : > { %v10046_v56 = vadd.f32 %v6244_v43, %v16330_v18  ;;  %6534 = vadd.xlane.f32.xlu0 %v6496_v16  ;;  %v6323_v29 = vadd.f32 %v10044_v20, %v14564_v5  ;;  %v14796_v16 = vsub.f32 %v14632_v63, %v6438_v17  ;;  %v14801_v8 = vsub.f32 %v14636_v34, %v6439_v41 }
0x10ca   : > { %v6326_v20 = vadd.f32 %v10045_v52, %v14564_v5  ;;  %v6392_v0 = vpop.xlane.xlu1 %6391  ;;  %v14798_v43 = vadd.f32 %v11079_v61, %v6325_v21  ;;  %v14807_v18 = vsub.f32 %v14639_v60, %v6440_v58 }
0x10cb   : > { %6536 = vadd.xlane.f32.xlu1 %v6497_v1  ;;  %v6324_v38 = vadd.f32 %v10046_v56, %v14564_v5  ;;  %v14780_v23 = vadd.f32 %v11077_v15, %v6323_v29  ;;  %v6441_v47 = vmul.f32 0.0078125, %v6392_v0  ;;  %v11080_v5 = vld [vmem:[#allocation2 + $0xf8] sm:$0xff]  ;;  %v6502_v63 = vmul.f32 %v14796_v16, %v14796_v16 }
0x10cc   : > { %v14804_v52 = vadd.f32 %v11080_v5, %v6326_v20  ;;  %v6503_v34 = vmul.f32 %v14801_v8, %v14801_v8  ;;  %v6504_v1 = vmul.f32 %v14807_v18, %v14807_v18 }
0x10cd   : > { %6413 = vadd.xlane.f32.xlu0 %v14762_v28  ;;  %v14786_v42 = vadd.f32 %v11078_v9, %v6324_v38  ;;  %v14813_v56 = vsub.f32 %v14642_v22, %v6441_v47 }
0x10cf   : > { %6415 = vadd.xlane.f32.xlu1 %v14768_v2  ;;  %v6505_v60 = vmul.f32 %v14813_v56, %v14813_v56 }
0x10d1   : > { %6538 = vadd.xlane.f32.xlu0 %v6498_v25 }
0x10d3   : > { %6540 = vadd.xlane.f32.xlu1 %v6499_v24 }
0x10d5   : > { %6417 = vadd.xlane.f32.xlu0 %v14780_v23 }
0x10d7   : > { %6419 = vadd.xlane.f32.xlu1 %v14786_v42 }
0x10d9   : > { %6542 = vadd.xlane.f32.xlu0 %v6500_v12 }
0x10db   : > { %6544 = vadd.xlane.f32.xlu1 %v6501_v11 }
0x10dd   : > { %6421 = vadd.xlane.f32.xlu0 %v14798_v43 }
0x10df   : > { %6423 = vadd.xlane.f32.xlu1 %v14804_v52 }
0x10e1   : > { %6546 = vadd.xlane.f32.xlu0 %v6502_v63 }
0x10e3   : > { %6548 = vadd.xlane.f32.xlu1 %v6503_v34 }
0x10e5   : > { %6550 = vadd.xlane.f32.xlu0 %v6504_v1 }
0x10e7   : > { %6552 = vadd.xlane.f32.xlu1 %v6505_v60 }
0x1112   : > { %v6394_v35 = vpop.xlane.xlu0 %6393 }
0x1113   : > { %v6442_v49 = vmul.f32 0.0078125, %v6394_v35 }
0x1114   : > { %v6396_v40 = vpop.xlane.xlu1 %6395 }
0x1115   : > { %v14822_v48 = vsub.f32 %v14652_v31, %v6442_v49  ;;  %v6443_v22 = vmul.f32 0.0078125, %v6396_v40 }
0x1116   : > { %v6398_v33 = vpop.xlane.xlu0 %6397 }
0x1117   : > { %v14825_v29 = vsub.f32 %v14656_v27, %v6443_v22  ;;  %v6444_v25 = vmul.f32 0.0078125, %v6398_v33  ;;  %v6506_v26 = vmul.f32 %v14822_v48, %v14822_v48 }
0x1118   : > { %v6400_v38 = vpop.xlane.xlu1 %6399 }
0x1119   : > { %v14830_v24 = vsub.f32 %v14661_v10, %v6444_v25  ;;  %v6445_v30 = vmul.f32 0.0078125, %v6400_v38  ;;  %6554 = vadd.xlane.f32.xlu0 %v6506_v26  ;;  %v6507_v15 = vmul.f32 %v14825_v29, %v14825_v29 }
0x111b   : > { %v14835_v31 = vsub.f32 %v14666_v57, %v6445_v30  ;;  %6556 = vadd.xlane.f32.xlu1 %v6507_v15  ;;  %v6508_v27 = vmul.f32 %v14830_v24, %v14830_v24 }
0x111c   : > { %v6523_v44 = vpop.xlane.xlu0 %6522 }
0x111d   : > { %v6586_v9 = vmul.f32 0.0078125, %v6523_v44  ;;  %6558 = vadd.xlane.f32.xlu0 %v6508_v27  ;;  %v6509_v17 = vmul.f32 %v14835_v31, %v14835_v31 }
0x111e   : > { %v6525_v10 = vpop.xlane.xlu1 %6524 }
0x111f   : > { %v6618_v21 = vadd.f32 1e-05, %v6586_v9  ;;  %v6587_v12 = vmul.f32 0.0078125, %v6525_v10  ;;  %6560 = vadd.xlane.f32.xlu1 %v6509_v17 }
0x1120   : > { %v6402_v13 = vpop.xlane.xlu0 %6401 }
0x1121   : > { %10873 = vrsqrt.f32 %v6618_v21  ;;  %v6619_v41 = vadd.f32 1e-05, %v6587_v12  ;;  %v6446_v20 = vmul.f32 0.0078125, %v6402_v13 }
0x1122   : > { %v6404_v57 = vpop.xlane.xlu1 %6403 }
0x1123   : > { %10875 = vrsqrt.f32 %v6619_v41  ;;  %v14842_v11 = vsub.f32 %v14684_v19, %v6446_v20  ;;  %v6447_v0 = vmul.f32 0.0078125, %v6404_v57 }
0x1124   : > { %v6527_v58 = vpop.xlane.xlu0 %6526 }
0x1125   : > { %v14845_v61 = vsub.f32 %v14690_v3, %v6447_v0  ;;  %v6588_v47 = vmul.f32 0.0078125, %v6527_v58  ;;  %v6510_v5 = vmul.f32 %v14842_v11, %v14842_v11  ;;  %v14856_v3 = vld [vmem:[%s16332_s12] ss:$0 sm:$0xff] }
0x1126   : > { %v6529_v63 = vpop.xlane.xlu1 %6528 }
0x1127   : > { %v6620_v34 = vadd.f32 1e-05, %v6588_v47  ;;  %v6589_v1 = vmul.f32 0.0078125, %v6529_v63  ;;  %6562 = vadd.xlane.f32.xlu0 %v6510_v5  ;;  %v6511_v60 = vmul.f32 %v14845_v61, %v14845_v61 }
0x1128   : > { %v6406_v35 = vpop.xlane.xlu0 %6405 }
0x1129   : > { %10877 = vrsqrt.f32 %v6620_v34  ;;  %v6621_v19 = vadd.f32 1e-05, %v6589_v1  ;;  %v6448_v49 = vmul.f32 0.0078125, %v6406_v35  ;;  %6564 = vadd.xlane.f32.xlu1 %v6511_v60 }
0x112a   : > { %v6408_v40 = vpop.xlane.xlu1 %6407 }
0x112b   : > { %v10874_v22 = vpop.eup %10873  ;;  %10879 = vrsqrt.f32 %v6621_v19  ;;  %v14859_v33 = vsub.f32 %v14705_v50, %v6448_v49  ;;  %v6449_v25 = vmul.f32 0.0078125, %v6408_v40 }
0x112c   : > { %v6682_v26 = vmul.f32 %v10874_v22, %v14669_v7  ;;  %v6531_v38 = vpop.xlane.xlu0 %6530 }
0x112d   : > { %v10876_v30 = vpop.eup %10875  ;;  %v14863_v15 = vsub.f32 %v14712_v62, %v6449_v25  ;;  %v6590_v27 = vmul.f32 0.0078125, %v6531_v38  ;;  %v6512_v44 = vmul.f32 %v14859_v33, %v14859_v33  ;;  %v14876_v62 = vld [vmem:[%s883_s11] ss:$0 sm:$0xff] }
0x112e   : > { %v6720_v9 = vmul.f32 %v14856_v3, %v6682_v26  ;;  %v6683_v17 = vmul.f32 %v10876_v30, %v14674_v6  ;;  %v6533_v10 = vpop.xlane.xlu1 %6532 }
0x112f   : > { %v6622_v21 = vadd.f32 1e-05, %v6590_v27  ;;  %v6591_v50 = vmul.f32 0.0078125, %v6533_v10  ;;  %6566 = vadd.xlane.f32.xlu0 %v6512_v44  ;;  %v6513_v7 = vmul.f32 %v14863_v15, %v14863_v15 }
0x1130   : > { %v6721_v12 = vmul.f32 %v14856_v3, %v6683_v17  ;;  %v14880_v6 = vadd.f32 %v14876_v62, %v6720_v9 }
0x1131   : > { %10881 = vrsqrt.f32 %v6622_v21  ;;  %v6623_v13 = vadd.f32 1e-05, %v6591_v50  ;;  %6568 = vadd.xlane.f32.xlu1 %v6513_v7 }
0x1132   : > { %v14883_v41 = vadd.f32 %v14876_v62, %v6721_v12 }
0x1133   : > { %v10878_v20 = vpop.eup %10877  ;;  %10883 = vrsqrt.f32 %v6623_v13 }
0x1134   : > { %v6790_v57 = vpack.c.bf16 %v14883_v41, %v14880_v6  ;;  %v6684_v0 = vmul.f32 %v10878_v20, %v14682_v4 }
0x1135   : > { %v10880_v58 = vpop.eup %10879 }
0x1136   : > { %6947 = vmatmul.mubr.bf16.vlgmr.msra.gmra.mrb[224].mxu1 %v6790_v57  ;;  %v6685_v47 = vmul.f32 %v10880_v58, %v14687_v54  ;;  %v6722_v5 = vmul.f32 %v14856_v3, %v6684_v0 }
0x1137   : > { %6956 = vmatprep.mubr.bf16.mxu1 %v16296_v45 }
0x1138   : > { %v6723_v63 = vmul.f32 %v14856_v3, %v6685_v47  ;;  %v14893_v34 = vadd.f32 %v14876_v62, %v6722_v5 }
0x113a   : > { %v14896_v1 = vadd.f32 %v14876_v62, %v6723_v63 }
0x113b   : > { %v10882_v60 = vpop.eup %10881 }
0x113c   : > { %v6791_v4 = vpack.c.bf16 %v14896_v1, %v14893_v34  ;;  %v6686_v35 = vmul.f32 %v10882_v60, %v14703_v53 }
0x113d   : > { %v10884_v19 = vpop.eup %10883 }
0x113e   : > { %6957 = vmatmul.mubr.bf16.gmra.mrb[228].mxu1 %v6791_v4  ;;  %v6687_v54 = vmul.f32 %v10884_v19, %v14709_v32  ;;  %v6724_v49 = vmul.f32 %v14856_v3, %v6686_v35 }
0x113f   : > { %6966 = vmatprep.mubr.bf16.mxu1 %v16296_v45 }
0x1140   : > { %v6725_v40 = vmul.f32 %v14856_v3, %v6687_v54  ;;  %v14906_v22 = vadd.f32 %v14876_v62, %v6724_v49 }
0x1142   : > { %v14909_v25 = vadd.f32 %v14876_v62, %v6725_v40 }
0x1144   : > { %v6792_v26 = vpack.c.bf16 %v14909_v25, %v14906_v22 }
0x1146   : > { %6967 = vmatmul.mubr.bf16.gmra.mrb[232].mxu1 %v6792_v26 }
0x1147   : > { %6976 = vmatprep.mubr.bf16.mxu1 %v16296_v45 }
0x1152   : > { %v6410_v53 = vpop.xlane.xlu0 %6409 }
0x1153   : > { %v6450_v32 = vmul.f32 0.0078125, %v6410_v53 }
0x1154   : > { %v6412_v38 = vpop.xlane.xlu1 %6411 }
0x1155   : > { %v14915_v30 = vsub.f32 %v14740_v46, %v6450_v32  ;;  %v6451_v27 = vmul.f32 0.0078125, %v6412_v38 }
0x1156   : > { %v6535_v44 = vpop.xlane.xlu0 %6534 }
0x1157   : > { %v14918_v9 = vsub.f32 %v14746_v51, %v6451_v27  ;;  %v6592_v17 = vmul.f32 0.0078125, %v6535_v44  ;;  %v6514_v10 = vmul.f32 %v14915_v30, %v14915_v30 }
0x1158   : > { %v6537_v21 = vpop.xlane.xlu1 %6536 }
0x1159   : > { %v6624_v50 = vadd.f32 1e-05, %v6592_v17  ;;  %v6593_v7 = vmul.f32 0.0078125, %v6537_v21  ;;  %6570 = vadd.xlane.f32.xlu0 %v6514_v10  ;;  %v6515_v12 = vmul.f32 %v14918_v9, %v14918_v9 }
0x115a   : > { %v6414_v13 = vpop.xlane.xlu0 %6413 }
0x115b   : > { %10885 = vrsqrt.f32 %v6624_v50  ;;  %v6625_v46 = vadd.f32 1e-05, %v6593_v7  ;;  %v6452_v20 = vmul.f32 0.0078125, %v6414_v13  ;;  %6572 = vadd.xlane.f32.xlu1 %v6515_v12 }
0x115c   : > { %v6416_v57 = vpop.xlane.xlu1 %6415 }
0x115d   : > { %10887 = vrsqrt.f32 %v6625_v46  ;;  %v14925_v51 = vsub.f32 %v14762_v28, %v6452_v20  ;;  %v6453_v0 = vmul.f32 0.0078125, %v6416_v57 }
0x115e   : > { %v6539_v58 = vpop.xlane.xlu0 %6538 }
0x115f   : > { %v14928_v47 = vsub.f32 %v14768_v2, %v6453_v0  ;;  %v6594_v5 = vmul.f32 0.0078125, %v6539_v58  ;;  %v6516_v63 = vmul.f32 %v14925_v51, %v14925_v51 }
0x1160   : > { %v6541_v60 = vpop.xlane.xlu1 %6540 }
0x1161   : > { %v6626_v4 = vadd.f32 1e-05, %v6594_v5  ;;  %v6595_v35 = vmul.f32 0.0078125, %v6541_v60  ;;  %6574 = vadd.xlane.f32.xlu0 %v6516_v63  ;;  %v6517_v19 = vmul.f32 %v14928_v47, %v14928_v47 }
0x1162   : > { %v6418_v54 = vpop.xlane.xlu0 %6417 }
0x1163   : > { %10889 = vrsqrt.f32 %v6626_v4  ;;  %v6627_v28 = vadd.f32 1e-05, %v6595_v35  ;;  %v6454_v49 = vmul.f32 0.0078125, %v6418_v54  ;;  %6576 = vadd.xlane.f32.xlu1 %v6517_v19 }
0x1164   : > { %v6420_v40 = vpop.xlane.xlu1 %6419 }
0x1165   : > { %v10886_v26 = vpop.eup %10885  ;;  %10891 = vrsqrt.f32 %v6627_v28  ;;  %v14935_v2 = vsub.f32 %v14780_v23, %v6454_v49  ;;  %v6455_v53 = vmul.f32 0.0078125, %v6420_v40 }
0x1166   : > { %v6543_v32 = vpop.xlane.xlu0 %6542  ;;  %v6688_v38 = vmul.f32 %v10886_v26, %v14737_v37 }
0x1167   : > { %v10888_v27 = vpop.eup %10887  ;;  %v14939_v44 = vsub.f32 %v14786_v42, %v6455_v53  ;;  %v6596_v17 = vmul.f32 0.0078125, %v6543_v32  ;;  %v6518_v10 = vmul.f32 %v14935_v2, %v14935_v2 }
0x1168   : > { %v6545_v21 = vpop.xlane.xlu1 %6544  ;;  %v6689_v50 = vmul.f32 %v10888_v27, %v14743_v39  ;;  %v6726_v7 = vmul.f32 %v14856_v3, %v6688_v38  ;;  %v10345_v27 = vld [vmem:[%s11893_s30 + $0x40] sm:$0xff]  }
0x1169   : > { %v6628_v12 = vadd.f32 1e-05, %v6596_v17  ;;  %v6597_v23 = vmul.f32 0.0078125, %v6545_v21  ;;  %6578 = vadd.xlane.f32.xlu0 %v6518_v10  ;;  %v6519_v13 = vmul.f32 %v14939_v44, %v14939_v44  ;;  %9199 = vmatprep.subr.bf16.mxu0 %v10345_v27  ;;  %v10353_v27 = vld [vmem:[%s11893_s30 + $0x60] sm:$0xff]  }
0x116a   : > { %v6422_v37 = vpop.xlane.xlu0 %6421  ;;  %v6727_v46 = vmul.f32 %v14856_v3, %v6689_v50  ;;  %v14949_v0 = vadd.f32 %v14876_v62, %v6726_v7 }
0x116b   : > { %10893 = vrsqrt.f32 %v6628_v12  ;;  %v6629_v42 = vadd.f32 1e-05, %v6597_v23  ;;  %v6456_v20 = vmul.f32 0.0078125, %v6422_v37  ;;  %6580 = vadd.xlane.f32.xlu1 %v6519_v13 }
0x116c   : > { %v6424_v57 = vpop.xlane.xlu1 %6423  ;;  %v14952_v39 = vadd.f32 %v14876_v62, %v6727_v46 }
0x116d   : > { %v10890_v58 = vpop.eup %10889  ;;  %10895 = vrsqrt.f32 %v6629_v42  ;;  %v14955_v5 = vsub.f32 %v14798_v43, %v6456_v20  ;;  %v6457_v63 = vmul.f32 0.0078125, %v6424_v57  ;;  %v10347_v42 = vld [vmem:[%s11893_s30 + $0x48] sm:$0xff]  }
0x116e   : > { %v6547_v60 = vpop.xlane.xlu0 %6546  ;;  %v6793_v4 = vpack.c.bf16 %v14952_v39, %v14949_v0  ;;  %v6690_v35 = vmul.f32 %v10890_v58, %v14760_v59  ;;  %v10348_v58 = vld [vmem:[%s11893_s30 + $0x8] sm:$0xff]  }
0x116f   : > { %v10892_v19 = vpop.eup %10891  ;;  %v14961_v54 = vsub.f32 %v14804_v52, %v6457_v63  ;;  %v6598_v28 = vmul.f32 0.0078125, %v6547_v60  ;;  %v6520_v49 = vmul.f32 %v14955_v5, %v14955_v5 }
0x1170   : > { %6977 = vmatmul.mubr.bf16.gmra.mrb[236].mxu1 %v6793_v4  ;;  %v6549_v43 = vpop.xlane.xlu1 %6548  ;;  %v6691_v40 = vmul.f32 %v10892_v19, %v14765_v14  ;;  %v6728_v26 = vmul.f32 %v14856_v3, %v6690_v35  ;;  %v10346_v14 = vld [vmem:[%s11893_s30] sm:$0xff]   ;;  %v10350_v35 = vld [vmem:[%s11893_s30 + $0x10] sm:$0xff]  }
0x1171   : > { %v6630_v53 = vadd.f32 1e-05, %v6598_v28  ;;  %v6599_v32 = vmul.f32 0.0078125, %v6549_v43  ;;  %6582 = vadd.xlane.f32.xlu0 %v6520_v49  ;;  %v6521_v59 = vmul.f32 %v14961_v54, %v14961_v54  ;;  %6986 = vmatprep.mubr.bf16.mxu1 %v16296_v45 }
0x1172   : > { %v6551_v52 = vpop.xlane.xlu0 %6550  ;;  %v6729_v38 = vmul.f32 %v14856_v3, %v6691_v40  ;;  %v14974_v50 = vadd.f32 %v14876_v62, %v6728_v26  ;;  %9200 = vmatpush3.bf16.msra.mxu0 %v10346_v14  ;;  %v10351_v40 = vld [vmem:[%s11893_s30 + $0x58] sm:$0xff]  }
0x1173   : > { %10897 = vrsqrt.f32 %v6630_v53  ;;  %v6631_v17 = vadd.f32 1e-05, %v6599_v32  ;;  %v6600_v10 = vmul.f32 0.0078125, %v6551_v52  ;;  %6584 = vadd.xlane.f32.xlu1 %v6521_v59  ;;  %9201 = vmatprep.subr.bf16.mxu0 %v10347_v42  ;;  %v10352_v53 = vld [vmem:[%s11893_s30 + $0x18] sm:$0xff]   ;;  %v10358_v42 = vld [vmem:[%s11893_s30 + $0x30] sm:$0xff]  }
0x1174   : > { %v6553_v21 = vpop.xlane.xlu1 %6552  ;;  %v14977_v7 = vadd.f32 %v14876_v62, %v6729_v38 }
0x1175   : > { %v10894_v12 = vpop.eup %10893  ;;  %10899 = vrsqrt.f32 %v6631_v17  ;;  %v6632_v23 = vadd.f32 1e-05, %v6600_v10  ;;  %v6601_v13 = vmul.f32 0.0078125, %v6553_v21 }
0x1176   : > { %v6794_v37 = vpack.c.bf16 %v14977_v7, %v14974_v50  ;;  %v6692_v46 = vmul.f32 %v10894_v12, %v14778_v55  ;;  %9202 = vmatpush3.bf16.msra.mxu0 %v10348_v58  ;;  %v10349_v55 = vld [vmem:[%s11893_s30 + $0x50] sm:$0xff]   ;;  %v10359_v58 = vld [vmem:[%s11893_s30 + $0x78] sm:$0xff]  }
0x1177   : > { %v10896_v20 = vpop.eup %10895  ;;  %10901 = vrsqrt.f32 %v6632_v23  ;;  %v6633_v57 = vadd.f32 1e-05, %v6601_v13  ;;  %9203 = vmatprep.subr.bf16.mxu0 %v10349_v55  ;;  %v10355_v13 = vld [vmem:[%s11893_s30 + $0x68] sm:$0xff]  }
0x1178   : > { %6987 = vmatmul.mubr.bf16.gmra.mrb[240].mxu1 %v6794_v37  ;;  %v6693_v63 = vmul.f32 %v10896_v20, %v14783_v36  ;;  %v6730_v60 = vmul.f32 %v14856_v3, %v6692_v46  ;;  %v10356_v37 = vld [vmem:[%s11893_s30 + $0x28] sm:$0xff]  }
0x1179   : > { %10903 = vrsqrt.f32 %v6633_v57  ;;  %6996 = vmatprep.mubr.bf16.mxu1 %v16296_v45 }
0x117a   : > { %v6731_v4 = vmul.f32 %v14856_v3, %v6693_v63  ;;  %v14991_v19 = vadd.f32 %v14876_v62, %v6730_v60  ;;  %9204 = vmatpush3.bf16.msra.mxu0 %v10350_v35  ;;  %v10360_v63 = vld [vmem:[%s11893_s30 + $0x38] sm:$0xff]  }
0x117b   : > { %9205 = vmatprep.subr.bf16.mxu0 %v10351_v40 }
0x117c   : > { %v14994_v28 = vadd.f32 %v14876_v62, %v6731_v4 }
0x117d   : > { %v10898_v36 = vpop.eup %10897 }
0x117e   : > { %v6795_v49 = vpack.c.bf16 %v14994_v28, %v14991_v19  ;;  %v6694_v43 = vmul.f32 %v10898_v36, %v14796_v16  ;;  %9206 = vmatpush3.bf16.msra.mxu0 %v10352_v53  ;;  %v10354_v16 = vld [vmem:[%s11893_s30 + $0x20] sm:$0xff]  }
0x117f   : > { %v10900_v26 = vpop.eup %10899  ;;  %9207 = vmatprep.subr.bf16.mxu0 %v10353_v27 }
0x1180   : > { %6997 = vmatmul.mubr.bf16.gmra.mrb[244].mxu1 %v6795_v49  ;;  %v6695_v32 = vmul.f32 %v10900_v26, %v14801_v8  ;;  %v6732_v59 = vmul.f32 %v14856_v3, %v6694_v43 }
0x1181   : > { %v10902_v52 = vpop.eup %10901  ;;  %7006 = vmatprep.mubr.bf16.mxu1 %v16296_v45 }
0x1182   : > { %v6733_v38 = vmul.f32 %v14856_v3, %v6695_v32  ;;  %v15008_v10 = vadd.f32 %v14876_v62, %v6732_v59  ;;  %v6696_v14 = vmul.f32 %v10902_v52, %v14807_v18  ;;  %9208 = vmatpush3.bf16.msra.mxu0 %v10354_v16 }
0x1183   : > { %v10904_v17 = vpop.eup %10903  ;;  %9209 = vmatprep.subr.bf16.mxu0 %v10355_v13 }
0x1184   : > { %v15011_v8 = vadd.f32 %v14876_v62, %v6733_v38  ;;  %v6697_v21 = vmul.f32 %v10904_v17, %v14813_v56  ;;  %v6734_v46 = vmul.f32 %v14856_v3, %v6696_v14  ;;  %v10357_v56 = vld [vmem:[%s11893_s30 + $0x70] sm:$0xff]  }
0x1186   : > { %v6796_v12 = vpack.c.bf16 %v15011_v8, %v15008_v10  ;;  %v6735_v23 = vmul.f32 %v14856_v3, %v6697_v21  ;;  %9210 = vmatpush3.bf16.msra.mxu0 %v10356_v37  ;;  %v15028_v20 = vadd.f32 %v14876_v62, %v6734_v46 }
0x1187   : > { %9211 = vmatprep.subr.bf16.mxu0 %v10357_v56 }
0x1188   : > { %7007 = vmatmul.mubr.bf16.gmra.mrb[248].mxu1 %v6796_v12  ;;  %v15023_v18 = vadd.f32 %v14876_v62, %v6735_v23 }
0x1189   : > { %7016 = vmatprep.mubr.bf16.mxu1 %v16296_v45 }
0x118a   : > { %9212 = vmatpush3.bf16.msra.mxu0 %v10358_v42  ;;  %v6797_v57 = vpack.c.bf16 %v15023_v18, %v15028_v20 }
0x118b   : > { %9213 = vmatprep.subr.bf16.mxu0 %v10359_v58 }
0x118e   : > { %9214 = vmatpush3.bf16.msra.mxu0 %v10360_v63 }
0x1190   : > { %7017 = vmatmul.mubr.bf16.gmra.mrb[252].mxu1 %v6797_v57 }
0x1191   : > { %7026 = vmatprep.mubr.bf16.mxu1 %v16296_v45 }
0x11a6   : > { %v6555_v60 = vpop.xlane.xlu0 %6554 }
0x11a7   : > { %v6602_v4 = vmul.f32 0.0078125, %v6555_v60 }
0x11a8   : > { %v6557_v55 = vpop.xlane.xlu1 %6556 }
0x11a9   : > { %v6634_v35 = vadd.f32 1e-05, %v6602_v4  ;;  %v6603_v36 = vmul.f32 0.0078125, %v6557_v55 }
0x11aa   : > { %v6559_v49 = vpop.xlane.xlu0 %6558 }
0x11ab   : > { %10905 = vrsqrt.f32 %v6634_v35  ;;  %v6635_v43 = vadd.f32 1e-05, %v6603_v36  ;;  %v6604_v40 = vmul.f32 0.0078125, %v6559_v49 }
0x11ac   : > { %v6561_v26 = vpop.xlane.xlu1 %6560 }
0x11ad   : > { %10907 = vrsqrt.f32 %v6635_v43  ;;  %v6636_v53 = vadd.f32 1e-05, %v6604_v40  ;;  %v6605_v32 = vmul.f32 0.0078125, %v6561_v26 }
0x11af   : > { %10909 = vrsqrt.f32 %v6636_v53  ;;  %v6637_v59 = vadd.f32 1e-05, %v6605_v32 }
0x11b1   : > { %10911 = vrsqrt.f32 %v6637_v59 }
0x11b4   : > { %v6563_v52 = vpop.xlane.xlu0 %6562 }
0x11b5   : > { %v10906_v38 = vpop.eup %10905  ;;  %v6606_v27 = vmul.f32 0.0078125, %v6563_v52 }
0x11b6   : > { %v6698_v17 = vmul.f32 %v10906_v38, %v14822_v48  ;;  %v6565_v16 = vpop.xlane.xlu1 %6564 }
0x11b7   : > { %v10908_v14 = vpop.eup %10907  ;;  %v6638_v21 = vadd.f32 1e-05, %v6606_v27  ;;  %v6607_v12 = vmul.f32 0.0078125, %v6565_v16 }
0x11b8   : > { %v6736_v23 = vmul.f32 %v14856_v3, %v6698_v17  ;;  %v6699_v13 = vmul.f32 %v10908_v14, %v14825_v29 }
0x11b9   : > { %v10910_v37 = vpop.eup %10909  ;;  %10913 = vrsqrt.f32 %v6638_v21  ;;  %v6639_v46 = vadd.f32 1e-05, %v6607_v12 }
0x11ba   : > { %v6737_v56 = vmul.f32 %v14856_v3, %v6699_v13  ;;  %v15040_v57 = vadd.f32 %v14876_v62, %v6736_v23  ;;  %v6700_v58 = vmul.f32 %v10910_v37, %v14830_v24 }
0x11bb   : > { %v10912_v42 = vpop.eup %10911  ;;  %10915 = vrsqrt.f32 %v6639_v46 }
0x11bc   : > { %v15043_v48 = vadd.f32 %v14876_v62, %v6737_v56  ;;  %v6701_v63 = vmul.f32 %v10912_v42, %v14835_v31  ;;  %v6567_v60 = vpop.xlane.xlu0 %6566  ;;  %v6738_v43 = vmul.f32 %v14856_v3, %v6700_v58 }
0x11bd   : > { %v6608_v4 = vmul.f32 0.0078125, %v6567_v60 }
0x11be   : > { %v6798_v29 = vpack.c.bf16 %v15043_v48, %v15040_v57  ;;  %v6739_v55 = vmul.f32 %v14856_v3, %v6701_v63  ;;  %v6569_v35 = vpop.xlane.xlu1 %6568  ;;  %v15056_v26 = vadd.f32 %v14876_v62, %v6738_v43 }
0x11bf   : > { %v6640_v36 = vadd.f32 1e-05, %v6608_v4  ;;  %v6609_v49 = vmul.f32 0.0078125, %v6569_v35 }
0x11c0   : > { %7027 = vmatmul.mubr.bf16.gmra.mrb[0].mxu1 %v6798_v29  ;;  %v15053_v24 = vadd.f32 %v14876_v62, %v6739_v55 }
0x11c1   : > { %10917 = vrsqrt.f32 %v6640_v36  ;;  %v6641_v40 = vadd.f32 1e-05, %v6609_v49  ;;  %7036 = vmatprep.mubr.bf16.mxu1 %v16296_v45 }
0x11c2   : > { %v6799_v59 = vpack.c.bf16 %v15053_v24, %v15056_v26 }
0x11c3   : > { %v10914_v31 = vpop.eup %10913  ;;  %10919 = vrsqrt.f32 %v6641_v40 }
0x11c4   : > { %v6702_v53 = vmul.f32 %v10914_v31, %v14842_v11 }
0x11c5   : > { %v10916_v32 = vpop.eup %10915 }
0x11c6   : > { %v6703_v52 = vmul.f32 %v10916_v32, %v14845_v61  ;;  %v6740_v38 = vmul.f32 %v14856_v3, %v6702_v53 }
0x11c8   : > { %v6741_v27 = vmul.f32 %v14856_v3, %v6703_v52  ;;  %7037 = vmatmul.mubr.bf16.gmra.mrb[4].mxu1 %v6799_v59  ;;  %v15069_v14 = vadd.f32 %v14876_v62, %v6740_v38 }
0x11c9   : > { %7046 = vmatprep.mubr.bf16.mxu1 %v16296_v45 }
0x11ca   : > { %v15066_v17 = vadd.f32 %v14876_v62, %v6741_v27 }
0x11cb   : > { %v10918_v16 = vpop.eup %10917 }
0x11cc   : > { %v6704_v11 = vmul.f32 %v10918_v16, %v14859_v33  ;;  %v6800_v61 = vpack.c.bf16 %v15066_v17, %v15069_v14 }
0x11cd   : > { %v10920_v21 = vpop.eup %10919 }
0x11ce   : > { %v6705_v12 = vmul.f32 %v10920_v21, %v14863_v15  ;;  %v6742_v23 = vmul.f32 %v14856_v3, %v6704_v11 }
0x11d0   : > { %v6743_v13 = vmul.f32 %v14856_v3, %v6705_v12  ;;  %7047 = vmatmul.mubr.bf16.gmra.mrb[8].mxu1 %v6800_v61  ;;  %v15082_v46 = vadd.f32 %v14876_v62, %v6742_v23 }
0x11d1   : > { %7056 = vmatprep.mubr.bf16.mxu1 %v16296_v45 }
0x11d2   : > { %v15079_v37 = vadd.f32 %v14876_v62, %v6743_v13 }
0x11d4   : > { %v6801_v33 = vpack.c.bf16 %v15079_v37, %v15082_v46 }
0x11d8   : > { %7057 = vmatmul.mubr.bf16.gmra.mrb[12].mxu1 %v6801_v33 }
0x11d9   : > { %7066 = vmatprep.mubr.bf16.mxu1 %v16296_v45 }
0x11e6   : > { %v6571_v15 = vpop.xlane.xlu0 %6570 }
0x11e7   : > { %v6610_v56 = vmul.f32 0.0078125, %v6571_v15 }
0x11e8   : > { %v6573_v42 = vpop.xlane.xlu1 %6572 }
0x11e9   : > { %v6642_v58 = vadd.f32 1e-05, %v6610_v56  ;;  %v6611_v63 = vmul.f32 0.0078125, %v6573_v42 }
0x11eb   : > { %10921 = vrsqrt.f32 %v6642_v58  ;;  %v6643_v60 = vadd.f32 1e-05, %v6611_v63 }
0x11ed   : > { %10923 = vrsqrt.f32 %v6643_v60 }
0x11ee   : > { %v6575_v4 = vpop.xlane.xlu0 %6574 }
0x11ef   : > { %v6612_v29 = vmul.f32 0.0078125, %v6575_v4 }
0x11f0   : > { %v6577_v55 = vpop.xlane.xlu1 %6576 }
0x11f1   : > { %v6644_v35 = vadd.f32 1e-05, %v6612_v29  ;;  %v6613_v36 = vmul.f32 0.0078125, %v6577_v55  ;;  %v6822_v55 = vld [vmem:[%s11928_s21] sm:$0x3] }
0x11f3   : > { %10925 = vrsqrt.f32 %v6644_v35  ;;  %v6645_v49 = vadd.f32 1e-05, %v6613_v36 }
0x11f5   : > { %v10922_v43 = vpop.eup %10921  ;;  %10927 = vrsqrt.f32 %v6645_v49 }
0x11f6   : > { %v6706_v40 = vmul.f32 %v10922_v43, %v14915_v30  ;;  %v6579_v31 = vpop.xlane.xlu0 %6578  ;;  %v16334_v43 = vld [vmem:[#allocation36_spill] sm:$0xff] }
0x11f7   : > { %v10924_v53 = vpop.eup %10923  ;;  %v6614_v32 = vmul.f32 0.0078125, %v6579_v31 }
0x11f8   : > { %v6744_v59 = vmul.f32 %v14856_v3, %v6706_v40  ;;  %v6707_v52 = vmul.f32 %v10924_v53, %v14918_v9  ;;  %v6581_v38 = vpop.xlane.xlu1 %6580  ;;  %v16335_v40 = vsub.s32 0, %v16334_v43 }
0x11f9   : > { %v6646_v27 = vadd.f32 1e-05, %v6614_v32  ;;  %v6615_v16 = vmul.f32 0.0078125, %v6581_v38  ;;  %v16336_v32 = vsub.s32 1, %v16334_v43 }
0x11fa   : > { %v6745_v11 = vmul.f32 %v14856_v3, %v6707_v52  ;;  %v15092_v61 = vadd.f32 %v14876_v62, %v6744_v59  ;;  %v15116_v31 = vrot.slane %v6822_v55, %v16335_v40 }
0x11fb   : > { %10929 = vrsqrt.f32 %v6646_v27  ;;  %v6647_v21 = vadd.f32 1e-05, %v6615_v16  ;;  %v15120_v59 = vrot.slane %v6822_v55, %v16336_v32 }
0x11fc   : > { %v15095_v12 = vadd.f32 %v14876_v62, %v6745_v11 }
0x11fd   : > { %v10926_v30 = vpop.eup %10925  ;;  %10931 = vrsqrt.f32 %v6647_v21 }
0x11fe   : > { %v6802_v23 = vpack.c.bf16 %v15095_v12, %v15092_v61  ;;  %v6708_v9 = vmul.f32 %v10926_v30, %v14925_v51  ;;  %v6583_v13 = vpop.xlane.xlu0 %6582 }
0x11ff   : > { %v10928_v33 = vpop.eup %10927  ;;  %v6616_v15 = vmul.f32 0.0078125, %v6583_v13 }
0x1200   : > { %v6746_v56 = vmul.f32 %v14856_v3, %v6708_v9  ;;  %v6709_v42 = vmul.f32 %v10928_v33, %v14928_v47  ;;  %7067 = vmatmul.mubr.bf16.gmra.mrb[16].mxu1 %v6802_v23  ;;  %v6585_v58 = vpop.xlane.xlu1 %6584 }
0x1201   : > { %v6648_v63 = vadd.f32 1e-05, %v6616_v15  ;;  %v6617_v60 = vmul.f32 0.0078125, %v6585_v58  ;;  %7076 = vmatprep.mubr.bf16.mxu1 %v16296_v45 }
0x1202   : > { %v6747_v4 = vmul.f32 %v14856_v3, %v6709_v42  ;;  %v15106_v51 = vadd.f32 %v14876_v62, %v6746_v56 }
0x1203   : > { %10933 = vrsqrt.f32 %v6648_v63  ;;  %v6649_v29 = vadd.f32 1e-05, %v6617_v60 }
0x1204   : > { %v15109_v35 = vadd.f32 %v14876_v62, %v6747_v4 }
0x1205   : > { %v10930_v36 = vpop.eup %10929  ;;  %10935 = vrsqrt.f32 %v6649_v29 }
0x1206   : > { %v6803_v47 = vpack.c.bf16 %v15109_v35, %v15106_v51  ;;  %v6710_v49 = vmul.f32 %v10930_v36, %v14935_v2 }
0x1207   : > { %v10932_v53 = vpop.eup %10931 }
0x1208   : > { %v6748_v52 = vmul.f32 %v14856_v3, %v6710_v49  ;;  %v6711_v38 = vmul.f32 %v10932_v53, %v14939_v44  ;;  %7077 = vmatmul.mubr.bf16.gmra.mrb[20].mxu1 %v6803_v47 }
0x1209   : > { %v6948_v27 = vpop.f32.mrb[224].mxu1  ;;  %7086 = vmatprep.mubr.bf16.mxu1 %v16296_v45 }
0x120a   : > { %v6749_v16 = vmul.f32 %v14856_v3, %v6711_v38  ;;  %v6949_v2 = vadd.f32 %v6948_v27, %v15116_v31  ;;  %v6950_v11 = vpop.f32.mrb[225].mxu1  ;;  %v15129_v23 = vadd.f32 %v14876_v62, %v6748_v52 }
0x120b   : > { %v6951_v21 = vadd.f32 %v6950_v11, %v15120_v59  ;;  %v6952_v30 = vpop.f32.mrb[226].mxu1 }
0x120c   : > { %v15132_v9 = vadd.f32 %v14876_v62, %v6749_v16  ;;  %v6953_v44 = vadd.f32 %v6952_v30, %v15116_v31  ;;  %v6954_v13 = vpop.f32.mrb[227].mxu1  ;;  %v7107_v58 = vmax.f32 %v6949_v2, 0.0 }
0x120d   : > { %v10934_v33 = vpop.eup %10933  ;;  %v6955_v15 = vadd.f32 %v6954_v13, %v15120_v59  ;;  %v7108_v4 = vmax.f32 %v6951_v21, 0.0 }
0x120e   : > { %v6804_v56 = vpack.c.bf16 %v15132_v9, %v15129_v23  ;;  %v6712_v42 = vmul.f32 %v10934_v33, %v14955_v5  ;;  %v7109_v63 = vmax.f32 %v6953_v44, 0.0 }
0x120f   : > { %v10936_v60 = vpop.eup %10935  ;;  %v7110_v29 = vmax.f32 %v6955_v15, 0.0 }
0x1210   : > { %v6750_v55 = vmul.f32 %v14856_v3, %v6712_v42  ;;  %v6713_v36 = vmul.f32 %v10936_v60, %v14961_v54  ;;  %v7171_v47 = vpack.c.bf16 %v7109_v63, %v7107_v58  ;;  %7087 = vmatmul.mubr.bf16.gmra.mrb[24].mxu1 %v6804_v56 }
0x1211   : > { %v7172_v49 = vpack.c.bf16 %v7110_v29, %v7108_v4  ;;  %v6958_v43 = vpop.f32.mrb[228].mxu1  ;;  %7096 = vmatprep.mubr.bf16.mxu1 %v16296_v45 }
0x1212   : > { %v6751_v40 = vmul.f32 %v14856_v3, %v6713_v36  ;;  %v6959_v53 = vadd.f32 %v6958_v43, %v15116_v31  ;;  %v6960_v5 = vpop.f32.mrb[229].mxu1  ;;  %v15146_v38 = vadd.f32 %v14876_v62, %v6750_v55 }
0x1213   : > { %v6961_v32 = vadd.f32 %v6960_v5, %v15120_v59  ;;  %v6962_v52 = vpop.f32.mrb[230].mxu1  ;;  %7370 = vmatprep.mubr.bf16.mxu0 %v7172_v49 }
0x1214   : > { %v15149_v54 = vadd.f32 %v14876_v62, %v6751_v40  ;;  %v6963_v27 = vadd.f32 %v6962_v52, %v15116_v31  ;;  %v6964_v16 = vpop.f32.mrb[231].mxu1  ;;  %7371 = vmatmul.mubr.bf16.vlgmr.msra.gmra.mrb[192].mxu0 %v7171_v47  ;;  %v7111_v2 = vmax.f32 %v6959_v53, 0.0 }
0x1215   : > { %v6965_v45 = vadd.f32 %v6964_v16, %v15120_v59  ;;  %v7112_v21 = vmax.f32 %v6961_v32, 0.0 }
0x1216   : > { %v6805_v3 = vpack.c.bf16 %v15149_v54, %v15146_v38  ;;  %v7113_v11 = vmax.f32 %v6963_v27, 0.0 }
0x1217   : > { %v7114_v30 = vmax.f32 %v6965_v45, 0.0 }
0x1218   : > { %v7173_v44 = vpack.c.bf16 %v7113_v11, %v7111_v2  ;;  %7097 = vmatmul.mubr.bf16.gmra.mrb[28].mxu1 %v6805_v3 }
0x1219   : > { %v7174_v13 = vpack.c.bf16 %v7114_v30, %v7112_v21  ;;  %v6968_v33 = vpop.f32.mrb[232].mxu1 }
0x121a   : > { %v6969_v62 = vadd.f32 %v6968_v33, %v15116_v31  ;;  %v6970_v15 = vpop.f32.mrb[233].mxu1 }
0x121b   : > { %v6971_v56 = vadd.f32 %v6970_v15, %v15120_v59  ;;  %v6972_v42 = vpop.f32.mrb[234].mxu1  ;;  %7378 = vmatprep.mubr.bf16.mxu0 %v7174_v13 }
0x121c   : > { %v6973_v58 = vadd.f32 %v6972_v42, %v15116_v31  ;;  %v6974_v63 = vpop.f32.mrb[235].mxu1  ;;  %7379 = vmatmul.mubr.bf16.gmra.mrb[196].mxu0 %v7173_v44  ;;  %v7115_v4 = vmax.f32 %v6969_v62, 0.0 }
0x121d   : > { %v6975_v60 = vadd.f32 %v6974_v63, %v15120_v59  ;;  %v7116_v55 = vmax.f32 %v6971_v56, 0.0 }
0x121e   : > { %v7117_v29 = vmax.f32 %v6973_v58, 0.0 }
0x121f   : > { %v7118_v36 = vmax.f32 %v6975_v60, 0.0 }
0x1220   : > { %v7175_v47 = vpack.c.bf16 %v7117_v29, %v7115_v4 }
0x1221   : > { %v7176_v49 = vpack.c.bf16 %v7118_v36, %v7116_v55 }
0x1223   : > { %7386 = vmatprep.mubr.bf16.mxu0 %v7176_v49 }
0x1224   : > { %7387 = vmatmul.mubr.bf16.gmra.mrb[200].mxu0 %v7175_v47 }
0x1243   : > { %v6978_v43 = vpop.f32.mrb[236].mxu1 }
0x1244   : > { %v6979_v40 = vadd.f32 %v6978_v43, %v15116_v31  ;;  %v6980_v53 = vpop.f32.mrb[237].mxu1 }
0x1245   : > { %v6981_v5 = vadd.f32 %v6980_v53, %v15120_v59  ;;  %v6982_v32 = vpop.f32.mrb[238].mxu1 }
0x1246   : > { %v6983_v52 = vadd.f32 %v6982_v32, %v15116_v31  ;;  %v6984_v27 = vpop.f32.mrb[239].mxu1  ;;  %v7119_v45 = vmax.f32 %v6979_v40, 0.0 }
0x1247   : > { %v6985_v16 = vadd.f32 %v6984_v27, %v15120_v59  ;;  %v7120_v2 = vmax.f32 %v6981_v5, 0.0 }
0x1248   : > { %v7121_v3 = vmax.f32 %v6983_v52, 0.0 }
0x1249   : > { %v7122_v11 = vmax.f32 %v6985_v16, 0.0 }
0x124a   : > { %v7177_v21 = vpack.c.bf16 %v7121_v3, %v7119_v45 }
0x124b   : > { %v7178_v30 = vpack.c.bf16 %v7122_v11, %v7120_v2  ;;  %v6988_v44 = vpop.f32.mrb[240].mxu1 }
0x124c   : > { %v6989_v13 = vadd.f32 %v6988_v44, %v15116_v31  ;;  %v6990_v33 = vpop.f32.mrb[241].mxu1 }
0x124d   : > { %v6991_v62 = vadd.f32 %v6990_v33, %v15120_v59  ;;  %v6992_v15 = vpop.f32.mrb[242].mxu1  ;;  %7394 = vmatprep.mubr.bf16.mxu0 %v7178_v30 }
0x124e   : > { %v6993_v56 = vadd.f32 %v6992_v15, %v15116_v31  ;;  %v6994_v42 = vpop.f32.mrb[243].mxu1  ;;  %7395 = vmatmul.mubr.bf16.gmra.mrb[204].mxu0 %v7177_v21  ;;  %v7123_v63 = vmax.f32 %v6989_v13, 0.0 }
0x124f   : > { %v6995_v58 = vadd.f32 %v6994_v42, %v15120_v59  ;;  %v7124_v4 = vmax.f32 %v6991_v62, 0.0 }
0x1250   : > { %v7125_v60 = vmax.f32 %v6993_v56, 0.0 }
0x1251   : > { %v7126_v29 = vmax.f32 %v6995_v58, 0.0 }
0x1252   : > { %v7179_v55 = vpack.c.bf16 %v7125_v60, %v7123_v63 }
0x1253   : > { %v7180_v36 = vpack.c.bf16 %v7126_v29, %v7124_v4  ;;  %v6998_v47 = vpop.f32.mrb[244].mxu1 }
0x1254   : > { %v6999_v49 = vadd.f32 %v6998_v47, %v15116_v31  ;;  %v7000_v43 = vpop.f32.mrb[245].mxu1 }
0x1255   : > { %v7001_v40 = vadd.f32 %v7000_v43, %v15120_v59  ;;  %v7002_v53 = vpop.f32.mrb[246].mxu1  ;;  %7402 = vmatprep.mubr.bf16.mxu0 %v7180_v36 }
0x1256   : > { %v7003_v5 = vadd.f32 %v7002_v53, %v15116_v31  ;;  %v7004_v32 = vpop.f32.mrb[247].mxu1  ;;  %7403 = vmatmul.mubr.bf16.gmra.mrb[208].mxu0 %v7179_v55  ;;  %v7127_v27 = vmax.f32 %v6999_v49, 0.0 }
0x1257   : > { %v7005_v52 = vadd.f32 %v7004_v32, %v15120_v59  ;;  %v7128_v45 = vmax.f32 %v7001_v40, 0.0 }
0x1258   : > { %v7129_v16 = vmax.f32 %v7003_v5, 0.0 }
0x1259   : > { %v7130_v3 = vmax.f32 %v7005_v52, 0.0 }
0x125a   : > { %v7181_v2 = vpack.c.bf16 %v7129_v16, %v7127_v27 }
0x125b   : > { %v7182_v11 = vpack.c.bf16 %v7130_v3, %v7128_v45  ;;  %v7008_v21 = vpop.f32.mrb[248].mxu1 }
0x125c   : > { %v7009_v30 = vadd.f32 %v7008_v21, %v15116_v31  ;;  %v7010_v44 = vpop.f32.mrb[249].mxu1 }
0x125d   : > { %v7011_v13 = vadd.f32 %v7010_v44, %v15120_v59  ;;  %v7012_v33 = vpop.f32.mrb[250].mxu1  ;;  %7410 = vmatprep.mubr.bf16.mxu0 %v7182_v11 }
0x125e   : > { %v7013_v62 = vadd.f32 %v7012_v33, %v15116_v31  ;;  %v7014_v15 = vpop.f32.mrb[251].mxu1  ;;  %7411 = vmatmul.mubr.bf16.gmra.mrb[212].mxu0 %v7181_v2  ;;  %v7131_v42 = vmax.f32 %v7009_v30, 0.0 }
0x125f   : > { %v7015_v56 = vadd.f32 %v7014_v15, %v15120_v59  ;;  %v7132_v63 = vmax.f32 %v7011_v13, 0.0 }
0x1260   : > { %v7133_v58 = vmax.f32 %v7013_v62, 0.0 }
0x1261   : > { %v7134_v60 = vmax.f32 %v7015_v56, 0.0 }
0x1262   : > { %v7183_v4 = vpack.c.bf16 %v7133_v58, %v7131_v42 }
0x1263   : > { %v7184_v29 = vpack.c.bf16 %v7134_v60, %v7132_v63  ;;  %v7018_v55 = vpop.f32.mrb[252].mxu1 }
0x1264   : > { %v7019_v36 = vadd.f32 %v7018_v55, %v15116_v31  ;;  %v7020_v47 = vpop.f32.mrb[253].mxu1 }
0x1265   : > { %v7021_v49 = vadd.f32 %v7020_v47, %v15120_v59  ;;  %v7022_v43 = vpop.f32.mrb[254].mxu1  ;;  %7418 = vmatprep.mubr.bf16.mxu0 %v7184_v29 }
0x1266   : > { %v7023_v40 = vadd.f32 %v7022_v43, %v15116_v31  ;;  %v7024_v53 = vpop.f32.mrb[255].mxu1  ;;  %7419 = vmatmul.mubr.bf16.gmra.mrb[216].mxu0 %v7183_v4  ;;  %v7135_v32 = vmax.f32 %v7019_v36, 0.0 }
0x1267   : > { %v7025_v5 = vadd.f32 %v7024_v53, %v15120_v59  ;;  %v7136_v27 = vmax.f32 %v7021_v49, 0.0 }
0x1268   : > { %v7137_v52 = vmax.f32 %v7023_v40, 0.0 }
0x1269   : > { %v7138_v16 = vmax.f32 %v7025_v5, 0.0 }
0x126a   : > { %v7185_v45 = vpack.c.bf16 %v7137_v52, %v7135_v32 }
0x126b   : > { %v7186_v3 = vpack.c.bf16 %v7138_v16, %v7136_v27 }
0x126d   : > { %7426 = vmatprep.mubr.bf16.mxu0 %v7186_v3 }
0x126e   : > { %7427 = vmatmul.mubr.bf16.gmra.mrb[220].mxu0 %v7185_v45 }
0x1293   : > { %v7028_v2 = vpop.f32.mrb[0].mxu1 }
0x1294   : > { %v7029_v11 = vadd.f32 %v7028_v2, %v15116_v31  ;;  %v7030_v21 = vpop.f32.mrb[1].mxu1 }
0x1295   : > { %v7031_v30 = vadd.f32 %v7030_v21, %v15120_v59  ;;  %v7032_v44 = vpop.f32.mrb[2].mxu1 }
0x1296   : > { %v7033_v13 = vadd.f32 %v7032_v44, %v15116_v31  ;;  %v7034_v33 = vpop.f32.mrb[3].mxu1  ;;  %v7139_v15 = vmax.f32 %v7029_v11, 0.0 }
0x1297   : > { %v7035_v62 = vadd.f32 %v7034_v33, %v15120_v59  ;;  %v7140_v42 = vmax.f32 %v7031_v30, 0.0 }
0x1298   : > { %v7141_v56 = vmax.f32 %v7033_v13, 0.0 }
0x1299   : > { %v7142_v58 = vmax.f32 %v7035_v62, 0.0 }
0x129a   : > { %v7187_v63 = vpack.c.bf16 %v7141_v56, %v7139_v15 }
0x129b   : > { %v7188_v60 = vpack.c.bf16 %v7142_v58, %v7140_v42  ;;  %v7038_v4 = vpop.f32.mrb[4].mxu1 }
0x129c   : > { %v7039_v29 = vadd.f32 %v7038_v4, %v15116_v31  ;;  %v7040_v55 = vpop.f32.mrb[5].mxu1 }
0x129d   : > { %v7041_v36 = vadd.f32 %v7040_v55, %v15120_v59  ;;  %v7042_v47 = vpop.f32.mrb[6].mxu1  ;;  %7434 = vmatprep.mubr.bf16.mxu0 %v7188_v60 }
0x129e   : > { %v7043_v49 = vadd.f32 %v7042_v47, %v15116_v31  ;;  %v7044_v43 = vpop.f32.mrb[7].mxu1  ;;  %7435 = vmatmul.mubr.bf16.gmra.mrb[224].mxu0 %v7187_v63  ;;  %v7143_v53 = vmax.f32 %v7039_v29, 0.0 }
0x129f   : > { %v7045_v40 = vadd.f32 %v7044_v43, %v15120_v59  ;;  %v7144_v32 = vmax.f32 %v7041_v36, 0.0 }
0x12a0   : > { %v7145_v5 = vmax.f32 %v7043_v49, 0.0 }
0x12a1   : > { %v7146_v52 = vmax.f32 %v7045_v40, 0.0 }
0x12a2   : > { %v7189_v27 = vpack.c.bf16 %v7145_v5, %v7143_v53 }
0x12a3   : > { %v7190_v16 = vpack.c.bf16 %v7146_v52, %v7144_v32  ;;  %v7048_v45 = vpop.f32.mrb[8].mxu1 }
0x12a4   : > { %v7049_v3 = vadd.f32 %v7048_v45, %v15116_v31  ;;  %v7050_v2 = vpop.f32.mrb[9].mxu1 }
0x12a5   : > { %v7051_v11 = vadd.f32 %v7050_v2, %v15120_v59  ;;  %v7052_v21 = vpop.f32.mrb[10].mxu1  ;;  %7442 = vmatprep.mubr.bf16.mxu0 %v7190_v16 }
0x12a6   : > { %v7053_v30 = vadd.f32 %v7052_v21, %v15116_v31  ;;  %v7054_v44 = vpop.f32.mrb[11].mxu1  ;;  %7443 = vmatmul.mubr.bf16.gmra.mrb[228].mxu0 %v7189_v27  ;;  %v7147_v33 = vmax.f32 %v7049_v3, 0.0 }
0x12a7   : > { %v7055_v13 = vadd.f32 %v7054_v44, %v15120_v59  ;;  %v7148_v15 = vmax.f32 %v7051_v11, 0.0 }
0x12a8   : > { %v7149_v62 = vmax.f32 %v7053_v30, 0.0 }
0x12a9   : > { %v7150_v56 = vmax.f32 %v7055_v13, 0.0 }
0x12aa   : > { %v7191_v42 = vpack.c.bf16 %v7149_v62, %v7147_v33 }
0x12ab   : > { %v7192_v58 = vpack.c.bf16 %v7150_v56, %v7148_v15  ;;  %v7058_v63 = vpop.f32.mrb[12].mxu1 }
0x12ac   : > { %v7059_v60 = vadd.f32 %v7058_v63, %v15116_v31  ;;  %v7060_v4 = vpop.f32.mrb[13].mxu1 }
0x12ad   : > { %v7061_v29 = vadd.f32 %v7060_v4, %v15120_v59  ;;  %v7062_v55 = vpop.f32.mrb[14].mxu1  ;;  %7450 = vmatprep.mubr.bf16.mxu0 %v7192_v58 }
0x12ae   : > { %v7063_v36 = vadd.f32 %v7062_v55, %v15116_v31  ;;  %v7064_v47 = vpop.f32.mrb[15].mxu1  ;;  %7451 = vmatmul.mubr.bf16.gmra.mrb[232].mxu0 %v7191_v42  ;;  %v7151_v43 = vmax.f32 %v7059_v60, 0.0 }
0x12af   : > { %v7065_v49 = vadd.f32 %v7064_v47, %v15120_v59  ;;  %v7152_v53 = vmax.f32 %v7061_v29, 0.0 }
0x12b0   : > { %v7153_v40 = vmax.f32 %v7063_v36, 0.0 }
0x12b1   : > { %v7154_v5 = vmax.f32 %v7065_v49, 0.0 }
0x12b2   : > { %v7193_v32 = vpack.c.bf16 %v7153_v40, %v7151_v43 }
0x12b3   : > { %v7194_v52 = vpack.c.bf16 %v7154_v5, %v7152_v53 }
0x12b5   : > { %7458 = vmatprep.mubr.bf16.mxu0 %v7194_v52 }
0x12b6   : > { %7459 = vmatmul.mubr.bf16.gmra.mrb[236].mxu0 %v7193_v32 }
0x12d3   : > { %v7068_v27 = vpop.f32.mrb[16].mxu1 }
0x12d4   : > { %v7069_v16 = vadd.f32 %v7068_v27, %v15116_v31  ;;  %v7070_v45 = vpop.f32.mrb[17].mxu1 }
0x12d5   : > { %v7071_v3 = vadd.f32 %v7070_v45, %v15120_v59  ;;  %v7072_v2 = vpop.f32.mrb[18].mxu1 }
0x12d6   : > { %v7073_v11 = vadd.f32 %v7072_v2, %v15116_v31  ;;  %v7074_v21 = vpop.f32.mrb[19].mxu1  ;;  %v7155_v44 = vmax.f32 %v7069_v16, 0.0 }
0x12d7   : > { %v7075_v30 = vadd.f32 %v7074_v21, %v15120_v59  ;;  %v7156_v33 = vmax.f32 %v7071_v3, 0.0 }
0x12d8   : > { %v7157_v13 = vmax.f32 %v7073_v11, 0.0 }
0x12d9   : > { %v7158_v62 = vmax.f32 %v7075_v30, 0.0 }
0x12da   : > { %v7195_v15 = vpack.c.bf16 %v7157_v13, %v7155_v44  ;;  %v15212_v13 = vld [vmem:[%s890_s13] ss:$0 sm:$0xff] }
0x12db   : > { %v7196_v56 = vpack.c.bf16 %v7158_v62, %v7156_v33  ;;  %v7078_v42 = vpop.f32.mrb[20].mxu1 }
0x12dc   : > { %v7079_v58 = vadd.f32 %v7078_v42, %v15116_v31  ;;  %v7080_v63 = vpop.f32.mrb[21].mxu1 }
0x12dd   : > { %v7081_v60 = vadd.f32 %v7080_v63, %v15120_v59  ;;  %v7082_v4 = vpop.f32.mrb[22].mxu1  ;;  %7466 = vmatprep.mubr.bf16.mxu0 %v7196_v56 }
0x12de   : > { %v7083_v29 = vadd.f32 %v7082_v4, %v15116_v31  ;;  %v7084_v55 = vpop.f32.mrb[23].mxu1  ;;  %7467 = vmatmul.mubr.bf16.gmra.mrb[240].mxu0 %v7195_v15  ;;  %v7159_v47 = vmax.f32 %v7079_v58, 0.0 }
0x12df   : > { %v7085_v36 = vadd.f32 %v7084_v55, %v15120_v59  ;;  %v7160_v43 = vmax.f32 %v7081_v60, 0.0 }
0x12e0   : > { %v7161_v49 = vmax.f32 %v7083_v29, 0.0 }
0x12e1   : > { %v7162_v40 = vmax.f32 %v7085_v36, 0.0 }
0x12e2   : > { %v7197_v53 = vpack.c.bf16 %v7161_v49, %v7159_v47 }
0x12e3   : > { %v7198_v5 = vpack.c.bf16 %v7162_v40, %v7160_v43  ;;  %v7088_v32 = vpop.f32.mrb[24].mxu1 }
0x12e4   : > { %v7089_v52 = vadd.f32 %v7088_v32, %v15116_v31  ;;  %v7090_v27 = vpop.f32.mrb[25].mxu1 }
0x12e5   : > { %v7091_v16 = vadd.f32 %v7090_v27, %v15120_v59  ;;  %v7092_v45 = vpop.f32.mrb[26].mxu1  ;;  %7474 = vmatprep.mubr.bf16.mxu0 %v7198_v5 }
0x12e6   : > { %v7093_v3 = vadd.f32 %v7092_v45, %v15116_v31  ;;  %v7094_v2 = vpop.f32.mrb[27].mxu1  ;;  %7475 = vmatmul.mubr.bf16.gmra.mrb[244].mxu0 %v7197_v53  ;;  %v7163_v30 = vmax.f32 %v7089_v52, 0.0 }
0x12e7   : > { %v7095_v11 = vadd.f32 %v7094_v2, %v15120_v59  ;;  %v9215_v21 = vpop.f32.mrb[192].mxu0  ;;  %v7164_v62 = vmax.f32 %v7091_v16, 0.0 }
0x12e8   : > { %v7165_v44 = vmax.f32 %v7093_v3, 0.0  ;;  %v9216_v33 = vpop.f32.mrb[193].mxu0 }
0x12e9   : > { %v7166_v15 = vmax.f32 %v7095_v11, 0.0  ;;  %v9217_v56 = vadd.f32 %v9216_v33, %v9215_v21  ;;  %v9218_v42 = vpop.f32.mrb[194].mxu0 }
0x12ea   : > { %v7199_v58 = vpack.c.bf16 %v7165_v44, %v7163_v30  ;;  %v9219_v63 = vpop.f32.mrb[195].mxu0 }
0x12eb   : > { %v7200_v60 = vpack.c.bf16 %v7166_v15, %v7164_v62  ;;  %v7373_v4 = vadd.f32 %v9217_v56, %v15212_v13  ;;  %v9220_v29 = vadd.f32 %v9219_v63, %v9218_v42  ;;  %v7098_v55 = vpop.f32.mrb[28].mxu1 }
0x12ec   : > { %v7099_v36 = vadd.f32 %v7098_v55, %v15116_v31  ;;  %v7100_v47 = vpop.f32.mrb[29].mxu1 }
0x12ed   : > { %v7376_v49 = vadd.f32 %v9220_v29, %v15212_v13  ;;  %v7101_v43 = vadd.f32 %v7100_v47, %v15120_v59  ;;  %v7102_v40 = vpop.f32.mrb[30].mxu1  ;;  %7482 = vmatprep.mubr.bf16.mxu0 %v7200_v60  ;;  %v15219_v53 = vadd.f32 %v7373_v4, %v14880_v6 }
0x12ee   : > { %v7103_v5 = vadd.f32 %v7102_v40, %v15116_v31  ;;  %v7104_v32 = vpop.f32.mrb[31].mxu1  ;;  %7483 = vmatmul.mubr.bf16.gmra.mrb[248].mxu0 %v7199_v58  ;;  %v7167_v45 = vmax.f32 %v7099_v36, 0.0 }
0x12ef   : > { %v7105_v52 = vadd.f32 %v7104_v32, %v15120_v59  ;;  %v9221_v27 = vpop.f32.mrb[196].mxu0  ;;  %7533 = vadd.xlane.f32.xlu0 %v15219_v53  ;;  %v15225_v16 = vadd.f32 %v7376_v49, %v14883_v41  ;;  %v7168_v11 = vmax.f32 %v7101_v43, 0.0 }
0x12f0   : > { %v7169_v3 = vmax.f32 %v7103_v5, 0.0  ;;  %v9222_v2 = vpop.f32.mrb[197].mxu0 }
0x12f1   : > { %v7170_v21 = vmax.f32 %v7105_v52, 0.0  ;;  %v9223_v30 = vadd.f32 %v9222_v2, %v9221_v27  ;;  %v9224_v6 = vpop.f32.mrb[198].mxu0  ;;  %7535 = vadd.xlane.f32.xlu1 %v15225_v16 }
0x12f2   : > { %v7201_v31 = vpack.c.bf16 %v7169_v3, %v7167_v45  ;;  %v9225_v44 = vpop.f32.mrb[199].mxu0 }
0x12f3   : > { %v7202_v33 = vpack.c.bf16 %v7170_v21, %v7168_v11  ;;  %v7381_v59 = vadd.f32 %v9223_v30, %v15212_v13  ;;  %v9226_v62 = vadd.f32 %v9225_v44, %v9224_v6 }
0x12f5   : > { %v7384_v15 = vadd.f32 %v9226_v62, %v15212_v13  ;;  %7490 = vmatprep.mubr.bf16.mxu0 %v7202_v33  ;;  %v15231_v41 = vadd.f32 %v7381_v59, %v14893_v34 }
0x12f6   : > { %7491 = vmatmul.mubr.bf16.gmra.mrb[252].mxu0 %v7201_v31 }
0x12f7   : > { %v9227_v56 = vpop.f32.mrb[200].mxu0  ;;  %7537 = vadd.xlane.f32.xlu0 %v15231_v41  ;;  %v15235_v42 = vadd.f32 %v7384_v15, %v14896_v1 }
0x12f8   : > { %v9228_v58 = vpop.f32.mrb[201].mxu0 }
0x12f9   : > { %v9229_v63 = vadd.f32 %v9228_v58, %v9227_v56  ;;  %v9230_v60 = vpop.f32.mrb[202].mxu0  ;;  %7539 = vadd.xlane.f32.xlu1 %v15235_v42 }
0x12fa   : > { %v9231_v4 = vpop.f32.mrb[203].mxu0 }
0x12fb   : > { %v7389_v29 = vadd.f32 %v9229_v63, %v15212_v13  ;;  %v9232_v55 = vadd.f32 %v9231_v4, %v9230_v60 }
0x12fd   : > { %v7392_v36 = vadd.f32 %v9232_v55, %v15212_v13  ;;  %v15241_v34 = vadd.f32 %v7389_v29, %v14906_v22 }
0x12ff   : > { %7541 = vadd.xlane.f32.xlu0 %v15241_v34  ;;  %v15245_v47 = vadd.f32 %v7392_v36, %v14909_v25 }
0x1301   : > { %7543 = vadd.xlane.f32.xlu1 %v15245_v47 }
0x1321   : > { %v9233_v1 = vpop.f32.mrb[204].mxu0 }
0x1322   : > { %v9234_v49 = vpop.f32.mrb[205].mxu0 }
0x1323   : > { %v9235_v43 = vadd.f32 %v9234_v49, %v9233_v1  ;;  %v9236_v40 = vpop.f32.mrb[206].mxu0 }
0x1324   : > { %v9237_v5 = vpop.f32.mrb[207].mxu0 }
0x1325   : > { %v7397_v32 = vadd.f32 %v9235_v43, %v15212_v13  ;;  %v9238_v52 = vadd.f32 %v9237_v5, %v9236_v40 }
0x1327   : > { %v7400_v27 = vadd.f32 %v9238_v52, %v15212_v13  ;;  %v15251_v22 = vadd.f32 %v7397_v32, %v14949_v0 }
0x1329   : > { %v9239_v45 = vpop.f32.mrb[208].mxu0  ;;  %7545 = vadd.xlane.f32.xlu0 %v15251_v22  ;;  %v15255_v25 = vadd.f32 %v7400_v27, %v14952_v39 }
0x132a   : > { %v9240_v3 = vpop.f32.mrb[209].mxu0 }
0x132b   : > { %v9241_v2 = vadd.f32 %v9240_v3, %v9239_v45  ;;  %v9242_v11 = vpop.f32.mrb[210].mxu0  ;;  %7547 = vadd.xlane.f32.xlu1 %v15255_v25 }
0x132c   : > { %v9243_v21 = vpop.f32.mrb[211].mxu0 }
0x132d   : > { %v7405_v30 = vadd.f32 %v9241_v2, %v15212_v13  ;;  %v9244_v6 = vadd.f32 %v9243_v21, %v9242_v11 }
0x132f   : > { %v7408_v31 = vadd.f32 %v9244_v6, %v15212_v13  ;;  %v15261_v0 = vadd.f32 %v7405_v30, %v14974_v50 }
0x1331   : > { %7549 = vadd.xlane.f32.xlu0 %v15261_v0  ;;  %v9245_v44 = vpop.f32.mrb[212].mxu0  ;;  %v15265_v39 = vadd.f32 %v7408_v31, %v14977_v7 }
0x1332   : > { %v9246_v33 = vpop.f32.mrb[213].mxu0 }
0x1333   : > { %v9247_v59 = vadd.f32 %v9246_v33, %v9245_v44  ;;  %v9248_v62 = vpop.f32.mrb[214].mxu0  ;;  %7551 = vadd.xlane.f32.xlu1 %v15265_v39 }
0x1334   : > { %v9249_v15 = vpop.f32.mrb[215].mxu0 }
0x1335   : > { %v7413_v56 = vadd.f32 %v9247_v59, %v15212_v13  ;;  %v9250_v58 = vadd.f32 %v9249_v15, %v9248_v62 }
0x1337   : > { %v7416_v63 = vadd.f32 %v9250_v58, %v15212_v13  ;;  %v15271_v50 = vadd.f32 %v7413_v56, %v14991_v19 }
0x1339   : > { %7553 = vadd.xlane.f32.xlu0 %v15271_v50  ;;  %v9251_v60 = vpop.f32.mrb[216].mxu0  ;;  %v15275_v7 = vadd.f32 %v7416_v63, %v14994_v28 }
0x133a   : > { %v9252_v4 = vpop.f32.mrb[217].mxu0 }
0x133b   : > { %v9253_v29 = vadd.f32 %v9252_v4, %v9251_v60  ;;  %7555 = vadd.xlane.f32.xlu1 %v15275_v7  ;;  %v9254_v55 = vpop.f32.mrb[218].mxu0 }
0x133c   : > { %v9255_v36 = vpop.f32.mrb[219].mxu0 }
0x133d   : > { %v7421_v1 = vadd.f32 %v9253_v29, %v15212_v13  ;;  %v9256_v49 = vadd.f32 %v9255_v36, %v9254_v55 }
0x133f   : > { %v7424_v43 = vadd.f32 %v9256_v49, %v15212_v13  ;;  %v15281_v19 = vadd.f32 %v7421_v1, %v15008_v10 }
0x1341   : > { %7557 = vadd.xlane.f32.xlu0 %v15281_v19  ;;  %v9257_v40 = vpop.f32.mrb[220].mxu0  ;;  %v15285_v28 = vadd.f32 %v7424_v43, %v15011_v8 }
0x1342   : > { %v9258_v5 = vpop.f32.mrb[221].mxu0 }
0x1343   : > { %v9259_v32 = vadd.f32 %v9258_v5, %v9257_v40  ;;  %7559 = vadd.xlane.f32.xlu1 %v15285_v28  ;;  %v9260_v52 = vpop.f32.mrb[222].mxu0 }
0x1344   : > { %v9261_v27 = vpop.f32.mrb[223].mxu0 }
0x1345   : > { %v7429_v45 = vadd.f32 %v9259_v32, %v15212_v13  ;;  %v9262_v3 = vadd.f32 %v9261_v27, %v9260_v52 }
0x1347   : > { %v7432_v2 = vadd.f32 %v9262_v3, %v15212_v13  ;;  %v15291_v10 = vadd.f32 %v7429_v45, %v15028_v20 }
0x1349   : > { %7561 = vadd.xlane.f32.xlu0 %v15291_v10  ;;  %v15295_v11 = vadd.f32 %v7432_v2, %v15023_v18 }
0x134b   : > { %7563 = vadd.xlane.f32.xlu1 %v15295_v11 }
0x1371   : > { %v9263_v8 = vpop.f32.mrb[224].mxu0 }
0x1372   : > { %v9264_v21 = vpop.f32.mrb[225].mxu0 }
0x1373   : > { %v9265_v30 = vadd.f32 %v9264_v21, %v9263_v8  ;;  %v9266_v6 = vpop.f32.mrb[226].mxu0 }
0x1374   : > { %v9267_v31 = vpop.f32.mrb[227].mxu0 }
0x1375   : > { %v7437_v44 = vadd.f32 %v9265_v30, %v15212_v13  ;;  %v9268_v33 = vadd.f32 %v9267_v31, %v9266_v6 }
0x1377   : > { %v7440_v59 = vadd.f32 %v9268_v33, %v15212_v13  ;;  %v15301_v20 = vadd.f32 %v7437_v44, %v15040_v57 }
0x1379   : > { %7565 = vadd.xlane.f32.xlu0 %v15301_v20  ;;  %v9269_v62 = vpop.f32.mrb[228].mxu0  ;;  %v15305_v18 = vadd.f32 %v7440_v59, %v15043_v48 }
0x137a   : > { %v9270_v15 = vpop.f32.mrb[229].mxu0 }
0x137b   : > { %v9271_v56 = vadd.f32 %v9270_v15, %v9269_v62  ;;  %7567 = vadd.xlane.f32.xlu1 %v15305_v18  ;;  %v9272_v58 = vpop.f32.mrb[230].mxu0 }
0x137c   : > { %v9273_v63 = vpop.f32.mrb[231].mxu0 }
0x137d   : > { %v7445_v60 = vadd.f32 %v9271_v56, %v15212_v13  ;;  %v9274_v4 = vadd.f32 %v9273_v63, %v9272_v58 }
0x137f   : > { %v7448_v29 = vadd.f32 %v9274_v4, %v15212_v13  ;;  %v15311_v57 = vadd.f32 %v7445_v60, %v15056_v26 }
0x1381   : > { %7569 = vadd.xlane.f32.xlu0 %v15311_v57  ;;  %v9275_v55 = vpop.f32.mrb[232].mxu0  ;;  %v15315_v48 = vadd.f32 %v7448_v29, %v15053_v24 }
0x1382   : > { %v9276_v36 = vpop.f32.mrb[233].mxu0 }
0x1383   : > { %v9277_v1 = vadd.f32 %v9276_v36, %v9275_v55  ;;  %7571 = vadd.xlane.f32.xlu1 %v15315_v48  ;;  %v9278_v49 = vpop.f32.mrb[234].mxu0 }
0x1384   : > { %v9279_v43 = vpop.f32.mrb[235].mxu0 }
0x1385   : > { %v7453_v40 = vadd.f32 %v9277_v1, %v15212_v13  ;;  %v9280_v5 = vadd.f32 %v9279_v43, %v9278_v49 }
0x1387   : > { %v7456_v32 = vadd.f32 %v9280_v5, %v15212_v13  ;;  %v15321_v26 = vadd.f32 %v7453_v40, %v15069_v14 }
0x1389   : > { %7573 = vadd.xlane.f32.xlu0 %v15321_v26  ;;  %v9281_v52 = vpop.f32.mrb[236].mxu0  ;;  %v15325_v24 = vadd.f32 %v7456_v32, %v15066_v17 }
0x138a   : > { %v9282_v27 = vpop.f32.mrb[237].mxu0 }
0x138b   : > { %v9283_v45 = vadd.f32 %v9282_v27, %v9281_v52  ;;  %7575 = vadd.xlane.f32.xlu1 %v15325_v24  ;;  %v9284_v3 = vpop.f32.mrb[238].mxu0 }
0x138c   : > { %v9285_v2 = vpop.f32.mrb[239].mxu0 }
0x138d   : > { %v7461_v8 = vadd.f32 %v9283_v45, %v15212_v13  ;;  %v9286_v21 = vadd.f32 %v9285_v2, %v9284_v3  ;;  %v7534_v3 = vpop.xlane.xlu0 %7533 }
0x138f   : > { %v7464_v30 = vadd.f32 %v9286_v21, %v15212_v13  ;;  %v15331_v14 = vadd.f32 %v7461_v8, %v15082_v46  ;;  %v7536_v8 = vpop.xlane.xlu1 %7535 }
0x1391   : > { %7577 = vadd.xlane.f32.xlu0 %v15331_v14  ;;  %v15335_v6 = vadd.f32 %v7464_v30, %v15079_v37  ;;  %v7597_v30 = vmul.f32 0.0078125, %v7534_v3 }
0x1393   : > { %7579 = vadd.xlane.f32.xlu1 %v15335_v6 }
0x13b1   : > { %v9287_v17 = vpop.f32.mrb[240].mxu0 }
0x13b2   : > { %v9288_v31 = vpop.f32.mrb[241].mxu0 }
0x13b3   : > { %v9289_v44 = vadd.f32 %v9288_v31, %v9287_v17  ;;  %v9290_v33 = vpop.f32.mrb[242].mxu0 }
0x13b4   : > { %v9291_v59 = vpop.f32.mrb[243].mxu0 }
0x13b5   : > { %v7469_v62 = vadd.f32 %v9289_v44, %v15212_v13  ;;  %v9292_v15 = vadd.f32 %v9291_v59, %v9290_v33  ;;  %v7538_v44 = vpop.xlane.xlu0 %7537  ;;  %v7598_v59 = vmul.f32 0.0078125, %v7536_v8 }
0x13b7   : > { %v7472_v56 = vadd.f32 %v9292_v15, %v15212_v13  ;;  %v15341_v46 = vadd.f32 %v7469_v62, %v15092_v61  ;;  %v7540_v15 = vpop.xlane.xlu1 %7539 }
0x13b9   : > { %7581 = vadd.xlane.f32.xlu0 %v15341_v46  ;;  %v9293_v58 = vpop.f32.mrb[244].mxu0  ;;  %v15345_v37 = vadd.f32 %v7472_v56, %v15095_v12  ;;  %v15370_v56 = vsub.f32 %v15219_v53, %v7597_v30 }
0x13ba   : > { %v9294_v63 = vpop.f32.mrb[245].mxu0 }
0x13bb   : > { %v9295_v60 = vadd.f32 %v9294_v63, %v9293_v58  ;;  %7583 = vadd.xlane.f32.xlu1 %v15345_v37  ;;  %v9296_v4 = vpop.f32.mrb[246].mxu0  ;;  %v7599_v58 = vmul.f32 0.0078125, %v7538_v44 }
0x13bc   : > { %v9297_v29 = vpop.f32.mrb[247].mxu0 }
0x13bd   : > { %v7477_v55 = vadd.f32 %v9295_v60, %v15212_v13  ;;  %v9298_v36 = vadd.f32 %v9297_v29, %v9296_v4  ;;  %v7542_v60 = vpop.xlane.xlu0 %7541  ;;  %v15377_v4 = vsub.f32 %v15225_v16, %v7598_v59  ;;  %v7600_v29 = vmul.f32 0.0078125, %v7540_v15 }
0x13be   : > { %v15384_v53 = vsub.f32 %v15231_v41, %v7599_v58 }
0x13bf   : > { %v7480_v1 = vadd.f32 %v9298_v36, %v15212_v13  ;;  %v15351_v61 = vadd.f32 %v7477_v55, %v15106_v51  ;;  %v7544_v36 = vpop.xlane.xlu1 %7543  ;;  %v15390_v16 = vsub.f32 %v15235_v42, %v7600_v29 }
0x13c1   : > { %7585 = vadd.xlane.f32.xlu0 %v15351_v61  ;;  %v9299_v49 = vpop.f32.mrb[248].mxu0  ;;  %v15355_v12 = vadd.f32 %v7480_v1, %v15109_v35  ;;  %v7601_v1 = vmul.f32 0.0078125, %v7542_v60 }
0x13c2   : > { %v9300_v43 = vpop.f32.mrb[249].mxu0 }
0x13c3   : > { %v9301_v40 = vadd.f32 %v9300_v43, %v9299_v49  ;;  %7587 = vadd.xlane.f32.xlu1 %v15355_v12  ;;  %v9302_v5 = vpop.f32.mrb[250].mxu0  ;;  %v7602_v49 = vmul.f32 0.0078125, %v7544_v36  ;;  %v7548_v43 = vpop.xlane.xlu1 %7547 }
0x13c4   : > { %v9303_v32 = vpop.f32.mrb[251].mxu0  ;;  %v7604_v42 = vmul.f32 0.0078125, %v7548_v43 }
0x13c5   : > { %v7485_v52 = vadd.f32 %v9301_v40, %v15212_v13  ;;  %v9304_v27 = vadd.f32 %v9303_v32, %v9302_v5  ;;  %v15395_v40 = vsub.f32 %v15241_v34, %v7601_v1  ;;  %v7663_v5 = vmul.f32 %v15384_v53, %v15384_v53 }
0x13c7   : > { %v7488_v45 = vadd.f32 %v9304_v27, %v15212_v13  ;;  %v15361_v51 = vadd.f32 %v7485_v52, %v15129_v23  ;;  %v15400_v52 = vsub.f32 %v15245_v47, %v7602_v49  ;;  %v7664_v27 = vmul.f32 %v15390_v16, %v15390_v16 }
0x13c9   : > { %7589 = vadd.xlane.f32.xlu0 %v15361_v51  ;;  %v9305_v2 = vpop.f32.mrb[252].mxu0  ;;  %v15365_v35 = vadd.f32 %v7488_v45, %v15132_v9  ;;  %v7552_v45 = vpop.xlane.xlu1 %7551  ;;  %v7666_v30 = vmul.f32 %v15400_v52, %v15400_v52 }
0x13ca   : > { %v9306_v21 = vpop.f32.mrb[253].mxu0  ;;  %v7606_v47 = vmul.f32 0.0078125, %v7552_v45 }
0x13cb   : > { %v9307_v17 = vadd.f32 %v9306_v21, %v9305_v2  ;;  %7591 = vadd.xlane.f32.xlu1 %v15365_v35  ;;  %v9308_v31 = vpop.f32.mrb[254].mxu0  ;;  %v7665_v2 = vmul.f32 %v15395_v40, %v15395_v40  ;;  %v15410_v21 = vsub.f32 %v15255_v25, %v7604_v42 }
0x13cc   : > { %v9309_v33 = vpop.f32.mrb[255].mxu0  ;;  %v15420_v59 = vsub.f32 %v15265_v39, %v7606_v47 }
0x13cd   : > { %v7493_v23 = vadd.f32 %v9307_v17, %v15212_v13  ;;  %v9310_v62 = vadd.f32 %v9309_v33, %v9308_v31  ;;  %v7556_v17 = vpop.xlane.xlu1 %7555 }
0x13ce   : > { %v7608_v25 = vmul.f32 0.0078125, %v7556_v17  ;;  %v7670_v29 = vmul.f32 %v15420_v59, %v15420_v59 }
0x13cf   : > { %v7496_v9 = vadd.f32 %v9310_v62, %v15212_v13  ;;  %v15374_v63 = vadd.f32 %v7493_v23, %v15146_v38  ;;  %v7661_v38 = vmul.f32 %v15370_v56, %v15370_v56  ;;  %v7546_v13 = vpop.xlane.xlu0 %7545  ;;  %v7668_v23 = vmul.f32 %v15410_v21, %v15410_v21 }
0x13d0   : > { %v7603_v41 = vmul.f32 0.0078125, %v7546_v13  ;;  %v15430_v60 = vsub.f32 %v15275_v7, %v7608_v25 }
0x13d1   : > { %7593 = vadd.xlane.f32.xlu0 %v15374_v63  ;;  %v15381_v55 = vadd.f32 %v7496_v9, %v15149_v54  ;;  %v7662_v54 = vmul.f32 %v15377_v4, %v15377_v4  ;;  %v7560_v62 = vpop.xlane.xlu1 %7559 }
0x13d2   : > { %v15405_v3 = vsub.f32 %v15251_v22, %v7603_v41  ;;  %v7610_v39 = vmul.f32 0.0078125, %v7560_v62  ;;  %v7672_v7 = vmul.f32 %v15430_v60, %v15430_v60 }
0x13d3   : > { %7595 = vadd.xlane.f32.xlu1 %v15381_v55  ;;  %v7550_v32 = vpop.xlane.xlu0 %7549 }
0x13d4   : > { %v7605_v34 = vmul.f32 0.0078125, %v7550_v32  ;;  %v7667_v44 = vmul.f32 %v15405_v3, %v15405_v3  ;;  %v15440_v13 = vsub.f32 %v15285_v28, %v7610_v39 }
0x13d5   : > { %7693 = vadd.xlane.f32.xlu0 %v7661_v38 }
0x13d6   : > { %v15415_v31 = vsub.f32 %v15261_v0, %v7605_v34  ;;  %v7674_v28 = vmul.f32 %v15440_v13, %v15440_v13 }
0x13d7   : > { %7695 = vadd.xlane.f32.xlu1 %v7662_v54  ;;  %v7554_v8 = vpop.xlane.xlu0 %7553 }
0x13d8   : > { %v7607_v22 = vmul.f32 0.0078125, %v7554_v8  ;;  %v7669_v58 = vmul.f32 %v15415_v31, %v15415_v31  ;;  %v7564_v36 = vpop.xlane.xlu1 %7563 }
0x13d9   : > { %7697 = vadd.xlane.f32.xlu0 %v7663_v5  ;;  %v7612_v49 = vmul.f32 0.0078125, %v7564_v36 }
0x13da   : > { %v15425_v15 = vsub.f32 %v15271_v50, %v7607_v22 }
0x13db   : > { %7699 = vadd.xlane.f32.xlu1 %v7664_v27  ;;  %v7558_v33 = vpop.xlane.xlu0 %7557  ;;  %v15450_v43 = vsub.f32 %v15295_v11, %v7612_v49 }
0x13dc   : > { %v7609_v0 = vmul.f32 0.0078125, %v7558_v33  ;;  %v7671_v38 = vmul.f32 %v15425_v15, %v15425_v15 }
0x13dd   : > { %7701 = vadd.xlane.f32.xlu0 %v7665_v2 }
0x13de   : > { %v15435_v1 = vsub.f32 %v15281_v19, %v7609_v0 }
0x13df   : > { %7703 = vadd.xlane.f32.xlu1 %v7666_v30  ;;  %v7562_v9 = vpop.xlane.xlu0 %7561 }
0x13e0   : > { %v7611_v50 = vmul.f32 0.0078125, %v7562_v9  ;;  %v7673_v19 = vmul.f32 %v15435_v1, %v15435_v1 }
0x13e1   : > { %7705 = vadd.xlane.f32.xlu0 %v7667_v44 }
0x13e2   : > { %v15445_v54 = vsub.f32 %v15291_v10, %v7611_v50  ;;  %v7676_v10 = vmul.f32 %v15450_v43, %v15450_v43 }
0x13e3   : > { %7707 = vadd.xlane.f32.xlu1 %v7668_v23 }
0x13e4   : > { %v7675_v41 = vmul.f32 %v15445_v54, %v15445_v54 }
0x13e5   : > { %7709 = vadd.xlane.f32.xlu0 %v7669_v58 }
0x13e7   : > { %7711 = vadd.xlane.f32.xlu1 %v7670_v29 }
0x13e9   : > { %7713 = vadd.xlane.f32.xlu0 %v7671_v38 }
0x13eb   : > { %7715 = vadd.xlane.f32.xlu1 %v7672_v7 }
0x13ed   : > { %7717 = vadd.xlane.f32.xlu0 %v7673_v19 }
0x13ef   : > { %7719 = vadd.xlane.f32.xlu1 %v7674_v28 }
0x13f1   : > { %7721 = vadd.xlane.f32.xlu0 %v7675_v41 }
0x13f3   : > { %7723 = vadd.xlane.f32.xlu1 %v7676_v10 }
0x1406   : > { %v7566_v5 = vpop.xlane.xlu0 %7565 }
0x1407   : > { %v7613_v32 = vmul.f32 0.0078125, %v7566_v5 }
0x1408   : > { %v7568_v42 = vpop.xlane.xlu1 %7567 }
0x1409   : > { %v15459_v27 = vsub.f32 %v15301_v20, %v7613_v32  ;;  %v7614_v11 = vmul.f32 0.0078125, %v7568_v42 }
0x140b   : > { %v15462_v45 = vsub.f32 %v15305_v18, %v7614_v11  ;;  %v7677_v34 = vmul.f32 %v15459_v27, %v15459_v27 }
0x140d   : > { %7725 = vadd.xlane.f32.xlu0 %v7677_v34  ;;  %v7678_v2 = vmul.f32 %v15462_v45, %v15462_v45 }
0x140e   : > { %v7570_v8 = vpop.xlane.xlu0 %7569 }
0x140f   : > { %v7615_v47 = vmul.f32 0.0078125, %v7570_v8  ;;  %7727 = vadd.xlane.f32.xlu1 %v7678_v2 }
0x1410   : > { %v7572_v30 = vpop.xlane.xlu1 %7571 }
0x1411   : > { %v15469_v17 = vsub.f32 %v15311_v57, %v7615_v47  ;;  %v7616_v20 = vmul.f32 0.0078125, %v7572_v30 }
0x1413   : > { %v15472_v22 = vsub.f32 %v15315_v48, %v7616_v20  ;;  %v7679_v18 = vmul.f32 %v15469_v17, %v15469_v17 }
0x1415   : > { %7729 = vadd.xlane.f32.xlu0 %v7679_v18  ;;  %v7680_v44 = vmul.f32 %v15472_v22, %v15472_v22 }
0x1416   : > { %v7574_v33 = vpop.xlane.xlu0 %7573 }
0x1417   : > { %v7617_v25 = vmul.f32 0.0078125, %v7574_v33  ;;  %7731 = vadd.xlane.f32.xlu1 %v7680_v44 }
0x1418   : > { %v7576_v23 = vpop.xlane.xlu1 %7575 }
0x1419   : > { %v15479_v62 = vsub.f32 %v15321_v26, %v7617_v25  ;;  %v7618_v57 = vmul.f32 0.0078125, %v7576_v23 }
0x141b   : > { %v15482_v0 = vsub.f32 %v15325_v24, %v7618_v57  ;;  %v7681_v48 = vmul.f32 %v15479_v62, %v15479_v62 }
0x141d   : > { %7733 = vadd.xlane.f32.xlu0 %v7681_v48  ;;  %v7682_v58 = vmul.f32 %v15482_v0, %v15482_v0 }
0x141e   : > { %v7578_v9 = vpop.xlane.xlu0 %7577 }
0x141f   : > { %v7619_v39 = vmul.f32 0.0078125, %v7578_v9  ;;  %7735 = vadd.xlane.f32.xlu1 %v7682_v58 }
0x1420   : > { %v7580_v29 = vpop.xlane.xlu1 %7579 }
0x1421   : > { %v15489_v36 = vsub.f32 %v15331_v14, %v7619_v39  ;;  %v7620_v26 = vmul.f32 0.0078125, %v7580_v29 }
0x1423   : > { %v15492_v50 = vsub.f32 %v15335_v6, %v7620_v26  ;;  %v7683_v24 = vmul.f32 %v15489_v36, %v15489_v36 }
0x1425   : > { %7737 = vadd.xlane.f32.xlu0 %v7683_v24  ;;  %v7684_v38 = vmul.f32 %v15492_v50, %v15492_v50 }
0x1427   : > { %7739 = vadd.xlane.f32.xlu1 %v7684_v38 }
0x1446   : > { %v7582_v49 = vpop.xlane.xlu0 %7581 }
0x1447   : > { %v7621_v7 = vmul.f32 0.0078125, %v7582_v49 }
0x1448   : > { %v7584_v19 = vpop.xlane.xlu1 %7583 }
0x1449   : > { %v15499_v28 = vsub.f32 %v15341_v46, %v7621_v7  ;;  %v7622_v14 = vmul.f32 0.0078125, %v7584_v19 }
0x144b   : > { %v15502_v41 = vsub.f32 %v15345_v37, %v7622_v14  ;;  %v7685_v6 = vmul.f32 %v15499_v28, %v15499_v28 }
0x144d   : > { %7741 = vadd.xlane.f32.xlu0 %v7685_v6  ;;  %v7686_v10 = vmul.f32 %v15502_v41, %v15502_v41 }
0x144e   : > { %v7586_v5 = vpop.xlane.xlu0 %7585 }
0x144f   : > { %v7623_v32 = vmul.f32 0.0078125, %v7586_v5  ;;  %7743 = vadd.xlane.f32.xlu1 %v7686_v10 }
0x1450   : > { %v7588_v42 = vpop.xlane.xlu1 %7587 }
0x1451   : > { %v15509_v11 = vsub.f32 %v15351_v61, %v7623_v32  ;;  %v7624_v46 = vmul.f32 0.0078125, %v7588_v42 }
0x1453   : > { %v15512_v34 = vsub.f32 %v15355_v12, %v7624_v46  ;;  %v7687_v37 = vmul.f32 %v15509_v11, %v15509_v11 }
0x1455   : > { %7745 = vadd.xlane.f32.xlu0 %v7687_v37  ;;  %v7688_v2 = vmul.f32 %v15512_v34, %v15512_v34 }
0x1456   : > { %v7590_v8 = vpop.xlane.xlu0 %7589 }
0x1457   : > { %v7625_v47 = vmul.f32 0.0078125, %v7590_v8  ;;  %7747 = vadd.xlane.f32.xlu1 %v7688_v2 }
0x1458   : > { %v7592_v30 = vpop.xlane.xlu1 %7591 }
0x1459   : > { %v15519_v20 = vsub.f32 %v15361_v51, %v7625_v47  ;;  %v7626_v61 = vmul.f32 0.0078125, %v7592_v30  ;;  %v15543_v30 = vld [vmem:[%s893_s29] ss:$0 sm:$0xff]  ;;  %s16341_s29 = sld [smem:[#allocation35_spill]] }
0x145b   : > { %v15522_v18 = vsub.f32 %v15365_v35, %v7626_v61  ;;  %v7689_v12 = vmul.f32 %v15519_v20, %v15519_v20 }
0x145d   : > { %7749 = vadd.xlane.f32.xlu0 %v7689_v12  ;;  %v7690_v44 = vmul.f32 %v15522_v18, %v15522_v18 }
0x145e   : > { %v7594_v33 = vpop.xlane.xlu0 %7593 }
0x145f   : > { %v7627_v25 = vmul.f32 0.0078125, %v7594_v33  ;;  %7751 = vadd.xlane.f32.xlu1 %v7690_v44  ;;  %s8154_s16 = scalar_lea.sflag [#allocation5], %s16341_s29 }
0x1460   : > { %v7596_v23 = vpop.xlane.xlu1 %7595 }
0x1461   : > { %v15529_v57 = vsub.f32 %v15374_v63, %v7627_v25  ;;  %v7628_v51 = vmul.f32 0.0078125, %v7596_v23  ;;  %v15551_v23 = vld [vmem:[%s896_s3] ss:$0 sm:$0xff]  ;;  %s16342_s3 = sld [smem:[#allocation32_spill]] }
0x1462   : > { %v7694_v48 = vpop.xlane.xlu0 %7693 }
0x1463   : > { %v15532_v58 = vsub.f32 %v15381_v55, %v7628_v51  ;;  %v7757_v35 = vmul.f32 0.0078125, %v7694_v48  ;;  %v7691_v9 = vmul.f32 %v15529_v57, %v15529_v57 }
0x1464   : > { %v7696_v39 = vpop.xlane.xlu1 %7695 }
0x1465   : > { %v7789_v29 = vadd.f32 1e-05, %v7757_v35  ;;  %v7758_v26 = vmul.f32 0.0078125, %v7696_v39  ;;  %7753 = vadd.xlane.f32.xlu0 %v7691_v9  ;;  %v7692_v24 = vmul.f32 %v15532_v58, %v15532_v58 }
0x1466   : > { %v7698_v38 = vpop.xlane.xlu0 %7697 }
0x1467   : > { %10937 = vrsqrt.f32 %v7789_v29  ;;  %v7790_v63 = vadd.f32 1e-05, %v7758_v26  ;;  %v7759_v49 = vmul.f32 0.0078125, %v7698_v38  ;;  %7755 = vadd.xlane.f32.xlu1 %v7692_v24  ;;  %p16345_p0 = scmp.ne.s32.totalorder %s16342_s3, 0 }
0x1468   : > { %v7700_v7 = vpop.xlane.xlu1 %7699 }
0x1469   : > { %10939 = vrsqrt.f32 %v7790_v63  ;;  %v7791_v55 = vadd.f32 1e-05, %v7759_v49  ;;  %v7760_v19 = vmul.f32 0.0078125, %v7700_v7  ;;  %p11317_p7 = pnand %p11316_p6, %p16345_p0 }
0x146a   : > { %v7702_v14 = vpop.xlane.xlu0 %7701 }
0x146b   : > { %10941 = vrsqrt.f32 %v7791_v55  ;;  %v7792_v6 = vadd.f32 1e-05, %v7760_v19  ;;  %v7761_v10 = vmul.f32 0.0078125, %v7702_v14  ;;  %p11318_p3 = pneg %p11317_p7 }
0x146c   : > { %v7704_v5 = vpop.xlane.xlu1 %7703 }
0x146d   : > { %10943 = vrsqrt.f32 %v7792_v6  ;;  %v7793_v32 = vadd.f32 1e-05, %v7761_v10  ;;  %v7762_v42 = vmul.f32 0.0078125, %v7704_v5  ;;  %p11325_p8 = pnand %p11324_p11, %p11318_p3 }
0x146e   : > { %v7706_v46 = vpop.xlane.xlu0 %7705 }
0x146f   : > { %10945 = vrsqrt.f32 %v7793_v32  ;;  %v7794_v37 = vadd.f32 1e-05, %v7762_v42  ;;  %v7763_v2 = vmul.f32 0.0078125, %v7706_v46 }
0x1470   : > { %v7708_v8 = vpop.xlane.xlu1 %7707 }
0x1471   : > { %v10938_v47 = vpop.eup %10937  ;;  %10947 = vrsqrt.f32 %v7794_v37  ;;  %v7795_v61 = vadd.f32 1e-05, %v7763_v2  ;;  %v7764_v12 = vmul.f32 0.0078125, %v7708_v8 }
0x1472   : > { %v7853_v44 = vmul.f32 %v10938_v47, %v15370_v56  ;;  %v7710_v33 = vpop.xlane.xlu0 %7709 }
0x1473   : > { %v10940_v25 = vpop.eup %10939  ;;  %10949 = vrsqrt.f32 %v7795_v61  ;;  %v7796_v51 = vadd.f32 1e-05, %v7764_v12  ;;  %v7765_v48 = vmul.f32 0.0078125, %v7710_v33 }
0x1474   : > { %v7891_v35 = vmul.f32 %v15543_v30, %v7853_v44  ;;  %v7854_v9 = vmul.f32 %v10940_v25, %v15377_v4  ;;  %v7712_v39 = vpop.xlane.xlu1 %7711 }
0x1475   : > { %v10942_v29 = vpop.eup %10941  ;;  %10951 = vrsqrt.f32 %v7796_v51  ;;  %v7797_v26 = vadd.f32 1e-05, %v7765_v48  ;;  %v7766_v56 = vmul.f32 0.0078125, %v7712_v39 }
0x1476   : > { %v7929_v24 = vadd.f32 %v15551_v23, %v7891_v35  ;;  %v7892_v38 = vmul.f32 %v15543_v30, %v7854_v9  ;;  %v7855_v63 = vmul.f32 %v10942_v29, %v15384_v53  ;;  %v7714_v49 = vpop.xlane.xlu0 %7713 }
0x1477   : > { %v10944_v7 = vpop.eup %10943  ;;  %10953 = vrsqrt.f32 %v7797_v26  ;;  %v7798_v55 = vadd.f32 1e-05, %v7766_v56  ;;  %v7767_v19 = vmul.f32 0.0078125, %v7714_v49 }
0x1478   : > { %7961 = vst [vmem:[#allocation2] sm:$0xff] %v7929_v24  ;;  %v7930_v14 = vadd.f32 %v15551_v23, %v7892_v38  ;;  %v7893_v4 = vmul.f32 %v15543_v30, %v7855_v63  ;;  %v7856_v6 = vmul.f32 %v10944_v7, %v15390_v16  ;;  %v7716_v10 = vpop.xlane.xlu1 %7715 }
0x1479   : > { %v10946_v5 = vpop.eup %10945  ;;  %10955 = vrsqrt.f32 %v7798_v55  ;;  %v7799_v32 = vadd.f32 1e-05, %v7767_v19  ;;  %v7768_v42 = vmul.f32 0.0078125, %v7716_v10 }
0x147a   : > { %7962 = vst [vmem:[#allocation2 + $0x8] sm:$0xff] %v7930_v14  ;;  %v8755_v53 = vpack.c.bf16 %v7930_v14, %v7929_v24  ;;  %v7931_v46 = vadd.f32 %v15551_v23, %v7893_v4  ;;  %v7894_v37 = vmul.f32 %v15543_v30, %v7856_v6  ;;  %v7857_v2 = vmul.f32 %v10946_v5, %v15395_v40  ;;  %v7718_v8 = vpop.xlane.xlu0 %7717 }
0x147b   : > { %v10948_v47 = vpop.eup %10947  ;;  %10957 = vrsqrt.f32 %v7799_v32  ;;  %v7800_v61 = vadd.f32 1e-05, %v7768_v42  ;;  %v7769_v12 = vmul.f32 0.0078125, %v7718_v8 }
0x147c   : > { %8756 = vst [vmem:[%s11942_s20] sm:$0xff] %v8755_v53   ;;  %7963 = vst [vmem:[#allocation2 + $0x10] sm:$0xff] %v7931_v46  ;;  %v7932_v16 = vadd.f32 %v15551_v23, %v7894_v37  ;;  %v7895_v44 = vmul.f32 %v15543_v30, %v7857_v2  ;;  %v7858_v33 = vmul.f32 %v10948_v47, %v15400_v52  ;;  %v7720_v25 = vpop.xlane.xlu1 %7719 }
0x147d   : > { %v10950_v51 = vpop.eup %10949  ;;  %10959 = vrsqrt.f32 %v7800_v61  ;;  %v7801_v48 = vadd.f32 1e-05, %v7769_v12  ;;  %v7770_v35 = vmul.f32 0.0078125, %v7720_v25 }
0x147e   : > { %7964 = vst [vmem:[#allocation2 + $0x18] sm:$0xff] %v7932_v16  ;;  %v8760_v40 = vpack.c.bf16 %v7932_v16, %v7931_v46  ;;  %v7933_v9 = vadd.f32 %v15551_v23, %v7895_v44  ;;  %v7896_v39 = vmul.f32 %v15543_v30, %v7858_v33  ;;  %v7859_v29 = vmul.f32 %v10950_v51, %v15405_v3  ;;  %v7722_v26 = vpop.xlane.xlu0 %7721 }
0x147f   : > { %v10952_v56 = vpop.eup %10951  ;;  %10961 = vrsqrt.f32 %v7801_v48  ;;  %v7802_v24 = vadd.f32 1e-05, %v7770_v35  ;;  %v7771_v38 = vmul.f32 0.0078125, %v7722_v26 }
0x1480   : > { %8832 = vst [vmem:[%s11942_s20 + $0x8] sm:$0xff] %v8760_v40   ;;  %7965 = vst [vmem:[#allocation2 + $0x20] sm:$0xff] %v7933_v9  ;;  %v7934_v52 = vadd.f32 %v15551_v23, %v7896_v39  ;;  %v7897_v63 = vmul.f32 %v15543_v30, %v7859_v29  ;;  %v7860_v49 = vmul.f32 %v10952_v56, %v15410_v21  ;;  %v7724_v7 = vpop.xlane.xlu1 %7723 }
0x1481   : > { %v10954_v55 = vpop.eup %10953  ;;  %10963 = vrsqrt.f32 %v7802_v24  ;;  %v7803_v19 = vadd.f32 1e-05, %v7771_v38  ;;  %v7772_v14 = vmul.f32 0.0078125, %v7724_v7 }
0x1482   : > { %7966 = vst [vmem:[#allocation2 + $0x28] sm:$0xff] %v7934_v52  ;;  %v8765_v3 = vpack.c.bf16 %v7934_v52, %v7933_v9  ;;  %v7935_v4 = vadd.f32 %v15551_v23, %v7897_v63  ;;  %v7898_v6 = vmul.f32 %v15543_v30, %v7860_v49  ;;  %v7861_v10 = vmul.f32 %v10954_v55, %v15415_v31 }
0x1483   : > { %v10956_v5 = vpop.eup %10955  ;;  %10965 = vrsqrt.f32 %v7803_v19  ;;  %v7804_v32 = vadd.f32 1e-05, %v7772_v14 }
0x1484   : > { %8833 = vst [vmem:[%s11942_s20 + $0x10] sm:$0xff] %v8765_v3   ;;  %7967 = vst [vmem:[#allocation2 + $0x30] sm:$0xff] %v7935_v4  ;;  %v7936_v21 = vadd.f32 %v15551_v23, %v7898_v6  ;;  %v7899_v42 = vmul.f32 %v15543_v30, %v7861_v10  ;;  %v7862_v53 = vmul.f32 %v10956_v5, %v15420_v59 }
0x1485   : > { %v10958_v46 = vpop.eup %10957  ;;  %10967 = vrsqrt.f32 %v7804_v32 }
0x1486   : > { %7968 = vst [vmem:[#allocation2 + $0x38] sm:$0xff] %v7936_v21  ;;  %v8770_v37 = vpack.c.bf16 %v7936_v21, %v7935_v4  ;;  %v7937_v2 = vadd.f32 %v15551_v23, %v7899_v42  ;;  %v7900_v31 = vmul.f32 %v15543_v30, %v7862_v53  ;;  %v7863_v8 = vmul.f32 %v10958_v46, %v15425_v15 }
0x1487   : > { %v10960_v47 = vpop.eup %10959 }
0x1488   : > { %8834 = vst [vmem:[%s11942_s20 + $0x18] sm:$0xff] %v8770_v37   ;;  %7969 = vst [vmem:[#allocation2 + $0x40] sm:$0xff] %v7937_v2  ;;  %v7938_v61 = vadd.f32 %v15551_v23, %v7900_v31  ;;  %v7901_v12 = vmul.f32 %v15543_v30, %v7863_v8  ;;  %v7864_v59 = vmul.f32 %v10960_v47, %v15430_v60 }
0x1489   : > { %v10962_v16 = vpop.eup %10961 }
0x148a   : > { %7970 = vst [vmem:[#allocation2 + $0x48] sm:$0xff] %v7938_v61  ;;  %v8775_v44 = vpack.c.bf16 %v7938_v61, %v7937_v2  ;;  %v7939_v33 = vadd.f32 %v15551_v23, %v7901_v12  ;;  %v7902_v25 = vmul.f32 %v15543_v30, %v7864_v59  ;;  %v7865_v51 = vmul.f32 %v10962_v16, %v15435_v1 }
0x148b   : > { %v10964_v15 = vpop.eup %10963 }
0x148c   : > { %8835 = vst [vmem:[%s11942_s20 + $0x20] sm:$0xff] %v8775_v44   ;;  %7971 = vst [vmem:[#allocation2 + $0x50] sm:$0xff] %v7939_v33  ;;  %v7940_v48 = vadd.f32 %v15551_v23, %v7902_v25  ;;  %v7903_v35 = vmul.f32 %v15543_v30, %v7865_v51  ;;  %v7866_v40 = vmul.f32 %v10964_v15, %v15440_v13 }
0x148d   : > { %v10966_v60 = vpop.eup %10965 }
0x148e   : > { %7972 = vst [vmem:[#allocation2 + $0x58] sm:$0xff] %v7940_v48  ;;  %v8780_v9 = vpack.c.bf16 %v7940_v48, %v7939_v33  ;;  %v7941_v39 = vadd.f32 %v15551_v23, %v7903_v35  ;;  %v7904_v29 = vmul.f32 %v15543_v30, %v7866_v40  ;;  %v7867_v26 = vmul.f32 %v10966_v60, %v15445_v54 }
0x148f   : > { %v10968_v1 = vpop.eup %10967 }
0x1490   : > { %8836 = vst [vmem:[%s11942_s20 + $0x28] sm:$0xff] %v8780_v9   ;;  %7973 = vst [vmem:[#allocation2 + $0x60] sm:$0xff] %v7941_v39  ;;  %v7942_v56 = vadd.f32 %v15551_v23, %v7904_v29  ;;  %v7905_v24 = vmul.f32 %v15543_v30, %v7867_v26  ;;  %v7868_v13 = vmul.f32 %v10968_v1, %v15450_v43 }
0x1492   : > { %7974 = vst [vmem:[#allocation2 + $0x68] sm:$0xff] %v7942_v56  ;;  %v8785_v38 = vpack.c.bf16 %v7942_v56, %v7941_v39  ;;  %v7943_v52 = vadd.f32 %v15551_v23, %v7905_v24  ;;  %v7906_v63 = vmul.f32 %v15543_v30, %v7868_v13 }
0x1494   : > { %8837 = vst [vmem:[%s11942_s20 + $0x30] sm:$0xff] %v8785_v38   ;;  %7975 = vst [vmem:[#allocation2 + $0x70] sm:$0xff] %v7943_v52  ;;  %v7944_v54 = vadd.f32 %v15551_v23, %v7906_v63 }
0x1496   : > { %7976 = vst [vmem:[#allocation2 + $0x78] sm:$0xff] %v7944_v54  ;;  %v8790_v49 = vpack.c.bf16 %v7944_v54, %v7943_v52 }
0x1498   : > { %8838 = vst [vmem:[%s11942_s20 + $0x38] sm:$0xff] %v8790_v49  }
0x149a   : > { %v7726_v7 = vpop.xlane.xlu0 %7725 }
0x149b   : > { %v7773_v55 = vmul.f32 0.0078125, %v7726_v7 }
0x149c   : > { %v7728_v19 = vpop.xlane.xlu1 %7727 }
0x149d   : > { %v7805_v14 = vadd.f32 1e-05, %v7773_v55  ;;  %v7774_v3 = vmul.f32 0.0078125, %v7728_v19 }
0x149f   : > { %10969 = vrsqrt.f32 %v7805_v14  ;;  %v7806_v43 = vadd.f32 1e-05, %v7774_v3 }
0x14a1   : > { %10971 = vrsqrt.f32 %v7806_v43 }
0x14a2   : > { %v7730_v4 = vpop.xlane.xlu0 %7729 }
0x14a3   : > { %v7775_v6 = vmul.f32 0.0078125, %v7730_v4 }
0x14a4   : > { %v7732_v10 = vpop.xlane.xlu1 %7731 }
0x14a5   : > { %v7807_v5 = vadd.f32 1e-05, %v7775_v6  ;;  %v7776_v32 = vmul.f32 0.0078125, %v7732_v10 }
0x14a7   : > { %10973 = vrsqrt.f32 %v7807_v5  ;;  %v7808_v21 = vadd.f32 1e-05, %v7776_v32 }
0x14a9   : > { %v10970_v42 = vpop.eup %10969  ;;  %10975 = vrsqrt.f32 %v7808_v21 }
0x14aa   : > { %v7869_v53 = vmul.f32 %v10970_v42, %v15459_v27  ;;  %v7734_v46 = vpop.xlane.xlu0 %7733 }
0x14ab   : > { %v10972_v37 = vpop.eup %10971  ;;  %v7777_v2 = vmul.f32 0.0078125, %v7734_v46 }
0x14ac   : > { %v7907_v31 = vmul.f32 %v15543_v30, %v7869_v53  ;;  %v7870_v8 = vmul.f32 %v10972_v37, %v15462_v45  ;;  %v7736_v47 = vpop.xlane.xlu1 %7735 }
0x14ad   : > { %v7809_v61 = vadd.f32 1e-05, %v7777_v2  ;;  %v7778_v12 = vmul.f32 0.0078125, %v7736_v47 }
0x14ae   : > { %v7945_v59 = vadd.f32 %v15551_v23, %v7907_v31  ;;  %v7908_v16 = vmul.f32 %v15543_v30, %v7870_v8 }
0x14af   : > { %10977 = vrsqrt.f32 %v7809_v61  ;;  %v7810_v44 = vadd.f32 1e-05, %v7778_v12 }
0x14b0   : > { %7977 = vst [vmem:[#allocation2 + $0x80] sm:$0xff] %v7945_v59  ;;  %v7946_v27 = vadd.f32 %v15551_v23, %v7908_v16 }
0x14b1   : > { %v10974_v33 = vpop.eup %10973  ;;  %10979 = vrsqrt.f32 %v7810_v44 }
0x14b2   : > { %7978 = vst [vmem:[#allocation2 + $0x88] sm:$0xff] %v7946_v27  ;;  %v8795_v25 = vpack.c.bf16 %v7946_v27, %v7945_v59  ;;  %v7871_v51 = vmul.f32 %v10974_v33, %v15469_v17  ;;  %v7738_v45 = vpop.xlane.xlu0 %7737 }
0x14b3   : > { %v10976_v15 = vpop.eup %10975  ;;  %v7779_v48 = vmul.f32 0.0078125, %v7738_v45 }
0x14b4   : > { %8839 = vst [vmem:[%s11942_s20 + $0x40] sm:$0xff] %v8795_v25   ;;  %v7909_v35 = vmul.f32 %v15543_v30, %v7871_v51  ;;  %v7872_v40 = vmul.f32 %v10976_v15, %v15472_v22  ;;  %v7740_v60 = vpop.xlane.xlu1 %7739 }
0x14b5   : > { %v7811_v9 = vadd.f32 1e-05, %v7779_v48  ;;  %v7780_v39 = vmul.f32 0.0078125, %v7740_v60 }
0x14b6   : > { %v7947_v29 = vadd.f32 %v15551_v23, %v7909_v35  ;;  %v7910_v26 = vmul.f32 %v15543_v30, %v7872_v40 }
0x14b7   : > { %10981 = vrsqrt.f32 %v7811_v9  ;;  %v7812_v1 = vadd.f32 1e-05, %v7780_v39 }
0x14b8   : > { %7979 = vst [vmem:[#allocation2 + $0x90] sm:$0xff] %v7947_v29  ;;  %v7948_v17 = vadd.f32 %v15551_v23, %v7910_v26 }
0x14b9   : > { %v10978_v56 = vpop.eup %10977  ;;  %10983 = vrsqrt.f32 %v7812_v1 }
0x14ba   : > { %7980 = vst [vmem:[#allocation2 + $0x98] sm:$0xff] %v7948_v17  ;;  %v8800_v24 = vpack.c.bf16 %v7948_v17, %v7947_v29  ;;  %v7873_v22 = vmul.f32 %v10978_v56, %v15479_v62 }
0x14bb   : > { %v10980_v13 = vpop.eup %10979 }
0x14bc   : > { %8840 = vst [vmem:[%s11942_s20 + $0x48] sm:$0xff] %v8800_v24   ;;  %v7911_v38 = vmul.f32 %v15543_v30, %v7873_v22  ;;  %v7874_v52 = vmul.f32 %v10980_v13, %v15482_v0 }
0x14be   : > { %v7949_v63 = vadd.f32 %v15551_v23, %v7911_v38  ;;  %v7912_v54 = vmul.f32 %v15543_v30, %v7874_v52 }
0x14c0   : > { %7981 = vst [vmem:[#allocation2 + $0xa0] sm:$0xff] %v7949_v63  ;;  %v7950_v49 = vadd.f32 %v15551_v23, %v7912_v54 }
0x14c1   : > { %v10982_v7 = vpop.eup %10981 }
0x14c2   : > { %7982 = vst [vmem:[#allocation2 + $0xa8] sm:$0xff] %v7950_v49  ;;  %v8805_v55 = vpack.c.bf16 %v7950_v49, %v7949_v63  ;;  %v7875_v19 = vmul.f32 %v10982_v7, %v15489_v36 }
0x14c3   : > { %v10984_v62 = vpop.eup %10983 }
0x14c4   : > { %8841 = vst [vmem:[%s11942_s20 + $0x50] sm:$0xff] %v8805_v55   ;;  %v7913_v14 = vmul.f32 %v15543_v30, %v7875_v19  ;;  %v7876_v3 = vmul.f32 %v10984_v62, %v15492_v50 }
0x14c6   : > { %v7951_v0 = vadd.f32 %v15551_v23, %v7913_v14  ;;  %v7914_v43 = vmul.f32 %v15543_v30, %v7876_v3 }
0x14c8   : > { %7983 = vst [vmem:[#allocation2 + $0xb0] sm:$0xff] %v7951_v0  ;;  %v7952_v4 = vadd.f32 %v15551_v23, %v7914_v43 }
0x14ca   : > { %7984 = vst [vmem:[#allocation2 + $0xb8] sm:$0xff] %v7952_v4  ;;  %v8810_v6 = vpack.c.bf16 %v7952_v4, %v7951_v0 }
0x14cc   : > { %8842 = vst [vmem:[%s11942_s20 + $0x58] sm:$0xff] %v8810_v6  }
0x14da   : > { %v7742_v10 = vpop.xlane.xlu0 %7741 }
0x14db   : > { %v7781_v5 = vmul.f32 0.0078125, %v7742_v10 }
0x14dc   : > { %v7744_v32 = vpop.xlane.xlu1 %7743 }
0x14dd   : > { %v7813_v36 = vadd.f32 1e-05, %v7781_v5  ;;  %v7782_v21 = vmul.f32 0.0078125, %v7744_v32 }
0x14df   : > { %10985 = vrsqrt.f32 %v7813_v36  ;;  %v7814_v42 = vadd.f32 1e-05, %v7782_v21 }
0x14e1   : > { %10987 = vrsqrt.f32 %v7814_v42 }
0x14e2   : > { %v7746_v53 = vpop.xlane.xlu0 %7745 }
0x14e3   : > { %v7783_v50 = vmul.f32 0.0078125, %v7746_v53 }
0x14e4   : > { %v7748_v46 = vpop.xlane.xlu1 %7747 }
0x14e5   : > { %v7815_v37 = vadd.f32 1e-05, %v7783_v50  ;;  %v7784_v2 = vmul.f32 0.0078125, %v7748_v46 }
0x14e7   : > { %10989 = vrsqrt.f32 %v7815_v37  ;;  %v7816_v31 = vadd.f32 1e-05, %v7784_v2 }
0x14e9   : > { %v10986_v8 = vpop.eup %10985  ;;  %10991 = vrsqrt.f32 %v7816_v31 }
0x14ea   : > { %v7877_v47 = vmul.f32 %v10986_v8, %v15499_v28  ;;  %v7750_v61 = vpop.xlane.xlu0 %7749 }
0x14eb   : > { %v10988_v12 = vpop.eup %10987  ;;  %v7785_v59 = vmul.f32 0.0078125, %v7750_v61 }
0x14ec   : > { %v7915_v16 = vmul.f32 %v15543_v30, %v7877_v47  ;;  %v7878_v44 = vmul.f32 %v10988_v12, %v15502_v41  ;;  %v7752_v27 = vpop.xlane.xlu1 %7751 }
0x14ed   : > { %v7817_v33 = vadd.f32 1e-05, %v7785_v59  ;;  %v7786_v25 = vmul.f32 0.0078125, %v7752_v27 }
0x14ee   : > { %v7953_v51 = vadd.f32 %v15551_v23, %v7915_v16  ;;  %v7916_v45 = vmul.f32 %v15543_v30, %v7878_v44 }
0x14ef   : > { %10993 = vrsqrt.f32 %v7817_v33  ;;  %v7818_v15 = vadd.f32 1e-05, %v7786_v25 }
0x14f0   : > { %7985 = vst [vmem:[#allocation2 + $0xc0] sm:$0xff] %v7953_v51  ;;  %v7954_v28 = vadd.f32 %v15551_v23, %v7916_v45 }
0x14f1   : > { %v10990_v48 = vpop.eup %10989  ;;  %10995 = vrsqrt.f32 %v7818_v15 }
0x14f2   : > { %7986 = vst [vmem:[#allocation2 + $0xc8] sm:$0xff] %v7954_v28  ;;  %v8815_v35 = vpack.c.bf16 %v7954_v28, %v7953_v51  ;;  %v7879_v40 = vmul.f32 %v10990_v48, %v15509_v11  ;;  %v7754_v41 = vpop.xlane.xlu0 %7753 }
0x14f3   : > { %v10992_v60 = vpop.eup %10991  ;;  %v7787_v9 = vmul.f32 0.0078125, %v7754_v41 }
0x14f4   : > { %8843 = vst [vmem:[%s11942_s20 + $0x60] sm:$0xff] %v8815_v35   ;;  %v7917_v39 = vmul.f32 %v15543_v30, %v7879_v40  ;;  %v7880_v29 = vmul.f32 %v10992_v60, %v15512_v34  ;;  %v7756_v26 = vpop.xlane.xlu1 %7755 }
0x14f5   : > { %v7819_v1 = vadd.f32 1e-05, %v7787_v9  ;;  %v7788_v17 = vmul.f32 0.0078125, %v7756_v26 }
0x14f6   : > { %v7955_v56 = vadd.f32 %v15551_v23, %v7917_v39  ;;  %v7918_v24 = vmul.f32 %v15543_v30, %v7880_v29 }
0x14f7   : > { %10997 = vrsqrt.f32 %v7819_v1  ;;  %v7820_v22 = vadd.f32 1e-05, %v7788_v17 }
0x14f8   : > { %7987 = vst [vmem:[#allocation2 + $0xd0] sm:$0xff] %v7955_v56  ;;  %v7956_v11 = vadd.f32 %v15551_v23, %v7918_v24 }
0x14f9   : > { %v10994_v13 = vpop.eup %10993  ;;  %10999 = vrsqrt.f32 %v7820_v22 }
0x14fa   : > { %7988 = vst [vmem:[#allocation2 + $0xd8] sm:$0xff] %v7956_v11  ;;  %v8820_v38 = vpack.c.bf16 %v7956_v11, %v7955_v56  ;;  %v7881_v34 = vmul.f32 %v10994_v13, %v15519_v20 }
0x14fb   : > { %v10996_v52 = vpop.eup %10995 }
0x14fc   : > { %8844 = vst [vmem:[%s11942_s20 + $0x68] sm:$0xff] %v8820_v38   ;;  %v7919_v63 = vmul.f32 %v15543_v30, %v7881_v34  ;;  %v7882_v54 = vmul.f32 %v10996_v52, %v15522_v18 }
0x14fe   : > { %v7957_v49 = vadd.f32 %v15551_v23, %v7919_v63  ;;  %v7920_v7 = vmul.f32 %v15543_v30, %v7882_v54 }
0x1500   : > { %7989 = vst [vmem:[#allocation2 + $0xe0] sm:$0xff] %v7957_v49  ;;  %v7958_v55 = vadd.f32 %v15551_v23, %v7920_v7 }
0x1501   : > { %v10998_v19 = vpop.eup %10997 }
0x1502   : > { %7990 = vst [vmem:[#allocation2 + $0xe8] sm:$0xff] %v7958_v55  ;;  %v8825_v62 = vpack.c.bf16 %v7958_v55, %v7957_v49  ;;  %v7883_v20 = vmul.f32 %v10998_v19, %v15529_v57 }
0x1503   : > { %v11000_v14 = vpop.eup %10999 }
0x1504   : > { %8845 = vst [vmem:[%s11942_s20 + $0x70] sm:$0xff] %v8825_v62   ;;  %v7921_v3 = vmul.f32 %v15543_v30, %v7883_v20  ;;  %v7884_v18 = vmul.f32 %v11000_v14, %v15532_v58 }
0x1506   : > { %v7959_v0 = vadd.f32 %v15551_v23, %v7921_v3  ;;  %v7922_v43 = vmul.f32 %v15543_v30, %v7884_v18 }
0x1508   : > { %7991 = vst [vmem:[#allocation2 + $0xf0] sm:$0xff] %v7959_v0  ;;  %v7960_v4 = vadd.f32 %v15551_v23, %v7922_v43 }
0x150a   : > { %7992 = vst [vmem:[#allocation2 + $0xf8] sm:$0xff] %v7960_v4  ;;  %v8830_v57 = vpack.c.bf16 %v7960_v4, %v7959_v0 }
0x150c   : > { %8846 = vst [vmem:[%s11942_s20 + $0x78] sm:$0xff] %v8830_v57  }
0x150d   : > { %11328 = shalt.err (!%p11325_p8)
}
0x150e   : > { %s11329_s20 = scalar_lea.hbm %s15668_s26, 2048  ;;  %s11333_s9 = scalar_lea.hbm %s16344_s7, 4096 }
0x150f   : > { %p11330_p2 = scmp.ne.s32.totalorder %s15668_s26, %s11329_s20  ;;  %p11334_p5 = scmp.lt.u32.totalorder %s15668_s26, %s16344_s7 }
0x1510   : > { %p11335_p12 = scmp.lt.u32.totalorder %s11333_s9, %s11329_s20  ;;  %p11337_p6 = scmp.lt.u32.totalorder %s11329_s20, %s15668_s26 }
0x1511   : > { %p11331_p4 = pnand %p11330_p2, %p16345_p0 }
0x1512   : > { %p11336_p1 = por %p11335_p12, %p11334_p5 }
0x1513   : > { %p11332_p13 = pneg %p11331_p4 }
0x1514   : > { %p11338_p7 = por %p11337_p6, %p11336_p1 }
0x1516   : > { %p11339_p3 = pnand %p11338_p7, %p11332_p13 }
0x1518   : > { %11342 = shalt.err (!%p11339_p3)
}
0x1519   : > { %s11416_s11 = smov 4  }
0x151a   : > { %10197 = dma.vmem_to_hbm [thread:$0]  (%p16345_p0), %s15670_s5, 2048, %s15668_s26, %s8154_s16, %s11413_s4, %s11413_s4, %s11416_s11  }
0x151b PF: > { %s16346_s30 = sld [smem:[#allocation24_spill]]  ;;  %s16347_s21 = sld [smem:[#allocation33_spill]] }
0x151c   : > { %s16348_s13 = sld [smem:[#allocation27_spill]] }
0x1521   : > { %s8182_s14 = sand.u32 1, %s16346_s30   ;;  %p16349_p9 = scmp.ne.s32.totalorder %s16347_s21, 0 }
0x1522   : > { %p16350_p10 = scmp.ge.s32.totalorder %s16348_s13, 2  ;;  %s8183_s1 = scalar_lea.sflag [#allocation5], %s8182_s14 }
0x1524   : > { %p10226_p11 = pnand %p16350_p10, %p16349_p9 }
0x1526   : > { %11380 = dma.done.wait (!%p10226_p11), %s8183_s1, 2048  }
0x1527   : > { %11382 = vsyncadd (!%p10226_p11), %s8183_s1, 4294965248  ;;  %s16351_s27 = sld [smem:[#allocation29_spill]]  ;;  %s16352_s24 = sld [smem:[#allocation25_spill]] }
0x1528   : > { %s16353_s25 = sld [smem:[#allocation26_spill]]  ;;  %s16354_s26 = sld [smem:[#allocation30_spill]] }
0x152d   : > { %p38_p8 = scmp.ge.s32.totalorder %s16351_s27, 4  }
0x152f   :  { %40 = sbr.rel (!%p38_p8) target bundleno = 30 (0x1e), region = 225 }
0x1536   :  { %8188 = vsyncpa [#allocation4], 1 }
0x1537   :  { %8190 = vsyncpa [#allocation4 + $0x1], 1 }
0x1538   :  { %8191 = vsyncpa [#allocation7], 1 }
0x1539   :  { %8192 = vsyncpa [#allocation10], 1 }
0x153a   :  { %8194 = vsyncpa [#allocation10 + $0x1], 1 }
0x153b   :  { %8195 = vsyncpa [#allocation13], 1 }
0x153c   :  { %8197 = vsyncpa [#allocation13 + $0x1], 1 }
0x153d   :  { %8198 = vsyncpa [#allocation16], 1 }
0x153e   :  { %8200 = vsyncpa [#allocation16 + $0x1], 1 }
0x153f   :  { %8201 = vsyncpa [#allocation5], 1 }
0x1540   :  { %8203 = vsyncpa [#allocation5 + $0x1], 1 }

</bundles_post_ra>
